<compile_context>
chip_gen: v5e
topology: v5e:2x2
jax: 0.10.0
libtpu: 0.0.40
codegen_flags: <defaults>
</compile_context>

<pallas_src>
import functools

import jax
import jax.numpy as jnp
from jax.experimental import pallas as pl
from jax.experimental.pallas import tpu as pltpu


# ---------------------------------------------------------------------------
# Tiling / VMEM helpers
# ---------------------------------------------------------------------------
def _pick_tile(n, target):
    """Largest tile that evenly divides n, is <= target and a multiple of 8
    (falls back to the full dimension, which is always a legal block)."""
    if n <= target:
        return n
    start = target - (target % 8)
    for t in range(start, 7, -8):
        if n % t == 0:
            return t
    return n


def _vmem_limit(nbytes):
    """Computed footprint with headroom, clamped to a budget that is safe on
    v5e (16 MiB default scoped), v6e (32 MiB default) and v7x (64 MiB physical)."""
    return int(min(max(2 * nbytes, 16 * 1024 * 1024), 48 * 1024 * 1024))


# ---------------------------------------------------------------------------
# Pallas kernel: flash-style multi-head attention
# ---------------------------------------------------------------------------
def _flash_mha_kernel(q_ref, k_ref, v_ref, o_ref, m_sc, l_sc, acc_sc, *,
                      heads, dim_head):
    # Blocks: q/o (1, tq, H*D)  k/v (1, tk, H*D)   (lane-dense, heads packed in lanes)
    # Scratch: m/l (H, tq, 1) f32, acc (H, tq, D) f32 -- online softmax state,
    # resident across the Nk grid axis (last, "arbitrary").
    ki = pl.program_id(2)
    H, D = heads, dim_head
    tq = q_ref.shape[1]
    tk = k_ref.shape[1]

    @pl.when(ki == 0)
    def _():
        m_sc[...] = jnp.full(m_sc.shape, -jnp.inf, dtype=m_sc.dtype)
        l_sc[...] = jnp.zeros(l_sc.shape, dtype=l_sc.dtype)
        acc_sc[...] = jnp.zeros(acc_sc.shape, dtype=acc_sc.dtype)

    # Lane-dense loads; split heads in-kernel (one relayout per tile).
    q = jnp.transpose(q_ref[0].reshape(tq, H, D), (1, 0, 2))   # (H, tq, D) pre-scaled
    k = jnp.transpose(k_ref[0].reshape(tk, H, D), (1, 0, 2))   # (H, tk, D)
    v = jnp.transpose(v_ref[0].reshape(tk, H, D), (1, 0, 2))   # (H, tk, D)

    # QK^T on the MXU in the operand dtype (bf16 fast path), f32 accumulate.
    s = jnp.einsum("hqd,hkd->hqk", q, k, preferred_element_type=jnp.float32)

    # f32 online softmax (VPU/EUP math stays f32 on every generation).
    m_prev = m_sc[...]
    m_new = jnp.maximum(m_prev, jnp.max(s, axis=-1, keepdims=True))
    alpha = jnp.exp(m_prev - m_new)
    p = jnp.exp(s - m_new)
    l_sc[...] = alpha * l_sc[...] + jnp.sum(p, axis=-1, keepdims=True)

    pv = jnp.einsum("hqk,hkd->hqd", p.astype(v.dtype), v,
                    preferred_element_type=jnp.float32)
    acc_sc[...] = alpha * acc_sc[...] + pv
    m_sc[...] = m_new

    @pl.when(ki == pl.num_programs(2) - 1)
    def _():
        inv_l = pl.reciprocal(l_sc[...], approx=True)           # EUP slot, ~free
        o = acc_sc[...] * inv_l                                  # (H, tq, D) f32
        o = jnp.transpose(o, (1, 0, 2)).reshape(tq, H * D)       # merge heads: lane-dense
        o_ref[0] = o.astype(o_ref.dtype)


def _mha_pallas(q, k, v, *, heads, dim_head, q_tile=128, k_tile=256):
    """q: (B, Nq, H*D) with 1/sqrt(D) already folded in; k/v: (B, Nk, H*D)."""
    B, Nq, HD = q.shape
    Nk = k.shape[1]
    H, D = heads, dim_head
    assert HD == H * D
    tq = _pick_tile(Nq, q_tile)     # 128-ish q tiles (v7x-safe)
    tk = _pick_tile(Nk, k_tile)     # 256-ish kv tiles

    q_spec = pl.BlockSpec((1, tq, HD), lambda b, qi, ki: (b, qi, 0))
    kv_spec = pl.BlockSpec((1, tk, HD), lambda b, qi, ki: (b, ki, 0))

    itm = q.dtype.itemsize
    # double-buffered q/k/v/o tiles + lane-padded f32 online-softmax scratch
    block_bytes = 2 * (2 * tq * HD + 2 * tk * HD) * itm
    scratch_bytes = H * tq * (2 * 128 + max(D, 128)) * 4
    cost = pl.CostEstimate(
        flops=4 * B * H * Nq * Nk * D,
        transcendentals=B * H * Nq * Nk,
        bytes_accessed=(2 * Nq + 2 * Nk) * B * HD * itm,
    )

    return pl.pallas_call(
        functools.partial(_flash_mha_kernel, heads=H, dim_head=D),
        out_shape=jax.ShapeDtypeStruct((B, Nq, HD), q.dtype),
        grid_spec=pltpu.PrefetchScalarGridSpec(
            num_scalar_prefetch=0,
            grid=(B, Nq // tq, Nk // tk),
            in_specs=[q_spec, kv_spec, kv_spec],
            out_specs=q_spec,
            scratch_shapes=[
                pltpu.VMEM((H, tq, 1), jnp.float32),   # running max
                pltpu.VMEM((H, tq, 1), jnp.float32),   # running sum
                pltpu.VMEM((H, tq, D), jnp.float32),   # output accumulator
            ],
        ),
        compiler_params=pltpu.CompilerParams(
            dimension_semantics=("parallel", "parallel", "arbitrary"),
            vmem_limit_bytes=_vmem_limit(block_bytes + scratch_bytes),
        ),
        cost_estimate=cost,
    )(q, k, v)


# ---------------------------------------------------------------------------
# Pallas kernel: row-tiled LayerNorm over the channel axis
# ---------------------------------------------------------------------------
def _layernorm_kernel(x_ref, g_ref, b_ref, o_ref, *, eps):
    x = x_ref[...].astype(jnp.float32)                 # (tr, C)
    mean = jnp.mean(x, axis=-1, keepdims=True)
    xc = x - mean
    var = jnp.mean(xc * xc, axis=-1, keepdims=True)
    y = xc * jax.lax.rsqrt(var + eps)
    o_ref[...] = (y * g_ref[...] + b_ref[...]).astype(o_ref.dtype)


def _layer_norm_pallas(x, gamma, beta, eps=1e-5, row_tile=512):
    B, N, C = x.shape
    R = B * N
    tr = _pick_tile(R, row_tile)
    x2 = x.reshape(R, C)
    itm = x.dtype.itemsize
    block_bytes = 2 * 2 * tr * C * itm + 2 * 2 * C * 4   # in/out double-buffered + params
    out = pl.pallas_call(
        functools.partial(_layernorm_kernel, eps=eps),
        out_shape=jax.ShapeDtypeStruct((R, C), x.dtype),
        grid_spec=pltpu.PrefetchScalarGridSpec(
            num_scalar_prefetch=0,
            grid=(R // tr,),
            in_specs=[pl.BlockSpec((tr, C), lambda i: (i, 0)),
                      pl.BlockSpec((1, C), lambda i: (0, 0)),
                      pl.BlockSpec((1, C), lambda i: (0, 0))],
            out_specs=pl.BlockSpec((tr, C), lambda i: (i, 0)),
        ),
        compiler_params=pltpu.CompilerParams(
            dimension_semantics=("parallel",),
            vmem_limit_bytes=_vmem_limit(block_bytes),
        ),
    )(x2, gamma.reshape(1, C), beta.reshape(1, C))
    return out.reshape(B, N, C)


def _layer_norm_ref(x, gamma, beta, eps=1e-5):
    m = x.mean(-1, keepdims=True)
    v = x.var(-1, keepdims=True)
    return (x - m) / jnp.sqrt(v + eps) * gamma + beta


# ---------------------------------------------------------------------------
# CrossAttention (lane-dense q/k/v, all head handling inside the Pallas kernel)
# ---------------------------------------------------------------------------
def _cross_attention_pallas(p, x, context, heads, dim_head, mxu_dtype=jnp.bfloat16):
    ctx = x if context is None else context
    H, D = heads, dim_head
    scale = float(D) ** -0.5
    q = x @ p["to_q"].T            # (B, Nq, H*D)  lane-dense, no head transpose copies
    k = ctx @ p["to_k"].T          # (B, Nk, H*D)
    v = ctx @ p["to_v"].T
    # Fold 1/sqrt(D) into q in f32 *before* the MXU-dtype cast (single rounding).
    q = (q * scale).astype(mxu_dtype)
    k = k.astype(mxu_dtype)
    v = v.astype(mxu_dtype)
    o = _mha_pallas(q, k, v, heads=H, dim_head=D)        # (B, Nq, H*D)
    return o @ p["to_out_w"].T + p["to_out_b"]


def _cross_attention_ref(p, x, context, heads, dim_head):
    ctx = x if context is None else context
    q = x @ p["to_q"].T
    k = ctx @ p["to_k"].T
    v = ctx @ p["to_v"].T
    B, N, _ = q.shape

    def split_heads(t):
        b, n, _ = t.shape
        return jnp.transpose(t.reshape(b, n, heads, dim_head), (0, 2, 1, 3))

    qh, kh, vh = split_heads(q), split_heads(k), split_heads(v)
    sim = jnp.einsum("bhid,bhjd->bhij", qh, kh) * (float(dim_head) ** -0.5)
    attn = jax.nn.softmax(sim, axis=-1)
    o = jnp.einsum("bhij,bhjd->bhid", attn, vh)
    o = jnp.transpose(o, (0, 2, 1, 3)).reshape(B, N, heads * dim_head)
    return o @ p["to_out_w"].T + p["to_out_b"]


# ---------------------------------------------------------------------------
# Remaining module pieces (plain XLA dense ops)
# ---------------------------------------------------------------------------
def _group_norm(x, gamma, beta, *, num_groups=32, eps=1e-6):
    B, C, H, W = x.shape
    g = x.reshape(B, num_groups, C // num_groups, H, W)
    mean = g.mean(axis=(2, 3, 4), keepdims=True)
    var = g.var(axis=(2, 3, 4), keepdims=True)
    g = (g - mean) / jnp.sqrt(var + eps)
    x = g.reshape(B, C, H, W)
    return x * gamma[None, :, None, None] + beta[None, :, None, None]


def _feed_forward(p, x):
    # FeedForward(glu=True) == GEGLU then Linear; dropout=0 -> identity.
    h = x @ p["w1"].T + p["b1"]
    a, gate = jnp.split(h, 2, axis=-1)
    h = a * jax.nn.gelu(gate, approximate=False)
    return h @ p["w2"].T + p["b2"]


def _transformer_block(p, x, context, *, n_heads, d_head, use_pallas, mxu_dtype):
    if use_pallas:
        ln = _layer_norm_pallas
        attn = functools.partial(_cross_attention_pallas, mxu_dtype=mxu_dtype)
    else:
        ln = _layer_norm_ref
        attn = _cross_attention_ref
    # TODO(synk): fuse the pre-attention LayerNorm (and residual add) into the
    # attention call's q-path to save one HBM round trip of the activation.
    x = attn(p["attn1"], ln(x, p["ln1_g"], p["ln1_b"]), None, n_heads, d_head) + x
    x = attn(p["attn2"], ln(x, p["ln2_g"], p["ln2_b"]), context, n_heads, d_head) + x
    x = _feed_forward(p["ff"], ln(x, p["ln3_g"], p["ln3_b"])) + x
    return x


def spatial_transformer_forward(params, x, context=None, *, n_heads, d_head,
                                use_pallas=True, mxu_dtype=jnp.bfloat16):
    b, c, l1, l2 = x.shape
    x_in = x
    h = _group_norm(x, params["norm_g"], params["norm_b"], num_groups=32, eps=1e-6)
    # proj_in: 1x1 conv == per-pixel linear over channels.
    h = jnp.einsum("bchw,oc->bohw", h, params["proj_in_w"]) \
        + params["proj_in_b"][None, :, None, None]
    inner = params["proj_in_w"].shape[0]
    assert inner == n_heads * d_head
    # b c h w -> b (h w) c
    h = jnp.transpose(h, (0, 2, 3, 1)).reshape(b, l1 * l2, inner)
    for blk in params["blocks"]:
        h = _transformer_block(blk, h, context, n_heads=n_heads, d_head=d_head,
                               use_pallas=use_pallas, mxu_dtype=mxu_dtype)
    # b (h w) c -> b c h w
    h = jnp.transpose(h.reshape(b, l1, l2, inner), (0, 3, 1, 2))
    # proj_out: 1x1 conv. PyTorch zero-inits it (zero_module); forward math is
    # identical for any weights — the self-test uses random weights so the check is real.
    h = jnp.einsum("bihw,oi->bohw", h, params["proj_out_w"]) \
        + params["proj_out_b"][None, :, None, None]
    return h + x_in


# ---------------------------------------------------------------------------
# Parameter construction (deterministic, for the self-test)
# ---------------------------------------------------------------------------
def init_params(key, in_channels, n_heads, d_head, depth, context_dim):
    inner = n_heads * d_head
    keys = iter(jax.random.split(key, 64))

    def w(shape, scale=0.05):
        return jax.random.normal(next(keys), shape, jnp.float32) * scale

    params = {
        "norm_g": jnp.ones((in_channels,), jnp.float32),
        "norm_b": jnp.zeros((in_channels,), jnp.float32),
        "proj_in_w": w((inner, in_channels)),
        "proj_in_b": w((inner,), 0.01),
        "proj_out_w": w((in_channels, inner)),   # zero in PyTorch init; random for the test
        "proj_out_b": w((in_channels,), 0.01),
        "blocks": [],
    }
    for _ in range(depth):
        blk = {
            "ln1_g": 1.0 + w((inner,)), "ln1_b": w((inner,)),
            "ln2_g": 1.0 + w((inner,)), "ln2_b": w((inner,)),
            "ln3_g": 1.0 + w((inner,)), "ln3_b": w((inner,)),
            "attn1": {
                "to_q": w((inner, inner)), "to_k": w((inner, inner)),
                "to_v": w((inner, inner)),
                "to_out_w": w((inner, inner)), "to_out_b": w((inner,), 0.01),
            },
            "attn2": {
                "to_q": w((inner, inner)),
                "to_k": w((inner, context_dim)),
                "to_v": w((inner, context_dim)),
                "to_out_w": w((inner, inner)), "to_out_b": w((inner,), 0.01),
            },
            "ff": {
                "w1": w((inner * 4 * 2, inner)), "b1": w((inner * 4 * 2,), 0.01),
                "w2": w((inner, inner * 4)), "b2": w((inner,), 0.01),
            },
        }
        params["blocks"].append(blk)
    return params


if __name__ == "__main__":
    in_channels = 64          # must be divisible by 32 (GroupNorm groups)
    n_heads = 2
    d_head = 32
    depth = 1
    context_dim = 48
    B, L1, L2 = 2, 8, 8       # spatial -> sequence length 64
    ctx_len = 16

    key = jax.random.PRNGKey(0)
    kx, kc, kp = jax.random.split(key, 3)
    x = jax.random.normal(kx, (B, in_channels, L1, L2), jnp.float32)
    context = jax.random.normal(kc, (B, ctx_len, context_dim), jnp.float32)
    params = init_params(kp, in_channels, n_heads, d_head, depth, context_dim)

    fwd_pallas = jax.jit(functools.partial(
        spatial_transformer_forward, n_heads=n_heads, d_head=d_head, use_pallas=True))
    fwd_ref = jax.jit(functools.partial(
        spatial_transformer_forward, n_heads=n_heads, d_head=d_head, use_pallas=False))

    out = jax.block_until_ready(fwd_pallas(params, x, context))
    ref = jax.block_until_ready(fwd_ref(params, x, context))

    assert out.shape == x.shape
    # Tolerance covers the bf16 MXU operands + approx (EUP) softmax reciprocal;
    # everything outside the two matmul operand pairs stays in f32.
    assert jnp.allclose(out, ref, atol=2e-2, rtol=2e-2), \
        float(jnp.max(jnp.abs(out - ref)))

    print("KERNEL_OK")
</pallas_src>

<mosaic_0001>
module attributes {stable_mosaic.version = 11 : i64} {
  func.func @_layernorm_kernel(%arg0: i32, %arg1: memref<128x64xf32, #tpu.memory_space<vmem>>, %arg2: memref<1x64xf32, #tpu.memory_space<vmem>>, %arg3: memref<1x64xf32, #tpu.memory_space<vmem>>, %arg4: memref<128x64xf32, #tpu.memory_space<vmem>>) attributes {dimension_semantics = [#tpu.dimension_semantics<parallel>], iteration_bounds = array<i64: 1>, scalar_prefetch = 0 : i64, scratch_operands = 0 : i64, tpu.core_type = #tpu.core_type<tc>, window_params = [{transform_indices = @transform_0, window_bounds = array<i64: 128, 64>}, {pipeline_mode = #tpu.pipeline_mode<synchronous>, transform_indices = @transform_1, window_bounds = array<i64: 1, 64>}, {pipeline_mode = #tpu.pipeline_mode<synchronous>, transform_indices = @transform_2, window_bounds = array<i64: 1, 64>}, {transform_indices = @transform_3, window_bounds = array<i64: 128, 64>}]} {
    %c0 = arith.constant 0 : index
    %c0_0 = arith.constant 0 : index
    %0 = vector.load %arg1[%c0, %c0_0] : memref<128x64xf32, #tpu.memory_space<vmem>>, vector<128x64xf32>
    %cst = arith.constant dense<0.000000e+00> : vector<128xf32>
    %1 = vector.multi_reduction <add>, %0, %cst [1] : vector<128x64xf32> to vector<128xf32>
    %2 = vector.shape_cast %1 : vector<128xf32> to vector<128x1xf32>
    %cst_1 = arith.constant 6.400000e+01 : f32
    %3 = vector.broadcast %cst_1 : f32 to vector<128x1xf32>
    %4 = arith.divf %2, %3 : vector<128x1xf32>
    %5 = vector.broadcast %4 : vector<128x1xf32> to vector<128x64xf32>
    %6 = arith.subf %0, %5 : vector<128x64xf32>
    %7 = arith.mulf %6, %6 : vector<128x64xf32>
    %cst_2 = arith.constant dense<0.000000e+00> : vector<128xf32>
    %8 = vector.multi_reduction <add>, %7, %cst_2 [1] : vector<128x64xf32> to vector<128xf32>
    %9 = vector.shape_cast %8 : vector<128xf32> to vector<128x1xf32>
    %cst_3 = arith.constant 6.400000e+01 : f32
    %10 = vector.broadcast %cst_3 : f32 to vector<128x1xf32>
    %11 = arith.divf %9, %10 : vector<128x1xf32>
    %cst_4 = arith.constant 9.99999974E-6 : f32
    %12 = vector.broadcast %cst_4 : f32 to vector<128x1xf32>
    %13 = arith.addf %11, %12 : vector<128x1xf32>
    %14 = math.rsqrt %13 : vector<128x1xf32>
    %15 = vector.broadcast %14 : vector<128x1xf32> to vector<128x64xf32>
    %16 = arith.mulf %6, %15 : vector<128x64xf32>
    %c0_5 = arith.constant 0 : index
    %c0_6 = arith.constant 0 : index
    %17 = vector.load %arg2[%c0_5, %c0_6] : memref<1x64xf32, #tpu.memory_space<vmem>>, vector<1x64xf32>
    %18 = vector.broadcast %17 : vector<1x64xf32> to vector<128x64xf32>
    %19 = arith.mulf %16, %18 : vector<128x64xf32>
    %c0_7 = arith.constant 0 : index
    %c0_8 = arith.constant 0 : index
    %20 = vector.load %arg3[%c0_7, %c0_8] : memref<1x64xf32, #tpu.memory_space<vmem>>, vector<1x64xf32>
    %21 = vector.broadcast %20 : vector<1x64xf32> to vector<128x64xf32>
    %22 = arith.addf %19, %21 : vector<128x64xf32>
    %c0_9 = arith.constant 0 : index
    %c0_10 = arith.constant 0 : index
    %23 = vector.load %arg4[%c0_9, %c0_10] : memref<128x64xf32, #tpu.memory_space<vmem>>, vector<128x64xf32>
    tpu.vector_store %arg4[%c0_9, %c0_10], %22 {strides = array<i32>} : memref<128x64xf32, #tpu.memory_space<vmem>>, vector<128x64xf32>,
    return
  }
  func.func @transform_0(%arg0: i32) -> (i32, i32) {
    %c0_i32 = arith.constant 0 : i32
    %c0_i32_0 = arith.constant 0 : i32
    return %arg0, %c0_i32 : i32, i32
  }
  func.func @transform_1(%arg0: i32) -> (i32, i32) {
    %c0_i32 = arith.constant 0 : i32
    %c0_i32_0 = arith.constant 0 : i32
    %c0_i32_1 = arith.constant 0 : i32
    return %c0_i32, %c0_i32_0 : i32, i32
  }
  func.func @transform_2(%arg0: i32) -> (i32, i32) {
    %c0_i32 = arith.constant 0 : i32
    %c0_i32_0 = arith.constant 0 : i32
    %c0_i32_1 = arith.constant 0 : i32
    return %c0_i32, %c0_i32_0 : i32, i32
  }
  func.func @transform_3(%arg0: i32) -> (i32, i32) {
    %c0_i32 = arith.constant 0 : i32
    %c0_i32_0 = arith.constant 0 : i32
    return %arg0, %c0_i32 : i32, i32
  }
}

module attributes {stable_mosaic.version = 11 : i64} {
  func.func @_flash_mha_kernel(%arg0: i32, %arg1: i32, %arg2: i32, %arg3: memref<1x64x64xbf16, #tpu.memory_space<vmem>>, %arg4: memref<1x64x64xbf16, #tpu.memory_space<vmem>>, %arg5: memref<1x64x64xbf16, #tpu.memory_space<vmem>>, %arg6: memref<1x64x64xbf16, #tpu.memory_space<vmem>>, %arg7: memref<2x64x1xf32, #tpu.memory_space<vmem>>, %arg8: memref<2x64x1xf32, #tpu.memory_space<vmem>>, %arg9: memref<2x64x32xf32, #tpu.memory_space<vmem>>) attributes {dimension_semantics = [#tpu.dimension_semantics<parallel>, #tpu.dimension_semantics<parallel>, #tpu.dimension_semantics<arbitrary>], iteration_bounds = array<i64: 2, 1, 1>, scalar_prefetch = 0 : i64, scratch_operands = 3 : i64, tpu.core_type = #tpu.core_type<tc>, window_params = [{transform_indices = @transform_0, window_bounds = array<i64: 1, 64, 64>}, {transform_indices = @transform_1, window_bounds = array<i64: 1, 64, 64>}, {transform_indices = @transform_2, window_bounds = array<i64: 1, 64, 64>}, {transform_indices = @transform_3, window_bounds = array<i64: 1, 64, 64>}]} {
    %c0_i32 = arith.constant 0 : i32
    %0 = arith.cmpi eq, %arg2, %c0_i32 : i32
    %1 = arith.extui %0 : i1 to i32
    %c0_i32_0 = arith.constant 0 : i32
    %2 = arith.cmpi ne, %1, %c0_i32_0 : i32
    scf.if %2 {
      %cst_32 = arith.constant 0xFF800000 : f32
      %42 = vector.broadcast %cst_32 : f32 to vector<2x64x1xf32>
      %c0_33 = arith.constant 0 : index
      %c0_34 = arith.constant 0 : index
      %c0_35 = arith.constant 0 : index
      %43 = vector.load %arg7[%c0_33, %c0_34, %c0_35] : memref<2x64x1xf32, #tpu.memory_space<vmem>>, vector<2x64x1xf32>
      tpu.vector_store %arg7[%c0_33, %c0_34, %c0_35], %42 {strides = array<i32>} : memref<2x64x1xf32, #tpu.memory_space<vmem>>, vector<2x64x1xf32>,
      %cst_36 = arith.constant 0.000000e+00 : f32
      %44 = vector.broadcast %cst_36 : f32 to vector<2x64x1xf32>
      %c0_37 = arith.constant 0 : index
      %c0_38 = arith.constant 0 : index
      %c0_39 = arith.constant 0 : index
      %45 = vector.load %arg8[%c0_37, %c0_38, %c0_39] : memref<2x64x1xf32, #tpu.memory_space<vmem>>, vector<2x64x1xf32>
      tpu.vector_store %arg8[%c0_37, %c0_38, %c0_39], %44 {strides = array<i32>} : memref<2x64x1xf32, #tpu.memory_space<vmem>>, vector<2x64x1xf32>,
      %cst_40 = arith.constant 0.000000e+00 : f32
      %46 = vector.broadcast %cst_40 : f32 to vector<2x64x32xf32>
      %c0_41 = arith.constant 0 : index
      %c0_42 = arith.constant 0 : index
      %c0_43 = arith.constant 0 : index
      %47 = vector.load %arg9[%c0_41, %c0_42, %c0_43] : memref<2x64x32xf32, #tpu.memory_space<vmem>>, vector<2x64x32xf32>
      tpu.vector_store %arg9[%c0_41, %c0_42, %c0_43], %46 {strides = array<i32>} : memref<2x64x32xf32, #tpu.memory_space<vmem>>, vector<2x64x32xf32>,
    } else {
    }
    %c0 = arith.constant 0 : index
    %c0_1 = arith.constant 0 : index
    %c0_2 = arith.constant 0 : index
    %3 = vector.load %arg3[%c0, %c0_1, %c0_2] : memref<1x64x64xbf16, #tpu.memory_space<vmem>>, vector<1x64x64xbf16>
    %4 = vector.shape_cast %3 : vector<1x64x64xbf16> to vector<64x64xbf16>
    %5 = vector.shape_cast %4 : vector<64x64xbf16> to vector<64x2x32xbf16>
    %6 = tpu.transpose %5, [1, 0, 2] : vector<64x2x32xbf16> -> vector<2x64x32xbf16>
    %c0_3 = arith.constant 0 : index
    %c0_4 = arith.constant 0 : index
    %c0_5 = arith.constant 0 : index
    %7 = vector.load %arg4[%c0_3, %c0_4, %c0_5] : memref<1x64x64xbf16, #tpu.memory_space<vmem>>, vector<1x64x64xbf16>
    %8 = vector.shape_cast %7 : vector<1x64x64xbf16> to vector<64x64xbf16>
    %9 = vector.shape_cast %8 : vector<64x64xbf16> to vector<64x2x32xbf16>
    %10 = tpu.transpose %9, [1, 0, 2] : vector<64x2x32xbf16> -> vector<2x64x32xbf16>
    %c0_6 = arith.constant 0 : index
    %c0_7 = arith.constant 0 : index
    %c0_8 = arith.constant 0 : index
    %11 = vector.load %arg5[%c0_6, %c0_7, %c0_8] : memref<1x64x64xbf16, #tpu.memory_space<vmem>>, vector<1x64x64xbf16>
    %12 = vector.shape_cast %11 : vector<1x64x64xbf16> to vector<64x64xbf16>
    %13 = vector.shape_cast %12 : vector<64x64xbf16> to vector<64x2x32xbf16>
    %14 = tpu.transpose %13, [1, 0, 2] : vector<64x2x32xbf16> -> vector<2x64x32xbf16>
    "tpu.trace_start"() <{level = 10 : i32, message = "hqd,hkd->hqk"}> : () -> ()
    %cst = arith.constant dense<0.000000e+00> : vector<2x64x64xf32>
    %15 = tpu.matmul %6, %10, %cst {dimension_numbers = #tpu.dot_dimension_numbers<[2], [2], [1], [1], [0, 0, 0, 1, 1, 1], [0], [0]>} : vector<2x64x32xbf16>, vector<2x64x32xbf16>, vector<2x64x64xf32> -> vector<2x64x64xf32>
    "tpu.trace_stop"() : () -> ()
    %c0_9 = arith.constant 0 : index
    %c0_10 = arith.constant 0 : index
    %c0_11 = arith.constant 0 : index
    %16 = vector.load %arg7[%c0_9, %c0_10, %c0_11] : memref<2x64x1xf32, #tpu.memory_space<vmem>>, vector<2x64x1xf32>
    %cst_12 = arith.constant dense<0xFF800000> : vector<2x64xf32>
    %17 = vector.multi_reduction <maximumf>, %15, %cst_12 [2] : vector<2x64x64xf32> to vector<2x64xf32>
    %18 = vector.shape_cast %17 : vector<2x64xf32> to vector<2x64x1xf32>
    %19 = arith.maximumf %16, %18 : vector<2x64x1xf32>
    %20 = arith.subf %16, %19 : vector<2x64x1xf32>
    %21 = math.exp %20 : vector<2x64x1xf32>
    %22 = vector.broadcast %19 : vector<2x64x1xf32> to vector<2x64x64xf32>
    %23 = arith.subf %15, %22 : vector<2x64x64xf32>
    %24 = math.exp %23 : vector<2x64x64xf32>
    %c0_13 = arith.constant 0 : index
    %c0_14 = arith.constant 0 : index
    %c0_15 = arith.constant 0 : index
    %25 = vector.load %arg8[%c0_13, %c0_14, %c0_15] : memref<2x64x1xf32, #tpu.memory_space<vmem>>, vector<2x64x1xf32>
    %26 = arith.mulf %21, %25 : vector<2x64x1xf32>
    %cst_16 = arith.constant dense<0.000000e+00> : vector<2x64xf32>
    %27 = vector.multi_reduction <add>, %24, %cst_16 [2] : vector<2x64x64xf32> to vector<2x64xf32>
    %28 = vector.shape_cast %27 : vector<2x64xf32> to vector<2x64x1xf32>
    %29 = arith.addf %26, %28 : vector<2x64x1xf32>
    %c0_17 = arith.constant 0 : index
    %c0_18 = arith.constant 0 : index
    %c0_19 = arith.constant 0 : index
    %30 = vector.load %arg8[%c0_17, %c0_18, %c0_19] : memref<2x64x1xf32, #tpu.memory_space<vmem>>, vector<2x64x1xf32>
    tpu.vector_store %arg8[%c0_17, %c0_18, %c0_19], %29 {strides = array<i32>} : memref<2x64x1xf32, #tpu.memory_space<vmem>>, vector<2x64x1xf32>,
    %31 = arith.truncf %24 : vector<2x64x64xf32> to vector<2x64x64xbf16>
    "tpu.trace_start"() <{level = 10 : i32, message = "hqk,hkd->hqd"}> : () -> ()
    %cst_20 = arith.constant dense<0.000000e+00> : vector<2x64x32xf32>
    %32 = tpu.matmul %31, %14, %cst_20 {dimension_numbers = #tpu.dot_dimension_numbers<[2], [1], [1], [2], [0, 0, 0, 1, 1, 2], [0], [0]>} : vector<2x64x64xbf16>, vector<2x64x32xbf16>, vector<2x64x32xf32> -> vector<2x64x32xf32>
    "tpu.trace_stop"() : () -> ()
    %c0_21 = arith.constant 0 : index
    %c0_22 = arith.constant 0 : index
    %c0_23 = arith.constant 0 : index
    %33 = vector.load %arg9[%c0_21, %c0_22, %c0_23] : memref<2x64x32xf32, #tpu.memory_space<vmem>>, vector<2x64x32xf32>
    %34 = vector.broadcast %21 : vector<2x64x1xf32> to vector<2x64x32xf32>
    %35 = arith.mulf %34, %33 : vector<2x64x32xf32>
    %36 = arith.addf %35, %32 : vector<2x64x32xf32>
    %c0_24 = arith.constant 0 : index
    %c0_25 = arith.constant 0 : index
    %c0_26 = arith.constant 0 : index
    %37 = vector.load %arg9[%c0_24, %c0_25, %c0_26] : memref<2x64x32xf32, #tpu.memory_space<vmem>>, vector<2x64x32xf32>
    tpu.vector_store %arg9[%c0_24, %c0_25, %c0_26], %36 {strides = array<i32>} : memref<2x64x32xf32, #tpu.memory_space<vmem>>, vector<2x64x32xf32>,
    %c0_27 = arith.constant 0 : index
    %c0_28 = arith.constant 0 : index
    %c0_29 = arith.constant 0 : index
    %38 = vector.load %arg7[%c0_27, %c0_28, %c0_29] : memref<2x64x1xf32, #tpu.memory_space<vmem>>, vector<2x64x1xf32>
    tpu.vector_store %arg7[%c0_27, %c0_28, %c0_29], %19 {strides = array<i32>} : memref<2x64x1xf32, #tpu.memory_space<vmem>>, vector<2x64x1xf32>,
    %c0_i32_30 = arith.constant 0 : i32
    %39 = arith.cmpi eq, %arg2, %c0_i32_30 : i32
    %40 = arith.extui %39 : i1 to i32
    %c0_i32_31 = arith.constant 0 : i32
    %41 = arith.cmpi ne, %40, %c0_i32_31 : i32
    scf.if %41 {
      %c0_32 = arith.constant 0 : index
      %c0_33 = arith.constant 0 : index
      %c0_34 = arith.constant 0 : index
      %42 = vector.load %arg8[%c0_32, %c0_33, %c0_34] : memref<2x64x1xf32, #tpu.memory_space<vmem>>, vector<2x64x1xf32>
      %43 = tpu.reciprocal %42 {approx = true} : vector<2x64x1xf32> -> vector<2x64x1xf32>
      %c0_35 = arith.constant 0 : index
      %c0_36 = arith.constant 0 : index
      %c0_37 = arith.constant 0 : index
      %44 = vector.load %arg9[%c0_35, %c0_36, %c0_37] : memref<2x64x32xf32, #tpu.memory_space<vmem>>, vector<2x64x32xf32>
      %45 = vector.broadcast %43 : vector<2x64x1xf32> to vector<2x64x32xf32>
      %46 = arith.mulf %44, %45 : vector<2x64x32xf32>
      %47 = tpu.transpose %46, [1, 0, 2] : vector<2x64x32xf32> -> vector<64x2x32xf32>
      %48 = vector.shape_cast %47 : vector<64x2x32xf32> to vector<64x64xf32>
      %49 = arith.truncf %48 : vector<64x64xf32> to vector<64x64xbf16>
      %c0_38 = arith.constant 0 : index
      %c0_39 = arith.constant 0 : index
      %c0_40 = arith.constant 0 : index
      %50 = vector.load %arg6[%c0_38, %c0_39, %c0_40] : memref<1x64x64xbf16, #tpu.memory_space<vmem>>, vector<1x64x64xbf16>
      %51 = vector.shape_cast %50 : vector<1x64x64xbf16> to vector<64x64xbf16>
      %52 = vector.shape_cast %49 : vector<64x64xbf16> to vector<1x64x64xbf16>
      tpu.vector_store %arg6[%c0_38, %c0_39, %c0_40], %52 {strides = array<i32>} : memref<1x64x64xbf16, #tpu.memory_space<vmem>>, vector<1x64x64xbf16>,
    } else {
    }
    return
  }
  func.func @transform_0(%arg0: i32, %arg1: i32, %arg2: i32) -> (i32, i32, i32) {
    %c0_i32 = arith.constant 0 : i32
    %c0_i32_0 = arith.constant 0 : i32
    return %arg0, %arg1, %c0_i32 : i32, i32, i32
  }
  func.func @transform_1(%arg0: i32, %arg1: i32, %arg2: i32) -> (i32, i32, i32) {
    %c0_i32 = arith.constant 0 : i32
    %c0_i32_0 = arith.constant 0 : i32
    return %arg0, %arg2, %c0_i32 : i32, i32, i32
  }
  func.func @transform_2(%arg0: i32, %arg1: i32, %arg2: i32) -> (i32, i32, i32) {
    %c0_i32 = arith.constant 0 : i32
    %c0_i32_0 = arith.constant 0 : i32
    return %arg0, %arg2, %c0_i32 : i32, i32, i32
  }
  func.func @transform_3(%arg0: i32, %arg1: i32, %arg2: i32) -> (i32, i32, i32) {
    %c0_i32 = arith.constant 0 : i32
    %c0_i32_0 = arith.constant 0 : i32
    return %arg0, %arg1, %c0_i32 : i32, i32, i32
  }
}

module attributes {stable_mosaic.version = 11 : i64} {
  func.func @_flash_mha_kernel(%arg0: i32, %arg1: i32, %arg2: i32, %arg3: memref<1x64x64xbf16, #tpu.memory_space<vmem>>, %arg4: memref<1x16x64xbf16, #tpu.memory_space<vmem>>, %arg5: memref<1x16x64xbf16, #tpu.memory_space<vmem>>, %arg6: memref<1x64x64xbf16, #tpu.memory_space<vmem>>, %arg7: memref<2x64x1xf32, #tpu.memory_space<vmem>>, %arg8: memref<2x64x1xf32, #tpu.memory_space<vmem>>, %arg9: memref<2x64x32xf32, #tpu.memory_space<vmem>>) attributes {dimension_semantics = [#tpu.dimension_semantics<parallel>, #tpu.dimension_semantics<parallel>, #tpu.dimension_semantics<arbitrary>], iteration_bounds = array<i64: 2, 1, 1>, scalar_prefetch = 0 : i64, scratch_operands = 3 : i64, tpu.core_type = #tpu.core_type<tc>, window_params = [{transform_indices = @transform_0, window_bounds = array<i64: 1, 64, 64>}, {transform_indices = @transform_1, window_bounds = array<i64: 1, 16, 64>}, {transform_indices = @transform_2, window_bounds = array<i64: 1, 16, 64>}, {transform_indices = @transform_3, window_bounds = array<i64: 1, 64, 64>}]} {
    %c0_i32 = arith.constant 0 : i32
    %0 = arith.cmpi eq, %arg2, %c0_i32 : i32
    %1 = arith.extui %0 : i1 to i32
    %c0_i32_0 = arith.constant 0 : i32
    %2 = arith.cmpi ne, %1, %c0_i32_0 : i32
    scf.if %2 {
      %cst_32 = arith.constant 0xFF800000 : f32
      %42 = vector.broadcast %cst_32 : f32 to vector<2x64x1xf32>
      %c0_33 = arith.constant 0 : index
      %c0_34 = arith.constant 0 : index
      %c0_35 = arith.constant 0 : index
      %43 = vector.load %arg7[%c0_33, %c0_34, %c0_35] : memref<2x64x1xf32, #tpu.memory_space<vmem>>, vector<2x64x1xf32>
      tpu.vector_store %arg7[%c0_33, %c0_34, %c0_35], %42 {strides = array<i32>} : memref<2x64x1xf32, #tpu.memory_space<vmem>>, vector<2x64x1xf32>,
      %cst_36 = arith.constant 0.000000e+00 : f32
      %44 = vector.broadcast %cst_36 : f32 to vector<2x64x1xf32>
      %c0_37 = arith.constant 0 : index
      %c0_38 = arith.constant 0 : index
      %c0_39 = arith.constant 0 : index
      %45 = vector.load %arg8[%c0_37, %c0_38, %c0_39] : memref<2x64x1xf32, #tpu.memory_space<vmem>>, vector<2x64x1xf32>
      tpu.vector_store %arg8[%c0_37, %c0_38, %c0_39], %44 {strides = array<i32>} : memref<2x64x1xf32, #tpu.memory_space<vmem>>, vector<2x64x1xf32>,
      %cst_40 = arith.constant 0.000000e+00 : f32
      %46 = vector.broadcast %cst_40 : f32 to vector<2x64x32xf32>
      %c0_41 = arith.constant 0 : index
      %c0_42 = arith.constant 0 : index
      %c0_43 = arith.constant 0 : index
      %47 = vector.load %arg9[%c0_41, %c0_42, %c0_43] : memref<2x64x32xf32, #tpu.memory_space<vmem>>, vector<2x64x32xf32>
      tpu.vector_store %arg9[%c0_41, %c0_42, %c0_43], %46 {strides = array<i32>} : memref<2x64x32xf32, #tpu.memory_space<vmem>>, vector<2x64x32xf32>,
    } else {
    }
    %c0 = arith.constant 0 : index
    %c0_1 = arith.constant 0 : index
    %c0_2 = arith.constant 0 : index
    %3 = vector.load %arg3[%c0, %c0_1, %c0_2] : memref<1x64x64xbf16, #tpu.memory_space<vmem>>, vector<1x64x64xbf16>
    %4 = vector.shape_cast %3 : vector<1x64x64xbf16> to vector<64x64xbf16>
    %5 = vector.shape_cast %4 : vector<64x64xbf16> to vector<64x2x32xbf16>
    %6 = tpu.transpose %5, [1, 0, 2] : vector<64x2x32xbf16> -> vector<2x64x32xbf16>
    %c0_3 = arith.constant 0 : index
    %c0_4 = arith.constant 0 : index
    %c0_5 = arith.constant 0 : index
    %7 = vector.load %arg4[%c0_3, %c0_4, %c0_5] : memref<1x16x64xbf16, #tpu.memory_space<vmem>>, vector<1x16x64xbf16>
    %8 = vector.shape_cast %7 : vector<1x16x64xbf16> to vector<16x64xbf16>
    %9 = vector.shape_cast %8 : vector<16x64xbf16> to vector<16x2x32xbf16>
    %10 = tpu.transpose %9, [1, 0, 2] : vector<16x2x32xbf16> -> vector<2x16x32xbf16>
    %c0_6 = arith.constant 0 : index
    %c0_7 = arith.constant 0 : index
    %c0_8 = arith.constant 0 : index
    %11 = vector.load %arg5[%c0_6, %c0_7, %c0_8] : memref<1x16x64xbf16, #tpu.memory_space<vmem>>, vector<1x16x64xbf16>
    %12 = vector.shape_cast %11 : vector<1x16x64xbf16> to vector<16x64xbf16>
    %13 = vector.shape_cast %12 : vector<16x64xbf16> to vector<16x2x32xbf16>
    %14 = tpu.transpose %13, [1, 0, 2] : vector<16x2x32xbf16> -> vector<2x16x32xbf16>
    "tpu.trace_start"() <{level = 10 : i32, message = "hqd,hkd->hqk"}> : () -> ()
    %cst = arith.constant dense<0.000000e+00> : vector<2x64x16xf32>
    %15 = tpu.matmul %6, %10, %cst {dimension_numbers = #tpu.dot_dimension_numbers<[2], [2], [1], [1], [0, 0, 0, 1, 1, 1], [0], [0]>} : vector<2x64x32xbf16>, vector<2x16x32xbf16>, vector<2x64x16xf32> -> vector<2x64x16xf32>
    "tpu.trace_stop"() : () -> ()
    %c0_9 = arith.constant 0 : index
    %c0_10 = arith.constant 0 : index
    %c0_11 = arith.constant 0 : index
    %16 = vector.load %arg7[%c0_9, %c0_10, %c0_11] : memref<2x64x1xf32, #tpu.memory_space<vmem>>, vector<2x64x1xf32>
    %cst_12 = arith.constant dense<0xFF800000> : vector<2x64xf32>
    %17 = vector.multi_reduction <maximumf>, %15, %cst_12 [2] : vector<2x64x16xf32> to vector<2x64xf32>
    %18 = vector.shape_cast %17 : vector<2x64xf32> to vector<2x64x1xf32>
    %19 = arith.maximumf %16, %18 : vector<2x64x1xf32>
    %20 = arith.subf %16, %19 : vector<2x64x1xf32>
    %21 = math.exp %20 : vector<2x64x1xf32>
    %22 = vector.broadcast %19 : vector<2x64x1xf32> to vector<2x64x16xf32>
    %23 = arith.subf %15, %22 : vector<2x64x16xf32>
    %24 = math.exp %23 : vector<2x64x16xf32>
    %c0_13 = arith.constant 0 : index
    %c0_14 = arith.constant 0 : index
    %c0_15 = arith.constant 0 : index
    %25 = vector.load %arg8[%c0_13, %c0_14, %c0_15] : memref<2x64x1xf32, #tpu.memory_space<vmem>>, vector<2x64x1xf32>
    %26 = arith.mulf %21, %25 : vector<2x64x1xf32>
    %cst_16 = arith.constant dense<0.000000e+00> : vector<2x64xf32>
    %27 = vector.multi_reduction <add>, %24, %cst_16 [2] : vector<2x64x16xf32> to vector<2x64xf32>
    %28 = vector.shape_cast %27 : vector<2x64xf32> to vector<2x64x1xf32>
    %29 = arith.addf %26, %28 : vector<2x64x1xf32>
    %c0_17 = arith.constant 0 : index
    %c0_18 = arith.constant 0 : index
    %c0_19 = arith.constant 0 : index
    %30 = vector.load %arg8[%c0_17, %c0_18, %c0_19] : memref<2x64x1xf32, #tpu.memory_space<vmem>>, vector<2x64x1xf32>
    tpu.vector_store %arg8[%c0_17, %c0_18, %c0_19], %29 {strides = array<i32>} : memref<2x64x1xf32, #tpu.memory_space<vmem>>, vector<2x64x1xf32>,
    %31 = arith.truncf %24 : vector<2x64x16xf32> to vector<2x64x16xbf16>
    "tpu.trace_start"() <{level = 10 : i32, message = "hqk,hkd->hqd"}> : () -> ()
    %cst_20 = arith.constant dense<0.000000e+00> : vector<2x64x32xf32>
    %32 = tpu.matmul %31, %14, %cst_20 {dimension_numbers = #tpu.dot_dimension_numbers<[2], [1], [1], [2], [0, 0, 0, 1, 1, 2], [0], [0]>} : vector<2x64x16xbf16>, vector<2x16x32xbf16>, vector<2x64x32xf32> -> vector<2x64x32xf32>
    "tpu.trace_stop"() : () -> ()
    %c0_21 = arith.constant 0 : index
    %c0_22 = arith.constant 0 : index
    %c0_23 = arith.constant 0 : index
    %33 = vector.load %arg9[%c0_21, %c0_22, %c0_23] : memref<2x64x32xf32, #tpu.memory_space<vmem>>, vector<2x64x32xf32>
    %34 = vector.broadcast %21 : vector<2x64x1xf32> to vector<2x64x32xf32>
    %35 = arith.mulf %34, %33 : vector<2x64x32xf32>
    %36 = arith.addf %35, %32 : vector<2x64x32xf32>
    %c0_24 = arith.constant 0 : index
    %c0_25 = arith.constant 0 : index
    %c0_26 = arith.constant 0 : index
    %37 = vector.load %arg9[%c0_24, %c0_25, %c0_26] : memref<2x64x32xf32, #tpu.memory_space<vmem>>, vector<2x64x32xf32>
    tpu.vector_store %arg9[%c0_24, %c0_25, %c0_26], %36 {strides = array<i32>} : memref<2x64x32xf32, #tpu.memory_space<vmem>>, vector<2x64x32xf32>,
    %c0_27 = arith.constant 0 : index
    %c0_28 = arith.constant 0 : index
    %c0_29 = arith.constant 0 : index
    %38 = vector.load %arg7[%c0_27, %c0_28, %c0_29] : memref<2x64x1xf32, #tpu.memory_space<vmem>>, vector<2x64x1xf32>
    tpu.vector_store %arg7[%c0_27, %c0_28, %c0_29], %19 {strides = array<i32>} : memref<2x64x1xf32, #tpu.memory_space<vmem>>, vector<2x64x1xf32>,
    %c0_i32_30 = arith.constant 0 : i32
    %39 = arith.cmpi eq, %arg2, %c0_i32_30 : i32
    %40 = arith.extui %39 : i1 to i32
    %c0_i32_31 = arith.constant 0 : i32
    %41 = arith.cmpi ne, %40, %c0_i32_31 : i32
    scf.if %41 {
      %c0_32 = arith.constant 0 : index
      %c0_33 = arith.constant 0 : index
      %c0_34 = arith.constant 0 : index
      %42 = vector.load %arg8[%c0_32, %c0_33, %c0_34] : memref<2x64x1xf32, #tpu.memory_space<vmem>>, vector<2x64x1xf32>
      %43 = tpu.reciprocal %42 {approx = true} : vector<2x64x1xf32> -> vector<2x64x1xf32>
      %c0_35 = arith.constant 0 : index
      %c0_36 = arith.constant 0 : index
      %c0_37 = arith.constant 0 : index
      %44 = vector.load %arg9[%c0_35, %c0_36, %c0_37] : memref<2x64x32xf32, #tpu.memory_space<vmem>>, vector<2x64x32xf32>
      %45 = vector.broadcast %43 : vector<2x64x1xf32> to vector<2x64x32xf32>
      %46 = arith.mulf %44, %45 : vector<2x64x32xf32>
      %47 = tpu.transpose %46, [1, 0, 2] : vector<2x64x32xf32> -> vector<64x2x32xf32>
      %48 = vector.shape_cast %47 : vector<64x2x32xf32> to vector<64x64xf32>
      %49 = arith.truncf %48 : vector<64x64xf32> to vector<64x64xbf16>
      %c0_38 = arith.constant 0 : index
      %c0_39 = arith.constant 0 : index
      %c0_40 = arith.constant 0 : index
      %50 = vector.load %arg6[%c0_38, %c0_39, %c0_40] : memref<1x64x64xbf16, #tpu.memory_space<vmem>>, vector<1x64x64xbf16>
      %51 = vector.shape_cast %50 : vector<1x64x64xbf16> to vector<64x64xbf16>
      %52 = vector.shape_cast %49 : vector<64x64xbf16> to vector<1x64x64xbf16>
      tpu.vector_store %arg6[%c0_38, %c0_39, %c0_40], %52 {strides = array<i32>} : memref<1x64x64xbf16, #tpu.memory_space<vmem>>, vector<1x64x64xbf16>,
    } else {
    }
    return
  }
  func.func @transform_0(%arg0: i32, %arg1: i32, %arg2: i32) -> (i32, i32, i32) {
    %c0_i32 = arith.constant 0 : i32
    %c0_i32_0 = arith.constant 0 : i32
    return %arg0, %arg1, %c0_i32 : i32, i32, i32
  }
  func.func @transform_1(%arg0: i32, %arg1: i32, %arg2: i32) -> (i32, i32, i32) {
    %c0_i32 = arith.constant 0 : i32
    %c0_i32_0 = arith.constant 0 : i32
    return %arg0, %arg2, %c0_i32 : i32, i32, i32
  }
  func.func @transform_2(%arg0: i32, %arg1: i32, %arg2: i32) -> (i32, i32, i32) {
    %c0_i32 = arith.constant 0 : i32
    %c0_i32_0 = arith.constant 0 : i32
    return %arg0, %arg2, %c0_i32 : i32, i32, i32
  }
  func.func @transform_3(%arg0: i32, %arg1: i32, %arg2: i32) -> (i32, i32, i32) {
    %c0_i32 = arith.constant 0 : i32
    %c0_i32_0 = arith.constant 0 : i32
    return %arg0, %arg1, %c0_i32 : i32, i32, i32
  }
}

</mosaic_0001>

<bundles_post_ra>
// kernel: spatial_transformer_forward.5
= control target key start
LH: loop header
LB: loop body
LE: loop exit
PB: predicated region body
PF: predicated region fallthrough
CT: control target
= control target key end

     0   :  { %vm30_vm0 = vcmask 523264   ;;  %v487_v32 = vmov 64.0   ;;  %s1012_s0 = inlined_call_operand.vmem [shape: f32[128,64], index: 0, kind: input, shape index: {}]   ;;  %s1013_s1 = inlined_call_operand.vmem [shape: f32[1,64], index: 1, kind: input, shape index: {}]   ;;  %s1014_s2 = inlined_call_operand.vmem [shape: f32[1,64], index: 2, kind: input, shape index: {}]   ;;  %s1015_s3 = inlined_call_operand.vmem [shape: f32[128,64], index: 3, kind: output, shape index: {}]  }
   0x1   :  { %v511_v0 = vld [vmem:[%s1012_s0 + $0x20] sm:$0xff]  ;;  %v516_v1 = vld [vmem:[%s1012_s0 + $0x10] sm:$0xff]  ;;  %v532_v6 = vld [vmem:[%s1012_s0 + $0x28] sm:$0xff]  ;;  %453 = vrcp.f32 %v487_v32 }
   0x2   :  { %v521_v2 = vld [vmem:[%s1012_s0] sm:$0xff]  ;;  %v43_v3 = vsel %vm30_vm0, %v511_v0, 0.0  ;;  %v37_v4 = vsel %vm30_vm0, %v516_v1, 0.0  ;;  %v537_v7 = vld [vmem:[%s1012_s0 + $0x18] sm:$0xff]  ;;  %v542_v8 = vld [vmem:[%s1012_s0 + $0x8] sm:$0xff]  ;;  %v46_v9 = vsel %vm30_vm0, %v532_v6, 0.0 }
   0x3   :  { %v31_v5 = vsel %vm30_vm0, %v521_v2, 0.0  ;;  %44 = vadd.xlane.f32.xlu2 %v43_v3  ;;  %38 = vadd.xlane.f32.xlu1 %v37_v4  ;;  %v40_v10 = vsel %vm30_vm0, %v537_v7, 0.0  ;;  %v34_v11 = vsel %vm30_vm0, %v542_v8, 0.0  ;;  %v553_v12 = vld [vmem:[%s1012_s0 + $0x40] sm:$0xff]  ;;  %v558_v13 = vld [vmem:[%s1012_s0 + $0x38] sm:$0xff]  ;;  %v563_v14 = vld [vmem:[%s1012_s0 + $0x30] sm:$0xff] }
   0x4   :  { %32 = vadd.xlane.f32.xlu0 %v31_v5  ;;  %v55_v15 = vsel %vm30_vm0, %v553_v12, 0.0  ;;  %v52_v16 = vsel %vm30_vm0, %v558_v13, 0.0  ;;  %v49_v17 = vsel %vm30_vm0, %v563_v14, 0.0  ;;  %v574_v18 = vld [vmem:[%s1012_s0 + $0x58] sm:$0xff]  ;;  %v579_v19 = vld [vmem:[%s1012_s0 + $0x50] sm:$0xff]  ;;  %v584_v20 = vld [vmem:[%s1012_s0 + $0x48] sm:$0xff] }
   0x5   :  { %v64_v21 = vsel %vm30_vm0, %v574_v18, 0.0  ;;  %v61_v22 = vsel %vm30_vm0, %v579_v19, 0.0  ;;  %v58_v23 = vsel %vm30_vm0, %v584_v20, 0.0  ;;  %v595_v24 = vld [vmem:[%s1012_s0 + $0x70] sm:$0xff]  ;;  %v600_v25 = vld [vmem:[%s1012_s0 + $0x68] sm:$0xff]  ;;  %v605_v26 = vld [vmem:[%s1012_s0 + $0x60] sm:$0xff] }
   0x6   :  { %v73_v27 = vsel %vm30_vm0, %v595_v24, 0.0  ;;  %v70_v28 = vsel %vm30_vm0, %v600_v25, 0.0  ;;  %v67_v29 = vsel %vm30_vm0, %v605_v26, 0.0  ;;  %v616_v30 = vld [vmem:[%s1012_s0 + $0x78] sm:$0xff] }
   0x7   :  { %v76_v31 = vsel %vm30_vm0, %v616_v30, 0.0  ;;  %v454_v33 = vpop.eup %453 }
   0x8   :  { %v80_v34 = vmul.f32 64.0, %v454_v33  ;;  %vm84_vm1 = vweird.f32 %v454_v33 }
   0xa   :  { %v81_v35 = vsub.f32 1.0, %v80_v34 }
   0xb   :  { %47 = vadd.xlane.f32.xlu2 %v46_v9  ;;  %41 = vadd.xlane.f32.xlu1 %v40_v10 }
   0xc   :  { %35 = vadd.xlane.f32.xlu0 %v34_v11  ;;  %v82_v36 = vmul.f32 %v454_v33, %v81_v35 }
   0xe   :  { %v83_v37 = vadd.f32 %v454_v33, %v82_v36 }
  0x10   :  { %v620_v38 = vsel %vm84_vm1, %v454_v33, %v83_v37 }
  0x13   :  { %56 = vadd.xlane.f32.xlu2 %v55_v15  ;;  %53 = vadd.xlane.f32.xlu1 %v52_v16 }
  0x14   :  { %50 = vadd.xlane.f32.xlu0 %v49_v17 }
  0x1b   :  { %65 = vadd.xlane.f32.xlu2 %v64_v21  ;;  %62 = vadd.xlane.f32.xlu1 %v61_v22 }
  0x1c   :  { %59 = vadd.xlane.f32.xlu0 %v58_v23 }
  0x23   :  { %74 = vadd.xlane.f32.xlu2 %v73_v27  ;;  %71 = vadd.xlane.f32.xlu1 %v70_v28 }
  0x24   :  { %68 = vadd.xlane.f32.xlu0 %v67_v29 }
  0x2c   :  { %77 = vadd.xlane.f32.xlu0 %v76_v31 }
  0x76   :  { %v45_v39 = vpop.xlane.xlu2 %44  ;;  %v39_v40 = vpop.xlane.xlu1 %38 }
  0x77   :  { %v88_v41 = vmul.f32 %v620_v38, %v39_v40  ;;  %v33_v42 = vpop.xlane.xlu0 %32  ;;  %v90_v58 = vmul.f32 %v620_v38, %v45_v39 }
  0x78   :  { %v86_v43 = vmul.f32 %v620_v38, %v33_v42 }
  0x79   :  { %v625_v44 = vsub.f32 %v516_v1, %v88_v41 }
  0x7a   :  { %v628_v45 = vsub.f32 %v521_v2, %v86_v43  ;;  %v658_v2 = vsub.f32 %v511_v0, %v90_v58 }
  0x7b   :  { %v120_v46 = vmul.f32 %v625_v44, %v625_v44 }
  0x7c   :  { %v118_v47 = vmul.f32 %v628_v45, %v628_v45  ;;  %v122_v11 = vmul.f32 %v658_v2, %v658_v2 }
  0x7d   :  { %v140_v48 = vsel %vm30_vm0, %v120_v46, 0.0 }
  0x7e   :  { %v48_v49 = vpop.xlane.xlu2 %47  ;;  %v42_v50 = vpop.xlane.xlu1 %41  ;;  %141 = vadd.xlane.f32.xlu0 %v140_v48  ;;  %v134_v51 = vsel %vm30_vm0, %v118_v47, 0.0 }
  0x7f   :  { %v91_v52 = vmul.f32 %v620_v38, %v48_v49  ;;  %v89_v53 = vmul.f32 %v620_v38, %v42_v50  ;;  %135 = vadd.xlane.f32.xlu1 %v134_v51  ;;  %v36_v54 = vpop.xlane.xlu0 %35 }
  0x80   :  { %v87_v55 = vmul.f32 %v620_v38, %v36_v54 }
  0x81   :  { %v640_v56 = vsub.f32 %v532_v6, %v91_v52  ;;  %v643_v57 = vsub.f32 %v537_v7, %v89_v53 }
  0x82   :  { %v647_v59 = vsub.f32 %v542_v8, %v87_v55 }
  0x83   :  { %v123_v60 = vmul.f32 %v640_v56, %v640_v56  ;;  %v121_v61 = vmul.f32 %v643_v57, %v643_v57 }
  0x84   :  { %v119_v62 = vmul.f32 %v647_v59, %v647_v59 }
  0x85   :  { %v149_v63 = vsel %vm30_vm0, %v123_v60, 0.0  ;;  %v143_v1 = vsel %vm30_vm0, %v121_v61, 0.0 }
  0x86   :  { %v57_v3 = vpop.xlane.xlu2 %56  ;;  %150 = vadd.xlane.f32.xlu0 %v149_v63  ;;  %v137_v4 = vsel %vm30_vm0, %v119_v62, 0.0  ;;  %v54_v5 = vpop.xlane.xlu1 %53 }
  0x87   :  { %v94_v6 = vmul.f32 %v620_v38, %v57_v3  ;;  %144 = vadd.xlane.f32.xlu1 %v143_v1  ;;  %138 = vadd.xlane.f32.xlu2 %v137_v4  ;;  %v51_v7 = vpop.xlane.xlu0 %50  ;;  %v93_v9 = vmul.f32 %v620_v38, %v54_v5 }
  0x88   :  { %v92_v8 = vmul.f32 %v620_v38, %v51_v7 }
  0x89   :  { %v665_v10 = vsub.f32 %v553_v12, %v94_v6  ;;  %v675_v16 = vsub.f32 %v558_v13, %v93_v9  ;;  %v146_v12 = vsel %vm30_vm0, %v122_v11, 0.0 }
  0x8a   :  { %v668_v0 = vsub.f32 %v563_v14, %v92_v8 }
  0x8b   :  { %v126_v15 = vmul.f32 %v665_v10, %v665_v10  ;;  %v125_v31 = vmul.f32 %v675_v16, %v675_v16 }
  0x8c   :  { %v124_v17 = vmul.f32 %v668_v0, %v668_v0 }
  0x8d   :  { %v158_v21 = vsel %vm30_vm0, %v126_v15, 0.0  ;;  %v155_v36 = vsel %vm30_vm0, %v125_v31, 0.0 }
  0x8e   :  { %v66_v22 = vpop.xlane.xlu2 %65  ;;  %159 = vadd.xlane.f32.xlu0 %v158_v21  ;;  %v152_v14 = vsel %vm30_vm0, %v124_v17, 0.0  ;;  %v63_v23 = vpop.xlane.xlu1 %62 }
  0x8f   :  { %v97_v27 = vmul.f32 %v620_v38, %v66_v22  ;;  %147 = vadd.xlane.f32.xlu2 %v146_v12  ;;  %153 = vadd.xlane.f32.xlu1 %v152_v14  ;;  %v60_v28 = vpop.xlane.xlu0 %59  ;;  %v96_v29 = vmul.f32 %v620_v38, %v63_v23 }
  0x90   :  { %v95_v13 = vmul.f32 %v620_v38, %v60_v28 }
  0x91   :  { %v688_v32 = vsub.f32 %v574_v18, %v97_v27  ;;  %v696_v35 = vsub.f32 %v579_v19, %v96_v29 }
  0x92   :  { %v691_v33 = vsub.f32 %v584_v20, %v95_v13 }
  0x93   :  { %v129_v34 = vmul.f32 %v688_v32, %v688_v32  ;;  %v128_v46 = vmul.f32 %v696_v35, %v696_v35 }
  0x94   :  { %v127_v37 = vmul.f32 %v691_v33, %v691_v33 }
  0x95   :  { %v167_v39 = vsel %vm30_vm0, %v129_v34, 0.0  ;;  %v164_v51 = vsel %vm30_vm0, %v128_v46, 0.0 }
  0x96   :  { %v75_v40 = vpop.xlane.xlu2 %74  ;;  %168 = vadd.xlane.f32.xlu0 %v167_v39  ;;  %v161_v18 = vsel %vm30_vm0, %v127_v37, 0.0  ;;  %v72_v41 = vpop.xlane.xlu1 %71 }
  0x97   :  { %v100_v20 = vmul.f32 %v620_v38, %v75_v40  ;;  %156 = vadd.xlane.f32.xlu2 %v155_v36  ;;  %162 = vadd.xlane.f32.xlu1 %v161_v18  ;;  %v69_v42 = vpop.xlane.xlu0 %68  ;;  %v99_v43 = vmul.f32 %v620_v38, %v72_v41 }
  0x98   :  { %v98_v19 = vmul.f32 %v620_v38, %v69_v42 }
  0x99   :  { %v709_v47 = vsub.f32 %v595_v24, %v100_v20  ;;  %v717_v50 = vsub.f32 %v600_v25, %v99_v43 }
  0x9a   :  { %v712_v48 = vsub.f32 %v605_v26, %v98_v19 }
  0x9b   :  { %v132_v49 = vmul.f32 %v709_v47, %v709_v47  ;;  %v131_v55 = vmul.f32 %v717_v50, %v717_v50 }
  0x9c   :  { %v130_v52 = vmul.f32 %v712_v48, %v712_v48 }
  0x9d   :  { %v176_v53 = vsel %vm30_vm0, %v132_v49, 0.0  ;;  %v173_v58 = vsel %vm30_vm0, %v131_v55, 0.0 }
  0x9e   :  { %177 = vadd.xlane.f32.xlu0 %v176_v53  ;;  %v170_v24 = vsel %vm30_vm0, %v130_v52, 0.0 }
  0x9f   :  { %165 = vadd.xlane.f32.xlu2 %v164_v51  ;;  %171 = vadd.xlane.f32.xlu1 %v170_v24  ;;  %v78_v26 = vpop.xlane.xlu0 %77  ;;  %v764_v51 = vld [vmem:[%s1013_s1] ss:$0 sm:$0xff] }
  0xa0   :  { %v101_v54 = vmul.f32 %v620_v38, %v78_v26 }
  0xa2   :  { %v728_v25 = vsub.f32 %v616_v30, %v101_v54 }
  0xa4   :  { %v133_v60 = vmul.f32 %v728_v25, %v728_v25 }
  0xa6   :  { %v179_v61 = vsel %vm30_vm0, %v133_v60, 0.0  ;;  %v779_v60 = vld [vmem:[%s1014_s2] ss:$0 sm:$0xff] }
  0xa7   :  { %174 = vadd.xlane.f32.xlu2 %v173_v58  ;;  %180 = vadd.xlane.f32.xlu1 %v179_v61 }
  0xf1   :  { %v142_v62 = vpop.xlane.xlu0 %141 }
  0xf2   :  { %v136_v63 = vpop.xlane.xlu1 %135  ;;  %v184_v1 = vmul.f32 %v142_v62, %v620_v38 }
  0xf3   :  { %v182_v3 = vmul.f32 %v136_v63, %v620_v38 }
  0xf4   :  { %v200_v4 = vadd.f32 1e-05, %v184_v1 }
  0xf5   :  { %v198_v5 = vadd.f32 1e-05, %v182_v3 }
  0xf6   :  { %455 = vrsqrt.f32 %v200_v4  ;;  %vm240_vm4 = vweird.f32 %v200_v4 }
  0xf7   :  { %457 = vrsqrt.f32 %v198_v5  ;;  %vm220_vm5 = vweird.f32 %v198_v5 }
  0xf9   :  { %v151_v30 = vpop.xlane.xlu0 %150 }
  0xfa   :  { %v145_v6 = vpop.xlane.xlu1 %144  ;;  %v139_v7 = vpop.xlane.xlu2 %138  ;;  %v187_v8 = vmul.f32 %v151_v30, %v620_v38 }
  0xfb   :  { %v185_v9 = vmul.f32 %v145_v6, %v620_v38  ;;  %v183_v11 = vmul.f32 %v139_v7, %v620_v38 }
  0xfc   :  { %v456_v15 = vpop.eup %455  ;;  %v739_v17 = vadd.f32 1e-05, %v187_v8 }
  0xfd   :  { %v458_v21 = vpop.eup %457  ;;  %v235_v22 = vmul.f32 %v456_v15, %v200_v4  ;;  %v741_v12 = vadd.f32 1e-05, %v185_v9  ;;  %v743_v14 = vadd.f32 1e-05, %v183_v11  ;;  %vm241_vm2 = vweird.f32 %v456_v15 }
  0xfe   :  { %v215_v23 = vmul.f32 %v458_v21, %v198_v5  ;;  %459 = vrsqrt.f32 %v739_v17  ;;  %vm221_vm3 = vweird.f32 %v458_v21  ;;  %vm242_vm6 = vmor %vm240_vm4, %vm241_vm2  ;;  %vm270_vm8 = vweird.f32 %v739_v17 }
  0xff   :  { %v236_v27 = vmul.f32 %v456_v15, %v235_v22  ;;  %461 = vrsqrt.f32 %v741_v12  ;;  %vm222_vm7 = vmor %vm220_vm5, %vm221_vm3  ;;  %vm250_vm12 = vweird.f32 %v741_v12  ;;  %vm230_vm13 = vweird.f32 %v743_v14 }
 0x100   :  { %v216_v28 = vmul.f32 %v458_v21, %v215_v23  ;;  %463 = vrsqrt.f32 %v743_v14 }
 0x101   :  { %v237_v13 = vmul.f32 0.5, %v236_v27  ;;  %v160_v29 = vpop.xlane.xlu0 %159 }
 0x102   :  { %v217_v31 = vmul.f32 0.5, %v216_v28  ;;  %v148_v34 = vpop.xlane.xlu2 %147  ;;  %v154_v36 = vpop.xlane.xlu1 %153  ;;  %v190_v18 = vmul.f32 %v160_v29, %v620_v38 }
 0x103   :  { %v238_v37 = vsub.f32 1.5, %v237_v13  ;;  %v186_v39 = vmul.f32 %v148_v34, %v620_v38  ;;  %v188_v40 = vmul.f32 %v154_v36, %v620_v38 }
 0x104   :  { %v751_v41 = vpop.eup %459  ;;  %v218_v20 = vsub.f32 1.5, %v217_v31  ;;  %v774_v58 = vadd.f32 1e-05, %v190_v18 }
 0x105   :  { %v753_v42 = vpop.eup %461  ;;  %v239_v19 = vmul.f32 %v456_v15, %v238_v37  ;;  %v265_v43 = vmul.f32 %v751_v41, %v739_v17  ;;  %v757_v46 = vadd.f32 1e-05, %v186_v39  ;;  %v769_v24 = vadd.f32 1e-05, %v188_v40 }
 0x106   :  { %v759_v49 = vpop.eup %463  ;;  %v219_v52 = vmul.f32 %v458_v21, %v218_v20  ;;  %v245_v53 = vmul.f32 %v753_v42, %v741_v12  ;;  %vm271_vm9 = vweird.f32 %v751_v41  ;;  %vm251_vm10 = vweird.f32 %v753_v42 }
 0x107   :  { %v243_v26 = vsel %vm242_vm6, %v456_v15, %v239_v19  ;;  %v225_v54 = vmul.f32 %v759_v49, %v743_v14  ;;  %v266_v55 = vmul.f32 %v751_v41, %v265_v43  ;;  %465 = vrsqrt.f32 %v757_v46  ;;  %vm272_vm14 = vmor %vm270_vm8, %vm271_vm9 }
 0x108   :  { %v223_v61 = vsel %vm222_vm7, %v458_v21, %v219_v52  ;;  %v376_v62 = vmul.f32 %v243_v26, %v625_v44  ;;  %v246_v63 = vmul.f32 %v753_v42, %v245_v53  ;;  %467 = vrsqrt.f32 %v769_v24  ;;  %vm252_vm15 = vmor %vm250_vm12, %vm251_vm10 }
 0x109   :  { %v374_v1 = vmul.f32 %v223_v61, %v628_v45  ;;  %v226_v3 = vmul.f32 %v759_v49, %v225_v54  ;;  %v267_v4 = vmul.f32 0.5, %v266_v55  ;;  %469 = vrsqrt.f32 %v774_v58  ;;  %v169_v27 = vpop.xlane.xlu0 %168 }
 0x10a   :  { %v396_v5 = vmul.f32 %v764_v51, %v376_v62  ;;  %v247_v30 = vmul.f32 0.5, %v246_v63  ;;  %v157_v6 = vpop.xlane.xlu2 %156  ;;  %v163_v15 = vpop.xlane.xlu1 %162  ;;  %vm231_vm11 = vweird.f32 %v759_v49  ;;  %vm260_vm1 = vweird.f32 %v757_v46 }
 0x10b   :  { %v394_v44 = vmul.f32 %v764_v51, %v374_v1  ;;  %v227_v7 = vmul.f32 0.5, %v226_v3  ;;  %v268_v8 = vsub.f32 1.5, %v267_v4  ;;  %v189_v11 = vmul.f32 %v157_v6, %v620_v38  ;;  %vm232_vm2 = vmor %vm230_vm13, %vm231_vm11 }
 0x10c   :  { %v416_v45 = vadd.f32 %v779_v60, %v396_v5  ;;  %v248_v9 = vsub.f32 1.5, %v247_v30  ;;  %v191_v17 = vmul.f32 %v163_v15, %v620_v38  ;;  %v193_v39 = vmul.f32 %v169_v27, %v620_v38 }
 0x10d   :  { %v414_v21 = vadd.f32 %v779_v60, %v394_v44  ;;  %v228_v22 = vsub.f32 1.5, %v227_v7  ;;  %v269_v23 = vmul.f32 %v751_v41, %v268_v8  ;;  %v798_v28 = vpop.eup %465  ;;  %v811_v29 = vadd.f32 1e-05, %v189_v11 }
 0x10e   :  { %432 = vst.msk [vmem:[%s1015_s3 + $0x10] sm:$0xff] %vm30_vm0, %v416_v45  ;;  %v249_v13 = vmul.f32 %v753_v42, %v248_v9  ;;  %v255_v14 = vmul.f32 %v798_v28, %v757_v46  ;;  %v825_v34 = vpop.eup %467  ;;  %vm280_vm3 = vweird.f32 %v769_v24  ;;  %vm261_vm4 = vweird.f32 %v798_v28 }
 0x10f   :  { %430 = vst.msk [vmem:[%s1015_s3] sm:$0xff] %vm30_vm0, %v414_v21  ;;  %v229_v31 = vmul.f32 %v759_v49, %v228_v22  ;;  %v273_v12 = vsel %vm272_vm14, %v751_v41, %v269_v23  ;;  %471 = vrsqrt.f32 %v811_v29  ;;  %v470_v40 = vpop.eup %469  ;;  %v275_v19 = vmul.f32 %v825_v34, %v769_v24  ;;  %vm262_vm7 = vmor %vm260_vm1, %vm261_vm4 }
 0x110   :  { %v253_v36 = vsel %vm252_vm15, %v753_v42, %v249_v13  ;;  %v379_v37 = vmul.f32 %v273_v12, %v640_v56  ;;  %v256_v20 = vmul.f32 %v798_v28, %v255_v14  ;;  %v295_v56 = vmul.f32 %v470_v40, %v774_v58 }
 0x111   :  { %v377_v18 = vmul.f32 %v253_v36, %v643_v57  ;;  %v233_v41 = vsel %vm232_vm2, %v759_v49, %v229_v31  ;;  %v276_v57 = vmul.f32 %v825_v34, %v275_v19  ;;  %v850_v1 = vadd.f32 1e-05, %v193_v39  ;;  %v178_v9 = vpop.xlane.xlu0 %177 }
 0x112   :  { %v375_v42 = vmul.f32 %v233_v41, %v647_v59  ;;  %v399_v43 = vmul.f32 %v764_v51, %v379_v37  ;;  %v166_v52 = vpop.xlane.xlu2 %165  ;;  %v257_v26 = vmul.f32 0.5, %v256_v20  ;;  %v296_v55 = vmul.f32 %v470_v40, %v295_v56  ;;  %v172_v30 = vpop.xlane.xlu1 %171 }
 0x113   :  { %v397_v53 = vmul.f32 %v764_v51, %v377_v18  ;;  %v847_v59 = vadd.f32 1e-05, %v191_v17  ;;  %v277_v63 = vmul.f32 0.5, %v276_v57  ;;  %vm300_vm5 = vweird.f32 %v774_v58 }
 0x114   :  { %v395_v49 = vmul.f32 %v764_v51, %v375_v42  ;;  %v419_v54 = vadd.f32 %v779_v60, %v399_v43  ;;  %v258_v62 = vsub.f32 1.5, %v257_v26  ;;  %v297_v5 = vmul.f32 0.5, %v296_v55 }
 0x115   :  { %v417_v61 = vadd.f32 %v779_v60, %v397_v53  ;;  %v852_v3 = vpop.eup %471  ;;  %473 = vrsqrt.f32 %v847_v59  ;;  %v278_v44 = vsub.f32 1.5, %v277_v63  ;;  %vm281_vm6 = vweird.f32 %v825_v34 }
 0x116   :  { %v415_v4 = vadd.f32 %v779_v60, %v395_v49  ;;  %435 = vst.msk [vmem:[%s1015_s3 + $0x28] sm:$0xff] %vm30_vm0, %v419_v54  ;;  %v259_v6 = vmul.f32 %v798_v28, %v258_v62  ;;  %v285_v7 = vmul.f32 %v852_v3, %v811_v29  ;;  %v298_v8 = vsub.f32 1.5, %v297_v5  ;;  %vm282_vm9 = vmor %vm280_vm3, %vm281_vm6 }
 0x117   :  { %433 = vst.msk [vmem:[%s1015_s3 + $0x18] sm:$0xff] %vm30_vm0, %v417_v61  ;;  %vm301_vm8 = vweird.f32 %v470_v40  ;;  %475 = vrsqrt.f32 %v850_v1  ;;  %v192_v45 = vmul.f32 %v166_v52, %v620_v38  ;;  %v279_v15 = vmul.f32 %v825_v34, %v278_v44 }
 0x118   :  { %431 = vst.msk [vmem:[%s1015_s3 + $0x8] sm:$0xff] %vm30_vm0, %v415_v4  ;;  %v263_v11 = vsel %vm262_vm7, %v798_v28, %v259_v6  ;;  %v286_v21 = vmul.f32 %v852_v3, %v285_v7  ;;  %v194_v22 = vmul.f32 %v172_v30, %v620_v38  ;;  %v299_v46 = vmul.f32 %v470_v40, %v298_v8  ;;  %vm302_vm11 = vmor %vm300_vm5, %vm301_vm8 }
 0x119   :  { %v378_v23 = vmul.f32 %v263_v11, %v658_v2  ;;  %vm290_vm10 = vweird.f32 %v811_v29  ;;  %v887_v27 = vadd.f32 1e-05, %v192_v45  ;;  %v283_v13 = vsel %vm282_vm9, %v825_v34, %v279_v15 }
 0x11a   :  { %v287_v28 = vmul.f32 0.5, %v286_v21  ;;  %v892_v31 = vadd.f32 1e-05, %v194_v22  ;;  %v196_v12 = vmul.f32 %v178_v9, %v620_v38  ;;  %v175_v14 = vpop.xlane.xlu2 %174  ;;  %v380_v17 = vmul.f32 %v283_v13, %v668_v0  ;;  %v181_v57 = vpop.xlane.xlu1 %180 }
 0x11b   :  { %v474_v2 = vpop.eup %473  ;;  %v398_v24 = vmul.f32 %v764_v51, %v378_v23  ;;  %v303_v36 = vsel %vm302_vm11, %v470_v40, %v299_v46  ;;  %477 = vrsqrt.f32 %v887_v27  ;;  %vm291_vm12 = vweird.f32 %v852_v3 }
 0x11c   :  { %v382_v37 = vmul.f32 %v303_v36, %v665_v10  ;;  %v288_v34 = vsub.f32 1.5, %v287_v28  ;;  %v305_v58 = vmul.f32 %v474_v2, %v847_v59  ;;  %v400_v41 = vmul.f32 %v764_v51, %v380_v17  ;;  %vm292_vm13 = vmor %vm290_vm10, %vm291_vm12 }
 0x11d   :  { %v476_v39 = vpop.eup %475  ;;  %v418_v18 = vadd.f32 %v779_v60, %v398_v24  ;;  %479 = vrsqrt.f32 %v892_v31  ;;  %v195_v20 = vmul.f32 %v175_v14, %v620_v38  ;;  %vm310_vm14 = vweird.f32 %v847_v59 }
 0x11e   :  { %v402_v0 = vmul.f32 %v764_v51, %v382_v37  ;;  %v289_v40 = vmul.f32 %v852_v3, %v288_v34  ;;  %v306_v19 = vmul.f32 %v474_v2, %v305_v58  ;;  %v325_v10 = vmul.f32 %v476_v39, %v850_v1 }
 0x11f   :  { %434 = vst.msk [vmem:[%s1015_s3 + $0x20] sm:$0xff] %vm30_vm0, %v418_v18  ;;  %v420_v42 = vadd.f32 %v779_v60, %v400_v41  ;;  %v916_v43 = vadd.f32 1e-05, %v196_v12  ;;  %vm330_vm15 = vweird.f32 %v850_v1  ;;  %v927_v54 = vadd.f32 1e-05, %v195_v20 }
 0x120   :  { %v422_v56 = vadd.f32 %v779_v60, %v402_v0  ;;  %v293_v52 = vsel %vm292_vm13, %v852_v3, %v289_v40  ;;  %v307_v53 = vmul.f32 0.5, %v306_v19  ;;  %v326_v26 = vmul.f32 %v476_v39, %v325_v10 }
 0x121   :  { %v478_v49 = vpop.eup %477  ;;  %436 = vst.msk [vmem:[%s1015_s3 + $0x30] sm:$0xff] %vm30_vm0, %v420_v42  ;;  %v381_v29 = vmul.f32 %v293_v52, %v675_v16  ;;  %481 = vrsqrt.f32 %v916_v43  ;;  %vm311_vm1 = vweird.f32 %v474_v2  ;;  %vm331_vm2 = vweird.f32 %v476_v39 }
 0x122   :  { %438 = vst.msk [vmem:[%s1015_s3 + $0x40] sm:$0xff] %vm30_vm0, %v422_v56  ;;  %v308_v55 = vsub.f32 1.5, %v307_v53  ;;  %v327_v61 = vmul.f32 0.5, %v326_v26  ;;  %v315_v62 = vmul.f32 %v478_v49, %v887_v27  ;;  %483 = vrsqrt.f32 %v927_v54  ;;  %vm312_vm3 = vmor %vm310_vm14, %vm311_vm1 }
 0x123   :  { %v480_v63 = vpop.eup %479  ;;  %v401_v3 = vmul.f32 %v764_v51, %v381_v29  ;;  %v197_v16 = vmul.f32 %v181_v57, %v620_v38  ;;  %vm332_vm4 = vmor %vm330_vm15, %vm331_vm2  ;;  %vm321_vm5 = vweird.f32 %v478_v49  ;;  %vm320_vm6 = vweird.f32 %v887_v27 }
 0x124   :  { %v309_v4 = vmul.f32 %v474_v2, %v308_v55  ;;  %v328_v5 = vsub.f32 1.5, %v327_v61  ;;  %v316_v30 = vmul.f32 %v478_v49, %v315_v62  ;;  %v335_v6 = vmul.f32 %v480_v63, %v892_v31  ;;  %vm322_vm8 = vmor %vm320_vm6, %vm321_vm5 }
 0x125   :  { %v421_v44 = vadd.f32 %v779_v60, %v401_v3  ;;  %v941_v7 = vadd.f32 1e-05, %v197_v16  ;;  %vm341_vm7 = vweird.f32 %v480_v63  ;;  %vm340_vm9 = vweird.f32 %v892_v31 }
 0x126   :  { %v313_v8 = vsel %vm312_vm3, %v474_v2, %v309_v4  ;;  %v329_v45 = vmul.f32 %v476_v39, %v328_v5  ;;  %v317_v9 = vmul.f32 0.5, %v316_v30  ;;  %v336_v11 = vmul.f32 %v480_v63, %v335_v6  ;;  %vm342_vm10 = vmor %vm340_vm9, %vm341_vm7 }
 0x127   :  { %v482_v15 = vpop.eup %481  ;;  %437 = vst.msk [vmem:[%s1015_s3 + $0x38] sm:$0xff] %vm30_vm0, %v421_v44  ;;  %v383_v38 = vmul.f32 %v313_v8, %v691_v33  ;;  %485 = vrsqrt.f32 %v941_v7  ;;  %vm360_vm11 = vweird.f32 %v916_v43  ;;  %vm350_vm15 = vweird.f32 %v927_v54 }
 0x128   :  { %v333_v59 = vsel %vm332_vm4, %v476_v39, %v329_v45  ;;  %v318_v21 = vsub.f32 1.5, %v317_v9  ;;  %v337_v22 = vmul.f32 0.5, %v336_v11  ;;  %v355_v23 = vmul.f32 %v482_v15, %v916_v43  ;;  %v484_v46 = vpop.eup %483 }
 0x129   :  { %v403_v13 = vmul.f32 %v764_v51, %v383_v38  ;;  %v385_v28 = vmul.f32 %v333_v59, %v688_v32  ;;  %v345_v14 = vmul.f32 %v484_v46, %v927_v54  ;;  %vm361_vm12 = vweird.f32 %v482_v15 }
 0x12a   :  { %v319_v33 = vmul.f32 %v478_v49, %v318_v21  ;;  %v338_v12 = vsub.f32 1.5, %v337_v22  ;;  %v356_v1 = vmul.f32 %v482_v15, %v355_v23  ;;  %vm351_vm13 = vweird.f32 %v484_v46  ;;  %vm362_vm14 = vmor %vm360_vm11, %vm361_vm12 }
 0x12b   :  { %v423_v2 = vadd.f32 %v779_v60, %v403_v13  ;;  %v405_v24 = vmul.f32 %v764_v51, %v385_v28  ;;  %v346_v32 = vmul.f32 %v484_v46, %v345_v14  ;;  %vm352_vm1 = vmor %vm350_vm15, %vm351_vm13  ;;  %vm370_vm3 = vweird.f32 %v941_v7 }
 0x12c   :  { %v323_v17 = vsel %vm322_vm8, %v478_v49, %v319_v33  ;;  %v339_v36 = vmul.f32 %v480_v63, %v338_v12  ;;  %v357_v37 = vmul.f32 0.5, %v356_v1 }
 0x12d   :  { %v486_v34 = vpop.eup %485  ;;  %439 = vst.msk [vmem:[%s1015_s3 + $0x48] sm:$0xff] %vm30_vm0, %v423_v2  ;;  %v425_v27 = vadd.f32 %v779_v60, %v405_v24  ;;  %v384_v58 = vmul.f32 %v323_v17, %v696_v35  ;;  %v347_v18 = vmul.f32 0.5, %v346_v32 }
 0x12e   :  { %v343_v31 = vsel %vm342_vm10, %v480_v63, %v339_v36  ;;  %v358_v39 = vsub.f32 1.5, %v357_v37  ;;  %v365_v41 = vmul.f32 %v486_v34, %v941_v7  ;;  %vm371_vm2 = vweird.f32 %v486_v34 }
 0x12f   :  { %441 = vst.msk [vmem:[%s1015_s3 + $0x58] sm:$0xff] %vm30_vm0, %v425_v27  ;;  %v404_v20 = vmul.f32 %v764_v51, %v384_v58  ;;  %v386_v0 = vmul.f32 %v343_v31, %v712_v48  ;;  %v348_v40 = vsub.f32 1.5, %v347_v18  ;;  %vm372_vm4 = vmor %vm370_vm3, %vm371_vm2 }
 0x130   :  { %v359_v35 = vmul.f32 %v482_v15, %v358_v39  ;;  %v366_v19 = vmul.f32 %v486_v34, %v365_v41 }
 0x131   :  { %v424_v10 = vadd.f32 %v779_v60, %v404_v20  ;;  %v406_v42 = vmul.f32 %v764_v51, %v386_v0  ;;  %v349_v52 = vmul.f32 %v484_v46, %v348_v40 }
 0x132   :  { %v363_v56 = vsel %vm362_vm14, %v482_v15, %v359_v35  ;;  %v367_v53 = vmul.f32 0.5, %v366_v19 }
 0x133   :  { %440 = vst.msk [vmem:[%s1015_s3 + $0x50] sm:$0xff] %vm30_vm0, %v424_v10  ;;  %v426_v48 = vadd.f32 %v779_v60, %v406_v42  ;;  %v388_v26 = vmul.f32 %v363_v56, %v709_v47  ;;  %v353_v57 = vsel %vm352_vm1, %v484_v46, %v349_v52 }
 0x134   :  { %v368_v49 = vsub.f32 1.5, %v367_v53  ;;  %v387_v29 = vmul.f32 %v353_v57, %v717_v50 }
 0x135   :  { %442 = vst.msk [vmem:[%s1015_s3 + $0x60] sm:$0xff] %vm30_vm0, %v426_v48  ;;  %v408_v43 = vmul.f32 %v764_v51, %v388_v26 }
 0x136   :  { %v369_v54 = vmul.f32 %v486_v34, %v368_v49  ;;  %v407_v47 = vmul.f32 %v764_v51, %v387_v29 }
 0x137   :  { %v428_v55 = vadd.f32 %v779_v60, %v408_v43 }
 0x138   :  { %v373_v61 = vsel %vm372_vm4, %v486_v34, %v369_v54  ;;  %v427_v62 = vadd.f32 %v779_v60, %v407_v47 }
 0x139   :  { %444 = vst.msk [vmem:[%s1015_s3 + $0x70] sm:$0xff] %vm30_vm0, %v428_v55  ;;  %v389_v63 = vmul.f32 %v373_v61, %v728_v25 }
 0x13a   :  { %443 = vst.msk [vmem:[%s1015_s3 + $0x68] sm:$0xff] %vm30_vm0, %v427_v62 }
 0x13b   :  { %v409_v50 = vmul.f32 %v764_v51, %v389_v63 }
 0x13d   :  { %v429_v3 = vadd.f32 %v779_v60, %v409_v50 }
 0x13f   :  { %445 = vst.msk [vmem:[%s1015_s3 + $0x78] sm:$0xff] %vm30_vm0, %v429_v3 }

// kernel: spatial_transformer_forward.8
= control target key start
LH: loop header
LB: loop body
LE: loop exit
PB: predicated region body
PF: predicated region fallthrough
CT: control target
= control target key end

     0   :  { %s3483_s12 = smov 0   ;;  %s3485_s13 = smov 0   ;;  %s5039_s0 = inlined_call_operand.vmem [shape: bf16[2,64,64], index: 0, kind: input, shape index: {}]   ;;  %s5040_s1 = inlined_call_operand.vmem [shape: bf16[2,16,64], index: 1, kind: input, shape index: {}]   ;;  %s5041_s2 = inlined_call_operand.vmem [shape: bf16[2,16,64], index: 2, kind: input, shape index: {}]   ;;  %s5042_s3 = inlined_call_operand.vmem [shape: bf16[2,64,64], index: 3, kind: output, shape index: {}]  }
   0x1   :  { %s3487_s14 = smov 0  }
   0x2 LB: > { %s32_s15 = sadd.s32 1, %s3450_s13  ;;  %p3251_p0 = scmp.ge.s32.totalorder %s3454_s14, 1  ;;  %s3454_s14 = sphi %s3487_s14, %s13_s14   ;;  %s3450_s13 = sphi %s3485_s13, %s5044_s13   ;;  %s3446_s12 = sphi %s3483_s12, %s5043_s12  }
   0x3   : > { %p34_p1 = scmp.ge.s32.totalorder %s32_s15, 2  ;;  %p199_p2 = scmp.lt.s32.totalorder %s3454_s14, 3 }
   0x5   : > { %s5046_s15 = smov (%p34_p1, %s32_s15), 0  ;;  %p200_p3 = pnand %p3251_p0, %p199_p2 }
   0x6   : > { %p250_p4 = scmp.lt.s32.totalorder (!%p200_p3), %s3446_s12, 1  ;;  %s3456_s24 = smov (!%p200_p3), 96  }
   0x7   : > { %203 = sbr.rel (%p200_p3) target bundleno = 1054 (0x41e), region = 32  ;;  %s3462_s28 = smov (!%p200_p3), 32  }
   0xc   : > { %s5048_s12 = smov (!%p250_p4, %s3446_s12), 1  ;;  %v3457_v11 = vmov 1983009808   ;;  %v3458_v20 = vmov 1934713408   ;;  %vm430_vm0 = vcmask 1047556  }
   0xd   : > { %s3279_s16 = sshll.u32 %s5048_s12, 3  ;;  %s3278_s17 = sshll.u32 %s5048_s12, 5  ;;  %v426_v12 = vunpack.c.l.s4 %v3457_v11  ;;  %v433_v21 = vunpack.c.l.s4 %v3458_v20  ;;  %vm327_vm1 = vcmask 261120   ;;  %vm1536_vm2 = vcmask 130048  }
   0xe   : > { %s267_s20 = scalar_lea.vmem %s5040_s1, %s3279_s16  ;;  %s257_s23 = scalar_lea.vmem %s5039_s0, %s3278_s17  ;;  %vm294_vm3 = vcmask 7168   ;;  %vm3112_vm4 = vcmask 519168  }
   0xf   : > { %v1049_v0 = vld [vmem:[%s267_s20] sm:$0xf]  ;;  %v346_v2 = vld [vmem:[%s257_s23 + $0x8] sm:$0xf]  ;;  %v3518_v3 = vld [vmem:[%s267_s20 + $0x4] sm:$0xf]  ;;  %v3546_v15 = vunpack.c.0.s8 %v426_v12  ;;  %v3552_v26 = vunpack.c.0.s8 %v433_v21  ;;  %s277_s27 = scalar_lea.vmem %s5041_s2, %s3279_s16  ;;  %s5004_s4 = scalar_lea.vmem %s5042_s3, %s3278_s17 }
  0x10   : > { %v344_v1 = vld [vmem:[%s257_s23] sm:$0xf]  ;;  %1053 = vrot.lane.b32.xlu0 %v1049_v0, %s3456_s24  ;;  %364 = vrot.lane.b32.xlu2 %v346_v2, %s3456_s24  ;;  %v3520_v4 = vld [vmem:[%s257_s23 + $0x4] sm:$0xf]  ;;  %v391_v10 = vshrl.u32 %v346_v2, 16  ;;  %v1060_v29 = vshrl.u32 %v1049_v0, 16 }
  0x11   : > { %360 = vrot.lane.b32.xlu1 %v344_v1, %s3456_s24  ;;  %v3522_v5 = vld [vmem:[%s257_s23 + $0xc] sm:$0xf]  ;;  %v3530_v6 = vld [vmem:[%s257_s23 + $0x10] sm:$0xf]  ;;  %v3532_v7 = vld [vmem:[%s257_s23 + $0x14] sm:$0xf] }
  0x12   : > { %v3534_v8 = vld [vmem:[%s257_s23 + $0x18] sm:$0xf]  ;;  %v3542_v9 = vld [vmem:[%s257_s23 + $0x1c] sm:$0xf]  ;;  %v379_v30 = vshrl.u32 %v344_v1, 16  ;;  %v397_v47 = vshrl.u32 %v3522_v5, 16 }
  0x13   : > { %v1066_v57 = vshrl.u32 %v3518_v3, 16  ;;  %v385_v58 = vshrl.u32 %v3520_v4, 16  ;;  %v403_v61 = vshrl.u32 %v3530_v6, 16 }
  0x18   : > { %1055 = vrot.lane.b32.xlu0 %v3518_v3, %s3456_s24  ;;  %366 = vrot.lane.b32.xlu2 %v3522_v5, %s3456_s24 }
  0x19   : > { %362 = vrot.lane.b32.xlu1 %v3520_v4, %s3456_s24 }
  0x20   : > { %368 = vrot.lane.b32.xlu0 %v3530_v6, %s3456_s24  ;;  %372 = vrot.lane.b32.xlu2 %v3534_v8, %s3456_s24 }
  0x21   : > { %370 = vrot.lane.b32.xlu1 %v3532_v7, %s3456_s24 }
  0x28   : > { %374 = vrot.lane.b32.xlu0 %v3542_v9, %s3456_s24 }
  0x6a   : > { %v365_v13 = vpop.permute.xlu2 %364 }
  0x6b   : > { %v392_v14 = vshrl.u32 %v365_v13, 16  ;;  %v390_v16 = vpack.i.b16 %v365_v13, %v346_v2 }
  0x6d   : > { %v393_v17 = vpack.i.b16 %v392_v14, %v391_v10  ;;  %v505_v18 = vperm.slane %v390_v16, %v3546_v15 }
  0x6f   : > { %v524_v19 = vperm.slane %v393_v17, %v3546_v15  ;;  %v506_v22 = vrot.slane %v505_v18, 4  ;;  %v511_v33 = vperm.slane %v505_v18, %v3552_v26  ;;  %v409_v17 = vshrl.u32 %v3532_v7, 16 }
  0x70   : > { %v421_v18 = vshrl.u32 %v3542_v9, 16 }
  0x71   : > { %v525_v23 = vrot.slane %v524_v19, 4  ;;  %v507_v24 = vsel %vm430_vm0, 0, %v506_v22  ;;  %v530_v39 = vperm.slane %v524_v19, %v3552_v26  ;;  %v516_v49 = vrot.slane %v511_v33, 4 }
  0x72   : > { %v515_v27 = vperm.slane %v507_v24, %v3552_v26  ;;  %v367_v41 = vpop.permute.xlu2 %366  ;;  %v415_v19 = vshrl.u32 %v3534_v8, 16 }
  0x73   : > { %v526_v25 = vsel %vm430_vm0, 0, %v525_v23  ;;  %v396_v46 = vpack.i.b16 %v367_v41, %v3522_v5  ;;  %v398_v50 = vshrl.u32 %v367_v41, 16  ;;  %v535_v55 = vrot.slane %v530_v39, 4 }
  0x74   : > { %v534_v28 = vperm.slane %v526_v25, %v3552_v26  ;;  %v518_v38 = vrot.slane %v515_v27, 4  ;;  %v517_v62 = vsel %vm430_vm0, 0, %v516_v49 }
  0x75   : > { %v543_v60 = vperm.slane %v396_v46, %v3546_v15  ;;  %v536_v14 = vsel %vm430_vm0, 0, %v535_v55 }
  0x76   : > { %v537_v40 = vrot.slane %v534_v28, 4  ;;  %v519_v53 = vsel %vm430_vm0, 0, %v518_v38  ;;  %v3574_v5 = vsel %vm430_vm0, %v518_v38, %v511_v33 }
  0x77   : > { %v802_v63 = vrot.slane %v519_v53, 4  ;;  %v544_v20 = vrot.slane %v543_v60, 4  ;;  %v801_v22 = vperm.slane %v3574_v5, %v3546_v15 }
  0x78   : > { %v538_v56 = vsel %vm430_vm0, 0, %v537_v40  ;;  %v3579_v16 = vsel %vm430_vm0, %v537_v40, %v530_v39 }
  0x79   : > { %v819_v10 = vrot.slane %v538_v56, 4  ;;  %v803_v23 = vsel %vm430_vm0, %v802_v63, %v517_v62  ;;  %v818_v27 = vperm.slane %v3579_v16, %v3546_v15 }
  0x7b   : > { %v3593_v28 = vsel %vm430_vm0, %v819_v10, %v536_v14 }
  0x82   : > { %v1054_v31 = vpop.permute.xlu0 %1053 }
  0x83   : > { %v361_v32 = vpop.permute.xlu1 %360  ;;  %v1059_v34 = vpack.i.b16 %v1054_v31, %v1049_v0  ;;  %v1061_v35 = vshrl.u32 %v1054_v31, 16  ;;  %v399_v0 = vpack.i.b16 %v398_v50, %v397_v47 }
  0x84   : > { %v378_v36 = vpack.i.b16 %v361_v32, %v344_v1  ;;  %v380_v37 = vshrl.u32 %v361_v32, 16 }
  0x85   : > { %v1062_v42 = vpack.i.b16 %v1061_v35, %v1060_v29  ;;  %v1073_v43 = vperm.slane %v1059_v34, %v3546_v15  ;;  %v807_v35 = vperm.slane %v803_v23, %v3546_v15 }
  0x86   : > { %v381_v44 = vpack.i.b16 %v380_v37, %v379_v30  ;;  %v428_v45 = vperm.slane %v378_v36, %v3546_v15  ;;  %v3596_v30 = vperm.slane %v399_v0, %v3546_v15  ;;  %v545_v37 = vsel %vm430_vm0, 0, %v544_v20 }
  0x87   : > { %v1074_v51 = vrot.slane %v1073_v43, 4  ;;  %v1092_v52 = vperm.slane %v1062_v42, %v3546_v15  ;;  %v1079_v31 = vperm.slane %v1073_v43, %v3552_v26 }
  0x88   : > { %v429_v48 = vrot.slane %v428_v45, 4  ;;  %v448_v54 = vperm.slane %v381_v44, %v3546_v15  ;;  %v435_v32 = vperm.slane %v428_v45, %v3552_v26  ;;  %v3609_v45 = vperm.slane %v543_v60, %v3552_v26 }
  0x89   : > { %v1075_v1 = vsel %vm430_vm0, 0, %v1074_v51  ;;  %v1093_v2 = vrot.slane %v1092_v52, 4  ;;  %v1084_v46 = vrot.slane %v1079_v31, 4 }
  0x8a   : > { %v431_v59 = vsel %vm430_vm0, 0, %v429_v48  ;;  %v1056_v11 = vpop.permute.xlu0 %1055  ;;  %v449_v13 = vrot.slane %v448_v54, 4  ;;  %v1083_v21 = vperm.slane %v1075_v1, %v3552_v26  ;;  %v440_v47 = vrot.slane %v435_v32, 4 }
  0x8b   : > { %v439_v12 = vperm.slane %v431_v59, %v3552_v26  ;;  %v1065_v24 = vpack.i.b16 %v1056_v11, %v3518_v3  ;;  %v1094_v25 = vsel %vm430_vm0, 0, %v1093_v2  ;;  %v363_v29 = vpop.permute.xlu1 %362  ;;  %v1098_v3 = vperm.slane %v1092_v52, %v3552_v26 }
  0x8c   : > { %v450_v34 = vsel %vm430_vm0, 0, %v449_v13  ;;  %v1067_v36 = vshrl.u32 %v1056_v11, 16  ;;  %v1086_v38 = vrot.slane %v1083_v21, 4  ;;  %v1102_v39 = vperm.slane %v1094_v25, %v3552_v26 }
  0x8d   : > { %v442_v33 = vrot.slane %v439_v12, 4  ;;  %v1111_v40 = vperm.slane %v1065_v24, %v3546_v15  ;;  %v384_v41 = vpack.i.b16 %v363_v29, %v3520_v4  ;;  %v458_v42 = vperm.slane %v450_v34, %v3552_v26 }
  0x8e   : > { %v1068_v43 = vpack.i.b16 %v1067_v36, %v1066_v57  ;;  %v386_v44 = vshrl.u32 %v363_v29, 16  ;;  %v1103_v50 = vrot.slane %v1098_v3, 4  ;;  %v1087_v4 = vsel %vm430_vm0, 0, %v1086_v38 }
  0x8f   : > { %v443_v48 = vsel %vm430_vm0, 0, %v442_v33  ;;  %v1112_v49 = vrot.slane %v1111_v40, 4  ;;  %v467_v53 = vperm.slane %v384_v41, %v3546_v15  ;;  %v1105_v55 = vrot.slane %v1102_v39, 4 }
  0x90   : > { %v1130_v51 = vperm.slane %v1068_v43, %v3546_v15  ;;  %v387_v52 = vpack.i.b16 %v386_v44, %v385_v58  ;;  %v454_v56 = vperm.slane %v448_v54, %v3552_v26  ;;  %v563_v57 = vrot.slane %v3596_v30, 4 }
  0x91   : > { %v3618_v59 = vsel %vm430_vm0, %v1086_v38, %v1079_v31  ;;  %v461_v60 = vrot.slane %v458_v42, 4  ;;  %v734_v62 = vrot.slane %v443_v48, 4  ;;  %v468_v63 = vrot.slane %v467_v53, 4 }
  0x92   : > { %v441_v0 = vsel %vm430_vm0, 0, %v440_v47  ;;  %v3621_v1 = vrot.slane %v807_v35, 4  ;;  %v1113_v58 = vsel %vm430_vm0, 0, %v1112_v49  ;;  %v1131_v2 = vrot.slane %v1130_v51, 4 }
  0x93   : > { %v1085_v10 = vsel %vm430_vm0, 0, %v1084_v46  ;;  %v3626_v11 = vsel %vm430_vm0, 0, %v1103_v50  ;;  %v486_v54 = vperm.slane %v387_v52, %v3546_v15  ;;  %v553_v12 = vperm.slane %v545_v37, %v3552_v26 }
  0x94   : > { %v1149_v13 = vperm.slane %v3618_v59, %v3546_v15  ;;  %v1150_v14 = vrot.slane %v1087_v4, 4  ;;  %v459_v20 = vrot.slane %v454_v56, 4  ;;  %v469_v21 = vsel %vm430_vm0, 0, %v468_v63 }
  0x95   : > { %v3634_v23 = vsel %vm430_vm0, 0, %v1105_v55  ;;  %v462_v24 = vsel %vm430_vm0, 0, %v461_v60  ;;  %v735_v25 = vsel %vm430_vm0, %v734_v62, %v441_v0  ;;  %v1121_v29 = vperm.slane %v1113_v58, %v3552_v26 }
  0x96   : > { %v3640_v31 = vsel %vm430_vm0, %v1105_v55, %v1098_v3  ;;  %v3643_v34 = vsel %vm430_vm0, %v442_v33, %v435_v32  ;;  %v1117_v35 = vperm.slane %v1111_v40, %v3552_v26  ;;  %v1132_v36 = vsel %vm430_vm0, 0, %v1131_v2 }
  0x97   : > { %v3648_v37 = vsel %vm430_vm0, %v461_v60, %v454_v56  ;;  %v1136_v38 = vperm.slane %v1130_v51, %v3552_v26  ;;  %v477_v39 = vperm.slane %v469_v21, %v3552_v26  ;;  %v487_v41 = vrot.slane %v486_v54, 4  ;;  %v369_v56 = vpop.permute.xlu0 %368 }
  0x98   : > { %v3653_v42 = vsel %vm430_vm0, %v1150_v14, %v1085_v10  ;;  %v739_v3 = vperm.slane %v735_v25, %v3546_v15  ;;  %v751_v43 = vrot.slane %v462_v24, 4  ;;  %v554_v32 = vrot.slane %v3609_v45, 4 }
  0x99   : > { %v1167_v33 = vrot.slane %v3634_v23, 4  ;;  %v460_v40 = vsel %vm430_vm0, 0, %v459_v20  ;;  %v1124_v44 = vrot.slane %v1121_v29, 4  ;;  %v1140_v46 = vperm.slane %v1132_v36, %v3552_v26 }
  0x9a   : > { %v733_v47 = vperm.slane %v3643_v34, %v3546_v15  ;;  %v750_v48 = vperm.slane %v3648_v37, %v3546_v15  ;;  %v1122_v49 = vrot.slane %v1117_v35, 4  ;;  %v556_v50 = vrot.slane %v553_v12, 4 }
  0x9b   : > { %v1141_v51 = vrot.slane %v1136_v38, 4  ;;  %v473_v52 = vperm.slane %v467_v53, %v3552_v26  ;;  %v480_v4 = vrot.slane %v477_v39, 4  ;;  %v488_v55 = vsel %vm430_vm0, 0, %v487_v41  ;;  %v371_v41 = vpop.permute.xlu1 %370 }
  0x9c   : > { %v3666_v60 = vrot.slane %v739_v3, 4  ;;  %v3669_v62 = vsel %vm430_vm0, %v751_v43, %v460_v40  ;;  %v555_v63 = vsel %vm430_vm0, 0, %v554_v32  ;;  %v402_v0 = vpack.i.b16 %v369_v56, %v3530_v6 }
  0x9d   : > { %v1125_v58 = vsel %vm430_vm0, 0, %v1124_v44  ;;  %v1143_v2 = vrot.slane %v1140_v46, 4  ;;  %v492_v10 = vperm.slane %v486_v54, %v3552_v26  ;;  %v564_v53 = vsel %vm430_vm0, 0, %v563_v57 }
  0x9e   : > { %v1123_v12 = vsel %vm430_vm0, 0, %v1122_v49  ;;  %v3678_v14 = vsel %vm430_vm0, %v1124_v44, %v1117_v35  ;;  %v496_v20 = vperm.slane %v488_v55, %v3552_v26  ;;  %v404_v21 = vshrl.u32 %v369_v56, 16 }
  0x9f   : > { %v3682_v24 = vsel %vm430_vm0, 0, %v1141_v51  ;;  %v478_v25 = vrot.slane %v473_v52, 4  ;;  %v481_v29 = vsel %vm430_vm0, 0, %v480_v4  ;;  %v557_v36 = vsel %vm430_vm0, 0, %v556_v50 }
  0xa0   : > { %v1184_v39 = vrot.slane %v1125_v58, 4  ;;  %v572_v54 = vperm.slane %v564_v53, %v3552_v26  ;;  %v405_v57 = vpack.i.b16 %v404_v21, %v403_v61  ;;  %v581_v35 = vperm.slane %v402_v0, %v3546_v15 }
  0xa1   : > { %v3691_v3 = vsel %vm430_vm0, 0, %v1143_v2  ;;  %v1183_v43 = vperm.slane %v3678_v14, %v3546_v15  ;;  %v497_v32 = vrot.slane %v492_v10, 4  ;;  %v408_v40 = vpack.i.b16 %v371_v41, %v3532_v7 }
  0xa2   : > { %v499_v44 = vrot.slane %v496_v20, 4  ;;  %v768_v46 = vrot.slane %v481_v29, 4  ;;  %v582_v49 = vrot.slane %v581_v35, 4  ;;  %v600_v51 = vperm.slane %v405_v57, %v3546_v15 }
  0xa3   : > { %v479_v6 = vsel %vm430_vm0, 0, %v478_v25  ;;  %v3699_v61 = vsel %vm430_vm0, %v480_v4, %v473_v52  ;;  %v568_v55 = vperm.slane %v3596_v30, %v3552_v26  ;;  %v836_v56 = vrot.slane %v557_v36, 4 }
  0xa4   : > { %v1185_v0 = vsel %vm430_vm0, %v1184_v39, %v1123_v12  ;;  %v3705_v58 = vsel %vm430_vm0, %v1143_v2, %v1136_v38  ;;  %v575_v53 = vrot.slane %v572_v54, 4  ;;  %v410_v20 = vshrl.u32 %v371_v41, 16 }
  0xa5   : > { %v1201_v21 = vrot.slane %v3691_v3, 4  ;;  %v498_v29 = vsel %vm430_vm0, 0, %v497_v32  ;;  %v583_v25 = vsel %vm430_vm0, 0, %v582_v49  ;;  %v619_v52 = vperm.slane %v408_v40, %v3546_v15 }
  0xa6   : > { %v500_v4 = vsel %vm430_vm0, 0, %v499_v44  ;;  %v767_v30 = vperm.slane %v3699_v61, %v3546_v15  ;;  %v769_v12 = vsel %vm430_vm0, %v768_v46, %v479_v6  ;;  %v601_v36 = vrot.slane %v600_v51, 4 }
  0xa7   : > { %v573_v38 = vrot.slane %v568_v55, 4  ;;  %v837_v2 = vsel %vm430_vm0, %v836_v56, %v555_v63  ;;  %v587_v39 = vperm.slane %v581_v35, %v3552_v26  ;;  %v1155_v54 = vperm.slane %v3653_v42, %v3546_v15 }
  0xa8   : > { %v576_v57 = vsel %vm430_vm0, 0, %v575_v53  ;;  %v591_v41 = vperm.slane %v583_v25, %v3552_v26  ;;  %v3722_v3 = vperm.slane %v600_v51, %v3552_v26  ;;  %v411_v32 = vpack.i.b16 %v410_v20, %v409_v17 }
  0xa9   : > { %v773_v40 = vperm.slane %v769_v12, %v3546_v15  ;;  %v3728_v46 = vsel %vm430_vm0, %v499_v44, %v492_v10  ;;  %v3732_v63 = vsel %vm430_vm0, %v556_v50, %v3609_v45  ;;  %v620_v42 = vrot.slane %v619_v52, 4 }
  0xaa   : > { %v785_v35 = vrot.slane %v500_v4, 4  ;;  %v841_v49 = vperm.slane %v837_v2, %v3546_v15  ;;  %v3736_v6 = vsel %vm430_vm0, %v575_v53, %v568_v55  ;;  %v602_v51 = vsel %vm430_vm0, 0, %v601_v36 }
  0xab   : > { %v853_v7 = vrot.slane %v576_v57, 4  ;;  %v592_v17 = vrot.slane %v587_v39, 4  ;;  %v3740_v56 = vperm.slane %v619_v52, %v3552_v26  ;;  %v1156_v10 = vrot.slane %v1155_v54, 4 }
  0xac   : > { %v574_v44 = vsel %vm430_vm0, 0, %v573_v38  ;;  %v594_v20 = vrot.slane %v591_v41, 4  ;;  %v611_v45 = vrot.slane %v3722_v3, 4  ;;  %v638_v50 = vperm.slane %v411_v32, %v3546_v15 }
  0xad   : > { %v784_v25 = vperm.slane %v3728_v46, %v3546_v15  ;;  %v835_v55 = vperm.slane %v3732_v63, %v3546_v15  ;;  %v610_v53 = vperm.slane %v602_v51, %v3552_v26  ;;  %v621_v4 = vsel %vm430_vm0, 0, %v620_v42 }
  0xae   : > { %v774_v52 = vrot.slane %v773_v40, 4  ;;  %v786_v12 = vsel %vm430_vm0, %v785_v35, %v498_v29  ;;  %v3752_v36 = vrot.slane %v841_v49, 4  ;;  %v852_v38 = vperm.slane %v3736_v6, %v3546_v15 }
  0xaf   : > { %v3757_v2 = vsel %vm430_vm0, %v853_v7, %v574_v44  ;;  %v3760_v54 = vsel %vm430_vm0, 0, %v592_v17  ;;  %v630_v57 = vrot.slane %v3740_v56, 4  ;;  %v1157_v41 = vsel %vm430_vm0, %v1156_v10, %v1149_v13 }
  0xb0   : > { %v3768_v29 = vsel %vm430_vm0, 0, %v594_v20  ;;  %v3771_v32 = vsel %vm430_vm0, 0, %v611_v45  ;;  %v629_v40 = vperm.slane %v621_v4, %v3552_v26  ;;  %v639_v46 = vrot.slane %v638_v50, 4 }
  0xb1   : > { %v3774_v42 = vrot.slane %v610_v53, 4  ;;  %v3777_v35 = vperm.slane %v638_v50, %v3552_v26  ;;  %v1168_v59 = vsel %vm430_vm0, %v1167_v33, %v3626_v11  ;;  %v1189_v13 = vperm.slane %v1185_v0, %v3546_v15 }
  0xb2   : > { %v3785_v49 = vsel %vm430_vm0, %v594_v20, %v587_v39  ;;  %v1161_v51 = vperm.slane %v1157_v41, %v3552_v26  ;;  %v1172_v7 = vperm.slane %v1168_v59, %v3546_v15  ;;  %v1202_v17 = vsel %vm430_vm0, %v1201_v21, %v3682_v24 }
  0xb3   : > { %v870_v10 = vrot.slane %v3768_v29, 4  ;;  %v3793_v44 = vsel %vm430_vm0, 0, %v630_v57  ;;  %v1190_v23 = vrot.slane %v1189_v13, 4  ;;  %v1206_v11 = vperm.slane %v1202_v17, %v3546_v15 }
  0xb4   : > { %v1166_v33 = vperm.slane %v3640_v31, %v3546_v15  ;;  %v1173_v0 = vrot.slane %v1172_v7, 4  ;;  %v1200_v39 = vperm.slane %v3705_v58, %v3546_v15  ;;  %v756_v20 = vperm.slane %v3669_v62, %v3546_v15 }
  0xb5   : > { %v1191_v24 = vsel %vm430_vm0, %v1190_v23, %v1183_v43  ;;  %v1207_v21 = vrot.slane %v1206_v11, 4  ;;  %v775_v45 = vsel %vm430_vm0, %v774_v52, %v767_v30  ;;  %v790_v31 = vperm.slane %v786_v12, %v3546_v15  ;;  %v375_v30 = vpop.permute.xlu0 %374 }
  0xb6   : > { %v1174_v50 = vsel %vm430_vm0, %v1173_v0, %v1166_v33  ;;  %v1195_v58 = vperm.slane %v1191_v24, %v3552_v26  ;;  %v1216_v53 = vshrl.u32 %v1161_v51, 16  ;;  %v757_v62 = vrot.slane %v756_v20, 4 }
  0xb7   : > { %v1178_v4 = vperm.slane %v1174_v50, %v3552_v26  ;;  %v1208_v14 = vsel %vm430_vm0, %v1207_v21, %v1200_v39  ;;  %v741_v43 = vsel %vm430_vm0, %v3666_v60, %v733_v47  ;;  %v791_v61 = vrot.slane %v790_v31, 4 }
  0xb8   : > { %v1212_v52 = vperm.slane %v1208_v14, %v3552_v26  ;;  %v1222_v12 = vshrl.u32 %v1195_v58, 16  ;;  %v758_v57 = vsel %vm430_vm0, %v757_v62, %v750_v48  ;;  %v779_v41 = vperm.slane %v775_v45, %v3552_v26  ;;  %v373_v62 = vpop.permute.xlu2 %372 }
  0xb9   : > { %v1215_v59 = vpack.i.b16 %v1178_v4, %v1161_v51  ;;  %v1217_v13 = vshrl.u32 %v1178_v4, 16  ;;  %v762_v7 = vperm.slane %v758_v57, %v3552_v26  ;;  %v792_v34 = vsel %vm430_vm0, %v791_v61, %v784_v25 }
  0xba   : > { %v1221_v17 = vpack.i.b16 %v1212_v52, %v1195_v58  ;;  %v1223_v47 = vshrl.u32 %v1212_v52, 16  ;;  %v796_v60 = vperm.slane %v792_v34, %v3552_v26  ;;  %v422_v23 = vshrl.u32 %v375_v30, 16 }
  0xbb   : > { %v632_v11 = vrot.slane %v629_v40, 4  ;;  %v640_v33 = vsel %vm430_vm0, 0, %v639_v46  ;;  %v1218_v0 = vpack.i.b16 %v1217_v13, %v1216_v53  ;;  %v745_v37 = vperm.slane %v741_v43, %v3552_v26 }
  0xbc   : > { %v1413_v48 = vunpack.c.l.b16 %v1215_v59  ;;  %v1414_v39 = vunpack.c.l.b16 %v1221_v17  ;;  %v1224_v20 = vpack.i.b16 %v1223_v47, %v1222_v12  ;;  %v1011_v51 = vshrl.u32 %v796_v60, 16 }
  0xbd   : > { %v1009_v24 = vpack.i.b16 %v796_v60, %v779_v41  ;;  %v1005_v21 = vshrl.u32 %v762_v7, 16  ;;  %v1010_v45 = vshrl.u32 %v779_v41, 16  ;;  %v420_v25 = vpack.i.b16 %v375_v30, %v3542_v9 }
  0xbe   : > { %v1415_v31 = vpack.c.b16 %v1414_v39, %v1413_v48  ;;  %v1473_v50 = vunpack.c.l.b16 %v1218_v0  ;;  %v1474_v58 = vunpack.c.l.b16 %v1224_v20  ;;  %v423_v40 = vpack.i.b16 %v422_v23, %v421_v18 }
  0xbf   : > { %v614_v46 = vsel %vm430_vm0, 0, %v3774_v42  ;;  %v648_v53 = vperm.slane %v640_v33, %v3552_v26  ;;  %v1004_v4 = vshrl.u32 %v745_v37, 16  ;;  %v414_v14 = vpack.i.b16 %v373_v62, %v3534_v8 }
  0xc0   : > { %v1430_v43 = vsel %vm327_vm1, %v1415_v31, 0  ;;  %v1475_v61 = vpack.c.b16 %v1474_v58, %v1473_v50  ;;  %v1003_v52 = vpack.i.b16 %v762_v7, %v745_v37  ;;  %v1012_v30 = vpack.i.b16 %v1011_v51, %v1010_v45 }
  0xc1   : > { %v633_v12 = vsel %vm430_vm0, 0, %v632_v11  ;;  %1439 = vmatpush.bf16.xpose.msra.mxu0 %v1430_v43  ;;  %v1402_v57 = vunpack.c.l.b16 %v1009_v24  ;;  %v1006_v9 = vpack.i.b16 %v1005_v21, %v1004_v4  ;;  %v695_v18 = vperm.slane %v420_v25, %v3546_v15 }
  0xc2   : > { %v1489_v41 = vsel %vm327_vm1, %v1475_v61, 0  ;;  %v714_v59 = vperm.slane %v423_v40, %v3546_v15  ;;  %v416_v13 = vshrl.u32 %v373_v62, 16  ;;  %v657_v34 = vperm.slane %v414_v14, %v3546_v15 }
  0xc3   : > { %v871_v7 = vsel %vm430_vm0, %v870_v10, %v3760_v54  ;;  %v3851_v17 = vsel %vm430_vm0, %v3774_v42, %v3722_v3  ;;  %v887_v47 = vrot.slane %v614_v46, 4  ;;  %v649_v60 = vrot.slane %v3777_v35, 4  ;;  %1498 = vmatpush.bf16.xpose.msra.mxu1 %v1489_v41 }
  0xc4   : > { %v651_v23 = vrot.slane %v648_v53, 4  ;;  %v1401_v33 = vunpack.c.l.b16 %v1003_v52  ;;  %v1462_v0 = vunpack.c.l.b16 %v1012_v30  ;;  %v417_v37 = vpack.i.b16 %v416_v13, %v415_v19 }
  0xc5   : > { %v3858_v29 = vsel %vm430_vm0, %v632_v11, %v3740_v56  ;;  %v904_v54 = vrot.slane %v633_v12, 4  ;;  %v1461_v10 = vunpack.c.l.b16 %v1006_v9  ;;  %v658_v48 = vrot.slane %v657_v34, 4 }
  0xc6   : > { %v1409_v39 = vpack.c.b16 %v1402_v57, %v1401_v33  ;;  %v696_v3 = vrot.slane %v695_v18, 4  ;;  %v715_v42 = vrot.slane %v714_v59, 4  ;;  %v676_v20 = vperm.slane %v417_v37, %v3546_v15 }
  0xc7   : > { %v869_v51 = vperm.slane %v3785_v49, %v3546_v15  ;;  %v875_v24 = vperm.slane %v871_v7, %v3546_v15  ;;  %v886_v8 = vperm.slane %v3851_v17, %v3546_v15  ;;  %v824_v19 = vperm.slane %v3593_v28, %v3546_v15 }
  0xc8   : > { %v888_v56 = vsel %vm430_vm0, %v887_v47, %v3771_v32  ;;  %v650_v11 = vsel %vm430_vm0, 0, %v649_v60  ;;  %v652_v21 = vsel %vm430_vm0, 0, %v651_v23  ;;  %3260 = vmatmul.msk.bf16.vlgmr.msra.gmra.mxu0 %vm327_vm1, %v1409_v39  ;;  %v1469_v45 = vpack.c.b16 %v1462_v0, %v1461_v10 }
  0xc9   : > { %v903_v25 = vperm.slane %v3858_v29, %v3546_v15  ;;  %v905_v31 = vsel %vm430_vm0, %v904_v54, %v3793_v44  ;;  %v659_v50 = vsel %vm430_vm0, 0, %v658_v48  ;;  %v809_v28 = vsel %vm430_vm0, %v3621_v1, %v801_v22 }
  0xca   : > { %3264 = vmatmul.msk.bf16.vlgmr.msra.gmra.mxu1 %vm327_vm1, %v1469_v45  ;;  %v697_v32 = vsel %vm430_vm0, 0, %v696_v3  ;;  %v3886_v58 = vperm.slane %v695_v18, %v3552_v26  ;;  %v716_v40 = vsel %vm430_vm0, 0, %v715_v42  ;;  %v677_v62 = vrot.slane %v676_v20, 4 }
  0xcb   : > { %v876_v46 = vrot.slane %v875_v24, 4  ;;  %v916_v44 = vsel %vm430_vm0, %v651_v23, %v3777_v35  ;;  %v921_v53 = vrot.slane %v652_v21, 4  ;;  %v825_v4 = vrot.slane %v824_v19, 4 }
  0xcc   : > { %v909_v5 = vperm.slane %v905_v31, %v3546_v15  ;;  %v667_v22 = vperm.slane %v659_v50, %v3552_v26  ;;  %v678_v1 = vsel %vm430_vm0, 0, %v677_v62  ;;  %v813_v14 = vperm.slane %v809_v28, %v3552_v26 }
  0xcd   : > { %v705_v43 = vperm.slane %v697_v32, %v3552_v26  ;;  %v724_v61 = vperm.slane %v716_v40, %v3552_v26  ;;  %v826_v52 = vsel %vm430_vm0, %v825_v4, %v818_v27  ;;  %v843_v35 = vsel %vm430_vm0, %v3752_v36, %v835_v55 }
  0xce   : > { %v706_v30 = vrot.slane %v3886_v58, 4  ;;  %v3908_v12 = vperm.slane %v714_v59, %v3552_v26  ;;  %v3911_v57 = vperm.slane %v657_v34, %v3552_v26  ;;  %v830_v9 = vperm.slane %v826_v52, %v3552_v26 }
  0xcf   : > { %v920_v16 = vperm.slane %v916_v44, %v3546_v15  ;;  %v922_v27 = vsel %vm430_vm0, %v921_v53, %v650_v11  ;;  %v686_v18 = vperm.slane %v678_v1, %v3552_v26  ;;  %v858_v63 = vperm.slane %v3757_v2, %v3546_v15 }
  0xd0   : > { %v3919_v55 = vrot.slane %v667_v22, 4  ;;  %v847_v36 = vperm.slane %v843_v35, %v3552_v26  ;;  %v1016_v41 = vshrl.u32 %v813_v14, 16  ;;  %v1017_v59 = vshrl.u32 %v830_v9, 16 }
  0xd1   : > { %v910_v13 = vrot.slane %v909_v5, 4  ;;  %v708_v34 = vrot.slane %v705_v43, 4  ;;  %v727_v7 = vrot.slane %v724_v61, 4  ;;  %v859_v47 = vrot.slane %v858_v63, 4 }
  0xd2   : > { %v707_v60 = vsel %vm430_vm0, 0, %v706_v30  ;;  %v725_v23 = vrot.slane %v3908_v12, 4  ;;  %v668_v33 = vrot.slane %v3911_v57, 4  ;;  %v1015_v0 = vpack.i.b16 %v830_v9, %v813_v14 }
  0xd3   : > { %v682_v37 = vperm.slane %v676_v20, %v3552_v26  ;;  %v689_v2 = vrot.slane %v686_v18, 4  ;;  %v860_v54 = vsel %vm430_vm0, %v859_v47, %v852_v38  ;;  %v892_v10 = vperm.slane %v888_v56, %v3546_v15 }
  0xd4   : > { %v671_v48 = vsel %vm430_vm0, 0, %v3919_v55  ;;  %v864_v39 = vperm.slane %v860_v54, %v3552_v26  ;;  %v1018_v3 = vpack.i.b16 %v1017_v59, %v1016_v41  ;;  %v1022_v42 = vshrl.u32 %v847_v36, 16 }
  0xd5   : > { %v709_v24 = vsel %vm430_vm0, 0, %v708_v34  ;;  %v728_v19 = vsel %vm430_vm0, 0, %v727_v7  ;;  %v893_v20 = vrot.slane %v892_v10, 4  ;;  %v926_v11 = vperm.slane %v922_v27, %v3546_v15  ;;  %v3971_v27 = vld [vmem:[%s277_s27 + $0x4] sm:$0xf] }
  0xd6   : > { %v669_v6 = vsel %vm430_vm0, 0, %v668_v33  ;;  %v1021_v21 = vpack.i.b16 %v864_v39, %v847_v36  ;;  %v1403_v38 = vunpack.c.l.b16 %v1015_v0  ;;  %v1023_v45 = vshrl.u32 %v864_v39, 16  ;;  %1231 = vrot.lane.b32.xlu2 %v3971_v27, %s3456_s24 }
  0xd7   : > { %v687_v56 = vrot.slane %v682_v37, 4  ;;  %v690_v31 = vsel %vm430_vm0, 0, %v689_v2  ;;  %v938_v50 = vrot.slane %v671_v48, 4  ;;  %v927_v28 = vrot.slane %v926_v11, 4 }
  0xd8   : > { %v1404_v32 = vunpack.c.l.b16 %v1021_v21  ;;  %v1024_v40 = vpack.i.b16 %v1023_v45, %v1022_v42  ;;  %v1463_v62 = vunpack.c.l.b16 %v1018_v3  ;;  %v877_v44 = vsel %vm430_vm0, %v876_v46, %v869_v51 }
  0xd9   : > { %v972_v53 = vrot.slane %v709_v24, 4  ;;  %v894_v4 = vsel %vm430_vm0, %v893_v20, %v886_v8  ;;  %v911_v5 = vsel %vm430_vm0, %v910_v13, %v903_v25  ;;  %v928_v22 = vsel %vm430_vm0, %v927_v28, %v920_v16  ;;  %v3969_v16 = vld [vmem:[%s277_s27] sm:$0xf] }
  0xda   : > { %v989_v1 = vrot.slane %v728_v19, 4  ;;  %v955_v14 = vrot.slane %v690_v31, 4  ;;  %v1410_v43 = vpack.c.b16 %v1404_v32, %v1403_v38  ;;  %v1464_v61 = vunpack.c.l.b16 %v1024_v40  ;;  %1229 = vrot.lane.b32.xlu1 %v3969_v16, %s3456_s24 }
  0xdb   : > { %v726_v49 = vsel %vm430_vm0, 0, %v725_v23  ;;  %v688_v51 = vsel %vm430_vm0, 0, %v687_v56  ;;  %v939_v46 = vsel %vm430_vm0, %v938_v50, %v669_v6  ;;  %v881_v17 = vperm.slane %v877_v44, %v3552_v26 }
  0xdc   : > { %3261 = vmatmul.msk.bf16.gmra.mxu0 %vm327_vm1, %v1410_v43  ;;  %v1470_v29 = vpack.c.b16 %v1464_v61, %v1463_v62  ;;  %v898_v8 = vperm.slane %v894_v4, %v3552_v26  ;;  %v915_v25 = vperm.slane %v911_v5, %v3552_v26  ;;  %v932_v52 = vperm.slane %v928_v22, %v3552_v26 }
  0xdd   : > { %v973_v35 = vsel %vm430_vm0, %v972_v53, %v707_v60  ;;  %v990_v30 = vsel %vm430_vm0, %v989_v1, %v726_v49  ;;  %v956_v9 = vsel %vm430_vm0, %v955_v14, %v688_v51  ;;  %v967_v18 = vsel %vm430_vm0, %v708_v34, %v3886_v58 }
  0xde   : > { %3265 = vmatmul.msk.bf16.gmra.mxu1 %vm327_vm1, %v1470_v29  ;;  %v984_v63 = vsel %vm430_vm0, %v727_v7, %v3908_v12  ;;  %v943_v36 = vperm.slane %v939_v46, %v3546_v15  ;;  %v1028_v41 = vshrl.u32 %v881_v17, 16  ;;  %v1029_v59 = vshrl.u32 %v898_v8, 16 }
  0xdf   : > { %v1034_v13 = vshrl.u32 %v915_v25, 16  ;;  %v1035_v47 = vshrl.u32 %v932_v52, 16  ;;  %v977_v60 = vperm.slane %v973_v35, %v3546_v15  ;;  %v933_v58 = vsel %vm430_vm0, %v3919_v55, %v3911_v57 }
  0xe0   : > { %v960_v12 = vperm.slane %v956_v9, %v3546_v15  ;;  %v994_v34 = vperm.slane %v990_v30, %v3546_v15  ;;  %v950_v7 = vsel %vm430_vm0, %v689_v2, %v682_v37  ;;  %v1027_v23 = vpack.i.b16 %v898_v8, %v881_v17 }
  0xe1   : > { %v1033_v33 = vpack.i.b16 %v932_v52, %v915_v25  ;;  %v971_v0 = vperm.slane %v967_v18, %v3546_v15  ;;  %v988_v54 = vperm.slane %v984_v63, %v3546_v15  ;;  %v937_v10 = vperm.slane %v933_v58, %v3546_v15 }
  0xe2   : > { %v944_v48 = vrot.slane %v943_v36, 4  ;;  %v1030_v39 = vpack.i.b16 %v1029_v59, %v1028_v41  ;;  %v1036_v3 = vpack.i.b16 %v1035_v47, %v1034_v13  ;;  %v978_v42 = vrot.slane %v977_v60, 4 }
  0xe3   : > { %v954_v57 = vperm.slane %v950_v7, %v3546_v15  ;;  %v961_v55 = vrot.slane %v960_v12, 4  ;;  %v995_v24 = vrot.slane %v994_v34, 4  ;;  %v1405_v19 = vunpack.c.l.b16 %v1027_v23 }
  0xe4   : > { %v1406_v20 = vunpack.c.l.b16 %v1033_v33  ;;  %v1465_v11 = vunpack.c.l.b16 %v1030_v39  ;;  %v1466_v37 = vunpack.c.l.b16 %v1036_v3  ;;  %v945_v2 = vsel %vm430_vm0, %v944_v48, %v937_v10 }
  0xe5   : > { %v962_v6 = vsel %vm430_vm0, %v961_v55, %v954_v57  ;;  %v979_v21 = vsel %vm430_vm0, %v978_v42, %v971_v0  ;;  %v996_v38 = vsel %vm430_vm0, %v995_v24, %v988_v54  ;;  %v949_v56 = vperm.slane %v945_v2, %v3552_v26 }
  0xe6   : > { %v1411_v45 = vpack.c.b16 %v1406_v20, %v1405_v19  ;;  %v1471_v31 = vpack.c.b16 %v1466_v37, %v1465_v11  ;;  %v966_v50 = vperm.slane %v962_v6, %v3552_v26  ;;  %v983_v28 = vperm.slane %v979_v21, %v3552_v26 }
  0xe7   : > { %v1000_v32 = vperm.slane %v996_v38, %v3552_v26  ;;  %v1040_v40 = vshrl.u32 %v949_v56, 16  ;;  %v1242_v18 = vshrl.u32 %v3971_v27, 16  ;;  %v1236_v63 = vshrl.u32 %v3969_v16, 16 }
  0xe8   : > { %v1041_v62 = vshrl.u32 %v966_v50, 16  ;;  %v1046_v44 = vshrl.u32 %v983_v28, 16  ;;  %v1039_v4 = vpack.i.b16 %v966_v50, %v949_v56 }
  0xe9   : > { %v1047_v53 = vshrl.u32 %v1000_v32, 16  ;;  %v1045_v5 = vpack.i.b16 %v1000_v32, %v983_v28 }
  0xea   : > { %v1042_v22 = vpack.i.b16 %v1041_v62, %v1040_v40  ;;  %v1407_v14 = vunpack.c.l.b16 %v1039_v4 }
  0xeb   : > { %v1048_v1 = vpack.i.b16 %v1047_v53, %v1046_v44  ;;  %v1408_v43 = vunpack.c.l.b16 %v1045_v5 }
  0xec   : > { %3262 = vmatmul.msk.bf16.gmra.mxu0 %vm327_vm1, %v1411_v45  ;;  %v1467_v61 = vunpack.c.l.b16 %v1042_v22 }
  0xed   : > { %v1468_v49 = vunpack.c.l.b16 %v1048_v1  ;;  %v1412_v51 = vpack.c.b16 %v1408_v43, %v1407_v14 }
  0xee   : > { %3266 = vmatmul.msk.bf16.gmra.mxu1 %vm327_vm1, %v1471_v31 }
  0xef   : > { %v1472_v46 = vpack.c.b16 %v1468_v49, %v1467_v61 }
  0xfc   : > { %3263 = vmatmul.msk.bf16.gmra.mxu0 %vm327_vm1, %v1412_v51 }
  0xfe   : > { %3267 = vmatmul.msk.bf16.gmra.mxu1 %vm327_vm1, %v1472_v46 }
 0x130   : > { %v1232_v41 = vpop.permute.xlu2 %1231 }
 0x131   : > { %v1241_v13 = vpack.i.b16 %v1232_v41, %v3971_v27  ;;  %v1243_v47 = vshrl.u32 %v1232_v41, 16 }
 0x133   : > { %v1244_v23 = vpack.i.b16 %v1243_v47, %v1242_v18  ;;  %v1287_v33 = vperm.slane %v1241_v13, %v3546_v15 }
 0x135   : > { %v1288_v10 = vrot.slane %v1287_v33, 4  ;;  %v1293_v27 = vperm.slane %v1287_v33, %v3552_v26  ;;  %v1306_v48 = vperm.slane %v1244_v23, %v3546_v15 }
 0x137   : > { %v1289_v42 = vsel %vm430_vm0, 0, %v1288_v10  ;;  %v1298_v57 = vrot.slane %v1293_v27, 4  ;;  %v1307_v55 = vrot.slane %v1306_v48, 4  ;;  %v1312_v24 = vperm.slane %v1306_v48, %v3552_v26 }
 0x138   : > { %v1297_v20 = vperm.slane %v1289_v42, %v3552_v26  ;;  %v3459_v42 = vmov -inf  }
 0x139   : > { %v1308_v6 = vsel %vm430_vm0, 0, %v1307_v55  ;;  %v1317_v31 = vrot.slane %v1312_v24, 4  ;;  %v1299_v32 = vsel %vm430_vm0, 0, %v1298_v57  ;;  %295 = vst.msk [vmem:[#allocation2] sm:$0xff] %vm294_vm3, %v3459_v42 }
 0x13a   : > { %v1300_v45 = vrot.slane %v1297_v20, 4  ;;  %v1316_v56 = vperm.slane %v1308_v6, %v3552_v26  ;;  %296 = vst.msk [vmem:[#allocation2 + $0x8] sm:$0xff] %vm294_vm3, %v3459_v42 }
 0x13b   : > { %v1318_v61 = vsel %vm430_vm0, 0, %v1317_v31  ;;  %297 = vst.msk [vmem:[#allocation2 + $0x10] sm:$0xff] %vm294_vm3, %v3459_v42 }
 0x13c   : > { %v1301_v44 = vsel %vm430_vm0, 0, %v1300_v45  ;;  %v1319_v53 = vrot.slane %v1316_v56, 4  ;;  %v1355_v4 = vsel %vm430_vm0, %v1300_v45, %v1293_v27  ;;  %298 = vst.msk [vmem:[#allocation2 + $0x18] sm:$0xff] %vm294_vm3, %v3459_v42 }
 0x13d   : > { %v1360_v22 = vrot.slane %v1301_v44, 4  ;;  %299 = vst.msk [vmem:[#allocation2 + $0x20] sm:$0xff] %vm294_vm3, %v3459_v42 }
 0x13e   : > { %v1320_v49 = vsel %vm430_vm0, 0, %v1319_v53  ;;  %v1372_v13 = vsel %vm430_vm0, %v1319_v53, %v1312_v24  ;;  %300 = vst.msk [vmem:[#allocation2 + $0x28] sm:$0xff] %vm294_vm3, %v3459_v42 }
 0x13f   : > { %v1376_v10 = vperm.slane %v1372_v13, %v3546_v15  ;;  %301 = vst.msk [vmem:[#allocation2 + $0x30] sm:$0xff] %vm294_vm3, %v3459_v42 }
 0x140   : > { %302 = vst.msk [vmem:[#allocation2 + $0x38] sm:$0xff] %vm294_vm3, %v3459_v42 }
 0x141   : > { %303 = vst.msk [vmem:[#allocation2 + $0x40] sm:$0xff] %vm294_vm3, %v3459_v42 }
 0x142   : > { %304 = vst.msk [vmem:[#allocation2 + $0x48] sm:$0xff] %vm294_vm3, %v3459_v42 }
 0x143   : > { %305 = vst.msk [vmem:[#allocation2 + $0x50] sm:$0xff] %vm294_vm3, %v3459_v42 }
 0x144   : > { %306 = vst.msk [vmem:[#allocation2 + $0x58] sm:$0xff] %vm294_vm3, %v3459_v42 }
 0x145   : > { %v4005_v17 = vpop.f32.mrf.mxu0  ;;  %307 = vst.msk [vmem:[#allocation2 + $0x60] sm:$0xff] %vm294_vm3, %v3459_v42 }
 0x146   : > { %v1537_v29 = vsel %vm1536_vm2, %v4005_v17, -inf  ;;  %308 = vst.msk [vmem:[#allocation2 + $0x68] sm:$0xff] %vm294_vm3, %v3459_v42 }
 0x147   : > { %v4009_v8 = vpop.f32.mrf.mxu1  ;;  %1538 = vmax.xlane.f32.xlu0 %v1537_v29  ;;  %v1377_v29 = vrot.slane %v1320_v49, 4  ;;  %309 = vst.msk [vmem:[#allocation2 + $0x70] sm:$0xff] %vm294_vm3, %v3459_v42 }
 0x148   : > { %v1561_v25 = vsel %vm1536_vm2, %v4009_v8, -inf  ;;  %310 = vst.msk [vmem:[#allocation2 + $0x78] sm:$0xff] %vm294_vm3, %v3459_v42 }
 0x149   : > { %1562 = vmax.xlane.f32.xlu1 %v1561_v25  ;;  %v1378_v27 = vsel %vm430_vm0, %v1377_v29, %v1318_v61 }
 0x14c   : > { %v1230_v60 = vpop.permute.xlu1 %1229 }
 0x14d   : > { %v4013_v52 = vpop.f32.mrf.mxu0  ;;  %v1235_v12 = vpack.i.b16 %v1230_v60, %v3969_v16  ;;  %v1237_v34 = vshrl.u32 %v1230_v60, 16 }
 0x14e   : > { %v1540_v9 = vsel %vm1536_vm2, %v4013_v52, -inf }
 0x14f   : > { %v4015_v35 = vpop.f32.mrf.mxu1  ;;  %v1238_v0 = vpack.i.b16 %v1237_v34, %v1236_v63  ;;  %v1249_v54 = vperm.slane %v1235_v12, %v3546_v15 }
 0x150   : > { %v1564_v30 = vsel %vm1536_vm2, %v4015_v35, -inf }
 0x151   : > { %1565 = vmax.xlane.f32.xlu2 %v1564_v30  ;;  %1541 = vmax.xlane.f32.xlu1 %v1540_v9  ;;  %v1250_v39 = vrot.slane %v1249_v54, 4  ;;  %v1255_v3 = vperm.slane %v1249_v54, %v3552_v26  ;;  %v1268_v16 = vperm.slane %v1238_v0, %v3546_v15  ;;  %v1359_v9 = vperm.slane %v1355_v4, %v3546_v15 }
 0x153   : > { %v1251_v11 = vsel %vm430_vm0, 0, %v1250_v39  ;;  %v1269_v37 = vrot.slane %v1268_v16, 4  ;;  %v1260_v21 = vrot.slane %v1255_v3, 4  ;;  %v1274_v62 = vperm.slane %v1268_v16, %v3552_v26 }
 0x154   : > { %v1259_v50 = vperm.slane %v1251_v11, %v3552_v26  ;;  %v1382_v16 = vperm.slane %v1378_v27, %v3546_v15 }
 0x155   : > { %v1270_v40 = vsel %vm430_vm0, 0, %v1269_v37  ;;  %v1261_v1 = vsel %vm430_vm0, 0, %v1260_v21  ;;  %v1279_v43 = vrot.slane %v1274_v62, 4 }
 0x156   : > { %v1262_v5 = vrot.slane %v1259_v50, 4  ;;  %v1278_v14 = vperm.slane %v1270_v40, %v3552_v26  ;;  %v1383_v11 = vrot.slane %v1382_v16, 4 }
 0x157   : > { %v1280_v63 = vsel %vm430_vm0, 0, %v1279_v43 }
 0x158   : > { %v1263_v51 = vsel %vm430_vm0, 0, %v1262_v5  ;;  %v1321_v46 = vsel %vm430_vm0, %v1262_v5, %v1255_v3  ;;  %v1281_v25 = vrot.slane %v1278_v14, 4  ;;  %v1384_v45 = vsel %vm430_vm0, %v1383_v11, %v1376_v10 }
 0x159   : > { %v4023_v36 = vpop.f32.mrf.mxu0  ;;  %v1326_v30 = vrot.slane %v1263_v51, 4  ;;  %v1325_v41 = vperm.slane %v1321_v46, %v3546_v15  ;;  %v1388_v50 = vperm.slane %v1384_v45, %v3552_v26  ;;  %v4239_v45 = vld [vmem:[#allocation2 + $0x58] sm:$0xff] }
 0x15a   : > { %v1543_v59 = vsel %vm1536_vm2, %v4023_v36, -inf  ;;  %v1282_v60 = vsel %vm430_vm0, 0, %v1281_v25  ;;  %v1338_v33 = vsel %vm430_vm0, %v1281_v25, %v1274_v62 }
 0x15b   : > { %v4028_v58 = vpop.f32.mrf.mxu1  ;;  %1544 = vmax.xlane.f32.xlu2 %v1543_v59  ;;  %v1361_v59 = vsel %vm430_vm0, %v1360_v22, %v1299_v32  ;;  %v1327_v12 = vsel %vm430_vm0, %v1326_v30, %v1261_v1  ;;  %v1342_v57 = vperm.slane %v1338_v33, %v3546_v15  ;;  %v1399_v4 = vshrl.u32 %v1388_v50, 16  ;;  %v4147_v33 = vld [vmem:[#allocation2 + $0x40] sm:$0xff] }
 0x15c   : > { %v1567_v7 = vsel %vm1536_vm2, %v4028_v58, -inf  ;;  %v1331_v23 = vperm.slane %v1327_v12, %v3546_v15  ;;  %v1365_v0 = vperm.slane %v1361_v59, %v3546_v15  ;;  %v3461_v12 = vmov 0.0  }
 0x15d   : > { %1568 = vmax.xlane.f32.xlu0 %v1567_v7  ;;  %v1343_v7 = vrot.slane %v1282_v60, 4  ;;  %v3460_v60 = vmov 0   ;;  %329 = vst.msk [vmem:[#allocation4 + $0x8] sm:$0xff] %vm327_vm1, %v3461_v12 }
 0x15e   : > { %v1332_v48 = vrot.slane %v1331_v23, 4  ;;  %v1366_v3 = vrot.slane %v1365_v0, 4  ;;  %3313 = vset.pattern.permute.xlu0 %v3460_v60  ;;  %3315 = vset.pattern.permute.xlu2 %v3460_v60  ;;  %311 = vst.msk [vmem:[#allocation3] sm:$0xff] %vm294_vm3, %v3461_v12 }
 0x15f   : > { %v1344_v39 = vsel %vm430_vm0, %v1343_v7, %v1280_v63  ;;  %3314 = vset.pattern.permute.xlu1 %v3460_v60  ;;  %v4141_v7 = vld [vmem:[#allocation2] sm:$0xff]  ;;  %312 = vst.msk [vmem:[#allocation3 + $0x8] sm:$0xff] %vm294_vm3, %v3461_v12 }
 0x160   : > { %v1348_v55 = vperm.slane %v1344_v39, %v3546_v15  ;;  %v1333_v24 = vsel %vm430_vm0, %v1332_v48, %v1325_v41  ;;  %v1367_v20 = vsel %vm430_vm0, %v1366_v3, %v1359_v9  ;;  %313 = vst.msk [vmem:[#allocation3 + $0x10] sm:$0xff] %vm294_vm3, %v3461_v12  ;;  %v4174_v48 = vld [vmem:[#allocation2 + $0x48] sm:$0xff] }
 0x161   : > { %v4041_v19 = vpop.f32.mrf.mxu0  ;;  %v1337_v37 = vperm.slane %v1333_v24, %v3552_v26  ;;  %v1371_v6 = vperm.slane %v1367_v20, %v3552_v26  ;;  %314 = vst.msk [vmem:[#allocation3 + $0x18] sm:$0xff] %vm294_vm3, %v3461_v12  ;;  %v4176_v39 = vld [vmem:[#allocation2 + $0x8] sm:$0xff]  ;;  %v4212_v24 = vld [vmem:[#allocation2 + $0x50] sm:$0xff] }
 0x162   : > { %v1546_v2 = vsel %vm1536_vm2, %v4041_v19, -inf  ;;  %315 = vst.msk [vmem:[#allocation3 + $0x20] sm:$0xff] %vm294_vm3, %v3461_v12 }
 0x163   : > { %v4048_v38 = vpop.f32.mrf.mxu1  ;;  %1547 = vmax.xlane.f32.xlu2 %v1546_v2  ;;  %v1349_v2 = vrot.slane %v1348_v55, 4  ;;  %v1392_v40 = vshrl.u32 %v1337_v37, 16  ;;  %v1398_v62 = vshrl.u32 %v1371_v6, 16  ;;  %v1397_v53 = vpack.i.b16 %v1388_v50, %v1371_v6  ;;  %316 = vst.msk [vmem:[#allocation3 + $0x28] sm:$0xff] %vm294_vm3, %v3461_v12  ;;  %v4206_v55 = vld [vmem:[#allocation2 + $0x10] sm:$0xff]  ;;  %v1523_v6 = vld [vmem:[#allocation2 + $0x18] sm:$0xff] }
 0x164   : > { %v1570_v28 = vsel %vm1536_vm2, %v4048_v38, -inf  ;;  %317 = vst.msk [vmem:[#allocation3 + $0x30] sm:$0xff] %vm294_vm3, %v3461_v12 }
 0x165   : > { %1571 = vmax.xlane.f32.xlu1 %v1570_v28  ;;  %v1350_v31 = vsel %vm430_vm0, %v1349_v2, %v1342_v57  ;;  %v1927_v1 = vunpack.c.l.b16 %v1397_v53  ;;  %v1400_v14 = vpack.i.b16 %v1399_v4, %v1398_v62  ;;  %318 = vst.msk [vmem:[#allocation3 + $0x38] sm:$0xff] %vm294_vm3, %v3461_v12 }
 0x166   : > { %v1354_v32 = vperm.slane %v1350_v31, %v3552_v26  ;;  %319 = vst.msk [vmem:[#allocation3 + $0x40] sm:$0xff] %vm294_vm3, %v3461_v12 }
 0x167   : > { %v1992_v49 = vunpack.c.l.b16 %v1400_v14  ;;  %320 = vst.msk [vmem:[#allocation3 + $0x48] sm:$0xff] %vm294_vm3, %v3461_v12 }
 0x168   : > { %v1391_v5 = vpack.i.b16 %v1354_v32, %v1337_v37  ;;  %v1393_v22 = vshrl.u32 %v1354_v32, 16  ;;  %321 = vst.msk [vmem:[#allocation3 + $0x50] sm:$0xff] %vm294_vm3, %v3461_v12 }
 0x169   : > { %v4066_v18 = vpop.f32.mrf.mxu0  ;;  %322 = vst.msk [vmem:[#allocation3 + $0x58] sm:$0xff] %vm294_vm3, %v3461_v12 }
 0x16a   : > { %v1549_v47 = vsel %vm1536_vm2, %v4066_v18, -inf  ;;  %v1926_v43 = vunpack.c.l.b16 %v1391_v5  ;;  %v1394_v61 = vpack.i.b16 %v1393_v22, %v1392_v40  ;;  %323 = vst.msk [vmem:[#allocation3 + $0x60] sm:$0xff] %vm294_vm3, %v3461_v12  ;;  %v1524_v40 = vld [vmem:[#allocation2 + $0x20] sm:$0xff] }
 0x16b   : > { %v4076_v34 = vpop.f32.mrf.mxu1  ;;  %1550 = vmax.xlane.f32.xlu0 %v1549_v47  ;;  %324 = vst.msk [vmem:[#allocation3 + $0x68] sm:$0xff] %vm294_vm3, %v3461_v12 }
 0x16c   : > { %v1573_v54 = vsel %vm1536_vm2, %v4076_v34, -inf  ;;  %v1928_v46 = vpack.c.b16 %v1927_v1, %v1926_v43  ;;  %v1991_v29 = vunpack.c.l.b16 %v1394_v61  ;;  %325 = vst.msk [vmem:[#allocation3 + $0x70] sm:$0xff] %vm294_vm3, %v3461_v12  ;;  %v1525_v1 = vld [vmem:[#allocation2 + $0x28] sm:$0xff] }
 0x16d   : > { %1574 = vmax.xlane.f32.xlu2 %v1573_v54  ;;  %326 = vst.msk [vmem:[#allocation3 + $0x78] sm:$0xff] %vm294_vm3, %v3461_v12  ;;  %v4270_v61 = vld [vmem:[#allocation2 + $0x68] sm:$0xff] }
 0x16e   : > { %1949 = vmatpush.bf16.msra.mxu2 %v1928_v46  ;;  %v1993_v9 = vpack.c.b16 %v1992_v49, %v1991_v29  ;;  %328 = vst.msk [vmem:[#allocation4] sm:$0xff] %vm327_vm1, %v3461_v12 }
 0x16f   : > { %330 = vst.msk [vmem:[#allocation4 + $0x10] sm:$0xff] %vm327_vm1, %v3461_v12 }
 0x170   : > { %2014 = vmatpush.bf16.msra.mxu3 %v1993_v9  ;;  %331 = vst.msk [vmem:[#allocation4 + $0x18] sm:$0xff] %vm327_vm1, %v3461_v12 }
 0x171   : > { %v4097_v21 = vpop.f32.mrf.mxu0  ;;  %332 = vst.msk [vmem:[#allocation4 + $0x20] sm:$0xff] %vm327_vm1, %v3461_v12 }
 0x172   : > { %v1552_v56 = vsel %vm1536_vm2, %v4097_v21, -inf  ;;  %333 = vst.msk [vmem:[#allocation4 + $0x28] sm:$0xff] %vm327_vm1, %v3461_v12 }
 0x173   : > { %v4106_v28 = vpop.f32.mrf.mxu1  ;;  %1553 = vmax.xlane.f32.xlu1 %v1552_v56  ;;  %334 = vst.msk [vmem:[#allocation4 + $0x30] sm:$0xff] %vm327_vm1, %v3461_v12 }
 0x174   : > { %v1576_v44 = vsel %vm1536_vm2, %v4106_v28, -inf  ;;  %335 = vst.msk [vmem:[#allocation4 + $0x38] sm:$0xff] %vm327_vm1, %v3461_v12 }
 0x175   : > { %1577 = vmax.xlane.f32.xlu0 %v1576_v44  ;;  %336 = vst.msk [vmem:[#allocation4 + $0x40] sm:$0xff] %vm327_vm1, %v3461_v12  ;;  %v4259_v44 = vld [vmem:[#allocation2 + $0x60] sm:$0xff] }
 0x176   : > { %337 = vst.msk [vmem:[#allocation4 + $0x48] sm:$0xff] %vm327_vm1, %v3461_v12 }
 0x177   : > { %338 = vst.msk [vmem:[#allocation4 + $0x50] sm:$0xff] %vm327_vm1, %v3461_v12 }
 0x178   : > { %339 = vst.msk [vmem:[#allocation4 + $0x58] sm:$0xff] %vm327_vm1, %v3461_v12 }
 0x179   : > { %v4117_v51 = vpop.f32.mrf.mxu0  ;;  %340 = vst.msk [vmem:[#allocation4 + $0x60] sm:$0xff] %vm327_vm1, %v3461_v12 }
 0x17a   : > { %v1555_v25 = vsel %vm1536_vm2, %v4117_v51, -inf  ;;  %341 = vst.msk [vmem:[#allocation4 + $0x68] sm:$0xff] %vm327_vm1, %v3461_v12 }
 0x17b   : > { %v4123_v30 = vpop.f32.mrf.mxu1  ;;  %1556 = vmax.xlane.f32.xlu2 %v1555_v25  ;;  %342 = vst.msk [vmem:[#allocation4 + $0x70] sm:$0xff] %vm327_vm1, %v3461_v12  ;;  %v4280_v25 = vld [vmem:[#allocation2 + $0x30] sm:$0xff] }
 0x17c   : > { %v1579_v63 = vsel %vm1536_vm2, %v4123_v30, -inf  ;;  %343 = vst.msk [vmem:[#allocation4 + $0x78] sm:$0xff] %vm327_vm1, %v3461_v12 }
 0x17d   : > { %1580 = vmax.xlane.f32.xlu1 %v1579_v63  ;;  %v4282_v63 = vld [vmem:[#allocation2 + $0x70] sm:$0xff] }
 0x181   : > { %v4129_v41 = vpop.f32.mrf.mxu0 }
 0x182   : > { %v1558_v59 = vsel %vm1536_vm2, %v4129_v41, -inf }
 0x183   : > { %v4133_v13 = vpop.f32.mrf.mxu1  ;;  %1559 = vmax.xlane.f32.xlu0 %v1558_v59 }
 0x184   : > { %v1582_v47 = vsel %vm1536_vm2, %v4133_v13, -inf }
 0x185   : > { %1583 = vmax.xlane.f32.xlu2 %v1582_v47 }
 0x1ba   : > { %v1539_v23 = vpop.xlane.xlu0 %1538 }
 0x1bb   : > { %v4152_v0 = vmax.f32 %v4141_v7, %v1539_v23 }
 0x1bc   : > { %v1563_v54 = vpop.xlane.xlu1 %1562 }
 0x1bd   : > { %2180 = vst.msk [vmem:[#allocation2] sm:$0xff] %vm294_vm3, %v4152_v0  ;;  %v4161_v10 = vmax.f32 %v4147_v33, %v1563_v54  ;;  %1651 = vperm.xlu0 %3313, %v4152_v0   ;;  %v1601_v22 = vsub.f32 %v4141_v7, %v4152_v0  ;;  %v4298_v54 = vld [vmem:[#allocation2 + $0x38] sm:$0xff] }
 0x1bf   : > { %v1609_v27 = vsub.f32 %v4147_v33, %v4161_v10  ;;  %2188 = vst.msk [vmem:[#allocation2 + $0x40] sm:$0xff] %vm294_vm3, %v4161_v10  ;;  %v1617_v14 = vmul.f32 1.442695, %v1601_v22 }
 0x1c1   : > { %3336 = vpow2.f32 %v1617_v14 }
 0x1c4   : > { %v1566_v3 = vpop.xlane.xlu2 %1565  ;;  %v1542_v16 = vpop.xlane.xlu1 %1541 }
 0x1c5   : > { %v4185_v42 = vmax.f32 %v4174_v48, %v1566_v3  ;;  %v4188_v57 = vmax.f32 %v4176_v39, %v1542_v16 }
 0x1c7   : > { %2189 = vst.msk [vmem:[#allocation2 + $0x48] sm:$0xff] %vm294_vm3, %v4185_v42  ;;  %1656 = vperm.xlu1 %3314, %v4188_v57   ;;  %1696 = vperm.xlu2 %3315, %v4185_v42   ;;  %v4285_v47 = vpop.eup %3336  ;;  %v1602_v0 = vsub.f32 %v4176_v39, %v4188_v57 }
 0x1c8   : > { %2181 = vst.msk [vmem:[#allocation2 + $0x8] sm:$0xff] %vm294_vm3, %v4188_v57 }
 0x1ce   : > { %v1545_v20 = vpop.xlane.xlu2 %1544 }
 0x1cf   : > { %v4217_v11 = vmax.f32 %v4206_v55, %v1545_v20  ;;  %1691 = vperm.xlu1 %3314, %v4161_v10   ;;  %v1535_v20 = vld [vmem:[#allocation2 + $0x78] sm:$0xff] }
 0x1d0   : > { %v1569_v37 = vpop.xlane.xlu0 %1568 }
 0x1d1   : > { %v4225_v2 = vmax.f32 %v4212_v24, %v1569_v37  ;;  %2182 = vst.msk [vmem:[#allocation2 + $0x10] sm:$0xff] %vm294_vm3, %v4217_v11  ;;  %1661 = vperm.xlu2 %3315, %v4217_v11   ;;  %v1603_v12 = vsub.f32 %v4206_v55, %v4217_v11  ;;  %v1619_v37 = vmul.f32 1.442695, %v1602_v0 }
 0x1d3   : > { %2190 = vst.msk [vmem:[#allocation2 + $0x50] sm:$0xff] %vm294_vm3, %v4225_v2  ;;  %1701 = vperm.xlu0 %3313, %v4225_v2   ;;  %v1621_v3 = vmul.f32 1.442695, %v1603_v12 }
 0x1d5   : > { %3338 = vpow2.f32 %v1621_v3 }
 0x1d6   : > { %v1548_v56 = vpop.xlane.xlu2 %1547 }
 0x1d7   : > { %v1588_v31 = vmax.f32 %v1523_v6, %v1548_v56 }
 0x1d8   : > { %v1572_v50 = vpop.xlane.xlu1 %1571 }
 0x1d9   : > { %v4248_v32 = vmax.f32 %v4239_v45, %v1572_v50  ;;  %2183 = vst.msk [vmem:[#allocation2 + $0x18] sm:$0xff] %vm294_vm3, %v1588_v31  ;;  %1666 = vperm.xlu1 %3314, %v1588_v31   ;;  %v1604_v23 = vsub.f32 %v1523_v6, %v1588_v31  ;;  %v1610_v50 = vsub.f32 %v4174_v48, %v4185_v42 }
 0x1da   : > { %v1611_v42 = vsub.f32 %v4212_v24, %v4225_v2  ;;  %v1633_v24 = vmul.f32 1.442695, %v1609_v27 }
 0x1db   : > { %2191 = vst.msk [vmem:[#allocation2 + $0x58] sm:$0xff] %vm294_vm3, %v4248_v32  ;;  %v1623_v16 = vmul.f32 1.442695, %v1604_v23  ;;  %v1635_v31 = vmul.f32 1.442695, %v1610_v50  ;;  %v1612_v33 = vsub.f32 %v4239_v45, %v4248_v32 }
 0x1dd   : > { %3340 = vpow2.f32 %v1623_v16 }
 0x1de   : > { %v1551_v62 = vpop.xlane.xlu0 %1550  ;;  %3342 = vpow2.f32 %v1619_v37 }
 0x1df   : > { %v1589_v53 = vmax.f32 %v1524_v40, %v1551_v62  ;;  %3344 = vpow2.f32 %v1635_v31 }
 0x1e0   : > { %v1575_v4 = vpop.xlane.xlu2 %1574 }
 0x1e1   : > { %2184 = vst.msk [vmem:[#allocation2 + $0x20] sm:$0xff] %vm294_vm3, %v1589_v53  ;;  %v4263_v5 = vmax.f32 %v4259_v44, %v1575_v4  ;;  %1671 = vperm.xlu2 %3315, %v1589_v53   ;;  %1706 = vperm.xlu1 %3314, %v4248_v32   ;;  %v1605_v39 = vsub.f32 %v1524_v40, %v1589_v53  ;;  %v4306_v4 = vpop.eup %3338 }
 0x1e3   : > { %2192 = vst.msk [vmem:[#allocation2 + $0x60] sm:$0xff] %vm294_vm3, %v4263_v5  ;;  %v1625_v62 = vmul.f32 1.442695, %v1605_v39  ;;  %v4308_v22 = vpop.eup %3340  ;;  %v1613_v53 = vsub.f32 %v4259_v44, %v4263_v5 }
 0x1e4   : > { %v4314_v40 = vpop.eup %3342 }
 0x1e5   : > { %3346 = vpow2.f32 %v1625_v62  ;;  %v1641_v14 = vmul.f32 1.442695, %v1613_v53 }
 0x1e6   : > { %v1554_v43 = vpop.xlane.xlu1 %1553 }
 0x1e7   : > { %v1590_v49 = vmax.f32 %v1525_v1, %v1554_v43  ;;  %v4319_v43 = vpop.eup %3344 }
 0x1e8   : > { %v1578_v46 = vpop.xlane.xlu0 %1577 }
 0x1e9   : > { %2185 = vst.msk [vmem:[#allocation2 + $0x28] sm:$0xff] %vm294_vm3, %v1590_v49  ;;  %v4274_v29 = vmax.f32 %v4270_v61, %v1578_v46  ;;  %1711 = vperm.xlu2 %3315, %v4263_v5   ;;  %1676 = vperm.xlu1 %3314, %v1590_v49   ;;  %v1606_v57 = vsub.f32 %v1525_v1, %v1590_v49  ;;  %v1637_v1 = vmul.f32 1.442695, %v1611_v42 }
 0x1eb   : > { %2193 = vst.msk [vmem:[#allocation2 + $0x68] sm:$0xff] %vm294_vm3, %v4274_v29  ;;  %1716 = vperm.xlu0 %3313, %v4274_v29   ;;  %v1627_v48 = vmul.f32 1.442695, %v1606_v57  ;;  %v4321_v49 = vpop.eup %3346  ;;  %v1614_v2 = vsub.f32 %v4270_v61, %v4274_v29  ;;  %v1639_v29 = vmul.f32 1.442695, %v1612_v33 }
 0x1ed   : > { %3348 = vpow2.f32 %v1627_v48  ;;  %v1643_v10 = vmul.f32 1.442695, %v1614_v2 }
 0x1ee   : > { %v1557_v9 = vpop.xlane.xlu2 %1556  ;;  %3350 = vpow2.f32 %v1637_v1 }
 0x1ef   : > { %v1591_v59 = vmax.f32 %v4280_v25, %v1557_v9  ;;  %3352 = vpow2.f32 %v1641_v14 }
 0x1f0   : > { %v1581_v60 = vpop.xlane.xlu1 %1580  ;;  %3354 = vpow2.f32 %v1633_v24 }
 0x1f1   : > { %2186 = vst.msk [vmem:[#allocation2 + $0x30] sm:$0xff] %vm294_vm3, %v1591_v59  ;;  %v4291_v7 = vmax.f32 %v4282_v63, %v1581_v60  ;;  %1681 = vperm.xlu2 %3315, %v1591_v59   ;;  %2054 = vperm.xlu1 %3314, %v4285_v47   ;;  %v1607_v5 = vsub.f32 %v4280_v25, %v1591_v59  ;;  %3356 = vpow2.f32 %v1643_v10 }
 0x1f3   : > { %2194 = vst.msk [vmem:[#allocation2 + $0x70] sm:$0xff] %vm294_vm3, %v4291_v7  ;;  %v4330_v44 = vpop.eup %3348  ;;  %v1629_v27 = vmul.f32 1.442695, %v1607_v5  ;;  %v1615_v45 = vsub.f32 %v4282_v63, %v4291_v7 }
 0x1f4   : > { %v4336_v46 = vpop.eup %3350 }
 0x1f5   : > { %v4338_v61 = vpop.eup %3352  ;;  %3358 = vpow2.f32 %v1629_v27  ;;  %v1645_v0 = vmul.f32 1.442695, %v1615_v45 }
 0x1f6   : > { %v1560_v55 = vpop.xlane.xlu0 %1559  ;;  %v4343_v25 = vpop.eup %3354  ;;  %3360 = vpow2.f32 %v1639_v29 }
 0x1f7   : > { %v1592_v11 = vmax.f32 %v4298_v54, %v1560_v55  ;;  %v4348_v12 = vpop.eup %3356 }
 0x1f8   : > { %v1584_v56 = vpop.xlane.xlu2 %1583 }
 0x1f9   : > { %2187 = vst.msk [vmem:[#allocation2 + $0x38] sm:$0xff] %vm294_vm3, %v1592_v11  ;;  %v1600_v6 = vmax.f32 %v1535_v20, %v1584_v56  ;;  %1686 = vperm.xlu0 %3313, %v1592_v11   ;;  %1721 = vperm.xlu1 %3314, %v4291_v7   ;;  %v1608_v9 = vsub.f32 %v4298_v54, %v1592_v11 }
 0x1fb   : > { %2195 = vst.msk [vmem:[#allocation2 + $0x78] sm:$0xff] %vm294_vm3, %v1600_v6  ;;  %1726 = vperm.xlu2 %3315, %v1600_v6   ;;  %v1616_v59 = vsub.f32 %v1535_v20, %v1600_v6  ;;  %v1631_v32 = vmul.f32 1.442695, %v1608_v9  ;;  %v4350_v23 = vpop.eup %3358 }
 0x1fc   : > { %v4354_v54 = vpop.eup %3360 }
 0x1fd   : > { %v1647_v60 = vmul.f32 1.442695, %v1616_v59  ;;  %3362 = vpow2.f32 %v1631_v32 }
 0x1ff   : > { %3364 = vpow2.f32 %v1647_v60 }
 0x200   : > { %3366 = vpow2.f32 %v1645_v0 }
 0x201   : > { %2064 = vperm.xlu0 %3313, %v4306_v4   ;;  %2069 = vperm.xlu1 %3314, %v4308_v22  }
 0x203   : > { %2059 = vperm.xlu2 %3315, %v4314_v40   ;;  %v4357_v3 = vpop.eup %3362 }
 0x205   : > { %v4359_v63 = vpop.eup %3364 }
 0x206   : > { %v4363_v7 = vpop.eup %3366 }
 0x209   : > { %2074 = vperm.xlu0 %3313, %v4321_v49   ;;  %2099 = vperm.xlu1 %3314, %v4319_v43  }
 0x20b   : > { %2079 = vperm.xlu2 %3315, %v4330_v44  }
 0x211   : > { %2104 = vperm.xlu0 %3313, %v4336_v46   ;;  %2114 = vperm.xlu1 %3314, %v4338_v61  }
 0x213   : > { %2094 = vperm.xlu2 %3315, %v4343_v25  }
 0x219   : > { %2119 = vperm.xlu0 %3313, %v4348_v12   ;;  %2084 = vperm.xlu1 %3314, %v4350_v23  }
 0x21b   : > { %2109 = vperm.xlu2 %3315, %v4354_v54  }
 0x221   : > { %2089 = vperm.xlu0 %3313, %v4357_v3   ;;  %2129 = vperm.xlu1 %3314, %v4359_v63   ;;  %v1697_v55 = vpop.permute.xlu2 %1696 }
 0x222   : > { %v1738_v56 = vsub.f32 %v4015_v35, %v1697_v55 }
 0x223   : > { %2124 = vperm.xlu2 %3315, %v4363_v7  }
 0x224   : > { %v1763_v57 = vmul.f32 1.442695, %v1738_v56 }
 0x22b   : > { %v1662_v50 = vpop.permute.xlu2 %1661 }
 0x22f   : > { %v1652_v16 = vpop.permute.xlu0 %1651 }
 0x230   : > { %v1729_v20 = vsub.f32 %v4005_v17, %v1652_v16  ;;  %v1731_v17 = vsub.f32 %v4023_v36, %v1662_v50 }
 0x232   : > { %v1745_v11 = vmul.f32 1.442695, %v1729_v20  ;;  %v1749_v10 = vmul.f32 1.442695, %v1731_v17 }
 0x234   : > { %3368 = vpow2.f32 %v1745_v11 }
 0x239   : > { %v1657_v37 = vpop.permute.xlu1 %1656 }
 0x23a   : > { %v1730_v6 = vsub.f32 %v4013_v52, %v1657_v37  ;;  %v3369_v31 = vpop.eup %3368 }
 0x23b   : > { %v1672_v48 = vpop.permute.xlu2 %1671  ;;  %v1890_v53 = vpack.c.bf16 %v3369_v31, %v3369_v31 }
 0x23c   : > { %v1747_v39 = vmul.f32 1.442695, %v1730_v6  ;;  %v1733_v27 = vsub.f32 %v4066_v18, %v1672_v48 }
 0x23d   : > { %v1914_v52 = vunpack.c.l.b16 %v1890_v53 }
 0x23e   : > { %3370 = vpow2.f32 %v1747_v39 }
 0x23f   : > { %3372 = vpow2.f32 %v1763_v57 }
 0x241   : > { %v1692_v62 = vpop.permute.xlu1 %1691 }
 0x242   : > { %v1737_v42 = vsub.f32 %v4009_v8, %v1692_v62  ;;  %v1809_v8 = vsel %vm1536_vm2, %v3369_v31, 0.0 }
 0x243   : > { %v1712_v60 = vpop.permute.xlu2 %1711 }
 0x244   : > { %v3371_v1 = vpop.eup %3370  ;;  %v1761_v14 = vmul.f32 1.442695, %v1737_v42  ;;  %v1741_v56 = vsub.f32 %v4076_v34, %v1712_v60 }
 0x245   : > { %v1702_v24 = vpop.permute.xlu0 %1701  ;;  %v1891_v35 = vpack.c.bf16 %v3371_v1, %v3371_v1  ;;  %v3373_v33 = vpop.eup %3372  ;;  %v1812_v59 = vsel %vm1536_vm2, %v3371_v1, 0.0 }
 0x246   : > { %3374 = vpow2.f32 %v1761_v14  ;;  %v1739_v2 = vsub.f32 %v4028_v58, %v1702_v24  ;;  %v1899_v45 = vpack.c.bf16 %v3373_v33, %v3373_v33  ;;  %v1753_v58 = vmul.f32 1.442695, %v1733_v27 }
 0x247   : > { %v1915_v5 = vunpack.c.l.b16 %v1891_v35  ;;  %v1836_v39 = vsel %vm1536_vm2, %v3373_v33, 0.0  ;;  %v1769_v62 = vmul.f32 1.442695, %v1741_v56 }
 0x248   : > { %v1765_v29 = vmul.f32 1.442695, %v1739_v2  ;;  %v1980_v11 = vunpack.c.l.b16 %v1899_v45 }
 0x249   : > { %v1922_v9 = vpack.c.b16 %v1915_v5, %v1914_v52 }
 0x24a   : > { %3376 = vpow2.f32 %v1765_v29 }
 0x24b   : > { %1810 = vadd.xlane.f32.xlu0 %v1809_v8  ;;  %v1667_v36 = vpop.permute.xlu1 %1666  ;;  %1813 = vadd.xlane.f32.xlu1 %v1812_v59  ;;  %3378 = vpow2.f32 %v1749_v10  ;;  %v1682_v53 = vpop.permute.xlu2 %1681 }
 0x24c   : > { %v3375_v32 = vpop.eup %3374  ;;  %v1732_v0 = vsub.f32 %v4041_v19, %v1667_v36  ;;  %3268 = vmatmul.msk.bf16.vlgmr.msra.gmra.mxu2 %vm1536_vm2, %v1922_v9  ;;  %3380 = vpow2.f32 %v1753_v58  ;;  %v1735_v35 = vsub.f32 %v4117_v51, %v1682_v53 }
 0x24d   : > { %v1833_v18 = vsel %vm1536_vm2, %v3375_v32, 0.0  ;;  %v1898_v16 = vpack.c.bf16 %v3375_v32, %v3375_v32 }
 0x24e   : > { %v1751_v55 = vmul.f32 1.442695, %v1732_v0  ;;  %1834 = vadd.xlane.f32.xlu2 %v1833_v18  ;;  %v1757_v27 = vmul.f32 1.442695, %v1735_v35 }
 0x24f   : > { %v1979_v20 = vunpack.c.l.b16 %v1898_v16 }
 0x250   : > { %v3377_v37 = vpop.eup %3376  ;;  %3382 = vpow2.f32 %v1751_v55 }
 0x251   : > { %v1987_v50 = vpack.c.b16 %v1980_v11, %v1979_v20  ;;  %v3379_v6 = vpop.eup %3378  ;;  %v1839_v19 = vsel %vm1536_vm2, %v3377_v37, 0.0  ;;  %v1900_v9 = vpack.c.bf16 %v3377_v37, %v3377_v37 }
 0x252   : > { %v1815_v48 = vsel %vm1536_vm2, %v3379_v6, 0.0  ;;  %v3381_v42 = vpop.eup %3380  ;;  %v1892_v1 = vpack.c.bf16 %v3379_v6, %v3379_v6 }
 0x253   : > { %1837 = vadd.xlane.f32.xlu0 %v1836_v39  ;;  %v1707_v57 = vpop.permute.xlu1 %1706  ;;  %1840 = vadd.xlane.f32.xlu1 %v1839_v19  ;;  %v1981_v0 = vunpack.c.l.b16 %v1900_v9  ;;  %v1894_v11 = vpack.c.bf16 %v3381_v42, %v3381_v42 }
 0x254   : > { %v1740_v31 = vsub.f32 %v4048_v38, %v1707_v57  ;;  %3272 = vmatmul.msk.bf16.vlgmr.msra.gmra.mxu3 %vm1536_vm2, %v1987_v50  ;;  %v1821_v38 = vsel %vm1536_vm2, %v3381_v42, 0.0  ;;  %v1916_v2 = vunpack.c.l.b16 %v1892_v1 }
 0x255   : > { %v1727_v59 = vpop.permute.xlu2 %1726  ;;  %v1918_v19 = vunpack.c.l.b16 %v1894_v11 }
 0x256   : > { %v1767_v34 = vmul.f32 1.442695, %v1740_v31  ;;  %1816 = vadd.xlane.f32.xlu2 %v1815_v48  ;;  %v3383_v17 = vpop.eup %3382 }
 0x257   : > { %v1818_v14 = vsel %vm1536_vm2, %v3383_v17, 0.0  ;;  %v1893_v24 = vpack.c.bf16 %v3383_v17, %v3383_v17 }
 0x258   : > { %3384 = vpow2.f32 %v1767_v34 }
 0x259   : > { %3386 = vpow2.f32 %v1769_v62  ;;  %v1917_v52 = vunpack.c.l.b16 %v1893_v24 }
 0x25b   : > { %1819 = vadd.xlane.f32.xlu0 %v1818_v14  ;;  %v1677_v5 = vpop.permute.xlu1 %1676  ;;  %1822 = vadd.xlane.f32.xlu1 %v1821_v38  ;;  %v1923_v10 = vpack.c.b16 %v1917_v52, %v1916_v2 }
 0x25c   : > { %v1734_v33 = vsub.f32 %v4097_v21, %v1677_v5  ;;  %v1744_v21 = vsub.f32 %v4133_v13, %v1727_v59 }
 0x25d   : > { %v1717_v29 = vpop.permute.xlu0 %1716  ;;  %3269 = vmatmul.msk.bf16.gmra.mxu2 %vm1536_vm2, %v1923_v10 }
 0x25e   : > { %v3385_v8 = vpop.eup %3384  ;;  %v1755_v36 = vmul.f32 1.442695, %v1734_v33  ;;  %v1742_v45 = vsub.f32 %v4106_v28, %v1717_v29  ;;  %v1775_v20 = vmul.f32 1.442695, %v1744_v21 }
 0x25f   : > { %v3387_v51 = vpop.eup %3386  ;;  %v1842_v32 = vsel %vm1536_vm2, %v3385_v8, 0.0  ;;  %v1901_v58 = vpack.c.bf16 %v3385_v8, %v3385_v8 }
 0x260   : > { %3388 = vpow2.f32 %v1755_v36  ;;  %v1771_v60 = vmul.f32 1.442695, %v1742_v45  ;;  %1843 = vadd.xlane.f32.xlu2 %v1842_v32  ;;  %v1845_v16 = vsel %vm1536_vm2, %v3387_v51, 0.0  ;;  %v1902_v17 = vpack.c.bf16 %v3387_v51, %v3387_v51 }
 0x261   : > { %3390 = vpow2.f32 %v1757_v27  ;;  %v1982_v18 = vunpack.c.l.b16 %v1901_v58 }
 0x262   : > { %3392 = vpow2.f32 %v1771_v60  ;;  %v1983_v2 = vunpack.c.l.b16 %v1902_v17 }
 0x263   : > { %1846 = vadd.xlane.f32.xlu0 %v1845_v16  ;;  %v4393_v55 = vpop.permute.xlu1 %2054  ;;  %v1988_v28 = vpack.c.b16 %v1982_v18, %v1981_v0  ;;  %3394 = vpow2.f32 %v1775_v20  ;;  %v4412_v0 = vpop.permute.xlu2 %2059 }
 0x265   : > { %3273 = vmatmul.msk.bf16.gmra.mxu3 %vm1536_vm2, %v1988_v28 }
 0x266   : > { %v3389_v37 = vpop.eup %3388 }
 0x267   : > { %v3391_v56 = vpop.eup %3390  ;;  %v1824_v50 = vsel %vm1536_vm2, %v3389_v37, 0.0  ;;  %v1895_v6 = vpack.c.bf16 %v3389_v37, %v3389_v37 }
 0x268   : > { %v3393_v39 = vpop.eup %3392  ;;  %1825 = vadd.xlane.f32.xlu2 %v1824_v50  ;;  %v1827_v31 = vsel %vm1536_vm2, %v3391_v56, 0.0 }
 0x269   : > { %v1848_v13 = vsel %vm1536_vm2, %v3393_v39, 0.0  ;;  %v1919_v57 = vunpack.c.l.b16 %v1895_v6  ;;  %v1903_v42 = vpack.c.bf16 %v3393_v39, %v3393_v39  ;;  %v3395_v35 = vpop.eup %3394 }
 0x26a   : > { %1849 = vadd.xlane.f32.xlu1 %v1848_v13  ;;  %v1854_v52 = vsel %vm1536_vm2, %v3395_v35, 0.0  ;;  %v1905_v45 = vpack.c.bf16 %v3395_v35, %v3395_v35 }
 0x26b   : > { %1828 = vadd.xlane.f32.xlu0 %v1827_v31  ;;  %v1687_v62 = vpop.permute.xlu0 %1686  ;;  %v1722_v48 = vpop.permute.xlu1 %1721  ;;  %v1924_v53 = vpack.c.b16 %v1919_v57, %v1918_v19  ;;  %v1984_v38 = vunpack.c.l.b16 %v1903_v42  ;;  %v1777_v57 = vld [vmem:[#allocation3] sm:$0xff]  ;;  %v1778_v31 = vld [vmem:[#allocation3 + $0x8] sm:$0xff] }
 0x26c   : > { %v1736_v34 = vsub.f32 %v4129_v41, %v1687_v62  ;;  %v1743_v1 = vsub.f32 %v4123_v30, %v1722_v48  ;;  %v1896_v41 = vpack.c.bf16 %v3391_v56, %v3391_v56  ;;  %v1986_v32 = vunpack.c.l.b16 %v1905_v45  ;;  %v4418_v28 = vpop.permute.xlu2 %2079 }
 0x26d   : > { %3270 = vmatmul.msk.bf16.gmra.mxu2 %vm1536_vm2, %v1924_v53  ;;  %v1989_v5 = vpack.c.b16 %v1984_v38, %v1983_v2  ;;  %v1793_v62 = vmul.f32 %v4285_v47, %v1777_v57  ;;  %v1794_v48 = vmul.f32 %v4314_v40, %v1778_v31  ;;  %v1785_v53 = vld [vmem:[#allocation3 + $0x40] sm:$0xff]  ;;  %v1786_v38 = vld [vmem:[#allocation3 + $0x48] sm:$0xff]  ;;  %v1787_v2 = vld [vmem:[#allocation3 + $0x50] sm:$0xff] }
 0x26e   : > { %v1759_v14 = vmul.f32 1.442695, %v1736_v34  ;;  %v1773_v24 = vmul.f32 1.442695, %v1743_v1  ;;  %v1920_v8 = vunpack.c.l.b16 %v1896_v41  ;;  %v1802_v47 = vmul.f32 %v4319_v43, %v1786_v38  ;;  %v1781_v43 = vld [vmem:[#allocation3 + $0x20] sm:$0xff] }
 0x26f   : > { %v1803_v40 = vmul.f32 %v4336_v46, %v1787_v2  ;;  %v2036_v46 = vld [vmem:[#allocation4] sm:$0xff] }
 0x270   : > { %3396 = vpow2.f32 %v1759_v14  ;;  %v1801_v14 = vmul.f32 %v4343_v25, %v1785_v53  ;;  %v2132_v45 = vmul.f32 %v4393_v55, %v2036_v46  ;;  %v1789_v55 = vld [vmem:[#allocation3 + $0x60] sm:$0xff] }
 0x271   : > { %3398 = vpow2.f32 %v1773_v24  ;;  %v1805_v2 = vmul.f32 %v4338_v61, %v1789_v55  ;;  %v1790_v61 = vld [vmem:[#allocation3 + $0x68] sm:$0xff]  ;;  %v2039_v55 = vld [vmem:[#allocation4 + $0x18] sm:$0xff] }
 0x273   : > { %1855 = vadd.xlane.f32.xlu0 %v1854_v52  ;;  %v4408_v60 = vpop.permute.xlu0 %2064  ;;  %v4410_v21 = vpop.permute.xlu1 %2069  ;;  %v1779_v52 = vld [vmem:[#allocation3 + $0x10] sm:$0xff] }
 0x274   : > { %v4424_v37 = vpop.permute.xlu2 %2094  ;;  %v1795_v25 = vmul.f32 %v4306_v4, %v1779_v52  ;;  %v1797_v4 = vmul.f32 %v4321_v49, %v1781_v43  ;;  %v2045_v43 = vld [vmem:[#allocation4 + $0x48] sm:$0xff] }
 0x275   : > { %3274 = vmatmul.msk.bf16.gmra.mxu3 %vm1536_vm2, %v1989_v5 }
 0x276   : > { %v3397_v33 = vpop.eup %3396 }
 0x277   : > { %v3399_v10 = vpop.eup %3398  ;;  %v1830_v30 = vsel %vm1536_vm2, %v3397_v33, 0.0  ;;  %v1897_v27 = vpack.c.bf16 %v3397_v33, %v3397_v33 }
 0x278   : > { %1831 = vadd.xlane.f32.xlu1 %v1830_v30  ;;  %v1851_v29 = vsel %vm1536_vm2, %v3399_v10, 0.0  ;;  %v1904_v59 = vpack.c.bf16 %v3399_v10, %v3399_v10 }
 0x279   : > { %1852 = vadd.xlane.f32.xlu2 %v1851_v29  ;;  %v1921_v9 = vunpack.c.l.b16 %v1897_v27 }
 0x27a   : > { %v1985_v51 = vunpack.c.l.b16 %v1904_v59 }
 0x27b   : > { %v1925_v36 = vpack.c.b16 %v1921_v9, %v1920_v8  ;;  %v4414_v18 = vpop.permute.xlu0 %2074  ;;  %v4416_v16 = vpop.permute.xlu1 %2099  ;;  %v1780_v8 = vld [vmem:[#allocation3 + $0x18] sm:$0xff] }
 0x27c   : > { %v1990_v58 = vpack.c.b16 %v1986_v32, %v1985_v51  ;;  %v4430_v6 = vpop.permute.xlu2 %2109 }
 0x27d   : > { %3271 = vmatmul.msk.bf16.gmra.mxu2 %vm1536_vm2, %v1925_v36  ;;  %v1796_v36 = vmul.f32 %v4308_v22, %v1780_v8  ;;  %v1783_v8 = vld [vmem:[#allocation3 + $0x30] sm:$0xff] }
 0x283   : > { %v4420_v20 = vpop.permute.xlu0 %2104  ;;  %v4422_v11 = vpop.permute.xlu1 %2114 }
 0x284   : > { %v4436_v19 = vpop.permute.xlu2 %2124 }
 0x285   : > { %3275 = vmatmul.msk.bf16.gmra.mxu3 %vm1536_vm2, %v1990_v58 }
 0x28b   : > { %v4426_v56 = vpop.permute.xlu0 %2119  ;;  %v4428_v50 = vpop.permute.xlu1 %2084 }
 0x293   : > { %v4432_v39 = vpop.permute.xlu0 %2089  ;;  %v4434_v13 = vpop.permute.xlu1 %2129 }
 0x2be   : > { %v1811_v42 = vpop.xlane.xlu0 %1810  ;;  %v1814_v34 = vpop.xlane.xlu1 %1813 }
 0x2bf   : > { %v1857_v1 = vadd.f32 %v1811_v42, %v1793_v62  ;;  %v1858_v17 = vadd.f32 %v1814_v34, %v1794_v48  ;;  %v1788_v48 = vld [vmem:[#allocation3 + $0x58] sm:$0xff] }
 0x2c0   : > { %v1804_v49 = vmul.f32 %v4354_v54, %v1788_v48 }
 0x2c1   : > { %1874 = vst.msk [vmem:[#allocation3] sm:$0xff] %vm294_vm3, %v1857_v1  ;;  %v1835_v24 = vpop.xlane.xlu2 %1834 }
 0x2c2   : > { %1875 = vst.msk [vmem:[#allocation3 + $0x8] sm:$0xff] %vm294_vm3, %v1858_v17  ;;  %v1865_v35 = vadd.f32 %v1835_v24, %v1801_v14  ;;  %v2037_v17 = vld [vmem:[#allocation4 + $0x8] sm:$0xff]  ;;  %v2044_v14 = vld [vmem:[#allocation4 + $0x40] sm:$0xff] }
 0x2c4   : > { %1882 = vst.msk [vmem:[#allocation3 + $0x40] sm:$0xff] %vm294_vm3, %v1865_v35 }
 0x2c6   : > { %v1838_v5 = vpop.xlane.xlu0 %1837  ;;  %v1841_v33 = vpop.xlane.xlu1 %1840 }
 0x2c7   : > { %v1866_v41 = vadd.f32 %v1838_v5, %v1802_v47  ;;  %v1867_v10 = vadd.f32 %v1841_v33, %v1803_v40  ;;  %v2133_v47 = vmul.f32 %v4412_v0, %v2037_v17  ;;  %v2140_v40 = vmul.f32 %v4424_v37, %v2044_v14 }
 0x2c8   : > { %v2199_v30 = vld [vmem:[#allocation3] sm:$0xff] }
 0x2c9   : > { %1883 = vst.msk [vmem:[#allocation3 + $0x48] sm:$0xff] %vm294_vm3, %v1866_v41  ;;  %v1817_v27 = vpop.xlane.xlu2 %1816  ;;  %3400 = vrcp.f32 %v2199_v30  ;;  %v2200_v29 = vld [vmem:[#allocation3 + $0x8] sm:$0xff] }
 0x2ca   : > { %1884 = vst.msk [vmem:[#allocation3 + $0x50] sm:$0xff] %vm294_vm3, %v1867_v10  ;;  %v1859_v9 = vadd.f32 %v1817_v27, %v1795_v25  ;;  %3402 = vrcp.f32 %v2200_v29  ;;  %v1782_v10 = vld [vmem:[#allocation3 + $0x28] sm:$0xff] }
 0x2cb   : > { %v2207_v59 = vld [vmem:[#allocation3 + $0x40] sm:$0xff] }
 0x2cc   : > { %1876 = vst.msk [vmem:[#allocation3 + $0x10] sm:$0xff] %vm294_vm3, %v1859_v9  ;;  %3404 = vrcp.f32 %v2207_v59  ;;  %v1798_v9 = vmul.f32 %v4330_v44, %v1782_v10 }
 0x2ce   : > { %v1820_v51 = vpop.xlane.xlu0 %1819  ;;  %v1823_v32 = vpop.xlane.xlu1 %1822 }
 0x2cf   : > { %v3401_v58 = vpop.eup %3400  ;;  %v1860_v57 = vadd.f32 %v1820_v51, %v1796_v36  ;;  %v1861_v31 = vadd.f32 %v1823_v32, %v1797_v4  ;;  %v1951_v62 = vpop.f32.mrf.mxu2  ;;  %v1806_v36 = vmul.f32 %v4348_v12, %v1790_v61  ;;  %v2038_v4 = vld [vmem:[#allocation4 + $0x10] sm:$0xff]  ;;  %v1799_v51 = vmul.f32 %v4350_v23, %v1783_v8 }
 0x2d0   : > { %v3403_v53 = vpop.eup %3402  ;;  %2249 = vperm.xlu0 %3313, %v3401_v58   ;;  %v2148_v42 = vadd.f32 %v2132_v45, %v1951_v62  ;;  %v2208_v34 = vld [vmem:[#allocation3 + $0x48] sm:$0xff]  ;;  %v2141_v58 = vmul.f32 %v4416_v16, %v2045_v43 }
 0x2d1   : > { %1877 = vst.msk [vmem:[#allocation3 + $0x18] sm:$0xff] %vm294_vm3, %v1860_v57  ;;  %2254 = vperm.xlu2 %3315, %v3403_v53   ;;  %3406 = vrcp.f32 %v2208_v34  ;;  %v2209_v22 = vld [vmem:[#allocation3 + $0x50] sm:$0xff] }
 0x2d2   : > { %v3405_v1 = vpop.eup %3404  ;;  %1878 = vst.msk [vmem:[#allocation3 + $0x20] sm:$0xff] %vm294_vm3, %v1861_v31  ;;  %3408 = vrcp.f32 %v2209_v22  ;;  %v1792_v22 = vld [vmem:[#allocation3 + $0x78] sm:$0xff] }
 0x2d3   : > { %2164 = vst.msk [vmem:[#allocation4] sm:$0xff] %vm327_vm1, %v2148_v42  ;;  %v1844_v24 = vpop.xlane.xlu2 %1843  ;;  %2289 = vperm.xlu1 %3314, %v3405_v1   ;;  %v2201_v35 = vld [vmem:[#allocation3 + $0x10] sm:$0xff]  ;;  %v2134_v42 = vmul.f32 %v4408_v60, %v2038_v4  ;;  %v1808_v60 = vmul.f32 %v4359_v63, %v1792_v22 }
 0x2d4   : > { %v1868_v38 = vadd.f32 %v1844_v24, %v1804_v49  ;;  %3410 = vrcp.f32 %v2201_v35  ;;  %v2046_v49 = vld [vmem:[#allocation4 + $0x50] sm:$0xff] }
 0x2d5   : > { %v2142_v35 = vmul.f32 %v4420_v20, %v2046_v49  ;;  %v2043_v49 = vld [vmem:[#allocation4 + $0x38] sm:$0xff] }
 0x2d6   : > { %1885 = vst.msk [vmem:[#allocation3 + $0x58] sm:$0xff] %vm294_vm3, %v1868_v38  ;;  %v1847_v54 = vpop.xlane.xlu0 %1846 }
 0x2d7   : > { %v3407_v52 = vpop.eup %3406  ;;  %v1869_v5 = vadd.f32 %v1847_v54, %v1805_v2  ;;  %v1953_v33 = vpop.f32.mrf.mxu2  ;;  %v1784_v2 = vld [vmem:[#allocation3 + $0x38] sm:$0xff]  ;;  %v1791_v54 = vld [vmem:[#allocation3 + $0x70] sm:$0xff] }
 0x2d8   : > { %v2016_v41 = vpop.f32.mrf.mxu3  ;;  %v3409_v25 = vpop.eup %3408  ;;  %2294 = vperm.xlu0 %3313, %v3407_v52   ;;  %v2149_v30 = vadd.f32 %v2133_v47, %v1953_v33  ;;  %v2202_v29 = vld [vmem:[#allocation3 + $0x18] sm:$0xff]  ;;  %v2135_v47 = vmul.f32 %v4410_v21, %v2039_v55  ;;  %v1807_v20 = vmul.f32 %v4363_v7, %v1791_v54 }
 0x2d9   : > { %v2156_v27 = vadd.f32 %v2140_v40, %v2016_v41  ;;  %1886 = vst.msk [vmem:[#allocation3 + $0x60] sm:$0xff] %vm294_vm3, %v1869_v5  ;;  %2299 = vperm.xlu2 %3315, %v3409_v25   ;;  %3412 = vrcp.f32 %v2202_v29  ;;  %v2203_v0 = vld [vmem:[#allocation3 + $0x20] sm:$0xff]  ;;  %v1800_v41 = vmul.f32 %v4357_v3, %v1784_v2 }
 0x2da   : > { %v3411_v37 = vpop.eup %3410  ;;  %2165 = vst.msk [vmem:[#allocation4 + $0x8] sm:$0xff] %vm327_vm1, %v2149_v30  ;;  %3414 = vrcp.f32 %v2203_v0  ;;  %v2047_v30 = vld [vmem:[#allocation4 + $0x58] sm:$0xff]  ;;  %v2040_v29 = vld [vmem:[#allocation4 + $0x20] sm:$0xff] }
 0x2db   : > { %2172 = vst.msk [vmem:[#allocation4 + $0x40] sm:$0xff] %vm327_vm1, %v2156_v27  ;;  %v1826_v46 = vpop.xlane.xlu2 %1825  ;;  %2259 = vperm.xlu1 %3314, %v3411_v37   ;;  %v2143_v37 = vmul.f32 %v4430_v6, %v2047_v30  ;;  %v2136_v3 = vmul.f32 %v4414_v18, %v2040_v29 }
 0x2dc   : > { %v1862_v59 = vadd.f32 %v1826_v46, %v1798_v9 }
 0x2dd   : > { %v1850_v45 = vpop.xlane.xlu1 %1849  ;;  %v2210_v32 = vld [vmem:[#allocation3 + $0x58] sm:$0xff] }
 0x2de   : > { %1879 = vst.msk [vmem:[#allocation3 + $0x28] sm:$0xff] %vm294_vm3, %v1862_v59  ;;  %v1870_v44 = vadd.f32 %v1850_v45, %v1806_v36  ;;  %v1829_v57 = vpop.xlane.xlu0 %1828  ;;  %3416 = vrcp.f32 %v2210_v32  ;;  %v2048_v59 = vld [vmem:[#allocation4 + $0x60] sm:$0xff]  ;;  %v2041_v36 = vld [vmem:[#allocation4 + $0x28] sm:$0xff] }
 0x2df   : > { %v3413_v31 = vpop.eup %3412  ;;  %v1863_v62 = vadd.f32 %v1829_v57, %v1799_v51  ;;  %v2144_v51 = vmul.f32 %v4422_v11, %v2048_v59  ;;  %v2137_v18 = vmul.f32 %v4418_v28, %v2041_v36 }
 0x2e0   : > { %v2018_v48 = vpop.f32.mrf.mxu3  ;;  %v3415_v53 = vpop.eup %3414  ;;  %1887 = vst.msk [vmem:[#allocation3 + $0x68] sm:$0xff] %vm294_vm3, %v1870_v44  ;;  %2264 = vperm.xlu0 %3313, %v3413_v31   ;;  %v2211_v34 = vld [vmem:[#allocation3 + $0x60] sm:$0xff] }
 0x2e1   : > { %v2157_v12 = vadd.f32 %v2141_v58, %v2018_v48  ;;  %1880 = vst.msk [vmem:[#allocation3 + $0x30] sm:$0xff] %vm294_vm3, %v1863_v62  ;;  %v1956_v23 = vpop.f32.mrf.mxu2  ;;  %2269 = vperm.xlu2 %3315, %v3415_v53   ;;  %3418 = vrcp.f32 %v2211_v34  ;;  %v2049_v48 = vld [vmem:[#allocation4 + $0x68] sm:$0xff] }
 0x2e2   : > { %v2150_v16 = vadd.f32 %v2134_v42, %v1956_v23  ;;  %v2042_v42 = vld [vmem:[#allocation4 + $0x30] sm:$0xff]  ;;  %v2145_v11 = vmul.f32 %v4426_v56, %v2049_v48 }
 0x2e3   : > { %2173 = vst.msk [vmem:[#allocation4 + $0x48] sm:$0xff] %vm327_vm1, %v2157_v12  ;;  %v2138_v28 = vmul.f32 %v4428_v50, %v2042_v42 }
 0x2e4   : > { %v3417_v1 = vpop.eup %3416  ;;  %2166 = vst.msk [vmem:[#allocation4 + $0x10] sm:$0xff] %vm327_vm1, %v2150_v16 }
 0x2e5   : > { %2304 = vperm.xlu1 %3314, %v3417_v1   ;;  %v2204_v17 = vld [vmem:[#allocation3 + $0x28] sm:$0xff]  ;;  %v2050_v1 = vld [vmem:[#allocation4 + $0x70] sm:$0xff] }
 0x2e6   : > { %v1856_v14 = vpop.xlane.xlu0 %1855  ;;  %3420 = vrcp.f32 %v2204_v17  ;;  %v2146_v55 = vmul.f32 %v4436_v19, %v2050_v1  ;;  %v2232_v19 = vld [vmem:[#allocation4 + $0x8] sm:$0xff] }
 0x2e7   : > { %v3419_v24 = vpop.eup %3418  ;;  %v1872_v38 = vadd.f32 %v1856_v14, %v1808_v60  ;;  %v2212_v31 = vld [vmem:[#allocation3 + $0x68] sm:$0xff]  ;;  %v2139_v60 = vmul.f32 %v4432_v39, %v2043_v49 }
 0x2e8   : > { %2309 = vperm.xlu0 %3313, %v3419_v24   ;;  %v2021_v40 = vpop.f32.mrf.mxu3  ;;  %v2205_v52 = vld [vmem:[#allocation3 + $0x30] sm:$0xff]  ;;  %v2051_v24 = vld [vmem:[#allocation4 + $0x78] sm:$0xff] }
 0x2e9   : > { %1889 = vst.msk [vmem:[#allocation3 + $0x78] sm:$0xff] %vm294_vm3, %v1872_v38  ;;  %v1958_v5 = vpop.f32.mrf.mxu2  ;;  %v2158_v33 = vadd.f32 %v2142_v35, %v2021_v40  ;;  %3422 = vrcp.f32 %v2205_v52  ;;  %v2147_v35 = vmul.f32 %v4434_v13, %v2051_v24 }
 0x2ea   : > { %v2151_v63 = vadd.f32 %v2135_v47, %v1958_v5 }
 0x2eb   : > { %2174 = vst.msk [vmem:[#allocation4 + $0x50] sm:$0xff] %vm327_vm1, %v2158_v33  ;;  %v1832_v10 = vpop.xlane.xlu1 %1831 }
 0x2ec   : > { %v3421_v25 = vpop.eup %3420  ;;  %2167 = vst.msk [vmem:[#allocation4 + $0x18] sm:$0xff] %vm327_vm1, %v2151_v63  ;;  %v1864_v21 = vadd.f32 %v1832_v10, %v1800_v41  ;;  %v1853_v27 = vpop.xlane.xlu2 %1852 }
 0x2ed   : > { %v1871_v61 = vadd.f32 %v1853_v27, %v1807_v20  ;;  %2274 = vperm.xlu1 %3314, %v3421_v25   ;;  %v2231_v25 = vld [vmem:[#allocation4] sm:$0xff] }
 0x2ee   : > { %1881 = vst.msk [vmem:[#allocation3 + $0x38] sm:$0xff] %vm294_vm3, %v1864_v21 }
 0x2ef   : > { %v3423_v0 = vpop.eup %3422  ;;  %1888 = vst.msk [vmem:[#allocation3 + $0x70] sm:$0xff] %vm294_vm3, %v1871_v61 }
 0x2f0   : > { %2279 = vperm.xlu0 %3313, %v3423_v0   ;;  %v2023_v7 = vpop.f32.mrf.mxu3  ;;  %v2214_v9 = vld [vmem:[#allocation3 + $0x78] sm:$0xff] }
 0x2f1   : > { %v1961_v8 = vpop.f32.mrf.mxu2  ;;  %v2159_v43 = vadd.f32 %v2143_v37, %v2023_v7  ;;  %3424 = vrcp.f32 %v2214_v9  ;;  %v2239_v37 = vld [vmem:[#allocation4 + $0x40] sm:$0xff] }
 0x2f2   : > { %v2152_v46 = vadd.f32 %v2136_v3, %v1961_v8  ;;  %v2241_v39 = vld [vmem:[#allocation4 + $0x50] sm:$0xff] }
 0x2f3   : > { %2175 = vst.msk [vmem:[#allocation4 + $0x58] sm:$0xff] %vm327_vm1, %v2159_v43 }
 0x2f4   : > { %2168 = vst.msk [vmem:[#allocation4 + $0x20] sm:$0xff] %vm327_vm1, %v2152_v46 }
 0x2f5   : > { %v2206_v4 = vld [vmem:[#allocation3 + $0x38] sm:$0xff] }
 0x2f6   : > { %3426 = vrcp.f32 %v2206_v4  ;;  %v2213_v6 = vld [vmem:[#allocation3 + $0x70] sm:$0xff] }
 0x2f7   : > { %v3425_v45 = vpop.eup %3424  ;;  %3428 = vrcp.f32 %v2213_v6 }
 0x2f8   : > { %2324 = vperm.xlu0 %3313, %v3425_v45   ;;  %v2026_v32 = vpop.f32.mrf.mxu3  ;;  %3430 = vrcp.f32 %v2212_v31  ;;  %v2240_v31 = vld [vmem:[#allocation4 + $0x48] sm:$0xff] }
 0x2f9   : > { %v1963_v58 = vpop.f32.mrf.mxu2  ;;  %v2160_v44 = vadd.f32 %v2144_v51, %v2026_v32 }
 0x2fa   : > { %v2153_v57 = vadd.f32 %v2137_v18, %v1963_v58 }
 0x2fb   : > { %2176 = vst.msk [vmem:[#allocation4 + $0x60] sm:$0xff] %vm327_vm1, %v2160_v44  ;;  %v2235_v41 = vld [vmem:[#allocation4 + $0x20] sm:$0xff] }
 0x2fc   : > { %v3427_v62 = vpop.eup %3426  ;;  %2169 = vst.msk [vmem:[#allocation4 + $0x28] sm:$0xff] %vm327_vm1, %v2153_v57 }
 0x2fd   : > { %v3429_v53 = vpop.eup %3428  ;;  %2284 = vperm.xlu2 %3315, %v3427_v62  }
 0x2fe   : > { %2319 = vperm.xlu1 %3314, %v3429_v53   ;;  %v3431_v22 = vpop.eup %3430 }
 0x300   : > { %v2028_v12 = vpop.f32.mrf.mxu3 }
 0x301   : > { %v1966_v34 = vpop.f32.mrf.mxu2  ;;  %v2161_v23 = vadd.f32 %v2145_v11, %v2028_v12 }
 0x302   : > { %v2154_v16 = vadd.f32 %v2138_v28, %v1966_v34 }
 0x303   : > { %2177 = vst.msk [vmem:[#allocation4 + $0x68] sm:$0xff] %vm327_vm1, %v2161_v23 }
 0x304   : > { %2170 = vst.msk [vmem:[#allocation4 + $0x30] sm:$0xff] %vm327_vm1, %v2154_v16 }
 0x305   : > { %2314 = vperm.xlu2 %3315, %v3431_v22  }
 0x308   : > { %v2031_v17 = vpop.f32.mrf.mxu3 }
 0x309   : > { %v1968_v56 = vpop.f32.mrf.mxu2  ;;  %v2162_v14 = vadd.f32 %v2146_v55, %v2031_v17 }
 0x30a   : > { %v2155_v50 = vadd.f32 %v2139_v60, %v1968_v56 }
 0x30b   : > { %2178 = vst.msk [vmem:[#allocation4 + $0x70] sm:$0xff] %vm327_vm1, %v2162_v14 }
 0x30c   : > { %2171 = vst.msk [vmem:[#allocation4 + $0x38] sm:$0xff] %vm327_vm1, %v2155_v50  ;;  %v2233_v50 = vld [vmem:[#allocation4 + $0x10] sm:$0xff] }
 0x310   : > { %v2033_v38 = vpop.f32.mrf.mxu3 }
 0x311   : > { %v2163_v2 = vadd.f32 %v2147_v35, %v2033_v38 }
 0x313   : > { %2179 = vst.msk [vmem:[#allocation4 + $0x78] sm:$0xff] %vm327_vm1, %v2163_v2 }
 0x32b   : > { %v2255_v47 = vpop.permute.xlu2 %2254 }
 0x32c   : > { %v2328_v54 = vmul.f32 %v2255_v47, %v2232_v19 }
 0x32e   : > { %v2396_v5 = vrot.slane %v2328_v54, 4  ;;  %v2401_v27 = vperm.slane %v2328_v54, %v3546_v15 }
 0x330   : > { %v2397_v10 = vsel %vm430_vm0, 0.0, %v2396_v5  ;;  %v2418_v51 = vrot.slane %v2401_v27, 4 }
 0x331   : > { %v4506_v29 = vperm.slane %v2397_v10, %v3546_v15 }
 0x333   : > { %v2300_v40 = vpop.permute.xlu2 %2299  ;;  %v2430_v18 = vrot.slane %v4506_v29, 4 }
 0x334   : > { %v2337_v52 = vmul.f32 %v2300_v40, %v2241_v39 }
 0x336   : > { %v2458_v63 = vrot.slane %v2337_v52, 4  ;;  %v4510_v8 = vperm.slane %v2337_v52, %v3546_v15 }
 0x338   : > { %v2459_v21 = vsel %vm430_vm0, 0.0, %v2458_v63  ;;  %v2468_v28 = vrot.slane %v4510_v8, 4 }
 0x339   : > { %v4513_v43 = vperm.slane %v2459_v21, %v3546_v15 }
 0x33b   : > { %v2270_v33 = vpop.permute.xlu2 %2269  ;;  %v2480_v12 = vrot.slane %v4513_v43, 4 }
 0x33c   : > { %v2331_v20 = vmul.f32 %v2270_v33, %v2235_v41 }
 0x33e   : > { %v2552_v7 = vrot.slane %v2331_v20, 4  ;;  %v4516_v46 = vperm.slane %v2331_v20, %v3546_v15 }
 0x340   : > { %v2553_v32 = vsel %vm430_vm0, 0.0, %v2552_v7  ;;  %v2574_v34 = vrot.slane %v4516_v46, 4 }
 0x341   : > { %v4534_v60 = vperm.slane %v2553_v32, %v3546_v15  ;;  %v2234_v32 = vld [vmem:[#allocation4 + $0x18] sm:$0xff] }
 0x342   : > { %v2250_v30 = vpop.permute.xlu0 %2249 }
 0x343   : > { %v2327_v13 = vmul.f32 %v2250_v30, %v2231_v25  ;;  %v2586_v25 = vrot.slane %v4534_v60, 4 }
 0x345   : > { %v2343_v61 = vrot.slane %v2327_v13, 4  ;;  %v2349_v0 = vperm.slane %v2327_v13, %v3546_v15  ;;  %v2290_v3 = vpop.permute.xlu1 %2289 }
 0x346   : > { %v2335_v9 = vmul.f32 %v2290_v3, %v2239_v37 }
 0x347   : > { %v2345_v59 = vsel %vm430_vm0, 0.0, %v2343_v61  ;;  %v2366_v4 = vrot.slane %v2349_v0, 4 }
 0x348   : > { %v2353_v36 = vperm.slane %v2345_v59, %v3546_v15  ;;  %v2354_v6 = vrot.slane %v2335_v9, 4  ;;  %v2359_v45 = vperm.slane %v2335_v9, %v3546_v15 }
 0x34a   : > { %v2355_v58 = vsel %vm430_vm0, 0.0, %v2354_v6  ;;  %v2364_v44 = vrot.slane %v2359_v45, 4  ;;  %v2367_v57 = vsel %vm430_vm0, %v2359_v45, %v2366_v4  ;;  %v2295_v62 = vpop.permute.xlu0 %2294  ;;  %v2378_v48 = vrot.slane %v2353_v36, 4 }
 0x34b   : > { %v2363_v53 = vperm.slane %v2355_v58, %v3546_v15  ;;  %v2375_v42 = vperm.slane %v2367_v57, %v3552_v26  ;;  %v2336_v11 = vmul.f32 %v2295_v62, %v2240_v31 }
 0x34c   : > { %v2365_v23 = vsel %vm430_vm0, %v2364_v44, %v2349_v0 }
 0x34d   : > { %v2371_v16 = vperm.slane %v2365_v23, %v3552_v26  ;;  %v2376_v22 = vrot.slane %v2363_v53, 4  ;;  %v2379_v1 = vsel %vm430_vm0, %v2363_v53, %v2378_v48  ;;  %v2390_v49 = vrot.slane %v2375_v42, 4  ;;  %v2260_v55 = vpop.permute.xlu1 %2259 }
 0x34e   : > { %v2387_v17 = vperm.slane %v2379_v1, %v3552_v26  ;;  %v2406_v56 = vrot.slane %v2336_v11, 4  ;;  %v2411_v14 = vperm.slane %v2336_v11, %v3546_v15  ;;  %v2329_v2 = vmul.f32 %v2260_v55, %v2233_v50 }
 0x34f   : > { %v2377_v24 = vsel %vm430_vm0, %v2376_v22, %v2353_v36  ;;  %v2388_v35 = vrot.slane %v2371_v16, 4  ;;  %v2391_v38 = vsel %vm430_vm0, 0.0, %v2390_v49  ;;  %v4546_v19 = vsel %vm430_vm0, %v2390_v49, %v2371_v16 }
 0x350   : > { %v4541_v47 = vperm.slane %v2377_v24, %v3552_v26  ;;  %v4543_v40 = vrot.slane %v2387_v17, 4  ;;  %v2765_v54 = vrot.slane %v2391_v38, 4  ;;  %v2407_v52 = vsel %vm430_vm0, 0.0, %v2406_v56 }
 0x351   : > { %v2389_v39 = vsel %vm430_vm0, 0.0, %v2388_v35  ;;  %v2416_v5 = vrot.slane %v2411_v14, 4  ;;  %v2419_v33 = vsel %vm430_vm0, %v2411_v14, %v2418_v51  ;;  %v2415_v20 = vperm.slane %v2407_v52, %v3546_v15 }
 0x352   : > { %v2392_v63 = vrot.slane %v4541_v47, 4  ;;  %v4554_v41 = vsel %vm430_vm0, 0.0, %v4543_v40  ;;  %v2766_v10 = vsel %vm430_vm0, %v2765_v54, %v2389_v39  ;;  %v2764_v30 = vperm.slane %v4546_v19, %v3546_v15  ;;  %v2265_v61 = vpop.permute.xlu0 %2264 }
 0x353   : > { %v2417_v13 = vsel %vm430_vm0, %v2416_v5, %v2401_v27  ;;  %v2427_v21 = vperm.slane %v2419_v33, %v3552_v26  ;;  %v2770_v0 = vperm.slane %v2766_v10, %v3546_v15  ;;  %v2428_v3 = vrot.slane %v2415_v20, 4 }
 0x354   : > { %v2423_v37 = vperm.slane %v2417_v13, %v3552_v26  ;;  %v2431_v7 = vsel %vm430_vm0, %v2415_v20, %v2430_v18  ;;  %v2776_v9 = vrot.slane %v4554_v41, 4  ;;  %v2448_v4 = vrot.slane %v2329_v2, 4  ;;  %v2238_v20 = vld [vmem:[#allocation4 + $0x38] sm:$0xff] }
 0x355   : > { %v2439_v59 = vperm.slane %v2431_v7, %v3552_v26  ;;  %v2442_v36 = vrot.slane %v2427_v21, 4  ;;  %v4569_v6 = vsel %vm430_vm0, 0.0, %v2392_v63  ;;  %v2429_v27 = vsel %vm430_vm0, %v2428_v3, %v4506_v29 }
 0x356   : > { %v2440_v45 = vrot.slane %v2423_v37, 4  ;;  %v2453_v51 = vperm.slane %v2329_v2, %v3546_v15  ;;  %v4575_v58 = vperm.slane %v2429_v27, %v3552_v26  ;;  %v2330_v57 = vmul.f32 %v2265_v61, %v2234_v32 }
 0x357   : > { %v2443_v18 = vsel %vm430_vm0, 0.0, %v2442_v36  ;;  %v4578_v44 = vrot.slane %v2439_v59, 4  ;;  %v4582_v62 = vsel %vm430_vm0, %v2442_v36, %v2423_v37  ;;  %v2449_v29 = vsel %vm430_vm0, 0.0, %v2448_v4  ;;  %v2285_v38 = vpop.permute.xlu2 %2284  ;;  %v2305_v5 = vpop.permute.xlu1 %2304  ;;  %v2243_v37 = vld [vmem:[#allocation4 + $0x60] sm:$0xff] }
 0x358   : > { %v2441_v31 = vsel %vm430_vm0, 0.0, %v2440_v45  ;;  %v2803_v48 = vrot.slane %v2443_v18, 4  ;;  %v4585_v53 = vrot.slane %v2770_v0, 4  ;;  %v2444_v42 = vrot.slane %v4575_v58, 4 }
 0x359   : > { %v2457_v11 = vperm.slane %v2449_v29, %v3546_v15  ;;  %v2469_v23 = vsel %vm430_vm0, %v2468_v28, %v2453_v51  ;;  %v4592_v16 = vsel %vm430_vm0, 0.0, %v4578_v44  ;;  %v2470_v1 = vrot.slane %v2453_v51, 4 }
 0x35a   : > { %v2804_v22 = vsel %vm430_vm0, %v2803_v48, %v2441_v31  ;;  %v2475_v49 = vperm.slane %v2469_v23, %v3552_v26  ;;  %v2802_v55 = vperm.slane %v4582_v62, %v3546_v15  ;;  %v2500_v35 = vrot.slane %v2330_v57, 4 }
 0x35b   : > { %v2808_v17 = vperm.slane %v2804_v22, %v3546_v15  ;;  %v2481_v56 = vsel %vm430_vm0, %v2480_v12, %v2457_v11  ;;  %v2482_v14 = vrot.slane %v2457_v11, 4  ;;  %v2471_v28 = vsel %vm430_vm0, %v4510_v8, %v2470_v1  ;;  %v2310_v12 = vpop.permute.xlu0 %2309 }
 0x35c   : > { %v2487_v50 = vperm.slane %v2481_v56, %v3552_v26  ;;  %v2492_v24 = vrot.slane %v2475_v49, 4  ;;  %v2814_v2 = vrot.slane %v4592_v16, 4  ;;  %v2479_v54 = vperm.slane %v2471_v28, %v3552_v26 }
 0x35d   : > { %v2483_v39 = vsel %vm430_vm0, %v4513_v43, %v2482_v14  ;;  %v2505_v52 = vperm.slane %v2330_v57, %v3546_v15  ;;  %v4611_v33 = vsel %vm430_vm0, 0.0, %v2444_v42  ;;  %v2501_v10 = vsel %vm430_vm0, 0.0, %v2500_v35  ;;  %v2242_v43 = vld [vmem:[#allocation4 + $0x58] sm:$0xff] }
 0x35e   : > { %v2491_v8 = vperm.slane %v2483_v39, %v3552_v26  ;;  %v2496_v63 = vrot.slane %v2487_v50, 4  ;;  %v4615_v13 = vrot.slane %v2808_v17, 4  ;;  %v2494_v21 = vrot.slane %v2479_v54, 4 }
 0x35f   : > { %v2509_v61 = vperm.slane %v2501_v10, %v3546_v15  ;;  %v2334_v0 = vmul.f32 %v2285_v38, %v2238_v20  ;;  %v2493_v3 = vsel %vm430_vm0, 0.0, %v2492_v24  ;;  %v2338_v59 = vmul.f32 %v2305_v5, %v2242_v43 }
 0x360   : > { %v2498_v7 = vrot.slane %v2491_v8, 4  ;;  %v2339_v36 = vmul.f32 %v2310_v12, %v2243_v37  ;;  %v2495_v4 = vsel %vm430_vm0, 0.0, %v2494_v21  ;;  %v4621_v27 = vsel %vm430_vm0, %v2494_v21, %v2475_v49 }
 0x361   : > { %v2522_v45 = vrot.slane %v2505_v52, 4  ;;  %v2708_v51 = vrot.slane %v2334_v0, 4  ;;  %v4624_v32 = vsel %vm430_vm0, 0.0, %v2496_v63  ;;  %v2841_v57 = vrot.slane %v2495_v4, 4 }
 0x362   : > { %v4627_v18 = vsel %vm430_vm0, 0.0, %v2498_v7  ;;  %v2534_v31 = vrot.slane %v2509_v61, 4  ;;  %v2840_v48 = vperm.slane %v4621_v27, %v3546_v15  ;;  %v4633_v42 = vperm.slane %v2334_v0, %v3546_v15 }
 0x363   : > { %v2709_v29 = vsel %vm430_vm0, 0.0, %v2708_v51  ;;  %v2510_v11 = vrot.slane %v2338_v59, 4  ;;  %v2842_v23 = vsel %vm430_vm0, %v2841_v57, %v2493_v3  ;;  %v4637_v22 = vsel %vm430_vm0, %v2498_v7, %v2487_v50 }
 0x364   : > { %v2515_v1 = vperm.slane %v2338_v59, %v3546_v15  ;;  %v2562_v49 = vrot.slane %v2339_v36, 4  ;;  %v2852_v17 = vrot.slane %v4627_v18, 4  ;;  %v4642_v56 = vperm.slane %v2709_v29, %v3546_v15 }
 0x365   : > { %v2511_v14 = vsel %vm430_vm0, 0.0, %v2510_v11  ;;  %v2567_v28 = vperm.slane %v2339_v36, %v3546_v15  ;;  %v2846_v24 = vperm.slane %v2842_v23, %v3546_v15  ;;  %v2730_v54 = vrot.slane %v4633_v42, 4 }
 0x366   : > { %v2519_v35 = vperm.slane %v2511_v14, %v3546_v15  ;;  %v2520_v38 = vrot.slane %v2515_v1, 4  ;;  %v2523_v50 = vsel %vm430_vm0, %v2515_v1, %v2522_v45  ;;  %v2563_v5 = vsel %vm430_vm0, 0.0, %v2562_v49  ;;  %v2315_v1 = vpop.permute.xlu2 %2314  ;;  %v2275_v49 = vpop.permute.xlu1 %2274 }
 0x367   : > { %v2531_v39 = vperm.slane %v2523_v50, %v3552_v26  ;;  %v2572_v12 = vrot.slane %v2567_v28, 4  ;;  %v2571_v20 = vperm.slane %v2563_v5, %v3546_v15  ;;  %v2575_v7 = vsel %vm430_vm0, %v2567_v28, %v2574_v34 }
 0x368   : > { %v2521_v8 = vsel %vm430_vm0, %v2520_v38, %v2505_v52  ;;  %v2532_v63 = vrot.slane %v2519_v35, 4  ;;  %v2535_v10 = vsel %vm430_vm0, %v2519_v35, %v2534_v31  ;;  %v4676_v34 = vrot.slane %v2846_v24, 4  ;;  %v2280_v38 = vpop.permute.xlu0 %2279 }
 0x369   : > { %v2527_v21 = vperm.slane %v2521_v8, %v3552_v26  ;;  %v2543_v0 = vperm.slane %v2535_v10, %v3552_v26  ;;  %v2546_v43 = vrot.slane %v2531_v39, 4  ;;  %v2573_v37 = vsel %vm430_vm0, %v2572_v12, %v4516_v46  ;;  %v2244_v8 = vld [vmem:[#allocation4 + $0x68] sm:$0xff] }
 0x36a   : > { %v2533_v3 = vsel %vm430_vm0, %v2532_v63, %v2509_v61  ;;  %v2579_v52 = vperm.slane %v2573_v37, %v3552_v26  ;;  %v2584_v59 = vrot.slane %v2571_v20, 4  ;;  %v2583_v61 = vperm.slane %v2575_v7, %v3552_v26  ;;  %v2236_v63 = vld [vmem:[#allocation4 + $0x28] sm:$0xff] }
 0x36b   : > { %v4665_v36 = vperm.slane %v2533_v3, %v3552_v26  ;;  %v2544_v4 = vrot.slane %v2527_v21, 4  ;;  %v2547_v45 = vsel %vm430_vm0, 0.0, %v2546_v43  ;;  %v4668_v51 = vrot.slane %v2543_v0, 4 }
 0x36c   : > { %v4671_v57 = vsel %vm430_vm0, %v2546_v43, %v2527_v21  ;;  %v2879_v31 = vrot.slane %v2547_v45, 4  ;;  %v2585_v46 = vsel %vm430_vm0, %v2584_v59, %v4534_v60  ;;  %v2742_v29 = vrot.slane %v4642_v56, 4 }
 0x36d   : > { %v2545_v11 = vsel %vm430_vm0, 0.0, %v2544_v4  ;;  %v2548_v23 = vrot.slane %v4665_v36, 4  ;;  %v4683_v14 = vsel %vm430_vm0, 0.0, %v4668_v51  ;;  %v2587_v35 = vsel %vm430_vm0, %v2571_v20, %v2586_v25  ;;  %v2237_v25 = vld [vmem:[#allocation4 + $0x30] sm:$0xff] }
 0x36e   : > { %v2880_v28 = vsel %vm430_vm0, %v2879_v31, %v2545_v11  ;;  %v4690_v24 = vperm.slane %v2585_v46, %v3552_v26  ;;  %v2878_v50 = vperm.slane %v4671_v57, %v3546_v15  ;;  %v2595_v5 = vperm.slane %v2587_v35, %v3552_v26 }
 0x36f   : > { %v2884_v39 = vperm.slane %v2880_v28, %v3546_v15  ;;  %v2596_v12 = vrot.slane %v2579_v52, 4  ;;  %v2598_v10 = vrot.slane %v2583_v61, 4  ;;  %v2340_v60 = vmul.f32 %v2315_v1, %v2244_v8 }
 0x370   : > { %v2600_v21 = vrot.slane %v4690_v24, 4  ;;  %v2332_v0 = vmul.f32 %v2275_v49, %v2236_v63  ;;  %v4698_v20 = vsel %vm430_vm0, 0.0, %v2548_v23  ;;  %v2890_v43 = vrot.slane %v4683_v14, 4 }
 0x371   : > { %v4701_v37 = vrot.slane %v2595_v5, 4  ;;  %v2333_v3 = vmul.f32 %v2280_v38, %v2237_v25  ;;  %v4703_v7 = vrot.slane %v2884_v39, 4  ;;  %v2597_v59 = vsel %vm430_vm0, 0.0, %v2596_v12 }
 0x372   : > { %v2599_v4 = vsel %vm430_vm0, 0.0, %v2598_v10  ;;  %v2614_v45 = vrot.slane %v2340_v60, 4  ;;  %v4708_v31 = vsel %vm430_vm0, 0.0, %v2600_v21  ;;  %v4711_v61 = vsel %vm430_vm0, %v2598_v10, %v2579_v52 }
 0x373   : > { %v2917_v46 = vrot.slane %v2599_v4, 4  ;;  %v2619_v11 = vperm.slane %v2340_v60, %v3546_v15  ;;  %v4716_v23 = vsel %vm430_vm0, 0.0, %v4701_v37  ;;  %v2604_v49 = vrot.slane %v2332_v0, 4 }
 0x374   : > { %v2615_v1 = vsel %vm430_vm0, 0.0, %v2614_v45  ;;  %v2609_v28 = vperm.slane %v2332_v0, %v3546_v15  ;;  %v2656_v5 = vrot.slane %v2333_v3, 4  ;;  %v4725_v63 = vperm.slane %v2333_v3, %v3546_v15 }
 0x375   : > { %v2918_v35 = vsel %vm430_vm0, %v2917_v46, %v2597_v59  ;;  %v2623_v38 = vperm.slane %v2615_v1, %v3546_v15  ;;  %v2624_v39 = vrot.slane %v2619_v11, 4  ;;  %v2605_v12 = vsel %vm430_vm0, 0.0, %v2604_v49 }
 0x376   : > { %v2922_v52 = vperm.slane %v2918_v35, %v3546_v15  ;;  %v2626_v8 = vrot.slane %v2609_v28, 4  ;;  %v2613_v21 = vperm.slane %v2605_v12, %v3546_v15  ;;  %v2657_v0 = vsel %vm430_vm0, 0.0, %v2656_v5 }
 0x377   : > { %v2636_v10 = vrot.slane %v2623_v38, 4  ;;  %v2625_v60 = vsel %vm430_vm0, %v2624_v39, %v2609_v28  ;;  %v2916_v25 = vperm.slane %v4711_v61, %v3546_v15  ;;  %v4735_v45 = vperm.slane %v2657_v0, %v3546_v15 }
 0x378   : > { %v2627_v59 = vsel %vm430_vm0, %v2619_v11, %v2626_v8  ;;  %v2631_v4 = vperm.slane %v2625_v60, %v3552_v26  ;;  %v2928_v3 = vrot.slane %v4716_v23, 4  ;;  %v2638_v49 = vrot.slane %v2613_v21, 4 }
 0x379   : > { %v2635_v46 = vperm.slane %v2627_v59, %v3552_v26  ;;  %v2637_v1 = vsel %vm430_vm0, %v2636_v10, %v2613_v21  ;;  %v4740_v28 = vrot.slane %v2922_v52, 4  ;;  %v2771_v11 = vsel %vm430_vm0, %v4543_v40, %v4541_v47 }
 0x37a   : > { %v2643_v35 = vperm.slane %v2637_v1, %v3552_v26  ;;  %v2648_v39 = vrot.slane %v2631_v4, 4  ;;  %v2639_v5 = vsel %vm430_vm0, %v2623_v38, %v2638_v49  ;;  %v2678_v8 = vrot.slane %v4725_v63, 4 }
 0x37b   : > { %v2650_v12 = vrot.slane %v2635_v46, 4  ;;  %v2777_v10 = vsel %vm430_vm0, %v2776_v9, %v4569_v6  ;;  %v2647_v52 = vperm.slane %v2639_v5, %v3552_v26  ;;  %v2690_v60 = vrot.slane %v4735_v45, 4 }
 0x37c   : > { %v2652_v21 = vrot.slane %v2643_v35, 4  ;;  %v2781_v0 = vperm.slane %v2777_v10, %v3546_v15  ;;  %v2775_v40 = vperm.slane %v2771_v11, %v3546_v15  ;;  %v2783_v41 = vsel %vm430_vm0, %v4585_v53, %v2764_v30  ;;  %v2325_v30 = vpop.permute.xlu0 %2324  ;;  %v2320_v11 = vpop.permute.xlu1 %2319 }
 0x37d   : > { %v2651_v59 = vsel %vm430_vm0, 0.0, %v2650_v12  ;;  %v4757_v47 = vsel %vm430_vm0, %v2650_v12, %v2631_v4  ;;  %v2649_v9 = vsel %vm430_vm0, 0.0, %v2648_v39  ;;  %v2654_v6 = vrot.slane %v2647_v52, 4 }
 0x37e   : > { %v2955_v38 = vrot.slane %v2651_v59, 4  ;;  %v2809_v46 = vsel %vm430_vm0, %v4578_v44, %v4575_v58  ;;  %v4770_v1 = vsel %vm430_vm0, 0.0, %v2652_v21  ;;  %v4773_v4 = vperm.slane %v2783_v41, %v3552_v26  ;;  %v2245_v59 = vld [vmem:[#allocation4 + $0x70] sm:$0xff] }
 0x37f   : > { %v2788_v49 = vrot.slane %v2781_v0, 4  ;;  %v2815_v19 = vsel %vm430_vm0, %v2814_v2, %v4611_v33  ;;  %v4780_v53 = vsel %vm430_vm0, 0.0, %v2654_v6  ;;  %v2954_v39 = vperm.slane %v4757_v47, %v3546_v15  ;;  %v2246_v33 = vld [vmem:[#allocation4 + $0x78] sm:$0xff] }
 0x380   : > { %v2956_v58 = vsel %vm430_vm0, %v2955_v38, %v2649_v9  ;;  %v2819_v44 = vperm.slane %v2815_v19, %v3546_v15  ;;  %v2796_v16 = vrot.slane %v4773_v4, 4  ;;  %v2813_v2 = vperm.slane %v2809_v46, %v3546_v15 }
 0x381   : > { %v2960_v5 = vperm.slane %v2956_v58, %v3546_v15  ;;  %v2789_v12 = vsel %vm430_vm0, %v2788_v49, %v2775_v40  ;;  %v2821_v52 = vsel %vm430_vm0, %v4615_v13, %v2802_v55  ;;  %v2342_v0 = vmul.f32 %v2325_v30, %v2246_v33 }
 0x382   : > { %v4791_v10 = vperm.slane %v2789_v12, %v3552_v26  ;;  %v2826_v21 = vrot.slane %v2819_v44, 4  ;;  %v4799_v41 = vsel %vm430_vm0, %v2654_v6, %v2643_v35  ;;  %v2966_v40 = vrot.slane %v4780_v53, 4 }
 0x383   : > { %v4803_v9 = vperm.slane %v2821_v52, %v3552_v26  ;;  %v2341_v38 = vmul.f32 %v2320_v11, %v2245_v59  ;;  %v4805_v46 = vrot.slane %v2960_v5, 4  ;;  %v2718_v55 = vrot.slane %v2342_v0, 4 }
 0x384   : > { %v2797_v62 = vsel %vm430_vm0, %v4791_v10, %v2796_v16  ;;  %v2827_v49 = vsel %vm430_vm0, %v2826_v21, %v2813_v2  ;;  %v2723_v6 = vperm.slane %v2342_v0, %v3546_v15  ;;  %v2794_v30 = vrot.slane %v4791_v10, 4 }
 0x385   : > { %v4811_v13 = vperm.slane %v2827_v49, %v3552_v26  ;;  %v2834_v35 = vrot.slane %v4803_v9, 4  ;;  %v2666_v19 = vrot.slane %v2341_v38, 4  ;;  %v2719_v58 = vsel %vm430_vm0, 0.0, %v2718_v55 }
 0x386   : > { %v2671_v44 = vperm.slane %v2341_v38, %v3546_v15  ;;  %v2851_v11 = vperm.slane %v4637_v22, %v3546_v15  ;;  %v2727_v12 = vperm.slane %v2719_v58, %v3546_v15  ;;  %v2728_v16 = vrot.slane %v2723_v6, 4 }
 0x387   : > { %v2835_v5 = vsel %vm430_vm0, %v4811_v13, %v2834_v35  ;;  %v2853_v2 = vsel %vm430_vm0, %v2852_v17, %v4624_v32  ;;  %v2731_v52 = vsel %vm430_vm0, %v2723_v6, %v2730_v54  ;;  %v2667_v21 = vsel %vm430_vm0, 0.0, %v2666_v19 }
 0x388   : > { %v3316_v33 = vpack.i.bf16 %v2835_v5, %v2797_v62  ;;  %v2676_v0 = vrot.slane %v2671_v44, 4  ;;  %v2729_v22 = vsel %vm430_vm0, %v2728_v16, %v4633_v42  ;;  %v2739_v59 = vperm.slane %v2731_v52, %v3552_v26 }
 0x389   : > { %v2740_v38 = vrot.slane %v2727_v12, 4  ;;  %v2743_v18 = vsel %vm430_vm0, %v2727_v12, %v2742_v29  ;;  %v2735_v32 = vperm.slane %v2729_v22, %v3552_v26  ;;  %v2675_v54 = vperm.slane %v2667_v21, %v3546_v15 }
 0x38a   : > { %3317 = vrot.lane.b32.xlu2 %v3316_v33, %s3462_s28  ;;  %v2751_v17 = vperm.slane %v2743_v18, %v3552_v26  ;;  %v2677_v62 = vsel %vm430_vm0, %v2676_v0, %v4725_v63  ;;  %v2754_v49 = vrot.slane %v2739_v59, 4  ;;  %v2679_v29 = vsel %vm430_vm0, %v2671_v44, %v2678_v8 }
 0x38b   : > { %v2741_v42 = vsel %vm430_vm0, %v2740_v38, %v4642_v56  ;;  %v2683_v55 = vperm.slane %v2677_v62, %v3552_v26  ;;  %v2752_v6 = vrot.slane %v2735_v32, 4  ;;  %v2687_v58 = vperm.slane %v2679_v29, %v3552_v26 }
 0x38c   : > { %v4850_v35 = vperm.slane %v2741_v42, %v3552_v26  ;;  %v4852_v19 = vrot.slane %v2751_v17, 4  ;;  %v2755_v5 = vsel %vm430_vm0, 0.0, %v2754_v49  ;;  %v4857_v12 = vsel %vm430_vm0, %v2754_v49, %v2735_v32 }
 0x38d   : > { %v2688_v56 = vrot.slane %v2675_v54, 4  ;;  %v2691_v63 = vsel %vm430_vm0, %v2675_v54, %v2690_v60  ;;  %v2832_v8 = vrot.slane %v4811_v13, 4  ;;  %v2753_v44 = vsel %vm430_vm0, 0.0, %v2752_v6 }
 0x38e   : > { %v4866_v16 = vsel %vm430_vm0, 0.0, %v4852_v19  ;;  %v2859_v33 = vsel %vm430_vm0, %v4676_v34, %v2840_v48  ;;  %v2756_v52 = vrot.slane %v4850_v35, 4  ;;  %v3031_v21 = vrot.slane %v2755_v5, 4 }
 0x38f   : > { %v2689_v60 = vsel %vm430_vm0, %v2688_v56, %v4735_v45  ;;  %v2699_v0 = vperm.slane %v2691_v63, %v3552_v26  ;;  %v3030_v22 = vperm.slane %v4857_v12, %v3546_v15  ;;  %v2700_v38 = vrot.slane %v2683_v55, 4 }
 0x390   : > { %v2695_v59 = vperm.slane %v2689_v60, %v3552_v26  ;;  %v2702_v18 = vrot.slane %v2687_v58, 4  ;;  %v3032_v27 = vsel %vm430_vm0, %v3031_v21, %v2753_v44  ;;  %v3042_v32 = vrot.slane %v4866_v16, 4 }
 0x391   : > { %v2706_v48 = vrot.slane %v2699_v0, 4  ;;  %v2857_v34 = vperm.slane %v2853_v2, %v3546_v15  ;;  %v3036_v17 = vperm.slane %v3032_v27, %v3546_v15  ;;  %v2701_v45 = vsel %vm430_vm0, 0.0, %v2700_v38 }
 0x392   : > { %v2703_v54 = vsel %vm430_vm0, 0.0, %v2702_v18  ;;  %v2704_v62 = vrot.slane %v2695_v59, 4  ;;  %v2988_v49 = vsel %vm430_vm0, %v2702_v18, %v2683_v55  ;;  %v2757_v58 = vsel %vm430_vm0, 0.0, %v2756_v52 }
 0x393   : > { %v2707_v42 = vsel %vm430_vm0, 0.0, %v2706_v48  ;;  %v2993_v29 = vrot.slane %v2703_v54, 4  ;;  %v2864_v6 = vrot.slane %v2857_v34, 4  ;;  %v3048_v5 = vrot.slane %v3036_v17, 4 }
 0x394   : > { %v2705_v56 = vsel %vm430_vm0, 0.0, %v2704_v62  ;;  %v4891_v2 = vperm.slane %v2859_v33, %v3552_v26  ;;  %v2992_v63 = vperm.slane %v2988_v49, %v3546_v15  ;;  %v2885_v55 = vsel %vm430_vm0, %v4668_v51, %v4665_v36 }
 0x395   : > { %v2994_v44 = vsel %vm430_vm0, %v2993_v29, %v2701_v45  ;;  %v2865_v21 = vsel %vm430_vm0, %v2864_v6, %v2851_v11  ;;  %v3004_v0 = vrot.slane %v2707_v42, 4  ;;  %v2891_v33 = vsel %vm430_vm0, %v2890_v43, %v4698_v20 }
 0x396   : > { %v2998_v60 = vperm.slane %v2994_v44, %v3546_v15  ;;  %v4901_v52 = vperm.slane %v2865_v21, %v3552_v26  ;;  %v2895_v38 = vperm.slane %v2891_v33, %v3546_v15  ;;  %v2897_v11 = vsel %vm430_vm0, %v4703_v7, %v2878_v50 }
 0x397   : > { %v2923_v36 = vsel %vm430_vm0, %v4701_v37, %v4690_v24  ;;  %v2929_v51 = vsel %vm430_vm0, %v2928_v3, %v4708_v31  ;;  %v2872_v20 = vrot.slane %v4891_v2, 4  ;;  %v2889_v43 = vperm.slane %v2885_v55, %v3546_v15 }
 0x398   : > { %v3010_v14 = vrot.slane %v2998_v60, 4  ;;  %v2901_v18 = vperm.slane %v2897_v11, %v3552_v26  ;;  %v2870_v57 = vrot.slane %v4901_v52, 4  ;;  %v2902_v27 = vrot.slane %v2895_v38, 4 }
 0x399   : > { %v2933_v50 = vperm.slane %v2929_v51, %v3546_v15  ;;  %v2935_v24 = vsel %vm430_vm0, %v4740_v28, %v2916_v25  ;;  %v2927_v7 = vperm.slane %v2923_v36, %v3546_v15  ;;  %v2967_v23 = vsel %vm430_vm0, %v2966_v40, %v4770_v1 }
 0x39a   : > { %v2910_v37 = vrot.slane %v2901_v18, 4  ;;  %v2939_v31 = vperm.slane %v2935_v24, %v3552_v26  ;;  %v2903_v3 = vsel %vm430_vm0, %v2902_v27, %v2889_v43  ;;  %v2971_v17 = vperm.slane %v2967_v23, %v3546_v15 }
 0x39b   : > { %v2940_v34 = vrot.slane %v2933_v50, 4  ;;  %v2973_v61 = vsel %vm430_vm0, %v4805_v46, %v2954_v39  ;;  %v2907_v25 = vperm.slane %v2903_v3, %v3552_v26  ;;  %v2965_v45 = vperm.slane %v4799_v41, %v3546_v15 }
 0x39c   : > { %v2948_v28 = vrot.slane %v2939_v31, 4  ;;  %v2977_v53 = vperm.slane %v2973_v61, %v3552_v26  ;;  %v2978_v40 = vrot.slane %v2971_v17, 4  ;;  %v2999_v54 = vsel %vm430_vm0, %v2706_v48, %v2695_v59 }
 0x39d   : > { %v2941_v1 = vsel %vm430_vm0, %v2940_v34, %v2927_v7  ;;  %v3005_v62 = vsel %vm430_vm0, %v3004_v0, %v2705_v56  ;;  %v2873_v47 = vsel %vm430_vm0, %v4901_v52, %v2872_v20  ;;  %v2911_v39 = vsel %vm430_vm0, %v2907_v25, %v2910_v37 }
 0x39e   : > { %v2945_v46 = vperm.slane %v2941_v1, %v3552_v26  ;;  %v2986_v42 = vrot.slane %v2977_v53, 4  ;;  %v3321_v49 = vpack.i.bf16 %v2911_v39, %v2873_v47  ;;  %v2979_v41 = vsel %vm430_vm0, %v2978_v40, %v2965_v45 }
 0x39f   : > { %v3009_v29 = vperm.slane %v3005_v62, %v3546_v15  ;;  %v3011_v6 = vsel %vm430_vm0, %v3010_v14, %v2992_v63  ;;  %v2908_v44 = vrot.slane %v2907_v25, 4  ;;  %v2983_v59 = vperm.slane %v2979_v41, %v3552_v26 }
 0x3a0   : > { %v3003_v48 = vperm.slane %v2999_v54, %v3546_v15  ;;  %v3015_v56 = vperm.slane %v3011_v6, %v3552_v26  ;;  %3322 = vrot.lane.b32.xlu1 %v3321_v49, %s3462_s28  ;;  %v2949_v21 = vsel %vm430_vm0, %v2945_v46, %v2948_v28  ;;  %v3043_v60 = vsel %vm430_vm0, %v3042_v32, %v2757_v58 }
 0x3a1   : > { %v3016_v55 = vrot.slane %v3009_v29, 4  ;;  %v3049_v63 = vsel %vm430_vm0, %v3048_v5, %v3030_v22  ;;  %v2984_v0 = vrot.slane %v2983_v59, 4  ;;  %v2987_v52 = vsel %vm430_vm0, %v2983_v59, %v2986_v42 }
 0x3a2   : > { %v2946_v33 = vrot.slane %v2945_v46, 4  ;;  %v3037_v38 = vsel %vm430_vm0, %v4852_v19, %v4850_v35  ;;  %v3326_v11 = vpack.i.bf16 %v2987_v52, %v2949_v21  ;;  %v3047_v16 = vperm.slane %v3043_v60, %v3546_v15 }
 0x3a3   : > { %v3017_v36 = vsel %vm430_vm0, %v3016_v55, %v3003_v48  ;;  %v3053_v32 = vperm.slane %v3049_v63, %v3552_v26  ;;  %v3024_v12 = vrot.slane %v3015_v56, 4  ;;  %v2795_v22 = vsel %vm430_vm0, %v2794_v30, %v4773_v4 }
 0x3a4   : > { %v3021_v58 = vperm.slane %v3017_v36, %v3552_v26  ;;  %v2833_v35 = vsel %vm430_vm0, %v2832_v8, %v4803_v9  ;;  %3327 = vrot.lane.b32.xlu0 %v3326_v11, %s3462_s28  ;;  %v3041_v19 = vperm.slane %v3037_v38, %v3546_v15  ;;  %v3054_v5 = vrot.slane %v3047_v16, 4 }
 0x3a5   : > { %v2871_v51 = vsel %vm430_vm0, %v2870_v57, %v4891_v2  ;;  %v2909_v14 = vsel %vm430_vm0, %v2908_v44, %v2901_v18  ;;  %v3062_v20 = vrot.slane %v3053_v32, 4  ;;  %v2947_v10 = vsel %vm430_vm0, %v2946_v33, %v2939_v31 }
 0x3a6   : > { %v2985_v4 = vsel %vm430_vm0, %v2984_v0, %v2977_v53  ;;  %v3055_v13 = vsel %vm430_vm0, %v3054_v5, %v3041_v19  ;;  %v3022_v30 = vrot.slane %v3021_v58, 4  ;;  %v3025_v9 = vsel %vm430_vm0, %v3021_v58, %v3024_v12 }
 0x3a7   : > { %v3059_v8 = vperm.slane %v3055_v13, %v3552_v26 }
 0x3a8   : > { %v3023_v2 = vsel %vm430_vm0, %v3022_v30, %v3015_v56 }
 0x3a9   : > { %v3063_v15 = vsel %vm430_vm0, %v3059_v8, %v3062_v20  ;;  %v3060_v43 = vrot.slane %v3059_v8, 4 }
 0x3aa   : > { %v3331_v27 = vpack.i.bf16 %v3063_v15, %v3025_v9 }
 0x3ab   : > { %v3061_v18 = vsel %vm430_vm0, %v3060_v43, %v3053_v32 }
 0x3ac   : > { %3332 = vrot.lane.b32.xlu2 %v3331_v27, %s3462_s28 }
 0x3e4   : > { %v3318_v57 = vpop.permute.xlu2 %3317 }
 0x3e5   : > { %v3320_v50 = vunpack.i.h.bf16 %v3318_v57  ;;  %v3319_v24 = vunpack.i.l.bf16 %v3318_v57 }
 0x3e7   : > { %v3096_v26 = vsel %vm327_vm1, %v2795_v22, %v3319_v24  ;;  %v3097_v37 = vsel %vm327_vm1, %v2833_v35, %v3320_v50 }
 0x3e8   : > { %v3104_v7 = vpack.c.bf16 %v3096_v26, %v3096_v26  ;;  %v3105_v31 = vpack.c.bf16 %v3097_v37, %v3097_v37 }
 0x3ea   : > { %3113 = vst.msk [vmem:[%s5004_s4] sm:$0xf] %vm3112_vm4, %v3104_v7 }
 0x3eb   : > { %3114 = vst.msk [vmem:[%s5004_s4 + $0x4] sm:$0xf] %vm3112_vm4, %v3105_v31 }
 0x406   : > { %v3333_v23 = vpop.permute.xlu2 %3332 }
 0x407   : > { %v3335_v3 = vunpack.i.h.bf16 %v3333_v23  ;;  %v3334_v34 = vunpack.i.l.bf16 %v3333_v23 }
 0x409   : > { %v3102_v17 = vsel %vm327_vm1, %v3023_v2, %v3334_v34  ;;  %v3103_v61 = vsel %vm327_vm1, %v3061_v18, %v3335_v3 }
 0x40a   : > { %v3110_v25 = vpack.c.bf16 %v3102_v17, %v3102_v17  ;;  %v3111_v28 = vpack.c.bf16 %v3103_v61, %v3103_v61 }
 0x40c   : > { %3119 = vst.msk [vmem:[%s5004_s4 + $0x18] sm:$0xf] %vm3112_vm4, %v3110_v25 }
 0x40d   : > { %3120 = vst.msk [vmem:[%s5004_s4 + $0x1c] sm:$0xf] %vm3112_vm4, %v3111_v28 }
 0x412   : > { %v3323_v45 = vpop.permute.xlu1 %3322 }
 0x413   : > { %v3325_v53 = vunpack.i.h.bf16 %v3323_v45  ;;  %v3324_v1 = vunpack.i.l.bf16 %v3323_v45 }
 0x415   : > { %v3098_v40 = vsel %vm327_vm1, %v2871_v51, %v3324_v1  ;;  %v3099_v54 = vsel %vm327_vm1, %v2909_v14, %v3325_v53 }
 0x416   : > { %v3106_v62 = vpack.c.bf16 %v3098_v40, %v3098_v40  ;;  %v3107_v47 = vpack.c.bf16 %v3099_v54, %v3099_v54  ;;  %v3328_v39 = vpop.permute.xlu0 %3327 }
 0x417   : > { %v3330_v46 = vunpack.i.h.bf16 %v3328_v39  ;;  %v3329_v42 = vunpack.i.l.bf16 %v3328_v39 }
 0x418   : > { %3115 = vst.msk [vmem:[%s5004_s4 + $0x8] sm:$0xf] %vm3112_vm4, %v3106_v62 }
 0x419   : > { %3116 = vst.msk [vmem:[%s5004_s4 + $0xc] sm:$0xf] %vm3112_vm4, %v3107_v47  ;;  %v3101_v49 = vsel %vm327_vm1, %v2985_v4, %v3330_v46  ;;  %v3100_v41 = vsel %vm327_vm1, %v2947_v10, %v3329_v42 }
 0x41a   : > { %v3109_v29 = vpack.c.bf16 %v3101_v49, %v3101_v49  ;;  %v3108_v6 = vpack.c.bf16 %v3100_v41, %v3100_v41 }
 0x41c   : > { %3118 = vst.msk [vmem:[%s5004_s4 + $0x14] sm:$0xf] %vm3112_vm4, %v3109_v29 }
 0x41d   : > { %3117 = vst.msk [vmem:[%s5004_s4 + $0x10] sm:$0xf] %vm3112_vm4, %v3108_v6 }
 0x41e PF: > { %s13_s14 = sadd.s32 1, %s3454_s14   ;;  %s5043_s12 = smov %s3450_s13 }
 0x41f   : > { %p10_p5 = scmp.ge.s32.totalorder %s13_s14, 4   ;;  %s5044_s13 = smov %s5046_s15 }
 0x421   :  { %12 = sbr.rel (!%p10_p5) target bundleno = 2 (0x2), region = 76 }

// kernel: spatial_transformer_forward.6
= control target key start
LH: loop header
LB: loop body
LE: loop exit
PB: predicated region body
PF: predicated region fallthrough
CT: control target
= control target key end

     0   :  { %s4601_s12 = smov 0   ;;  %s4603_s13 = smov 0   ;;  %s6834_s0 = inlined_call_operand.vmem [shape: bf16[2,64,64], index: 0, kind: input, shape index: {}]   ;;  %s6835_s1 = inlined_call_operand.vmem [shape: bf16[2,64,64], index: 1, kind: input, shape index: {}]   ;;  %s6836_s2 = inlined_call_operand.vmem [shape: bf16[2,64,64], index: 2, kind: input, shape index: {}]   ;;  %s6837_s3 = inlined_call_operand.vmem [shape: bf16[2,64,64], index: 3, kind: output, shape index: {}]  }
   0x1   :  { %s4605_s14 = smov 0  }
   0x2 LB: > { %s32_s15 = sadd.s32 1, %s4568_s13  ;;  %p4367_p0 = scmp.ge.s32.totalorder %s4572_s14, 1  ;;  %s4572_s14 = sphi %s4605_s14, %s13_s14   ;;  %s4568_s13 = sphi %s4603_s13, %s6902_s13   ;;  %s4564_s12 = sphi %s4601_s12, %s6901_s12  }
   0x3   : > { %p34_p1 = scmp.ge.s32.totalorder %s32_s15, 2  ;;  %p199_p2 = scmp.lt.s32.totalorder %s4572_s14, 3 }
   0x5   : > { %s6904_s15 = smov (%p34_p1, %s32_s15), 0  ;;  %p200_p3 = pnand %p4367_p0, %p199_p2 }
   0x7   : > { %203 = sbr.rel (%p200_p3) target bundleno = 1123 (0x463), region = 32 }
   0xc   : > { %p250_p4 = scmp.lt.s32.totalorder %s4564_s12, 1  ;;  %s4574_s20 = smov 96   ;;  %v4575_v17 = vmov 1983009808   ;;  %v4576_v28 = vmov 1934713408  }
   0xd   : > { %v426_v18 = vunpack.c.l.s4 %v4575_v17  ;;  %v433_v29 = vunpack.c.l.s4 %v4576_v28  ;;  %vm430_vm0 = vcmask 1047556   ;;  %vm327_vm1 = vcmask 261120   ;;  %s4580_s27 = smov 32  }
   0xe   : > { %s6906_s12 = smov (!%p250_p4, %s4564_s12), 1  ;;  %vm2628_vm2 = vcmask 523264   ;;  %vm294_vm3 = vcmask 7168   ;;  %vm4228_vm4 = vcmask 519168  }
   0xf   : > { %s4619_s16 = sshll.u32 %s6906_s12, 5  ;;  %v4697_v21 = vunpack.c.0.s8 %v426_v18  ;;  %v4703_v35 = vunpack.c.0.s8 %v433_v29 }
  0x10   : > { %s267_s19 = scalar_lea.vmem %s6835_s1, %s4619_s16  ;;  %s4651_s23 = scalar_lea.vmem %s6834_s0, %s4619_s16 }
  0x11   : > { %v4625_v0 = vld [vmem:[%s267_s19 + $0x18] sm:$0xf]  ;;  %v4627_v1 = vld [vmem:[%s267_s19 + $0x10] sm:$0xf]  ;;  %v1051_v2 = vld [vmem:[%s267_s19 + $0x8] sm:$0xf]  ;;  %s5295_s26 = scalar_lea.vmem %s6836_s2, %s4619_s16  ;;  %s6799_s30 = scalar_lea.vmem %s6837_s3, %s4619_s16 }
  0x12   : > { %1077 = vrot.lane.b32.xlu0 %v4625_v0, %s4574_s20  ;;  %1073 = vrot.lane.b32.xlu1 %v4627_v1, %s4574_s20  ;;  %v4634_v3 = vld [vmem:[%s267_s19 + $0x1c] sm:$0xf]  ;;  %v4636_v4 = vld [vmem:[%s267_s19 + $0x14] sm:$0xf]  ;;  %v1096_v20 = vshrl.u32 %v1051_v2, 16  ;;  %v1120_v40 = vshrl.u32 %v4625_v0, 16 }
  0x13   : > { %1069 = vrot.lane.b32.xlu2 %v1051_v2, %s4574_s20  ;;  %v1052_v5 = vld [vmem:[%s267_s19 + $0xc] sm:$0xf]  ;;  %v4643_v6 = vld [vmem:[%s267_s19 + $0x4] sm:$0xf]  ;;  %v4645_v7 = vld [vmem:[%s267_s19] sm:$0xf] }
  0x14   : > { %v4654_v8 = vld [vmem:[%s4651_s23] sm:$0xf]  ;;  %v4663_v9 = vld [vmem:[%s4651_s23 + $0x4] sm:$0xf]  ;;  %v4666_v10 = vld [vmem:[%s4651_s23 + $0x8] sm:$0xf] }
  0x15   : > { %v4669_v11 = vld [vmem:[%s4651_s23 + $0xc] sm:$0xf]  ;;  %v4678_v12 = vld [vmem:[%s4651_s23 + $0x14] sm:$0xf]  ;;  %v4681_v13 = vld [vmem:[%s4651_s23 + $0x10] sm:$0xf] }
  0x16   : > { %6847 = vst [vmem:[#allocation5_spill] sm:$0xff] %v4681_v13  ;;  %v4684_v14 = vld [vmem:[%s4651_s23 + $0x18] sm:$0xf]  ;;  %v4693_v15 = vld [vmem:[%s4651_s23 + $0x1c] sm:$0xf]  ;;  %v1102_v31 = vshrl.u32 %v1052_v5, 16 }
  0x17   : > { %6848 = vst [vmem:[#allocation6_spill] sm:$0xff] %v4684_v14  ;;  %v1108_v41 = vshrl.u32 %v4627_v1, 16  ;;  %v1126_v42 = vshrl.u32 %v4634_v3, 16  ;;  %v1114_v43 = vshrl.u32 %v4636_v4, 16  ;;  %v1090_v44 = vshrl.u32 %v4643_v6, 16 }
  0x18   : > { %6849 = vst [vmem:[#allocation7_spill] sm:$0xff] %v4693_v15  ;;  %v1084_v56 = vshrl.u32 %v4645_v7, 16  ;;  %v385_v57 = vshrl.u32 %v4663_v9, 16 }
  0x1a   : > { %1079 = vrot.lane.b32.xlu0 %v4634_v3, %s4574_s20  ;;  %1075 = vrot.lane.b32.xlu1 %v4636_v4, %s4574_s20 }
  0x1b   : > { %1071 = vrot.lane.b32.xlu2 %v1052_v5, %s4574_s20 }
  0x22   : > { %1067 = vrot.lane.b32.xlu1 %v4643_v6, %s4574_s20  ;;  %1065 = vrot.lane.b32.xlu0 %v4645_v7, %s4574_s20 }
  0x23   : > { %360 = vrot.lane.b32.xlu2 %v4654_v8, %s4574_s20 }
  0x2a   : > { %362 = vrot.lane.b32.xlu0 %v4663_v9, %s4574_s20  ;;  %364 = vrot.lane.b32.xlu1 %v4666_v10, %s4574_s20 }
  0x2b   : > { %366 = vrot.lane.b32.xlu2 %v4669_v11, %s4574_s20 }
  0x32   : > { %370 = vrot.lane.b32.xlu1 %v4678_v12, %s4574_s20  ;;  %368 = vrot.lane.b32.xlu0 %v4681_v13, %s4574_s20 }
  0x33   : > { %372 = vrot.lane.b32.xlu2 %v4684_v14, %s4574_s20 }
  0x3a   : > { %374 = vrot.lane.b32.xlu0 %v4693_v15, %s4574_s20 }
  0x6d   : > { %v1070_v16 = vpop.permute.xlu2 %1069 }
  0x6e   : > { %v1095_v19 = vpack.i.b16 %v1070_v16, %v1051_v2  ;;  %v1097_v22 = vshrl.u32 %v1070_v16, 16 }
  0x70   : > { %v1209_v23 = vperm.slane %v1095_v19, %v4697_v21  ;;  %v1098_v24 = vpack.i.b16 %v1097_v22, %v1096_v20 }
  0x72   : > { %v1210_v27 = vrot.slane %v1209_v23, 4  ;;  %v1228_v30 = vperm.slane %v1098_v24, %v4697_v21  ;;  %v1215_v46 = vperm.slane %v1209_v23, %v4703_v35 }
  0x74   : > { %v1211_v34 = vsel %vm430_vm0, 0, %v1210_v27  ;;  %v1229_v36 = vrot.slane %v1228_v30, 4  ;;  %v1234_v61 = vperm.slane %v1228_v30, %v4703_v35  ;;  %v1220_v2 = vrot.slane %v1215_v46, 4 }
  0x75   : > { %v1072_v25 = vpop.permute.xlu2 %1071  ;;  %v1219_v37 = vperm.slane %v1211_v34, %v4703_v35 }
  0x76   : > { %v1101_v26 = vpack.i.b16 %v1072_v25, %v1052_v5  ;;  %v1103_v32 = vshrl.u32 %v1072_v25, 16  ;;  %v1230_v45 = vsel %vm430_vm0, 0, %v1229_v36  ;;  %v1239_v28 = vrot.slane %v1234_v61, 4 }
  0x77   : > { %v1222_v47 = vrot.slane %v1219_v37, 4  ;;  %v1238_v59 = vperm.slane %v1230_v45, %v4703_v35  ;;  %v1221_v34 = vsel %vm430_vm0, 0, %v1220_v2 }
  0x78   : > { %v1247_v33 = vperm.slane %v1101_v26, %v4697_v21  ;;  %v1104_v38 = vpack.i.b16 %v1103_v32, %v1102_v31 }
  0x79   : > { %v1223_v16 = vsel %vm430_vm0, 0, %v1222_v47  ;;  %v1241_v20 = vrot.slane %v1238_v59, 4  ;;  %v4735_v29 = vsel %vm430_vm0, %v1222_v47, %v1215_v46  ;;  %v4746_v47 = vsel %vm430_vm0, 0, %v1239_v28 }
  0x7a   : > { %v1248_v39 = vrot.slane %v1247_v33, 4  ;;  %v1266_v51 = vperm.slane %v1104_v38, %v4697_v21  ;;  %v1253_v23 = vperm.slane %v1247_v33, %v4703_v35  ;;  %v1506_v30 = vrot.slane %v1223_v16, 4 }
  0x7b   : > { %v4742_v38 = vsel %vm430_vm0, 0, %v1241_v20 }
  0x7c   : > { %v1249_v50 = vsel %vm430_vm0, 0, %v1248_v39  ;;  %v1267_v5 = vrot.slane %v1266_v51, 4  ;;  %v1272_v24 = vperm.slane %v1266_v51, %v4703_v35  ;;  %v4755_v51 = vsel %vm430_vm0, %v1241_v20, %v1234_v61 }
  0x7e   : > { %v1268_v32 = vsel %vm430_vm0, 0, %v1267_v5 }
  0x84   : > { %v1078_v48 = vpop.permute.xlu0 %1077  ;;  %v1074_v49 = vpop.permute.xlu1 %1073 }
  0x85   : > { %v1119_v52 = vpack.i.b16 %v1078_v48, %v4625_v0  ;;  %v1121_v53 = vshrl.u32 %v1078_v48, 16  ;;  %v1107_v54 = vpack.i.b16 %v1074_v49, %v4627_v1  ;;  %v1109_v55 = vshrl.u32 %v1074_v49, 16 }
  0x86   : > { %v1257_v1 = vperm.slane %v1249_v50, %v4703_v35  ;;  %v1276_v49 = vperm.slane %v1268_v32, %v4703_v35  ;;  %v4752_v50 = vsel %vm430_vm0, %v1506_v30, %v1221_v34 }
  0x87   : > { %v1122_v62 = vpack.i.b16 %v1121_v53, %v1120_v40  ;;  %v1361_v63 = vperm.slane %v1119_v52, %v4697_v21  ;;  %v1110_v18 = vpack.i.b16 %v1109_v55, %v1108_v41  ;;  %v1285_v19 = vperm.slane %v1107_v54, %v4697_v21 }
  0x88   : > { %v1260_v31 = vrot.slane %v1257_v1, 4  ;;  %v1258_v40 = vrot.slane %v1253_v23, 4  ;;  %v1277_v41 = vrot.slane %v1272_v24, 4 }
  0x89   : > { %v1362_v17 = vrot.slane %v1361_v63, 4  ;;  %v1380_v22 = vperm.slane %v1122_v62, %v4697_v21  ;;  %v1286_v36 = vrot.slane %v1285_v19, 4  ;;  %v1304_v37 = vperm.slane %v1110_v18, %v4697_v21 }
  0x8a   : > { %v1261_v53 = vsel %vm430_vm0, 0, %v1260_v31  ;;  %v1367_v2 = vperm.slane %v1361_v63, %v4703_v35  ;;  %v1259_v5 = vsel %vm430_vm0, 0, %v1258_v40  ;;  %v4766_v61 = vsel %vm430_vm0, 0, %v1277_v41 }
  0x8b   : > { %v1363_v33 = vsel %vm430_vm0, 0, %v1362_v17  ;;  %v1381_v39 = vrot.slane %v1380_v22, 4  ;;  %v1287_v55 = vsel %vm430_vm0, 0, %v1286_v36  ;;  %v1305_v59 = vrot.slane %v1304_v37, 4 }
  0x8c   : > { %v1080_v45 = vpop.permute.xlu0 %1079  ;;  %v1371_v52 = vperm.slane %v1363_v33, %v4703_v35  ;;  %v1076_v16 = vpop.permute.xlu1 %1075  ;;  %v1291_v17 = vperm.slane %v1285_v19, %v4703_v35  ;;  %v1279_v18 = vrot.slane %v1276_v49, 4  ;;  %v4770_v20 = vsel %vm430_vm0, %v1260_v31, %v1253_v23 }
  0x8d   : > { %v1125_v62 = vpack.i.b16 %v1080_v45, %v4634_v3  ;;  %v1382_v1 = vsel %vm430_vm0, 0, %v1381_v39  ;;  %6850 = vst [vmem:[#allocation8_spill] sm:$0xff] %v4770_v20  ;;  %v1540_v28 = vrot.slane %v1261_v53, 4  ;;  %v1386_v32 = vperm.slane %v1380_v22, %v4703_v35 }
  0x8e   : > { %v1374_v30 = vrot.slane %v1371_v52, 4  ;;  %v1295_v63 = vperm.slane %v1287_v55, %v4703_v35  ;;  %v1127_v34 = vshrl.u32 %v1080_v45, 16  ;;  %v1390_v33 = vperm.slane %v1382_v1, %v4703_v35 }
  0x8f   : > { %v1306_v36 = vsel %vm430_vm0, 0, %v1305_v59  ;;  %v1399_v39 = vperm.slane %v1125_v62, %v4697_v21  ;;  %v1113_v40 = vpack.i.b16 %v1076_v16, %v4636_v4  ;;  %v1372_v19 = vrot.slane %v1367_v2, 4 }
  0x90   : > { %v1128_v31 = vpack.i.b16 %v1127_v34, %v1126_v42  ;;  %v1115_v41 = vshrl.u32 %v1076_v16, 16  ;;  %v1296_v22 = vrot.slane %v1291_v17, 4  ;;  %v4783_v49 = vsel %vm430_vm0, 0, %v1279_v18 }
  0x91   : > { %v4786_v45 = vsel %vm430_vm0, %v1540_v28, %v1259_v5  ;;  %v1323_v52 = vperm.slane %v1113_v40, %v4697_v21  ;;  %v1391_v53 = vrot.slane %v1386_v32, 4  ;;  %v1314_v55 = vperm.slane %v1306_v36, %v4703_v35 }
  0x92   : > { %v4791_v59 = vsel %vm430_vm0, %v1279_v18, %v1272_v24  ;;  %v1400_v62 = vrot.slane %v1399_v39, 4  ;;  %v1375_v3 = vsel %vm430_vm0, 0, %v1374_v30  ;;  %v1393_v42 = vrot.slane %v1390_v33, 4 }
  0x93   : > { %v1298_v1 = vrot.slane %v1295_v63, 4  ;;  %v1418_v16 = vperm.slane %v1128_v31, %v4697_v21  ;;  %v1373_v34 = vsel %vm430_vm0, 0, %v1372_v19  ;;  %v1310_v5 = vperm.slane %v1304_v37, %v4703_v35 }
  0x94   : > { %v1116_v40 = vpack.i.b16 %v1115_v41, %v1114_v43  ;;  %v1068_v36 = vpop.permute.xlu1 %1067  ;;  %v4801_v24 = vsel %vm430_vm0, %v1374_v30, %v1367_v2  ;;  %v1297_v18 = vsel %vm430_vm0, 0, %v1296_v22  ;;  %v1324_v46 = vrot.slane %v1323_v52, 4  ;;  %v1066_v27 = vpop.permute.xlu0 %1065 }
  0x95   : > { %v1089_v63 = vpack.i.b16 %v1068_v36, %v4643_v6  ;;  %v4806_v33 = vsel %vm430_vm0, 0, %v1391_v53  ;;  %v1642_v19 = vrot.slane %v1375_v3, 4  ;;  %v1317_v31 = vrot.slane %v1314_v55, 4 }
  0x96   : > { %v1401_v37 = vsel %vm430_vm0, 0, %v1400_v62  ;;  %v4810_v4 = vsel %vm430_vm0, 0, %v1393_v42  ;;  %v1299_v43 = vsel %vm430_vm0, 0, %v1298_v1  ;;  %v1419_v2 = vrot.slane %v1418_v16, 4 }
  0x97   : > { %v1091_v30 = vshrl.u32 %v1068_v36, 16  ;;  %v4816_v22 = vsel %vm430_vm0, %v1393_v42, %v1386_v32  ;;  %v1315_v53 = vrot.slane %v1310_v5, 4  ;;  %v1342_v3 = vperm.slane %v1116_v40, %v4697_v21 }
  0x98   : > { %v4820_v55 = vsel %vm430_vm0, %v1298_v1, %v1291_v17  ;;  %v1409_v62 = vperm.slane %v1401_v37, %v4703_v35  ;;  %v1325_v25 = vsel %vm430_vm0, 0, %v1324_v46  ;;  %v1171_v0 = vperm.slane %v1089_v63, %v4697_v21 }
  0x99   : > { %v4826_v36 = vsel %vm430_vm0, %v1642_v19, %v1373_v34  ;;  %v4830_v32 = vsel %vm430_vm0, 0, %v1317_v31  ;;  %v1574_v42 = vrot.slane %v1299_v43, 4  ;;  %v1405_v40 = vperm.slane %v1399_v39, %v4703_v35 }
  0x9a   : > { %v1420_v17 = vsel %vm430_vm0, 0, %v1419_v2  ;;  %v1329_v1 = vperm.slane %v1323_v52, %v4703_v35  ;;  %v1092_v46 = vpack.i.b16 %v1091_v30, %v1090_v44  ;;  %v1424_v63 = vperm.slane %v1418_v16, %v4703_v35 }
  0x9b   : > { %v1333_v34 = vperm.slane %v1325_v25, %v4703_v35  ;;  %v1343_v19 = vrot.slane %v1342_v3, 4  ;;  %v1083_v37 = vpack.i.b16 %v1066_v27, %v4645_v7  ;;  %v4841_v28 = vsel %vm430_vm0, 0, %v1315_v53 }
  0x9c   : > { %v1412_v43 = vrot.slane %v1409_v62, 4  ;;  %v1172_v48 = vrot.slane %v1171_v0, 4  ;;  %v1085_v39 = vshrl.u32 %v1066_v27, 16  ;;  %v4846_v52 = vsel %vm430_vm0, %v1317_v31, %v1310_v5  ;;  %v363_v26 = vpop.permute.xlu0 %362 }
  0x9d   : > { %v1428_v44 = vperm.slane %v1420_v17, %v4703_v35  ;;  %v4851_v25 = vsel %vm430_vm0, %v1574_v42, %v1297_v18  ;;  %v1410_v16 = vrot.slane %v1405_v40, 4  ;;  %v1334_v30 = vrot.slane %v1329_v1, 4 }
  0x9e   : > { %v1190_v53 = vperm.slane %v1092_v46, %v4697_v21  ;;  %v1429_v62 = vrot.slane %v1424_v63, 4  ;;  %v1336_v54 = vrot.slane %v1333_v34, 4  ;;  %v1344_v27 = vsel %vm430_vm0, 0, %v1343_v19 }
  0x9f   : > { %v1133_v2 = vperm.slane %v1083_v37, %v4697_v21  ;;  %v1413_v5 = vsel %vm430_vm0, 0, %v1412_v43  ;;  %v1173_v31 = vsel %vm430_vm0, 0, %v1172_v48  ;;  %v1086_v17 = vpack.i.b16 %v1085_v39, %v1084_v56 }
  0xa0   : > { %v384_v18 = vpack.i.b16 %v363_v26, %v4663_v9  ;;  %v1431_v42 = vrot.slane %v1428_v44, 4  ;;  %v4862_v6 = vsel %vm430_vm0, %v1412_v43, %v1405_v40  ;;  %v1348_v46 = vperm.slane %v1342_v3, %v4703_v35 }
  0xa1   : > { %v1134_v34 = vrot.slane %v1133_v2, 4  ;;  %v1411_v19 = vsel %vm430_vm0, 0, %v1410_v16  ;;  %v1335_v37 = vsel %vm430_vm0, 0, %v1334_v30  ;;  %v1352_v58 = vperm.slane %v1344_v27, %v4703_v35 }
  0xa2   : > { %v1191_v41 = vrot.slane %v1190_v53, 4  ;;  %v4869_v48 = vsel %vm430_vm0, 0, %v1429_v62  ;;  %v1676_v7 = vrot.slane %v1413_v5, 4  ;;  %v1337_v56 = vsel %vm430_vm0, 0, %v1336_v54 }
  0xa3   : > { %v1181_v39 = vperm.slane %v1173_v31, %v4703_v35  ;;  %v1135_v3 = vsel %vm430_vm0, 0, %v1134_v34  ;;  %v1152_v43 = vperm.slane %v1086_v17, %v4697_v21  ;;  %v467_v44 = vperm.slane %v384_v18, %v4697_v21 }
  0xa4   : > { %v4879_v16 = vsel %vm430_vm0, 0, %v1431_v42  ;;  %v1353_v30 = vrot.slane %v1348_v46, 4  ;;  %v4882_v62 = vsel %vm430_vm0, %v1336_v54, %v1329_v1  ;;  %v386_v27 = vshrl.u32 %v363_v26, 16 }
  0xa5   : > { %v1355_v5 = vrot.slane %v1352_v58, 4  ;;  %v1608_v23 = vrot.slane %v1337_v56, 4  ;;  %v1177_v31 = vperm.slane %v1171_v0, %v4703_v35  ;;  %v1192_v40 = vsel %vm430_vm0, 0, %v1191_v41 }
  0xa6   : > { %v4887_v34 = vsel %vm430_vm0, %v1676_v7, %v1411_v19  ;;  %v4890_v17 = vsel %vm430_vm0, %v1431_v42, %v1424_v63  ;;  %v1184_v18 = vrot.slane %v1181_v39, 4  ;;  %v1143_v60 = vperm.slane %v1135_v3, %v4703_v35  ;;  %v361_v39 = vpop.permute.xlu2 %360 }
  0xa7   : > { %v1196_v26 = vperm.slane %v1190_v53, %v4703_v35  ;;  %v1153_v58 = vrot.slane %v1152_v43, 4  ;;  %v468_v1 = vrot.slane %v467_v44, 4  ;;  %v4898_v41 = vsel %vm430_vm0, 0, %v1353_v30 }
  0xa8   : > { %v1200_v19 = vperm.slane %v1192_v40, %v4703_v35  ;;  %v387_v63 = vpack.i.b16 %v386_v27, %v385_v57  ;;  %v4904_v42 = vsel %vm430_vm0, 0, %v1355_v5  ;;  %v4907_v7 = vsel %vm430_vm0, %v1608_v23, %v1335_v37 }
  0xa9   : > { %v1182_v56 = vrot.slane %v1177_v31, 4  ;;  %v1139_v53 = vperm.slane %v1133_v2, %v4703_v35  ;;  %v4911_v3 = vsel %vm430_vm0, %v1355_v5, %v1348_v46  ;;  %v1185_v30 = vsel %vm430_vm0, 0, %v1184_v18 }
  0xaa   : > { %v1146_v54 = vrot.slane %v1143_v60, 4  ;;  %v378_v40 = vpack.i.b16 %v361_v39, %v4654_v8  ;;  %v1201_v9 = vrot.slane %v1196_v26, 4  ;;  %v1154_v57 = vsel %vm430_vm0, 0, %v1153_v58 }
  0xab   : > { %v1158_v27 = vperm.slane %v1152_v43, %v4703_v35  ;;  %v469_v23 = vsel %vm430_vm0, 0, %v468_v1  ;;  %v1203_v0 = vrot.slane %v1200_v19, 4  ;;  %v4920_v2 = vsel %vm430_vm0, %v1184_v18, %v1177_v31 }
  0xac   : > { %6851 = vst [vmem:[#allocation9_spill] sm:$0xff] %v4920_v2  ;;  %v486_v46 = vperm.slane %v387_v63, %v4697_v21  ;;  %v1183_v5 = vsel %vm430_vm0, 0, %v1182_v56  ;;  %v1472_v60 = vrot.slane %v1185_v30, 4  ;;  %v1144_v14 = vrot.slane %v1139_v53, 4 }
  0xad   : > { %v428_v15 = vperm.slane %v378_v40, %v4697_v21  ;;  %v1147_v58 = vsel %vm430_vm0, 0, %v1146_v54  ;;  %v1162_v43 = vperm.slane %v1154_v57, %v4703_v35  ;;  %v477_v1 = vperm.slane %v469_v23, %v4703_v35 }
  0xae   : > { %v380_v13 = vshrl.u32 %v361_v39, 16  ;;  %v4929_v19 = vsel %vm430_vm0, 0, %v1201_v9  ;;  %v1163_v18 = vrot.slane %v1158_v27, 4  ;;  %v4934_v56 = vsel %vm430_vm0, 0, %v1203_v0 }
  0xaf   : > { %6852 = vst [vmem:[#allocation10_spill] sm:$0xff] %v4929_v19  ;;  %v429_v63 = vrot.slane %v428_v15, 4  ;;  %v4937_v30 = vsel %vm430_vm0, %v1146_v54, %v1139_v53  ;;  %v473_v40 = vperm.slane %v467_v44, %v4703_v35  ;;  %v487_v57 = vrot.slane %v486_v46, 4 }
  0xb0   : > { %6853 = vst [vmem:[#allocation11_spill] sm:$0xff] %v4934_v56  ;;  %v4941_v23 = vsel %vm430_vm0, %v1472_v60, %v1183_v5  ;;  %v4944_v39 = vsel %vm430_vm0, %v1203_v0, %v1196_v26  ;;  %v1438_v9 = vrot.slane %v1147_v58, 4  ;;  %v1647_v31 = vperm.slane %v4826_v36, %v4697_v21 }
  0xb1   : > { %6854 = vst [vmem:[#allocation12_spill] sm:$0xff] %v4937_v30  ;;  %v1145_v37 = vsel %vm430_vm0, 0, %v1144_v14  ;;  %v1165_v2 = vrot.slane %v1162_v43, 4  ;;  %v480_v19 = vrot.slane %v477_v1, 4  ;;  %v6856_v54 = vshrl.u32 %v4654_v8, 16 }
  0xb2   : > { %6855 = vst [vmem:[#allocation13_spill] sm:$0xff] %v4944_v39  ;;  %v4953_v20 = vsel %vm430_vm0, 0, %v1163_v18  ;;  %v431_v0 = vsel %vm430_vm0, 0, %v429_v63  ;;  %v478_v5 = vrot.slane %v473_v40, 4  ;;  %v488_v36 = vsel %vm430_vm0, 0, %v487_v57 }
  0xb3   : > { %v381_v53 = vpack.i.b16 %v380_v13, %v6856_v54  ;;  %v4960_v14 = vperm.slane %v486_v46, %v4703_v35  ;;  %v6857_v8 = vrot.slane %v4810_v4, 4  ;;  %v4967_v60 = vsel %vm430_vm0, %v1438_v9, %v1145_v37 }
  0xb4   : > { %v1648_v58 = vrot.slane %v1647_v31, 4  ;;  %v1681_v1 = vperm.slane %v4887_v34, %v4697_v21  ;;  %v4973_v18 = vsel %vm430_vm0, 0, %v1165_v2  ;;  %v481_v46 = vsel %vm430_vm0, 0, %v480_v19 }
  0xb5   : > { %v1660_v13 = vsel %vm430_vm0, %v6857_v8, %v4806_v33  ;;  %v439_v63 = vperm.slane %v431_v0, %v4703_v35  ;;  %v448_v4 = vperm.slane %v381_v53, %v4697_v21  ;;  %v4979_v33 = vsel %vm430_vm0, %v1165_v2, %v1158_v27 }
  0xb6   : > { %v1664_v43 = vperm.slane %v1660_v13, %v4697_v21  ;;  %6858 = vst [vmem:[#allocation14_spill] sm:$0xff] %v4979_v33  ;;  %v496_v37 = vperm.slane %v488_v36, %v4703_v35  ;;  %v1658_v31 = vperm.slane %v4816_v22, %v4697_v21  ;;  %v497_v34 = vrot.slane %v4960_v14, 4 }
  0xb7   : > { %v4986_v9 = vsel %vm430_vm0, %v480_v19, %v473_v40  ;;  %v1682_v54 = vrot.slane %v1681_v1, 4  ;;  %v6860_v0 = vrot.slane %v4879_v16, 4  ;;  %v768_v8 = vrot.slane %v481_v46, 4 }
  0xb8   : > { %v1665_v57 = vrot.slane %v1664_v43, 4  ;;  %6859 = vst [vmem:[#allocation15_spill] sm:$0xff] %v4986_v9  ;;  %v4993_v27 = vperm.slane %v428_v15, %v4703_v35  ;;  %v6861_v2 = vperm.slane %v4801_v24, %v4697_v21  ;;  %v479_v19 = vsel %vm430_vm0, 0, %v478_v5  ;;  %v365_v43 = vpop.permute.xlu1 %364 }
  0xb9   : > { %v1694_v53 = vsel %vm430_vm0, %v6860_v0, %v4869_v48  ;;  %v5001_v40 = vrot.slane %v439_v63, 4  ;;  %v449_v13 = vrot.slane %v448_v4, 4  ;;  %v6862_v15 = vperm.slane %v4862_v6, %v4697_v21 }
  0xba   : > { %v1649_v22 = vsel %vm430_vm0, %v1648_v58, %v6861_v2  ;;  %v1666_v36 = vsel %vm430_vm0, %v1665_v57, %v1658_v31  ;;  %v1698_v24 = vperm.slane %v1694_v53, %v4697_v21  ;;  %v390_v58 = vpack.i.b16 %v365_v43, %v4666_v10 }
  0xbb   : > { %v1670_v16 = vperm.slane %v1666_v36, %v4703_v35  ;;  %v1683_v1 = vsel %vm430_vm0, %v1682_v54, %v6862_v15  ;;  %v5012_v46 = vsel %vm430_vm0, 0, %v497_v34  ;;  %v499_v5 = vrot.slane %v496_v37, 4 }
  0xbc   : > { %v1653_v31 = vperm.slane %v1649_v22, %v4703_v35  ;;  %v769_v57 = vsel %vm430_vm0, %v768_v8, %v479_v19  ;;  %v440_v0 = vrot.slane %v4993_v27, 4  ;;  %v1692_v6 = vperm.slane %v4890_v17, %v4697_v21  ;;  %v367_v19 = vpop.permute.xlu2 %366 }
  0xbd   : > { %v1699_v54 = vrot.slane %v1698_v24, 4  ;;  %v443_v53 = vsel %vm430_vm0, 0, %v5001_v40  ;;  %v450_v34 = vsel %vm430_vm0, 0, %v449_v13  ;;  %v1687_v37 = vperm.slane %v1683_v1, %v4703_v35 }
  0xbe   : > { %v1745_v2 = vshrl.u32 %v1670_v16, 16  ;;  %v1743_v15 = vpack.i.b16 %v1670_v16, %v1653_v31  ;;  %v392_v22 = vshrl.u32 %v365_v43, 16  ;;  %v505_v8 = vperm.slane %v390_v58, %v4697_v21 }
  0xbf   : > { %v1700_v36 = vsel %vm430_vm0, %v1699_v54, %v1692_v6  ;;  %v1744_v17 = vshrl.u32 %v1653_v31, 16  ;;  %v396_v24 = vpack.i.b16 %v367_v19, %v4669_v11  ;;  %v500_v44 = vsel %vm430_vm0, 0, %v499_v5 }
  0xc0   : > { %v1704_v63 = vperm.slane %v1700_v36, %v4703_v35  ;;  %v773_v13 = vperm.slane %v769_v57, %v4697_v21  ;;  %v458_v1 = vperm.slane %v450_v34, %v4703_v35  ;;  %v734_v26 = vrot.slane %v443_v53, 4 }
  0xc1   : > { %v1746_v6 = vpack.i.b16 %v1745_v2, %v1744_v17  ;;  %v1750_v16 = vshrl.u32 %v1687_v37, 16  ;;  %v441_v58 = vsel %vm430_vm0, 0, %v440_v0  ;;  %v2475_v54 = vunpack.c.l.b16 %v1743_v15 }
  0xc2   : > { %v1749_v48 = vpack.i.b16 %v1704_v63, %v1687_v37  ;;  %v1751_v43 = vshrl.u32 %v1704_v63, 16  ;;  %v6863_v9 = vshrl.u32 %v4666_v10, 16  ;;  %v506_v31 = vrot.slane %v505_v8, 4 }
  0xc3   : > { %v398_v33 = vshrl.u32 %v367_v19, 16  ;;  %v543_v30 = vperm.slane %v396_v24, %v4697_v21  ;;  %v5038_v57 = vsel %vm430_vm0, %v499_v5, %v4960_v14  ;;  %v785_v53 = vrot.slane %v500_v44, 4 }
  0xc4   : > { %v393_v36 = vpack.i.b16 %v392_v22, %v6863_v9  ;;  %v2476_v39 = vunpack.c.l.b16 %v1749_v48  ;;  %v1752_v56 = vpack.i.b16 %v1751_v43, %v1750_v16  ;;  %v454_v34 = vperm.slane %v448_v4, %v4703_v35 }
  0xc5   : > { %v461_v63 = vrot.slane %v458_v1, 4  ;;  %v735_v0 = vsel %vm430_vm0, %v734_v26, %v441_v58  ;;  %v2553_v2 = vunpack.c.l.b16 %v1746_v6  ;;  %v507_v9 = vsel %vm430_vm0, 0, %v506_v31 }
  0xc6   : > { %v2480_v37 = vpack.c.b16 %v2476_v39, %v2475_v54  ;;  %v2554_v10 = vunpack.c.l.b16 %v1752_v56  ;;  %v5044_v48 = vperm.slane %v505_v8, %v4703_v35  ;;  %v524_v15 = vperm.slane %v393_v36, %v4697_v21 }
  0xc7   : > { %v1579_v14 = vperm.slane %v4851_v25, %v4697_v21  ;;  %v6864_v4 = vshrl.u32 %v4669_v11, 16  ;;  %v544_v26 = vrot.slane %v543_v30, 4  ;;  %v784_v56 = vperm.slane %v5038_v57, %v4697_v21 }
  0xc8   : > { %v2504_v44 = vsel %vm327_vm1, %v2480_v37, 0  ;;  %v2558_v5 = vpack.c.b16 %v2554_v10, %v2553_v2  ;;  %v459_v39 = vrot.slane %v454_v34, 4  ;;  %v5055_v19 = vsel %vm430_vm0, 0, %v461_v63 }
  0xc9   : > { %v399_v22 = vpack.i.b16 %v398_v33, %v6864_v4  ;;  %v5060_v8 = vsel %vm430_vm0, %v5001_v40, %v4993_v27  ;;  %2510 = vmatpush.bf16.xpose.msra.mxu0 %v2504_v44  ;;  %v739_v25 = vperm.slane %v735_v0, %v4697_v21  ;;  %v5064_v17 = vsel %vm430_vm0, %v461_v63, %v454_v34 }
  0xca   : > { %v2581_v11 = vsel %vm327_vm1, %v2558_v5, 0  ;;  %v515_v33 = vperm.slane %v507_v9, %v4703_v35  ;;  %v5068_v24 = vrot.slane %v773_v13, 4  ;;  %v5072_v1 = vsel %vm430_vm0, %v785_v53, %v5012_v46 }
  0xcb   : > { %2587 = vmatpush.bf16.xpose.msra.mxu1 %v2581_v11  ;;  %v525_v6 = vrot.slane %v524_v15, 4  ;;  %v1580_v27 = vrot.slane %v1579_v14, 4  ;;  %v516_v40 = vrot.slane %v5044_v48, 4  ;;  %v545_v16 = vsel %vm430_vm0, 0, %v544_v26 }
  0xcc   : > { %v5077_v43 = vperm.slane %v399_v22, %v4697_v21  ;;  %v6865_v58 = vrot.slane %v4830_v32, 4  ;;  %v5084_v54 = vsel %vm430_vm0, 0, %v459_v39  ;;  %v733_v46 = vperm.slane %v5060_v8, %v4697_v21 }
  0xcd   : > { %v750_v36 = vperm.slane %v5064_v17, %v4697_v21  ;;  %v751_v31 = vrot.slane %v5055_v19, 4  ;;  %v5091_v53 = vrot.slane %v739_v25, 4  ;;  %v5093_v34 = vrot.slane %v515_v33, 4 }
  0xce   : > { %v1592_v13 = vsel %vm430_vm0, %v6865_v58, %v4841_v28  ;;  %v5096_v63 = vperm.slane %v543_v30, %v4703_v35  ;;  %v6866_v28 = vperm.slane %v4820_v55, %v4697_v21  ;;  %v5103_v0 = vsel %vm430_vm0, 0, %v525_v6 }
  0xcf   : > { %v553_v37 = vperm.slane %v545_v16, %v4703_v35  ;;  %v1596_v2 = vperm.slane %v1592_v13, %v4697_v21  ;;  %v1613_v10 = vperm.slane %v4907_v7, %v4697_v21  ;;  %v5110_v9 = vsel %vm430_vm0, 0, %v516_v40 }
  0xd0   : > { %v1581_v32 = vsel %vm430_vm0, %v1580_v27, %v6866_v28  ;;  %v563_v30 = vrot.slane %v5077_v43, 4  ;;  %v1590_v55 = vperm.slane %v4846_v52, %v4697_v21  ;;  %v6867_v14 = vrot.slane %v4904_v42, 4 }
  0xd1   : > { %v1585_v5 = vperm.slane %v1581_v32, %v4703_v35  ;;  %v1597_v4 = vrot.slane %v1596_v2, 4  ;;  %v1614_v22 = vrot.slane %v1613_v10, 4  ;;  %v5122_v7 = vperm.slane %v524_v15, %v4703_v35 }
  0xd2   : > { %v1626_v44 = vsel %vm430_vm0, %v6867_v14, %v4898_v41  ;;  %v534_v39 = vperm.slane %v5103_v0, %v4703_v35  ;;  %v554_v25 = vrot.slane %v5096_v63, 4  ;;  %v1511_v52 = vperm.slane %v4752_v50, %v4697_v21 }
  0xd3   : > { %v1630_v26 = vperm.slane %v1626_v44, %v4697_v21  ;;  %v5131_v41 = vsel %vm430_vm0, 0, %v5093_v34  ;;  %v5133_v42 = vrot.slane %v553_v37, 4  ;;  %v1598_v11 = vsel %vm430_vm0, %v1597_v4, %v1590_v55 }
  0xd4   : > { %v1624_v15 = vperm.slane %v4911_v3, %v4697_v21  ;;  %v1602_v33 = vperm.slane %v1598_v11, %v4703_v35  ;;  %v6868_v6 = vperm.slane %v4882_v62, %v4697_v21  ;;  %v1512_v50 = vrot.slane %v1511_v52, 4 }
  0xd5   : > { %v1631_v40 = vrot.slane %v1630_v26, 4  ;;  %v5144_v16 = vsel %vm430_vm0, 0, %v563_v30  ;;  %v1732_v13 = vshrl.u32 %v1585_v5, 16  ;;  %v6869_v28 = vrot.slane %v4742_v38, 4 }
  0xd6   : > { %v1615_v27 = vsel %vm430_vm0, %v1614_v22, %v6868_v6  ;;  %v1731_v37 = vpack.i.b16 %v1602_v33, %v1585_v5  ;;  %v1733_v2 = vshrl.u32 %v1602_v33, 16  ;;  %v6870_v62 = vperm.slane %v4735_v29, %v4697_v21 }
  0xd7   : > { %v1619_v58 = vperm.slane %v1615_v27, %v4703_v35  ;;  %v1524_v3 = vsel %vm430_vm0, %v6869_v28, %v4746_v47  ;;  %v1632_v32 = vsel %vm430_vm0, %v1631_v40, %v1624_v15  ;;  %v1522_v14 = vperm.slane %v4755_v51, %v4697_v21  ;;  %v371_v15 = vpop.permute.xlu1 %370  ;;  %v6872_v28 = vld [vmem:[#allocation8_spill] sm:$0xff] }
  0xd8   : > { %v1513_v10 = vsel %vm430_vm0, %v1512_v50, %v6870_v62  ;;  %v1636_v30 = vperm.slane %v1632_v32, %v4703_v35  ;;  %v1528_v38 = vperm.slane %v1524_v3, %v4697_v21  ;;  %v2473_v44 = vunpack.c.l.b16 %v1731_v37 }
  0xd9   : > { %v1517_v55 = vperm.slane %v1513_v10, %v4703_v35  ;;  %v1734_v47 = vpack.i.b16 %v1733_v2, %v1732_v13  ;;  %v1738_v4 = vshrl.u32 %v1619_v58, 16  ;;  %v1545_v5 = vperm.slane %v4786_v45, %v4697_v21 }
  0xda   : > { %v1737_v22 = vpack.i.b16 %v1636_v30, %v1619_v58  ;;  %v1739_v26 = vshrl.u32 %v1636_v30, 16  ;;  %v1529_v29 = vrot.slane %v1528_v38, 4  ;;  %v6871_v52 = vrot.slane %v4783_v49, 4 }
  0xdb   : > { %v1546_v33 = vrot.slane %v1545_v5, 4  ;;  %v1556_v51 = vperm.slane %v4791_v59, %v4697_v21  ;;  %v1720_v27 = vshrl.u32 %v1517_v55, 16  ;;  %v408_v58 = vpack.i.b16 %v371_v15, %v4678_v12 }
  0xdc   : > { %v1558_v11 = vsel %vm430_vm0, %v6871_v52, %v4766_v61  ;;  %v2474_v40 = vunpack.c.l.b16 %v1737_v22  ;;  %v1740_v50 = vpack.i.b16 %v1739_v26, %v1738_v4  ;;  %v1530_v45 = vsel %vm430_vm0, %v1529_v29, %v1522_v14 }
  0xdd   : > { %v1562_v6 = vperm.slane %v1558_v11, %v4697_v21  ;;  %v1534_v13 = vperm.slane %v1530_v45, %v4703_v35  ;;  %v6873_v49 = vperm.slane %v6872_v28, %v4697_v21  ;;  %v410_v32 = vshrl.u32 %v371_v15, 16 }
  0xde   : > { %v2479_v37 = vpack.c.b16 %v2474_v40, %v2473_v44  ;;  %v2551_v59 = vunpack.c.l.b16 %v1734_v47  ;;  %v2552_v2 = vunpack.c.l.b16 %v1740_v50  ;;  %v619_v38 = vperm.slane %v408_v58, %v4697_v21 }
  0xdf   : > { %v1547_v61 = vsel %vm430_vm0, %v1546_v33, %v6873_v49  ;;  %v1563_v3 = vrot.slane %v1562_v6, 4  ;;  %v1719_v30 = vpack.i.b16 %v1534_v13, %v1517_v55  ;;  %v1721_v14 = vshrl.u32 %v1534_v13, 16 }
  0xe0   : > { %v1551_v62 = vperm.slane %v1547_v61, %v4703_v35  ;;  %v2501_v4 = vsel %vm327_vm1, %v2479_v37, 0  ;;  %v2557_v5 = vpack.c.b16 %v2552_v2, %v2551_v59  ;;  %v557_v29 = vsel %vm430_vm0, 0, %v5133_v42  ;;  %v369_v2 = vpop.permute.xlu0 %368 }
  0xe1   : > { %v1564_v10 = vsel %vm430_vm0, %v1563_v3, %v1556_v51  ;;  %v572_v44 = vperm.slane %v5144_v16, %v4703_v35  ;;  %2511 = vmatpush.bf16.xpose.msra.mxu0 %v2501_v4  ;;  %v1722_v47 = vpack.i.b16 %v1721_v14, %v1720_v27  ;;  %v6874_v52 = vshrl.u32 %v4678_v12, 16 }
  0xe2   : > { %v1568_v22 = vperm.slane %v1564_v10, %v4703_v35  ;;  %v1726_v26 = vshrl.u32 %v1551_v62, 16  ;;  %v2578_v11 = vsel %vm327_vm1, %v2557_v5, 0  ;;  %v2471_v33 = vunpack.c.l.b16 %v1719_v30  ;;  %v6875_v10 = vld [vmem:[#allocation5_spill] sm:$0xff] }
  0xe3   : > { %v411_v55 = vpack.i.b16 %v410_v32, %v6874_v52  ;;  %v537_v6 = vrot.slane %v534_v39, 4  ;;  %v802_v40 = vrot.slane %v5131_v41, 4  ;;  %v568_v50 = vperm.slane %v5077_v43, %v4703_v35  ;;  %2588 = vmatpush.bf16.xpose.msra.mxu1 %v2578_v11 }
  0xe4   : > { %v1725_v15 = vpack.i.b16 %v1568_v22, %v1551_v62  ;;  %v1727_v51 = vshrl.u32 %v1568_v22, 16  ;;  %v620_v16 = vrot.slane %v619_v38, 4  ;;  %v836_v27 = vrot.slane %v557_v29, 4 }
  0xe5   : > { %v2549_v58 = vunpack.c.l.b16 %v1722_v47  ;;  %v535_v13 = vrot.slane %v5122_v7, 4  ;;  %v555_v28 = vsel %vm430_vm0, 0, %v554_v25  ;;  %v575_v49 = vrot.slane %v572_v44, 4 }
  0xe6   : > { %v2472_v45 = vunpack.c.l.b16 %v1725_v15  ;;  %v1728_v12 = vpack.i.b16 %v1727_v51, %v1726_v26  ;;  %v638_v0 = vperm.slane %v411_v55, %v4697_v21  ;;  %v5204_v43 = vsel %vm430_vm0, %v751_v31, %v5084_v54 }
  0xe7   : > { %v5209_v39 = vsel %vm430_vm0, %v5093_v34, %v5044_v48  ;;  %v538_v3 = vsel %vm430_vm0, 0, %v537_v6  ;;  %v803_v25 = vsel %vm430_vm0, %v802_v40, %v5110_v9  ;;  %v573_v32 = vrot.slane %v568_v50, 4 }
  0xe8   : > { %v2478_v41 = vpack.c.b16 %v2472_v45, %v2471_v33  ;;  %v2550_v61 = vunpack.c.l.b16 %v1728_v12  ;;  %v621_v37 = vsel %vm430_vm0, 0, %v620_v16  ;;  %v837_v19 = vsel %vm430_vm0, %v836_v27, %v555_v28 }
  0xe9   : > { %v625_v59 = vperm.slane %v619_v38, %v4703_v35  ;;  %v536_v48 = vsel %vm430_vm0, 0, %v535_v13  ;;  %v576_v34 = vsel %vm430_vm0, 0, %v575_v49  ;;  %v639_v62 = vrot.slane %v638_v0, 4 }
  0xea   : > { %v2498_v54 = vsel %vm327_vm1, %v2478_v41, 0  ;;  %v2556_v31 = vpack.c.b16 %v2550_v61, %v2549_v58  ;;  %v402_v30 = vpack.i.b16 %v369_v2, %v6875_v10  ;;  %v807_v9 = vperm.slane %v803_v25, %v4697_v21  ;;  %v6878_v25 = vld [vmem:[#allocation12_spill] sm:$0xff] }
  0xeb   : > { %2512 = vmatpush.bf16.xpose.msra.mxu0 %v2498_v54  ;;  %v819_v14 = vrot.slane %v538_v3, 4  ;;  %v629_v5 = vperm.slane %v621_v37, %v4703_v35  ;;  %v801_v22 = vperm.slane %v5209_v39, %v4697_v21  ;;  %v5228_v38 = vsel %vm430_vm0, %v537_v6, %v5122_v7 }
  0xec   : > { %v2575_v4 = vsel %vm327_vm1, %v2556_v31, 0  ;;  %v5233_v26 = vsel %vm430_vm0, %v5133_v42, %v5096_v63  ;;  %v841_v29 = vperm.slane %v837_v19, %v4697_v21  ;;  %v574_v44 = vsel %vm430_vm0, 0, %v573_v32  ;;  %v6880_v19 = vld [vmem:[#allocation14_spill] sm:$0xff] }
  0xed   : > { %2589 = vmatpush.bf16.xpose.msra.mxu1 %v2575_v4  ;;  %v5238_v47 = vsel %vm430_vm0, %v575_v49, %v568_v50  ;;  %v853_v52 = vrot.slane %v576_v34, 4  ;;  %v630_v55 = vrot.slane %v625_v59, 4  ;;  %v640_v11 = vsel %vm430_vm0, 0, %v639_v62 }
  0xee   : > { %v404_v15 = vshrl.u32 %v369_v2, 16  ;;  %v581_v7 = vperm.slane %v402_v30, %v4697_v21  ;;  %v1443_v33 = vperm.slane %v4967_v60, %v4697_v21  ;;  %v5244_v63 = vrot.slane %v807_v9, 4  ;;  %v6884_v9 = vld [vmem:[#allocation13_spill] sm:$0xff] }
  0xef   : > { %v818_v42 = vperm.slane %v5228_v38, %v4697_v21  ;;  %v5249_v51 = vsel %vm430_vm0, %v819_v14, %v536_v48  ;;  %v632_v6 = vrot.slane %v629_v5, 4  ;;  %v835_v40 = vperm.slane %v5233_v26, %v4697_v21  ;;  %v6881_v48 = vld [vmem:[#allocation10_spill] sm:$0xff] }
  0xf0   : > { %v5253_v50 = vrot.slane %v841_v29, 4  ;;  %v852_v16 = vperm.slane %v5238_v47, %v4697_v21  ;;  %v5258_v27 = vperm.slane %v638_v0, %v4703_v35  ;;  %v5261_v60 = vsel %vm430_vm0, %v853_v52, %v574_v44  ;;  %v6885_v52 = vld [vmem:[#allocation9_spill] sm:$0xff] }
  0xf1   : > { %v5264_v45 = vsel %vm430_vm0, 0, %v630_v55  ;;  %v648_v12 = vperm.slane %v640_v11, %v4703_v35  ;;  %v1444_v58 = vrot.slane %v1443_v33, 4  ;;  %v6876_v13 = vshrl.u32 %v6875_v10, 16 }
  0xf2   : > { %v582_v49 = vrot.slane %v581_v7, 4  ;;  %v6877_v41 = vrot.slane %v4973_v18, 4  ;;  %v1477_v61 = vperm.slane %v4941_v23, %v4697_v21  ;;  %v5276_v3 = vsel %vm430_vm0, 0, %v632_v6  ;;  %v6882_v23 = vld [vmem:[#allocation11_spill] sm:$0xff] }
  0xf3   : > { %v405_v28 = vpack.i.b16 %v404_v15, %v6876_v13  ;;  %v6879_v32 = vperm.slane %v6878_v25, %v4697_v21  ;;  %v1454_v54 = vperm.slane %v6880_v19, %v4697_v21  ;;  %v649_v18 = vrot.slane %v5258_v27, 4 }
  0xf4   : > { %v1456_v0 = vsel %vm430_vm0, %v6877_v41, %v4953_v20  ;;  %v1478_v2 = vrot.slane %v1477_v61, 4  ;;  %v6883_v34 = vrot.slane %v6882_v23, 4  ;;  %v5298_v10 = vsel %vm430_vm0, %v632_v6, %v625_v59 }
  0xf5   : > { %v1445_v37 = vsel %vm430_vm0, %v1444_v58, %v6879_v32  ;;  %v1460_v31 = vperm.slane %v1456_v0, %v4697_v21  ;;  %v1488_v14 = vperm.slane %v6884_v9, %v4697_v21  ;;  %v5303_v5 = vrot.slane %v648_v12, 4  ;;  %v5317_v58 = vld [vmem:[%s5295_s26] sm:$0xf] }
  0xf6   : > { %v1449_v20 = vperm.slane %v1445_v37, %v4703_v35  ;;  %v1490_v62 = vsel %vm430_vm0, %v6883_v34, %v6881_v48  ;;  %v904_v29 = vrot.slane %v5276_v3, 4  ;;  %v583_v44 = vsel %vm430_vm0, 0, %v582_v49  ;;  %1769 = vrot.lane.b32.xlu1 %v5317_v58, %s4574_s20  ;;  %v6887_v3 = vld [vmem:[#allocation15_spill] sm:$0xff]  ;;  %v375_v37 = vpop.permute.xlu0 %374 }
  0xf7   : > { %v1461_v30 = vrot.slane %v1460_v31, 4  ;;  %v1494_v4 = vperm.slane %v1490_v62, %v4697_v21  ;;  %v6886_v55 = vperm.slane %v6885_v52, %v4697_v21  ;;  %v5312_v59 = vperm.slane %v405_v28, %v4697_v21 }
  0xf8   : > { %v1708_v13 = vshrl.u32 %v1449_v20, 16  ;;  %v741_v49 = vsel %vm430_vm0, %v5091_v53, %v733_v46  ;;  %v756_v28 = vperm.slane %v5204_v43, %v4697_v21  ;;  %v5330_v41 = vperm.slane %v581_v7, %v4703_v35 }
  0xf9   : > { %v1479_v11 = vsel %vm430_vm0, %v1478_v2, %v6886_v55  ;;  %v1462_v15 = vsel %vm430_vm0, %v1461_v30, %v1454_v54  ;;  %v1495_v6 = vrot.slane %v1494_v4, 4  ;;  %v6888_v25 = vperm.slane %v6887_v3, %v4697_v21 }
  0xfa   : > { %v1483_v33 = vperm.slane %v1479_v11, %v4703_v35  ;;  %v1466_v12 = vperm.slane %v1462_v15, %v4703_v35  ;;  %v757_v43 = vrot.slane %v756_v28, 4  ;;  %v591_v19 = vperm.slane %v583_v44, %v4703_v35 }
  0xfb   : > { %v1496_v0 = vsel %vm430_vm0, %v1495_v6, %v1488_v14  ;;  %v775_v8 = vsel %vm430_vm0, %v5068_v24, %v6888_v25  ;;  %v601_v7 = vrot.slane %v5312_v59, 4  ;;  %v745_v54 = vperm.slane %v741_v49, %v4703_v35  ;;  %v4548_v49 = vld [vmem:[%s4651_s23 + $0x1c] sm:$0xf] }
  0xfc   : > { %v1714_v61 = vshrl.u32 %v1483_v33, 16  ;;  %v1500_v46 = vperm.slane %v1496_v0, %v4703_v35  ;;  %v1707_v53 = vpack.i.b16 %v1466_v12, %v1449_v20  ;;  %v1709_v32 = vshrl.u32 %v1466_v12, 16 }
  0xfd   : > { %v790_v31 = vperm.slane %v5072_v1, %v4697_v21  ;;  %v758_v24 = vsel %vm430_vm0, %v757_v43, %v750_v36  ;;  %v779_v20 = vperm.slane %v775_v8, %v4703_v35  ;;  %v422_v30 = vshrl.u32 %v375_v37, 16  ;;  %v373_v8 = vpop.permute.xlu2 %372 }
  0xfe   : > { %v1713_v2 = vpack.i.b16 %v1500_v46, %v1483_v33  ;;  %v2469_v48 = vunpack.c.l.b16 %v1707_v53  ;;  %v1710_v23 = vpack.i.b16 %v1709_v32, %v1708_v13  ;;  %v1715_v34 = vshrl.u32 %v1500_v46, 16  ;;  %v5367_v46 = vld [vmem:[%s5295_s26 + $0xc] sm:$0xf]  ;;  %v5370_v53 = vld [vmem:[%s5295_s26 + $0x8] sm:$0xf] }
  0xff   : > { %v791_v62 = vrot.slane %v790_v31, 4  ;;  %v762_v44 = vperm.slane %v758_v24, %v4703_v35  ;;  %v5352_v1 = vsel %vm430_vm0, 0, %v5303_v5  ;;  %v5354_v52 = vrot.slane %v591_v19, 4  ;;  %1775 = vrot.lane.b32.xlu1 %v5367_v46, %s4574_s20  ;;  %1773 = vrot.lane.b32.xlu0 %v5370_v53, %s4574_s20 }
 0x100   : > { %v2470_v9 = vunpack.c.l.b16 %v1713_v2  ;;  %v1716_v14 = vpack.i.b16 %v1715_v34, %v1714_v61  ;;  %v2547_v4 = vunpack.c.l.b16 %v1710_v23  ;;  %v1004_v36 = vshrl.u32 %v745_v54, 16 }
 0x101   : > { %v792_v17 = vsel %vm430_vm0, %v791_v62, %v784_v56  ;;  %v1003_v33 = vpack.i.b16 %v762_v44, %v745_v54  ;;  %v602_v6 = vsel %vm430_vm0, 0, %v601_v7  ;;  %v1005_v12 = vshrl.u32 %v762_v44, 16  ;;  %v6889_v56 = vld [vmem:[#allocation7_spill] sm:$0xff]  ;;  %v4549_v7 = vld [vmem:[%s4651_s23 + $0x18] sm:$0xf] }
 0x102   : > { %v2477_v55 = vpack.c.b16 %v2470_v9, %v2469_v48  ;;  %v2548_v11 = vunpack.c.l.b16 %v1716_v14  ;;  %v796_v15 = vperm.slane %v792_v17, %v4703_v35  ;;  %v1010_v13 = vshrl.u32 %v779_v20, 16 }
 0x103   : > { %v420_v28 = vpack.i.b16 %v375_v37, %v4548_v49  ;;  %v6890_v3 = vshrl.u32 %v6889_v56, 16  ;;  %v905_v32 = vsel %vm430_vm0, %v904_v29, %v5264_v45  ;;  %v1006_v43 = vpack.i.b16 %v1005_v12, %v1004_v36 }
 0x104   : > { %v2495_v0 = vsel %vm327_vm1, %v2477_v55, 0  ;;  %v2555_v57 = vpack.c.b16 %v2548_v11, %v2547_v4  ;;  %v1009_v61 = vpack.i.b16 %v796_v15, %v779_v20  ;;  %v1011_v19 = vshrl.u32 %v796_v15, 16  ;;  %v6891_v11 = vld [vmem:[#allocation6_spill] sm:$0xff] }
 0x105   : > { %v423_v25 = vpack.i.b16 %v422_v30, %v6890_v3  ;;  %2513 = vmatpush.bf16.xpose.msra.mxu0 %v2495_v0  ;;  %v414_v37 = vpack.i.b16 %v373_v8, %v4549_v7  ;;  %v610_v54 = vperm.slane %v602_v6, %v4703_v35  ;;  %v2457_v2 = vunpack.c.l.b16 %v1003_v33 }
 0x106   : > { %v2572_v31 = vsel %vm327_vm1, %v2555_v57, 0  ;;  %v2458_v48 = vunpack.c.l.b16 %v1009_v61  ;;  %v592_v23 = vrot.slane %v5330_v41, 4  ;;  %v595_v45 = vsel %vm430_vm0, 0, %v5354_v52 }
 0x107   : > { %2590 = vmatpush.bf16.xpose.msra.mxu1 %v2572_v31  ;;  %v1012_v29 = vpack.i.b16 %v1011_v19, %v1010_v13  ;;  %v695_v34 = vperm.slane %v420_v28, %v4697_v21  ;;  %v5388_v24 = vsel %vm430_vm0, %v5303_v5, %v5258_v27  ;;  %v2535_v20 = vunpack.c.l.b16 %v1006_v43  ;;  %v5398_v5 = vld [vmem:[%s5295_s26 + $0x18] sm:$0xf] }
 0x108   : > { %v714_v62 = vperm.slane %v423_v25, %v4697_v21  ;;  %v416_v30 = vshrl.u32 %v373_v8, 16  ;;  %v909_v9 = vperm.slane %v905_v32, %v4697_v21  ;;  %v606_v14 = vperm.slane %v5312_v59, %v4703_v35  ;;  %1781 = vrot.lane.b32.xlu1 %v5398_v5, %s4574_s20 }
 0x109   : > { %v2536_v4 = vunpack.c.l.b16 %v1012_v29  ;;  %v657_v44 = vperm.slane %v414_v37, %v4697_v21  ;;  %v613_v17 = vrot.slane %v610_v54, 4  ;;  %v870_v36 = vrot.slane %v595_v45, 4 }
 0x10a   : > { %v2465_v55 = vpack.c.b16 %v2458_v48, %v2457_v2  ;;  %v6892_v15 = vshrl.u32 %v6891_v11, 16  ;;  %v650_v6 = vsel %vm430_vm0, 0, %v649_v18  ;;  %v921_v12 = vrot.slane %v5352_v1, 4 }
 0x10b   : > { %v593_v13 = vsel %vm430_vm0, 0, %v592_v23  ;;  %v696_v59 = vrot.slane %v695_v34, 4  ;;  %v2543_v49 = vpack.c.b16 %v2536_v4, %v2535_v20  ;;  %v715_v28 = vrot.slane %v714_v62, 4  ;;  %v5467_v4 = vld [vmem:[%s5295_s26 + $0x14] sm:$0xf] }
 0x10c   : > { %v417_v33 = vpack.i.b16 %v416_v30, %v6892_v15  ;;  %4376 = vmatmul.msk.bf16.vlgmr.msra.gmra.mxu0 %vm327_vm1, %v2465_v55  ;;  %v658_v0 = vrot.slane %v657_v44, 4  ;;  %v903_v61 = vperm.slane %v5298_v10, %v4697_v21  ;;  %v920_v27 = vperm.slane %v5388_v24, %v4697_v21  ;;  %1779 = vrot.lane.b32.xlu0 %v5467_v4, %s4574_s20 }
 0x10d   : > { %v611_v56 = vrot.slane %v606_v14, 4  ;;  %v824_v18 = vperm.slane %v5249_v51, %v4697_v21  ;;  %v5415_v1 = vrot.slane %v909_v9, 4  ;;  %v614_v3 = vsel %vm430_vm0, 0, %v613_v17 }
 0x10e   : > { %v676_v57 = vperm.slane %v417_v33, %v4697_v21  ;;  %v871_v25 = vsel %vm430_vm0, %v870_v36, %v593_v13  ;;  %4380 = vmatmul.msk.bf16.vlgmr.msra.gmra.mxu1 %vm327_vm1, %v2543_v49  ;;  %v659_v8 = vsel %vm430_vm0, 0, %v658_v0  ;;  %v5422_v32 = vsel %vm430_vm0, %v921_v12, %v650_v6 }
 0x10f   : > { %v697_v43 = vsel %vm430_vm0, 0, %v696_v59  ;;  %v809_v51 = vsel %vm430_vm0, %v5244_v63, %v801_v22  ;;  %v5433_v7 = vsel %vm430_vm0, %v5354_v52, %v5330_v41  ;;  %v5436_v37 = vperm.slane %v695_v34, %v4703_v35 }
 0x110   : > { %v677_v19 = vrot.slane %v676_v57, 4  ;;  %v716_v54 = vsel %vm430_vm0, 0, %v715_v28  ;;  %v825_v31 = vrot.slane %v824_v18, 4  ;;  %v612_v2 = vsel %vm430_vm0, 0, %v611_v56 }
 0x111   : > { %v875_v48 = vperm.slane %v871_v25, %v4697_v21  ;;  %v887_v39 = vrot.slane %v614_v3, 4  ;;  %v667_v23 = vperm.slane %v659_v8, %v4703_v35  ;;  %v705_v22 = vperm.slane %v697_v43, %v4703_v35 }
 0x112   : > { %v678_v63 = vsel %vm430_vm0, 0, %v677_v19  ;;  %v813_v41 = vperm.slane %v809_v51, %v4703_v35  ;;  %v826_v52 = vsel %vm430_vm0, %v825_v31, %v818_v42  ;;  %v724_v45 = vperm.slane %v716_v54, %v4703_v35 }
 0x113   : > { %v5451_v29 = vperm.slane %v657_v44, %v4703_v35  ;;  %v830_v34 = vperm.slane %v826_v52, %v4703_v35  ;;  %v843_v20 = vsel %vm430_vm0, %v5253_v50, %v835_v40  ;;  %v869_v30 = vperm.slane %v5433_v7, %v4697_v21  ;;  %v5477_v50 = vld [vmem:[%s5295_s26 + $0x4] sm:$0xf]  ;;  %v5502_v7 = vld [vmem:[%s5295_s26 + $0x10] sm:$0xf] }
 0x114   : > { %v882_v38 = vsel %vm430_vm0, %v613_v17, %v606_v14  ;;  %v706_v42 = vrot.slane %v5436_v37, 4  ;;  %v5464_v9 = vperm.slane %v714_v62, %v4703_v35  ;;  %v876_v44 = vrot.slane %v875_v48, 4  ;;  %1771 = vrot.lane.b32.xlu2 %v5477_v50, %s4574_s20 }
 0x115   : > { %v5469_v36 = vrot.slane %v667_v23, 4  ;;  %v686_v26 = vperm.slane %v678_v63, %v4703_v35  ;;  %v858_v40 = vperm.slane %v5261_v60, %v4697_v21  ;;  %v888_v14 = vsel %vm430_vm0, %v887_v39, %v612_v2 }
 0x116   : > { %v847_v62 = vperm.slane %v843_v20, %v4703_v35  ;;  %v1016_v17 = vshrl.u32 %v813_v41, 16  ;;  %v1017_v55 = vshrl.u32 %v830_v34, 16  ;;  %v708_v11 = vrot.slane %v705_v22, 4 }
 0x117   : > { %v727_v15 = vrot.slane %v724_v45, 4  ;;  %v668_v33 = vrot.slane %v5451_v29, 4  ;;  %v859_v6 = vrot.slane %v858_v40, 4  ;;  %v886_v60 = vperm.slane %v882_v38, %v4697_v21 }
 0x118   : > { %v707_v12 = vsel %vm430_vm0, 0, %v706_v42  ;;  %v725_v13 = vrot.slane %v5464_v9, 4  ;;  %v1015_v59 = vpack.i.b16 %v830_v34, %v813_v41  ;;  %v671_v49 = vsel %vm430_vm0, 0, %v5469_v36 }
 0x119   : > { %v682_v28 = vperm.slane %v676_v57, %v4703_v35  ;;  %v689_v0 = vrot.slane %v686_v26, 4  ;;  %v860_v56 = vsel %vm430_vm0, %v859_v6, %v852_v16  ;;  %v1018_v3 = vpack.i.b16 %v1017_v55, %v1016_v17 }
 0x11a   : > { %v864_v18 = vperm.slane %v860_v56, %v4703_v35  ;;  %v1022_v25 = vshrl.u32 %v847_v62, 16  ;;  %v892_v8 = vperm.slane %v888_v14, %v4697_v21  ;;  %v709_v43 = vsel %vm430_vm0, 0, %v708_v11 }
 0x11b   : > { %v728_v19 = vsel %vm430_vm0, 0, %v727_v15  ;;  %v669_v51 = vsel %vm430_vm0, 0, %v668_v33  ;;  %v926_v57 = vperm.slane %v5422_v32, %v4697_v21  ;;  %v2459_v54 = vunpack.c.l.b16 %v1015_v59  ;;  %v5531_v33 = vld [vmem:[%s5295_s26 + $0x1c] sm:$0xf] }
 0x11c   : > { %v1021_v47 = vpack.i.b16 %v864_v18, %v847_v62  ;;  %v1023_v16 = vshrl.u32 %v864_v18, 16  ;;  %v893_v31 = vrot.slane %v892_v8, 4  ;;  %v687_v2 = vrot.slane %v682_v28, 4  ;;  %1777 = vrot.lane.b32.xlu2 %v5502_v7, %s4574_s20 }
 0x11d   : > { %v690_v48 = vsel %vm430_vm0, 0, %v689_v0  ;;  %v938_v39 = vrot.slane %v671_v49, 4  ;;  %v927_v23 = vrot.slane %v926_v57, 4  ;;  %v2537_v41 = vunpack.c.l.b16 %v1018_v3 }
 0x11e   : > { %v2460_v22 = vunpack.c.l.b16 %v1021_v47  ;;  %v1024_v63 = vpack.i.b16 %v1023_v16, %v1022_v25  ;;  %v877_v52 = vsel %vm430_vm0, %v876_v44, %v869_v30  ;;  %v972_v32 = vrot.slane %v709_v43, 4 }
 0x11f   : > { %v894_v45 = vsel %vm430_vm0, %v893_v31, %v886_v60  ;;  %v911_v34 = vsel %vm430_vm0, %v5415_v1, %v903_v61  ;;  %v928_v20 = vsel %vm430_vm0, %v927_v23, %v920_v27  ;;  %v989_v38 = vrot.slane %v728_v19, 4 }
 0x120   : > { %v955_v42 = vrot.slane %v690_v48, 4  ;;  %v2466_v30 = vpack.c.b16 %v2460_v22, %v2459_v54  ;;  %v2538_v44 = vunpack.c.l.b16 %v1024_v63  ;;  %v726_v26 = vsel %vm430_vm0, 0, %v725_v13 }
 0x121   : > { %v688_v40 = vsel %vm430_vm0, 0, %v687_v2  ;;  %v939_v14 = vsel %vm430_vm0, %v938_v39, %v669_v51  ;;  %v881_v10 = vperm.slane %v877_v52, %v4703_v35  ;;  %v898_v24 = vperm.slane %v894_v45, %v4703_v35 }
 0x122   : > { %4377 = vmatmul.msk.bf16.gmra.mxu0 %vm327_vm1, %v2466_v30  ;;  %v2544_v61 = vpack.c.b16 %v2538_v44, %v2537_v41  ;;  %v915_v27 = vperm.slane %v911_v34, %v4703_v35  ;;  %v932_v1 = vperm.slane %v928_v20, %v4703_v35  ;;  %v973_v62 = vsel %vm430_vm0, %v972_v32, %v707_v12 }
 0x123   : > { %v990_v17 = vsel %vm430_vm0, %v989_v38, %v726_v26  ;;  %v956_v55 = vsel %vm430_vm0, %v955_v42, %v688_v40  ;;  %v967_v6 = vsel %vm430_vm0, %v708_v11, %v5436_v37  ;;  %v984_v60 = vsel %vm430_vm0, %v727_v15, %v5464_v9 }
 0x124   : > { %4381 = vmatmul.msk.bf16.gmra.mxu1 %vm327_vm1, %v2544_v61  ;;  %v943_v13 = vperm.slane %v939_v14, %v4697_v21  ;;  %v1028_v59 = vshrl.u32 %v881_v10, 16  ;;  %v1029_v49 = vshrl.u32 %v898_v24, 16  ;;  %v1034_v56 = vshrl.u32 %v915_v27, 16  ;;  %1783 = vrot.lane.b32.xlu2 %v5531_v33, %s4574_s20 }
 0x125   : > { %v1035_v12 = vshrl.u32 %v932_v1, 16  ;;  %v977_v18 = vperm.slane %v973_v62, %v4697_v21  ;;  %v933_v3 = vsel %vm430_vm0, %v5469_v36, %v5451_v29  ;;  %v960_v37 = vperm.slane %v956_v55, %v4697_v21 }
 0x126   : > { %v994_v11 = vperm.slane %v990_v17, %v4697_v21  ;;  %v950_v9 = vsel %vm430_vm0, %v689_v0, %v682_v28  ;;  %v1027_v15 = vpack.i.b16 %v898_v24, %v881_v10  ;;  %v1033_v25 = vpack.i.b16 %v932_v1, %v915_v27 }
 0x127   : > { %v971_v8 = vperm.slane %v967_v6, %v4697_v21  ;;  %v988_v43 = vperm.slane %v984_v60, %v4697_v21  ;;  %v937_v19 = vperm.slane %v933_v3, %v4697_v21  ;;  %v944_v51 = vrot.slane %v943_v13, 4 }
 0x128   : > { %v1030_v57 = vpack.i.b16 %v1029_v49, %v1028_v59  ;;  %v1036_v47 = vpack.i.b16 %v1035_v12, %v1034_v56  ;;  %v978_v54 = vrot.slane %v977_v18, 4  ;;  %v954_v29 = vperm.slane %v950_v9, %v4697_v21 }
 0x129   : > { %v961_v36 = vrot.slane %v960_v37, 4  ;;  %v995_v16 = vrot.slane %v994_v11, 4  ;;  %v2461_v31 = vunpack.c.l.b16 %v1027_v15  ;;  %v2462_v2 = vunpack.c.l.b16 %v1033_v25 }
 0x12a   : > { %v2539_v48 = vunpack.c.l.b16 %v1030_v57  ;;  %v2540_v28 = vunpack.c.l.b16 %v1036_v47  ;;  %v945_v0 = vsel %vm430_vm0, %v944_v51, %v937_v19  ;;  %v979_v23 = vsel %vm430_vm0, %v978_v54, %v971_v8 }
 0x12b   : > { %v962_v39 = vsel %vm430_vm0, %v961_v36, %v954_v29  ;;  %v996_v22 = vsel %vm430_vm0, %v995_v16, %v988_v43  ;;  %v2467_v63 = vpack.c.b16 %v2462_v2, %v2461_v31  ;;  %v949_v41 = vperm.slane %v945_v0, %v4703_v35 }
 0x12c   : > { %v2545_v52 = vpack.c.b16 %v2540_v28, %v2539_v48  ;;  %v966_v32 = vperm.slane %v962_v39, %v4703_v35  ;;  %v983_v45 = vperm.slane %v979_v23, %v4703_v35  ;;  %v1000_v34 = vperm.slane %v996_v22, %v4703_v35 }
 0x12d   : > { %v1040_v20 = vshrl.u32 %v949_v41, 16  ;;  %v1788_v17 = vshrl.u32 %v5317_v58, 16  ;;  %v1794_v13 = vshrl.u32 %v5477_v50, 16  ;;  %v1806_v9 = vshrl.u32 %v5367_v46, 16 }
 0x12e   : > { %v1041_v38 = vshrl.u32 %v966_v32, 16  ;;  %v1046_v42 = vshrl.u32 %v983_v45, 16  ;;  %v1047_v30 = vshrl.u32 %v1000_v34, 16  ;;  %v1039_v44 = vpack.i.b16 %v966_v32, %v949_v41 }
 0x12f   : > { %v1045_v26 = vpack.i.b16 %v1000_v34, %v983_v45  ;;  %v1800_v15 = vshrl.u32 %v5370_v53, 16  ;;  %v1824_v8 = vshrl.u32 %v5398_v5, 16  ;;  %v1818_v29 = vshrl.u32 %v5467_v4, 16 }
 0x130   : > { %v1042_v40 = vpack.i.b16 %v1041_v38, %v1040_v20  ;;  %v1048_v14 = vpack.i.b16 %v1047_v30, %v1046_v42  ;;  %v2463_v10 = vunpack.c.l.b16 %v1039_v44  ;;  %v1812_v39 = vshrl.u32 %v5502_v7, 16 }
 0x131   : > { %v2464_v61 = vunpack.c.l.b16 %v1045_v26  ;;  %v1830_v41 = vshrl.u32 %v5531_v33, 16 }
 0x132   : > { %4378 = vmatmul.msk.bf16.gmra.mxu0 %vm327_vm1, %v2467_v63  ;;  %v2541_v24 = vunpack.c.l.b16 %v1042_v40  ;;  %v2542_v27 = vunpack.c.l.b16 %v1048_v14 }
 0x133   : > { %v2468_v1 = vpack.c.b16 %v2464_v61, %v2463_v10 }
 0x134   : > { %4382 = vmatmul.msk.bf16.gmra.mxu1 %vm327_vm1, %v2545_v52  ;;  %v2546_v62 = vpack.c.b16 %v2542_v27, %v2541_v24 }
 0x142   : > { %4379 = vmatmul.msk.bf16.gmra.mxu0 %vm327_vm1, %v2468_v1 }
 0x144   : > { %4383 = vmatmul.msk.bf16.gmra.mxu1 %vm327_vm1, %v2546_v62 }
 0x168   : > { %v1770_v55 = vpop.permute.xlu1 %1769 }
 0x169   : > { %v1787_v6 = vpack.i.b16 %v1770_v55, %v5317_v58  ;;  %v1789_v60 = vshrl.u32 %v1770_v55, 16 }
 0x16b   : > { %v1790_v59 = vpack.i.b16 %v1789_v60, %v1788_v17  ;;  %v1837_v49 = vperm.slane %v1787_v6, %v4697_v21 }
 0x16d   : > { %v1838_v3 = vrot.slane %v1837_v49, 4  ;;  %v1843_v37 = vperm.slane %v1837_v49, %v4703_v35  ;;  %v1856_v11 = vperm.slane %v1790_v59, %v4697_v21 }
 0x16e   : > { %v1772_v56 = vpop.permute.xlu2 %1771 }
 0x16f   : > { %v1793_v12 = vpack.i.b16 %v1772_v56, %v5477_v50  ;;  %v1795_v18 = vshrl.u32 %v1772_v56, 16  ;;  %v1839_v43 = vsel %vm430_vm0, 0, %v1838_v3  ;;  %v1857_v19 = vrot.slane %v1856_v11, 4 }
 0x170   : > { %v1862_v50 = vperm.slane %v1856_v11, %v4703_v35  ;;  %v1847_v51 = vperm.slane %v1839_v43, %v4703_v35  ;;  %v1848_v36 = vrot.slane %v1843_v37, 4 }
 0x171   : > { %v1796_v58 = vpack.i.b16 %v1795_v18, %v1794_v13  ;;  %v1875_v25 = vperm.slane %v1793_v12, %v4697_v21  ;;  %v1858_v16 = vsel %vm430_vm0, 0, %v1857_v19  ;;  %v1776_v55 = vpop.permute.xlu1 %1775 }
 0x172   : > { %v1867_v31 = vrot.slane %v1862_v50, 4  ;;  %v1850_v2 = vrot.slane %v1847_v51, 4  ;;  %v1866_v48 = vperm.slane %v1858_v16, %v4703_v35  ;;  %v1849_v34 = vsel %vm430_vm0, 0, %v1848_v36 }
 0x173   : > { %v1876_v57 = vrot.slane %v1875_v25, 4  ;;  %v1881_v47 = vperm.slane %v1875_v25, %v4703_v35  ;;  %v1894_v54 = vperm.slane %v1796_v58, %v4697_v21  ;;  %v1805_v60 = vpack.i.b16 %v1776_v55, %v5367_v46  ;;  %v1774_v58 = vpop.permute.xlu0 %1773 }
 0x174   : > { %v1851_v52 = vsel %vm430_vm0, 0, %v1850_v2  ;;  %v1869_v32 = vrot.slane %v1866_v48, 4  ;;  %v5591_v45 = vsel %vm430_vm0, %v1850_v2, %v1843_v37  ;;  %v5596_v30 = vsel %vm430_vm0, 0, %v1867_v31 }
 0x175   : > { %v1877_v28 = vsel %vm430_vm0, 0, %v1876_v57  ;;  %v1886_v0 = vrot.slane %v1881_v47, 4  ;;  %v1895_v22 = vrot.slane %v1894_v54, 4  ;;  %v5586_v63 = vperm.slane %v1894_v54, %v4703_v35 }
 0x176   : > { %v1885_v23 = vperm.slane %v1877_v28, %v4703_v35  ;;  %v2142_v20 = vrot.slane %v1851_v52, 4  ;;  %v5602_v14 = vsel %vm430_vm0, 0, %v1869_v32  ;;  %v5614_v1 = vsel %vm430_vm0, %v1869_v32, %v1862_v50  ;;  %v1778_v6 = vpop.permute.xlu2 %1777 }
 0x177   : > { %v1896_v42 = vsel %vm430_vm0, 0, %v1895_v22  ;;  %v1887_v44 = vsel %vm430_vm0, 0, %v1886_v0  ;;  %v1905_v40 = vrot.slane %v5586_v63, 4  ;;  %v1807_v13 = vshrl.u32 %v1776_v55, 16 }
 0x178   : > { %v1888_v38 = vrot.slane %v1885_v23, 4  ;;  %v1904_v26 = vperm.slane %v1896_v42, %v4703_v35  ;;  %v5611_v27 = vsel %vm430_vm0, %v2142_v20, %v1849_v34  ;;  %v1811_v59 = vpack.i.b16 %v1778_v6, %v5502_v7 }
 0x179   : > { %v1813_v49 = vshrl.u32 %v1778_v6, 16  ;;  %v5622_v12 = vsel %vm430_vm0, 0, %v1905_v40  ;;  %v1808_v46 = vpack.i.b16 %v1807_v13, %v1806_v9  ;;  %v1951_v7 = vperm.slane %v1805_v60, %v4697_v21 }
 0x17a   : > { %v1889_v61 = vsel %vm430_vm0, 0, %v1888_v38  ;;  %v5608_v24 = vsel %vm430_vm0, %v1888_v38, %v1881_v47  ;;  %v5616_v62 = vrot.slane %v1904_v26, 4  ;;  %v1989_v43 = vperm.slane %v1811_v59, %v4697_v21 }
 0x17b   : > { %v2176_v17 = vrot.slane %v1889_v61, 4  ;;  %v1814_v11 = vpack.i.b16 %v1813_v49, %v1812_v39  ;;  %v1799_v19 = vpack.i.b16 %v1774_v58, %v5370_v53  ;;  %v1801_v50 = vshrl.u32 %v1774_v58, 16 }
 0x17c   : > { %v5626_v18 = vsel %vm430_vm0, 0, %v5616_v62  ;;  %v1952_v51 = vrot.slane %v1951_v7, 4  ;;  %v1957_v57 = vperm.slane %v1951_v7, %v4703_v35  ;;  %v1970_v47 = vperm.slane %v1808_v46, %v4697_v21 }
 0x17d   : > { %v5631_v37 = vsel %vm430_vm0, %v2176_v17, %v1887_v44  ;;  %v2008_v54 = vperm.slane %v1814_v11, %v4697_v21  ;;  %v1990_v36 = vrot.slane %v1989_v43, 4  ;;  %v1995_v9 = vperm.slane %v1989_v43, %v4703_v35 }
 0x17e   : > { %v1802_v16 = vpack.i.b16 %v1801_v50, %v1800_v15  ;;  %v1913_v31 = vperm.slane %v1799_v19, %v4697_v21  ;;  %v1953_v2 = vsel %vm430_vm0, 0, %v1952_v51  ;;  %v1962_v48 = vrot.slane %v1957_v57, 4  ;;  %v1780_v3 = vpop.permute.xlu0 %1779 }
 0x17f   : > { %v1971_v28 = vrot.slane %v1970_v47, 4  ;;  %v1976_v0 = vperm.slane %v1970_v47, %v4703_v35  ;;  %v1961_v39 = vperm.slane %v1953_v2, %v4703_v35  ;;  %v1991_v23 = vsel %vm430_vm0, 0, %v1990_v36 }
 0x180   : > { %v2000_v22 = vrot.slane %v1995_v9, 4  ;;  %v2009_v52 = vrot.slane %v2008_v54, 4  ;;  %v1963_v32 = vsel %vm430_vm0, 0, %v1962_v48  ;;  %v1999_v15 = vperm.slane %v1991_v23, %v4703_v35  ;;  %v1784_v23 = vpop.permute.xlu2 %1783 }
 0x181   : > { %v1972_v34 = vsel %vm430_vm0, 0, %v1971_v28  ;;  %v1981_v53 = vrot.slane %v1976_v0, 4  ;;  %v1964_v20 = vrot.slane %v1961_v39, 4  ;;  %v2014_v61 = vperm.slane %v2008_v54, %v4703_v35  ;;  %v1782_v39 = vpop.permute.xlu1 %1781 }
 0x182   : > { %v1980_v38 = vperm.slane %v1972_v34, %v4703_v35  ;;  %v2001_v42 = vsel %vm430_vm0, 0, %v2000_v22  ;;  %v2010_v44 = vsel %vm430_vm0, 0, %v2009_v52  ;;  %v2002_v40 = vrot.slane %v1999_v15, 4 }
 0x183   : > { %v5655_v26 = vsel %vm430_vm0, 0, %v1981_v53  ;;  %v2018_v17 = vperm.slane %v2010_v44, %v4703_v35  ;;  %v1965_v6 = vsel %vm430_vm0, 0, %v1964_v20  ;;  %v5663_v13 = vsel %vm430_vm0, %v1964_v20, %v1957_v57 }
 0x184   : > { %v1983_v60 = vrot.slane %v1980_v38, 4  ;;  %v1914_v59 = vrot.slane %v1913_v31, 4  ;;  %v2244_v7 = vrot.slane %v1965_v6, 4  ;;  %v2003_v11 = vsel %vm430_vm0, 0, %v2002_v40 }
 0x185   : > { %v2019_v50 = vrot.slane %v2014_v61, 4  ;;  %v2021_v51 = vrot.slane %v2018_v17, 4  ;;  %v5685_v36 = vsel %vm430_vm0, %v2002_v40, %v1995_v9  ;;  %v1932_v15 = vperm.slane %v1802_v16, %v4697_v21 }
 0x186   : > { %v5673_v43 = vsel %vm430_vm0, 0, %v1983_v60  ;;  %v5676_v19 = vsel %vm430_vm0, %v1983_v60, %v1976_v0  ;;  %v5681_v47 = vsel %vm430_vm0, %v2244_v7, %v1963_v32  ;;  %v2277_v28 = vperm.slane %v5685_v36, %v4697_v21 }
 0x187   : > { %v5688_v2 = vsel %vm430_vm0, 0, %v2019_v50  ;;  %v5691_v48 = vsel %vm430_vm0, 0, %v2021_v51  ;;  %v2278_v0 = vrot.slane %v2003_v11, 4  ;;  %v5696_v22 = vsel %vm430_vm0, %v2021_v51, %v2014_v61 }
 0x188   : > { %v2295_v52 = vrot.slane %v5691_v48, 4  ;;  %v1915_v9 = vsel %vm430_vm0, 0, %v1914_v59  ;;  %v1919_v32 = vperm.slane %v1913_v31, %v4703_v35  ;;  %v1823_v20 = vpack.i.b16 %v1782_v39, %v5398_v5 }
 0x189   : > { %v5659_v55 = vpop.f32.mrf.mxu0  ;;  %v5702_v34 = vsel %vm430_vm0, %v2278_v0, %v2001_v42  ;;  %v1923_v53 = vperm.slane %v1915_v9, %v4703_v35  ;;  %v1825_v44 = vshrl.u32 %v1782_v39, 16  ;;  %v1829_v40 = vpack.i.b16 %v1784_v23, %v5531_v33 }
 0x18a   : > { %v2629_v49 = vsel %vm2628_vm2, %v5659_v55, -inf  ;;  %v1924_v38 = vrot.slane %v1919_v32, 4  ;;  %v1831_v61 = vshrl.u32 %v1784_v23, 16  ;;  %v1933_v60 = vrot.slane %v1932_v15, 4 }
 0x18b   : > { %v5670_v58 = vpop.f32.mrf.mxu1  ;;  %2630 = vmax.xlane.f32.xlu0 %v2629_v49  ;;  %v1926_v6 = vrot.slane %v1923_v53, 4  ;;  %v1938_v31 = vperm.slane %v1932_v15, %v4703_v35  ;;  %v2065_v42 = vperm.slane %v1823_v20, %v4697_v21  ;;  %v1826_v49 = vpack.i.b16 %v1825_v44, %v1824_v8 }
 0x18c   : > { %v2653_v57 = vsel %vm2628_vm2, %v5670_v58, -inf  ;;  %v1925_v16 = vsel %vm430_vm0, 0, %v1924_v38  ;;  %v1832_v7 = vpack.i.b16 %v1831_v61, %v1830_v41  ;;  %v1934_v51 = vsel %vm430_vm0, 0, %v1933_v60 }
 0x18d   : > { %2654 = vmax.xlane.f32.xlu1 %v2653_v57  ;;  %v1927_v50 = vsel %vm430_vm0, 0, %v1926_v6  ;;  %v1943_v57 = vrot.slane %v1938_v31, 4  ;;  %v5724_v0 = vsel %vm430_vm0, %v1926_v6, %v1919_v32  ;;  %v1942_v23 = vperm.slane %v1934_v51, %v4703_v35 }
 0x18e   : > { %v2210_v33 = vrot.slane %v1927_v50, 4  ;;  %v2066_v41 = vrot.slane %v2065_v42, 4  ;;  %v2071_v9 = vperm.slane %v2065_v42, %v4703_v35  ;;  %v2084_v32 = vperm.slane %v1826_v49, %v4697_v21 }
 0x18f   : > { %v5732_v8 = vsel %vm430_vm0, 0, %v1943_v57  ;;  %v1945_v53 = vrot.slane %v1942_v23, 4  ;;  %v2103_v20 = vperm.slane %v1829_v40, %v4697_v21  ;;  %v2122_v38 = vperm.slane %v1832_v7, %v4697_v21 }
 0x190   : > { %v5737_v15 = vsel %vm430_vm0, %v2210_v33, %v1925_v16  ;;  %v2067_v44 = vsel %vm430_vm0, 0, %v2066_v41  ;;  %v2076_v61 = vrot.slane %v2071_v9, 4  ;;  %v2085_v6 = vrot.slane %v2084_v32, 4 }
 0x191   : > { %v5708_v17 = vpop.f32.mrf.mxu0  ;;  %v2090_v60 = vperm.slane %v2084_v32, %v4703_v35  ;;  %v5747_v42 = vsel %vm430_vm0, %v1945_v53, %v1938_v31  ;;  %v2075_v49 = vperm.slane %v2067_v44, %v4703_v35  ;;  %v2104_v16 = vrot.slane %v2103_v20, 4 }
 0x192   : > { %v2632_v59 = vsel %vm2628_vm2, %v5708_v17, -inf  ;;  %v2077_v40 = vsel %vm430_vm0, 0, %v2076_v61  ;;  %v2086_v7 = vsel %vm430_vm0, 0, %v2085_v6  ;;  %v2109_v33 = vperm.slane %v2103_v20, %v4703_v35 }
 0x193   : > { %v5719_v11 = vpop.f32.mrf.mxu1  ;;  %v2095_v51 = vrot.slane %v2090_v60, 4  ;;  %v2078_v57 = vrot.slane %v2075_v49, 4  ;;  %v2105_v23 = vsel %vm430_vm0, 0, %v2104_v16  ;;  %v2123_v32 = vrot.slane %v2122_v38, 4 }
 0x194   : > { %v2656_v39 = vsel %vm2628_vm2, %v5719_v11, -inf  ;;  %v2113_v41 = vperm.slane %v2105_v23, %v4703_v35  ;;  %v2114_v49 = vrot.slane %v2109_v33, 4  ;;  %v1817_v10 = vpack.i.b16 %v1780_v3, %v5467_v4 }
 0x195   : > { %2657 = vmax.xlane.f32.xlu2 %v2656_v39  ;;  %2633 = vmax.xlane.f32.xlu1 %v2632_v59  ;;  %v5744_v59 = vsel %vm430_vm0, 0, %v1945_v53  ;;  %v2094_v39 = vperm.slane %v2086_v7, %v4703_v35  ;;  %v2096_v31 = vsel %vm430_vm0, 0, %v2095_v51  ;;  %v5759_v53 = vperm.slane %v2122_v38, %v4703_v35 }
 0x196   : > { %v2079_v44 = vsel %vm430_vm0, 0, %v2078_v57  ;;  %v2341_v6 = vsel %vm430_vm0, %v2078_v57, %v2071_v9  ;;  %v2116_v7 = vrot.slane %v2113_v41, 4  ;;  %v2124_v16 = vsel %vm430_vm0, 0, %v2123_v32 }
 0x197   : > { %v2097_v61 = vrot.slane %v2094_v39, 4  ;;  %v2346_v25 = vrot.slane %v2079_v44, 4  ;;  %v2133_v20 = vrot.slane %v5759_v53, 4  ;;  %v2115_v23 = vsel %vm430_vm0, 0, %v2114_v49 }
 0x198   : > { %v2132_v38 = vperm.slane %v2124_v16, %v4703_v35  ;;  %v2117_v9 = vsel %vm430_vm0, 0, %v2116_v7  ;;  %v2375_v41 = vsel %vm430_vm0, %v2116_v7, %v2109_v33  ;;  %v1819_v54 = vshrl.u32 %v1780_v3, 16 }
 0x199   : > { %v2098_v51 = vsel %vm430_vm0, 0, %v2097_v61  ;;  %v2134_v57 = vsel %vm430_vm0, 0, %v2133_v20  ;;  %v2380_v56 = vrot.slane %v2117_v9, 4  ;;  %v2027_v16 = vperm.slane %v1817_v10, %v4697_v21 }
 0x19a   : > { %v2363_v39 = vrot.slane %v2098_v51, 4  ;;  %v2135_v44 = vrot.slane %v2132_v38, 4  ;;  %v2345_v5 = vperm.slane %v2341_v6, %v4697_v21  ;;  %v2347_v51 = vsel %vm430_vm0, %v2346_v25, %v2077_v40 }
 0x19b   : > { %v2358_v50 = vsel %vm430_vm0, %v2097_v61, %v2090_v60  ;;  %v1820_v20 = vpack.i.b16 %v1819_v54, %v1818_v29  ;;  %v2351_v3 = vperm.slane %v2347_v51, %v4697_v21  ;;  %v2028_v9 = vrot.slane %v2027_v16, 4 }
 0x19c   : > { %v2136_v7 = vsel %vm430_vm0, 0, %v2135_v44  ;;  %v2033_v10 = vperm.slane %v2027_v16, %v4703_v35  ;;  %v2362_v6 = vperm.slane %v2358_v50, %v4697_v21  ;;  %v2364_v40 = vsel %vm430_vm0, %v2363_v39, %v2096_v31 }
 0x19d   : > { %v2397_v38 = vrot.slane %v2136_v7, 4  ;;  %v2046_v25 = vperm.slane %v1820_v20, %v4697_v21  ;;  %v2352_v60 = vrot.slane %v2351_v3, 4  ;;  %v2379_v61 = vperm.slane %v2375_v41, %v4697_v21 }
 0x19e   : > { %v2038_v4 = vrot.slane %v2033_v10, 4  ;;  %v2368_v29 = vperm.slane %v2364_v40, %v4697_v21  ;;  %v2381_v54 = vsel %vm430_vm0, %v2380_v56, %v2115_v23 }
 0x19f   : > { %v5769_v46 = vpop.f32.mrf.mxu0  ;;  %v2052_v16 = vperm.slane %v2046_v25, %v4703_v35  ;;  %v2353_v50 = vsel %vm430_vm0, %v2352_v60, %v2345_v5  ;;  %v2385_v20 = vperm.slane %v2381_v54, %v4697_v21 }
 0x1a0   : > { %v2635_v32 = vsel %vm2628_vm2, %v5769_v46, -inf  ;;  %v2039_v31 = vsel %vm430_vm0, 0, %v2038_v4  ;;  %v2357_v39 = vperm.slane %v2353_v50, %v4703_v35  ;;  %v2369_v41 = vrot.slane %v2368_v29, 4 }
 0x1a1   : > { %v5776_v49 = vpop.f32.mrf.mxu1  ;;  %2636 = vmax.xlane.f32.xlu2 %v2635_v32  ;;  %v2029_v32 = vsel %vm430_vm0, 0, %v2028_v9  ;;  %v2057_v56 = vrot.slane %v2052_v16, 4  ;;  %v2386_v60 = vrot.slane %v2385_v20, 4 }
 0x1a2   : > { %v2659_v33 = vsel %vm2628_vm2, %v5776_v49, -inf  ;;  %v2037_v51 = vperm.slane %v2029_v32, %v4703_v35  ;;  %v2370_v5 = vsel %vm430_vm0, %v2369_v41, %v2362_v6  ;;  %v2392_v32 = vsel %vm430_vm0, %v2135_v44, %v5759_v53 }
 0x1a3   : > { %2660 = vmax.xlane.f32.xlu0 %v2659_v33  ;;  %v2047_v33 = vrot.slane %v2046_v25, 4  ;;  %v2058_v29 = vsel %vm430_vm0, 0, %v2057_v56  ;;  %v2374_v6 = vperm.slane %v2370_v5, %v4703_v35  ;;  %v2387_v41 = vsel %vm430_vm0, %v2386_v60, %v2379_v61 }
 0x1a4   : > { %v2040_v3 = vrot.slane %v2037_v51, 4  ;;  %v2396_v53 = vperm.slane %v2392_v32, %v4697_v21  ;;  %v2398_v44 = vsel %vm430_vm0, %v2397_v38, %v2134_v57  ;;  %v2448_v20 = vshrl.u32 %v2357_v39, 16 }
 0x1a5   : > { %v2048_v9 = vsel %vm430_vm0, 0, %v2047_v33  ;;  %v2449_v5 = vshrl.u32 %v2374_v6, 16  ;;  %v2283_v57 = vperm.slane %v5702_v34, %v4697_v21  ;;  %v2294_v38 = vperm.slane %v5696_v22, %v4697_v21 }
 0x1a6   : > { %v2056_v25 = vperm.slane %v2048_v9, %v4703_v35  ;;  %v2041_v4 = vsel %vm430_vm0, 0, %v2040_v3  ;;  %v2307_v54 = vsel %vm430_vm0, %v2040_v3, %v2033_v10 }
 0x1a7   : > { %v5799_v7 = vpop.f32.mrf.mxu0  ;;  %v2311_v50 = vperm.slane %v2307_v54, %v4697_v21  ;;  %v2312_v9 = vrot.slane %v2041_v4, 4  ;;  %v2402_v4 = vperm.slane %v2398_v44, %v4697_v21  ;;  %v2447_v54 = vpack.i.b16 %v2374_v6, %v2357_v39 }
 0x1a8   : > { %v2638_v23 = vsel %vm2628_vm2, %v5799_v7, -inf  ;;  %v2059_v33 = vrot.slane %v2056_v25, 4  ;;  %v2450_v32 = vpack.i.b16 %v2449_v5, %v2448_v20 }
 0x1a9   : > { %v5808_v40 = vpop.f32.mrf.mxu1  ;;  %2639 = vmax.xlane.f32.xlu2 %v2638_v23  ;;  %v2313_v10 = vsel %vm430_vm0, %v2312_v9, %v2039_v31  ;;  %v2391_v23 = vperm.slane %v2387_v41, %v4703_v35  ;;  %v2403_v60 = vrot.slane %v2402_v4, 4  ;;  %v3024_v39 = vunpack.c.l.b16 %v2447_v54 }
 0x1aa   : > { %v2662_v51 = vsel %vm2628_vm2, %v5808_v40, -inf  ;;  %v2060_v56 = vsel %vm430_vm0, 0, %v2059_v33  ;;  %v2324_v3 = vsel %vm430_vm0, %v2059_v33, %v2052_v16  ;;  %v2296_v16 = vsel %vm430_vm0, %v2295_v52, %v5688_v2 }
 0x1ab   : > { %2663 = vmax.xlane.f32.xlu1 %v2662_v51  ;;  %v2329_v25 = vrot.slane %v2060_v56, 4  ;;  %v2454_v61 = vshrl.u32 %v2391_v23, 16  ;;  %v2284_v9 = vrot.slane %v2283_v57, 4  ;;  %v2300_v34 = vperm.slane %v2296_v16, %v4697_v21 }
 0x1ac   : > { %v2317_v6 = vperm.slane %v2313_v10, %v4697_v21  ;;  %v2328_v22 = vperm.slane %v2324_v3, %v4697_v21  ;;  %v2404_v2 = vsel %vm430_vm0, %v2403_v60, %v2396_v53  ;;  %v3101_v52 = vunpack.c.l.b16 %v2450_v32 }
 0x1ad   : > { %v2330_v41 = vsel %vm430_vm0, %v2329_v25, %v2058_v29  ;;  %v2408_v44 = vperm.slane %v2404_v2, %v4703_v35  ;;  %v2285_v20 = vsel %vm430_vm0, %v2284_v9, %v2277_v28  ;;  %v2301_v56 = vrot.slane %v2300_v34, 4 }
 0x1ae   : > { %v2318_v10 = vrot.slane %v2317_v6, 4  ;;  %v2289_v3 = vperm.slane %v2285_v20, %v4703_v35  ;;  %v2334_v4 = vperm.slane %v2330_v41, %v4697_v21  ;;  %v2215_v53 = vperm.slane %v5737_v15, %v4697_v21 }
 0x1af   : > { %v5828_v51 = vpop.f32.mrf.mxu0  ;;  %v2226_v29 = vperm.slane %v5747_v42, %v4697_v21  ;;  %v2453_v25 = vpack.i.b16 %v2408_v44, %v2391_v23  ;;  %v2455_v54 = vshrl.u32 %v2408_v44, 16  ;;  %v2302_v5 = vsel %vm430_vm0, %v2301_v56, %v2294_v38 }
 0x1b0   : > { %v2641_v31 = vsel %vm2628_vm2, %v5828_v51, -inf  ;;  %v2319_v36 = vsel %vm430_vm0, %v2318_v10, %v2311_v50  ;;  %v2306_v28 = vperm.slane %v2302_v5, %v4703_v35  ;;  %v2335_v16 = vrot.slane %v2334_v4, 4 }
 0x1b1   : > { %v5840_v33 = vpop.f32.mrf.mxu1  ;;  %2642 = vmax.xlane.f32.xlu0 %v2641_v31  ;;  %v2323_v57 = vperm.slane %v2319_v36, %v4703_v35  ;;  %v2436_v31 = vshrl.u32 %v2289_v3, 16  ;;  %v3025_v32 = vunpack.c.l.b16 %v2453_v25  ;;  %v2456_v9 = vpack.i.b16 %v2455_v54, %v2454_v61 }
 0x1b2   : > { %v2665_v48 = vsel %vm2628_vm2, %v5840_v33, -inf  ;;  %v2216_v15 = vrot.slane %v2215_v53, 4  ;;  %v6893_v42 = vrot.slane %v5744_v59, 4  ;;  %v2336_v50 = vsel %vm430_vm0, %v2335_v16, %v2328_v22 }
 0x1b3   : > { %2666 = vmax.xlane.f32.xlu2 %v2665_v48  ;;  %v2435_v34 = vpack.i.b16 %v2306_v28, %v2289_v3  ;;  %v2437_v6 = vshrl.u32 %v2306_v28, 16  ;;  %v3029_v2 = vpack.c.b16 %v3025_v32, %v3024_v39  ;;  %v3102_v41 = vunpack.c.l.b16 %v2456_v9 }
 0x1b4   : > { %v2228_v23 = vsel %vm430_vm0, %v6893_v42, %v5732_v8  ;;  %v2340_v61 = vperm.slane %v2336_v50, %v4703_v35  ;;  %v2442_v44 = vshrl.u32 %v2323_v57, 16  ;;  %v6894_v56 = vperm.slane %v5724_v0, %v4697_v21 }
 0x1b5   : > { %v3022_v20 = vunpack.c.l.b16 %v2435_v34  ;;  %v2438_v8 = vpack.i.b16 %v2437_v6, %v2436_v31  ;;  %3050 = vmatpush.bf16.msra.mxu2 %v3029_v2  ;;  %v3106_v10 = vpack.c.b16 %v3102_v41, %v3101_v52  ;;  %v2232_v25 = vperm.slane %v2228_v23, %v4697_v21 }
 0x1b6   : > { %v2217_v22 = vsel %vm430_vm0, %v2216_v15, %v6894_v56  ;;  %v2441_v3 = vpack.i.b16 %v2340_v61, %v2323_v57  ;;  %v2443_v4 = vshrl.u32 %v2340_v61, 16  ;;  %v2249_v54 = vperm.slane %v5681_v47, %v4697_v21 }
 0x1b7   : > { %v5864_v60 = vpop.f32.mrf.mxu0  ;;  %v2221_v39 = vperm.slane %v2217_v22, %v4703_v35  ;;  %v3099_v53 = vunpack.c.l.b16 %v2438_v8  ;;  %v2260_v5 = vperm.slane %v5676_v19, %v4697_v21  ;;  %3127 = vmatpush.bf16.msra.mxu3 %v3106_v10  ;;  %v6895_v28 = vrot.slane %v5673_v43, 4 }
 0x1b8   : > { %v2644_v38 = vsel %vm2628_vm2, %v5864_v60, -inf  ;;  %v3023_v0 = vunpack.c.l.b16 %v2441_v3  ;;  %v2444_v36 = vpack.i.b16 %v2443_v4, %v2442_v44  ;;  %v2233_v16 = vrot.slane %v2232_v25, 4 }
 0x1b9   : > { %v5873_v48 = vpop.f32.mrf.mxu1  ;;  %2645 = vmax.xlane.f32.xlu1 %v2644_v38  ;;  %v2262_v52 = vsel %vm430_vm0, %v6895_v28, %v5655_v26  ;;  %v2424_v57 = vshrl.u32 %v2221_v39, 16  ;;  %v2250_v31 = vrot.slane %v2249_v54, 4  ;;  %v2147_v9 = vperm.slane %v5611_v27, %v4697_v21 }
 0x1ba   : > { %v2668_v59 = vsel %vm2628_vm2, %v5873_v48, -inf  ;;  %v2266_v32 = vperm.slane %v2262_v52, %v4697_v21  ;;  %v3028_v15 = vpack.c.b16 %v3023_v0, %v3022_v20  ;;  %v3100_v19 = vunpack.c.l.b16 %v2444_v36 }
 0x1bb   : > { %2669 = vmax.xlane.f32.xlu0 %v2668_v59  ;;  %v2158_v42 = vperm.slane %v5614_v1, %v4697_v21  ;;  %v6896_v43 = vrot.slane %v5602_v14, 4  ;;  %v2234_v38 = vsel %vm430_vm0, %v2233_v16, %v2226_v29  ;;  %v6897_v27 = vperm.slane %v5663_v13, %v4697_v21 }
 0x1bc   : > { %v2267_v34 = vrot.slane %v2266_v32, 4  ;;  %3051 = vmatpush.bf16.msra.mxu2 %v3028_v15  ;;  %v3105_v1 = vpack.c.b16 %v3100_v19, %v3099_v53  ;;  %v2238_v14 = vperm.slane %v2234_v38, %v4703_v35  ;;  %v2148_v2 = vrot.slane %v2147_v9, 4 }
 0x1bd   : > { %v2160_v26 = vsel %vm430_vm0, %v6896_v43, %v5596_v30  ;;  %v2251_v50 = vsel %vm430_vm0, %v2250_v31, %v6897_v27  ;;  %v2181_v61 = vperm.slane %v5631_v37, %v4697_v21  ;;  %v2188_v56 = vsel %vm430_vm0, %v5616_v62, %v5586_v63 }
 0x1be   : > { %v2255_v30 = vperm.slane %v2251_v50, %v4703_v35  ;;  %v2268_v29 = vsel %vm430_vm0, %v2267_v34, %v2260_v5  ;;  %v2164_v13 = vperm.slane %v2160_v26, %v4697_v21  ;;  %3128 = vmatpush.bf16.msra.mxu3 %v3105_v1  ;;  %v2423_v59 = vpack.i.b16 %v2238_v14, %v2221_v39 }
 0x1bf   : > { %v5895_v47 = vpop.f32.mrf.mxu0  ;;  %v2272_v44 = vperm.slane %v2268_v29, %v4703_v35  ;;  %v2425_v20 = vshrl.u32 %v2238_v14, 16  ;;  %v6898_v22 = vperm.slane %v5591_v45, %v4697_v21  ;;  %v2182_v4 = vrot.slane %v2181_v61, 4 }
 0x1c0   : > { %v2647_v23 = vsel %vm2628_vm2, %v5895_v47, -inf  ;;  %v2430_v8 = vshrl.u32 %v2255_v30, 16  ;;  %v2165_v3 = vrot.slane %v2164_v13, 4  ;;  %v3020_v37 = vunpack.c.l.b16 %v2423_v59 }
 0x1c1   : > { %v5910_v6 = vpop.f32.mrf.mxu1  ;;  %2648 = vmax.xlane.f32.xlu2 %v2647_v23  ;;  %v2149_v10 = vsel %vm430_vm0, %v2148_v2, %v6898_v22  ;;  %v2429_v53 = vpack.i.b16 %v2272_v44, %v2255_v30  ;;  %v2426_v25 = vpack.i.b16 %v2425_v20, %v2424_v57  ;;  %v2431_v54 = vshrl.u32 %v2272_v44, 16 }
 0x1c2   : > { %v2671_v41 = vsel %vm2628_vm2, %v5910_v6, -inf  ;;  %v2153_v5 = vperm.slane %v2149_v10, %v4703_v35  ;;  %v2166_v39 = vsel %vm430_vm0, %v2165_v3, %v2158_v42  ;;  %v6899_v0 = vperm.slane %v5608_v24, %v4697_v21 }
 0x1c3   : > { %2672 = vmax.xlane.f32.xlu1 %v2671_v41  ;;  %v6900_v45 = vrot.slane %v5626_v18, 4  ;;  %v3021_v28 = vunpack.c.l.b16 %v2429_v53  ;;  %v2432_v52 = vpack.i.b16 %v2431_v54, %v2430_v8  ;;  %v3097_v57 = vunpack.c.l.b16 %v2426_v25 }
 0x1c4   : > { %v2183_v63 = vsel %vm430_vm0, %v2182_v4, %v6899_v0  ;;  %v2170_v16 = vperm.slane %v2166_v39, %v4703_v35  ;;  %v2192_v24 = vperm.slane %v2188_v56, %v4697_v21  ;;  %v2412_v19 = vshrl.u32 %v2153_v5, 16 }
 0x1c5   : > { %v2194_v62 = vsel %vm430_vm0, %v6900_v45, %v5622_v12  ;;  %v2187_v32 = vperm.slane %v2183_v63, %v4703_v35  ;;  %v3027_v12 = vpack.c.b16 %v3021_v28, %v3020_v37  ;;  %v3098_v18 = vunpack.c.l.b16 %v2432_v52 }
 0x1c6   : > { %v2198_v9 = vperm.slane %v2194_v62, %v4697_v21  ;;  %v2413_v42 = vshrl.u32 %v2170_v16, 16  ;;  %v2411_v38 = vpack.i.b16 %v2170_v16, %v2153_v5  ;;  %v4577_v50 = vmov -inf  }
 0x1c7   : > { %v5938_v36 = vpop.f32.mrf.mxu0  ;;  %3052 = vmatpush.bf16.msra.mxu2 %v3027_v12  ;;  %v3104_v23 = vpack.c.b16 %v3098_v18, %v3097_v57  ;;  %295 = vst.msk [vmem:[#allocation2] sm:$0xff] %vm294_vm3, %v4577_v50  ;;  %v2418_v14 = vshrl.u32 %v2187_v32, 16  ;;  %v4578_v8 = vmov 0   ;;  %v4579_v56 = vmov 0.0  }
 0x1c8   : > { %v2650_v31 = vsel %vm2628_vm2, %v5938_v36, -inf  ;;  %v2199_v26 = vrot.slane %v2198_v9, 4  ;;  %v2414_v1 = vpack.i.b16 %v2413_v42, %v2412_v19  ;;  %296 = vst.msk [vmem:[#allocation2 + $0x8] sm:$0xff] %vm294_vm3, %v4577_v50  ;;  %v3018_v2 = vunpack.c.l.b16 %v2411_v38  ;;  %4429 = vset.pattern.permute.xlu0 %v4578_v8  ;;  %4431 = vset.pattern.permute.xlu2 %v4578_v8 }
 0x1c9   : > { %v5946_v15 = vpop.f32.mrf.mxu1  ;;  %2651 = vmax.xlane.f32.xlu0 %v2650_v31  ;;  %3129 = vmatpush.bf16.msra.mxu3 %v3104_v23  ;;  %297 = vst.msk [vmem:[#allocation2 + $0x10] sm:$0xff] %vm294_vm3, %v4577_v50 }
 0x1ca   : > { %v2674_v43 = vsel %vm2628_vm2, %v5946_v15, -inf  ;;  %v2200_v27 = vsel %vm430_vm0, %v2199_v26, %v2192_v24  ;;  %298 = vst.msk [vmem:[#allocation2 + $0x18] sm:$0xff] %vm294_vm3, %v4577_v50  ;;  %v3095_v61 = vunpack.c.l.b16 %v2414_v1  ;;  %4430 = vset.pattern.permute.xlu1 %v4578_v8 }
 0x1cb   : > { %2675 = vmax.xlane.f32.xlu2 %v2674_v43  ;;  %v2204_v34 = vperm.slane %v2200_v27, %v4703_v35  ;;  %299 = vst.msk [vmem:[#allocation2 + $0x20] sm:$0xff] %vm294_vm3, %v4577_v50 }
 0x1cc   : > { %300 = vst.msk [vmem:[#allocation2 + $0x28] sm:$0xff] %vm294_vm3, %v4577_v50 }
 0x1cd   : > { %v2417_v30 = vpack.i.b16 %v2204_v34, %v2187_v32  ;;  %v2419_v41 = vshrl.u32 %v2204_v34, 16  ;;  %301 = vst.msk [vmem:[#allocation2 + $0x30] sm:$0xff] %vm294_vm3, %v4577_v50 }
 0x1ce   : > { %302 = vst.msk [vmem:[#allocation2 + $0x38] sm:$0xff] %vm294_vm3, %v4577_v50  ;;  %v5976_v22 = vld [vmem:[#allocation2] sm:$0xff] }
 0x1cf   : > { %v3019_v29 = vunpack.c.l.b16 %v2417_v30  ;;  %v2420_v13 = vpack.i.b16 %v2419_v41, %v2418_v14  ;;  %303 = vst.msk [vmem:[#allocation2 + $0x40] sm:$0xff] %vm294_vm3, %v4577_v50  ;;  %v6003_v5 = vld [vmem:[#allocation2 + $0x8] sm:$0xff] }
 0x1d0   : > { %304 = vst.msk [vmem:[#allocation2 + $0x48] sm:$0xff] %vm294_vm3, %v4577_v50  ;;  %v6027_v62 = vld [vmem:[#allocation2 + $0x10] sm:$0xff] }
 0x1d1   : > { %v3026_v44 = vpack.c.b16 %v3019_v29, %v3018_v2  ;;  %v3096_v59 = vunpack.c.l.b16 %v2420_v13  ;;  %305 = vst.msk [vmem:[#allocation2 + $0x50] sm:$0xff] %vm294_vm3, %v4577_v50  ;;  %v2615_v32 = vld [vmem:[#allocation2 + $0x18] sm:$0xff] }
 0x1d2   : > { %306 = vst.msk [vmem:[#allocation2 + $0x58] sm:$0xff] %vm294_vm3, %v4577_v50  ;;  %v2616_v42 = vld [vmem:[#allocation2 + $0x20] sm:$0xff] }
 0x1d3   : > { %3053 = vmatpush.bf16.msra.mxu2 %v3026_v44  ;;  %v3103_v20 = vpack.c.b16 %v3096_v59, %v3095_v61  ;;  %307 = vst.msk [vmem:[#allocation2 + $0x60] sm:$0xff] %vm294_vm3, %v4577_v50  ;;  %v2617_v34 = vld [vmem:[#allocation2 + $0x28] sm:$0xff] }
 0x1d4   : > { %308 = vst.msk [vmem:[#allocation2 + $0x68] sm:$0xff] %vm294_vm3, %v4577_v50  ;;  %v6075_v13 = vld [vmem:[#allocation2 + $0x30] sm:$0xff] }
 0x1d5   : > { %3130 = vmatpush.bf16.msra.mxu3 %v3103_v20  ;;  %309 = vst.msk [vmem:[#allocation2 + $0x70] sm:$0xff] %vm294_vm3, %v4577_v50 }
 0x1d6   : > { %310 = vst.msk [vmem:[#allocation2 + $0x78] sm:$0xff] %vm294_vm3, %v4577_v50  ;;  %v5980_v3 = vld [vmem:[#allocation2 + $0x40] sm:$0xff] }
 0x1d7   : > { %329 = vst.msk [vmem:[#allocation4 + $0x8] sm:$0xff] %vm327_vm1, %v4579_v56  ;;  %v6001_v54 = vld [vmem:[#allocation2 + $0x48] sm:$0xff] }
 0x1d8   : > { %311 = vst.msk [vmem:[#allocation3] sm:$0xff] %vm294_vm3, %v4579_v56  ;;  %v6032_v28 = vld [vmem:[#allocation2 + $0x50] sm:$0xff] }
 0x1d9   : > { %312 = vst.msk [vmem:[#allocation3 + $0x8] sm:$0xff] %vm294_vm3, %v4579_v56  ;;  %v6046_v24 = vld [vmem:[#allocation2 + $0x58] sm:$0xff] }
 0x1da   : > { %313 = vst.msk [vmem:[#allocation3 + $0x10] sm:$0xff] %vm294_vm3, %v4579_v56  ;;  %v6054_v26 = vld [vmem:[#allocation2 + $0x60] sm:$0xff] }
 0x1db   : > { %314 = vst.msk [vmem:[#allocation3 + $0x18] sm:$0xff] %vm294_vm3, %v4579_v56  ;;  %v6065_v30 = vld [vmem:[#allocation2 + $0x68] sm:$0xff] }
 0x1dc   : > { %315 = vst.msk [vmem:[#allocation3 + $0x20] sm:$0xff] %vm294_vm3, %v4579_v56  ;;  %v6077_v44 = vld [vmem:[#allocation2 + $0x70] sm:$0xff] }
 0x1dd   : > { %316 = vst.msk [vmem:[#allocation3 + $0x28] sm:$0xff] %vm294_vm3, %v4579_v56 }
 0x1de   : > { %317 = vst.msk [vmem:[#allocation3 + $0x30] sm:$0xff] %vm294_vm3, %v4579_v56 }
 0x1df   : > { %318 = vst.msk [vmem:[#allocation3 + $0x38] sm:$0xff] %vm294_vm3, %v4579_v56 }
 0x1e0   : > { %319 = vst.msk [vmem:[#allocation3 + $0x40] sm:$0xff] %vm294_vm3, %v4579_v56 }
 0x1e1   : > { %320 = vst.msk [vmem:[#allocation3 + $0x48] sm:$0xff] %vm294_vm3, %v4579_v56 }
 0x1e2   : > { %321 = vst.msk [vmem:[#allocation3 + $0x50] sm:$0xff] %vm294_vm3, %v4579_v56 }
 0x1e3   : > { %322 = vst.msk [vmem:[#allocation3 + $0x58] sm:$0xff] %vm294_vm3, %v4579_v56 }
 0x1e4   : > { %323 = vst.msk [vmem:[#allocation3 + $0x60] sm:$0xff] %vm294_vm3, %v4579_v56 }
 0x1e5   : > { %324 = vst.msk [vmem:[#allocation3 + $0x68] sm:$0xff] %vm294_vm3, %v4579_v56 }
 0x1e6   : > { %325 = vst.msk [vmem:[#allocation3 + $0x70] sm:$0xff] %vm294_vm3, %v4579_v56 }
 0x1e7   : > { %326 = vst.msk [vmem:[#allocation3 + $0x78] sm:$0xff] %vm294_vm3, %v4579_v56 }
 0x1e8   : > { %328 = vst.msk [vmem:[#allocation4] sm:$0xff] %vm327_vm1, %v4579_v56 }
 0x1e9   : > { %330 = vst.msk [vmem:[#allocation4 + $0x10] sm:$0xff] %vm327_vm1, %v4579_v56 }
 0x1ea   : > { %331 = vst.msk [vmem:[#allocation4 + $0x18] sm:$0xff] %vm327_vm1, %v4579_v56 }
 0x1eb   : > { %332 = vst.msk [vmem:[#allocation4 + $0x20] sm:$0xff] %vm327_vm1, %v4579_v56 }
 0x1ec   : > { %333 = vst.msk [vmem:[#allocation4 + $0x28] sm:$0xff] %vm327_vm1, %v4579_v56 }
 0x1ed   : > { %334 = vst.msk [vmem:[#allocation4 + $0x30] sm:$0xff] %vm327_vm1, %v4579_v56 }
 0x1ee   : > { %335 = vst.msk [vmem:[#allocation4 + $0x38] sm:$0xff] %vm327_vm1, %v4579_v56 }
 0x1ef   : > { %336 = vst.msk [vmem:[#allocation4 + $0x40] sm:$0xff] %vm327_vm1, %v4579_v56 }
 0x1f0   : > { %337 = vst.msk [vmem:[#allocation4 + $0x48] sm:$0xff] %vm327_vm1, %v4579_v56 }
 0x1f1   : > { %338 = vst.msk [vmem:[#allocation4 + $0x50] sm:$0xff] %vm327_vm1, %v4579_v56 }
 0x1f2   : > { %339 = vst.msk [vmem:[#allocation4 + $0x58] sm:$0xff] %vm327_vm1, %v4579_v56 }
 0x1f3   : > { %340 = vst.msk [vmem:[#allocation4 + $0x60] sm:$0xff] %vm327_vm1, %v4579_v56 }
 0x1f4   : > { %341 = vst.msk [vmem:[#allocation4 + $0x68] sm:$0xff] %vm327_vm1, %v4579_v56 }
 0x1f5   : > { %342 = vst.msk [vmem:[#allocation4 + $0x70] sm:$0xff] %vm327_vm1, %v4579_v56 }
 0x1f6   : > { %343 = vst.msk [vmem:[#allocation4 + $0x78] sm:$0xff] %vm327_vm1, %v4579_v56 }
 0x1fe   : > { %v2631_v10 = vpop.xlane.xlu0 %2630 }
 0x1ff   : > { %v5984_v4 = vmax.f32 %v5976_v22, %v2631_v10 }
 0x200   : > { %v2655_v53 = vpop.xlane.xlu1 %2654 }
 0x201   : > { %3296 = vst.msk [vmem:[#allocation2] sm:$0xff] %vm294_vm3, %v5984_v4  ;;  %v5991_v37 = vmax.f32 %v5980_v3, %v2655_v53  ;;  %2743 = vperm.xlu0 %4429, %v5984_v4   ;;  %v2693_v50 = vsub.f32 %v5976_v22, %v5984_v4  ;;  %v6092_v53 = vld [vmem:[#allocation2 + $0x38] sm:$0xff] }
 0x203   : > { %v2701_v25 = vsub.f32 %v5980_v3, %v5991_v37  ;;  %3304 = vst.msk [vmem:[#allocation2 + $0x40] sm:$0xff] %vm294_vm3, %v5991_v37  ;;  %v2709_v1 = vmul.f32 1.442695, %v2693_v50 }
 0x205   : > { %4452 = vpow2.f32 %v2709_v1 }
 0x208   : > { %v2658_v39 = vpop.xlane.xlu2 %2657  ;;  %v2634_v0 = vpop.xlane.xlu1 %2633 }
 0x209   : > { %v6009_v63 = vmax.f32 %v6001_v54, %v2658_v39  ;;  %v6012_v45 = vmax.f32 %v6003_v5, %v2634_v0 }
 0x20b   : > { %3305 = vst.msk [vmem:[#allocation2 + $0x48] sm:$0xff] %vm294_vm3, %v6009_v63  ;;  %2748 = vperm.xlu1 %4430, %v6012_v45   ;;  %2788 = vperm.xlu2 %4431, %v6009_v63   ;;  %v6080_v20 = vpop.eup %4452  ;;  %v2694_v4 = vsub.f32 %v6003_v5, %v6012_v45 }
 0x20c   : > { %3297 = vst.msk [vmem:[#allocation2 + $0x8] sm:$0xff] %vm294_vm3, %v6012_v45 }
 0x213   : > { %2783 = vperm.xlu1 %4430, %v5991_v37  }
 0x214   : > { %v2637_v52 = vpop.xlane.xlu2 %2636 }
 0x215   : > { %v2679_v57 = vmax.f32 %v6027_v62, %v2637_v52  ;;  %v2627_v52 = vld [vmem:[#allocation2 + $0x78] sm:$0xff] }
 0x216   : > { %v2661_v16 = vpop.xlane.xlu0 %2660 }
 0x217   : > { %v6039_v31 = vmax.f32 %v6032_v28, %v2661_v16  ;;  %3298 = vst.msk [vmem:[#allocation2 + $0x10] sm:$0xff] %vm294_vm3, %v2679_v57  ;;  %2753 = vperm.xlu2 %4431, %v2679_v57   ;;  %v2695_v56 = vsub.f32 %v6027_v62, %v2679_v57  ;;  %v2711_v16 = vmul.f32 1.442695, %v2694_v4 }
 0x219   : > { %3306 = vst.msk [vmem:[#allocation2 + $0x50] sm:$0xff] %vm294_vm3, %v6039_v31  ;;  %2793 = vperm.xlu0 %4429, %v6039_v31   ;;  %v2713_v39 = vmul.f32 1.442695, %v2695_v56 }
 0x21b   : > { %4454 = vpow2.f32 %v2713_v39 }
 0x21c   : > { %v2640_v9 = vpop.xlane.xlu2 %2639 }
 0x21d   : > { %v2680_v12 = vmax.f32 %v2615_v32, %v2640_v9 }
 0x21e   : > { %v2664_v18 = vpop.xlane.xlu1 %2663 }
 0x21f   : > { %v6049_v19 = vmax.f32 %v6046_v24, %v2664_v18  ;;  %3299 = vst.msk [vmem:[#allocation2 + $0x18] sm:$0xff] %vm294_vm3, %v2680_v12  ;;  %2758 = vperm.xlu1 %4430, %v2680_v12   ;;  %v2696_v10 = vsub.f32 %v2615_v32, %v2680_v12  ;;  %v2702_v18 = vsub.f32 %v6001_v54, %v6009_v63 }
 0x220   : > { %v2703_v63 = vsub.f32 %v6032_v28, %v6039_v31  ;;  %v2725_v28 = vmul.f32 1.442695, %v2701_v25 }
 0x221   : > { %3307 = vst.msk [vmem:[#allocation2 + $0x58] sm:$0xff] %vm294_vm3, %v6049_v19  ;;  %v2715_v0 = vmul.f32 1.442695, %v2696_v10  ;;  %v2727_v12 = vmul.f32 1.442695, %v2702_v18  ;;  %v2704_v3 = vsub.f32 %v6046_v24, %v6049_v19 }
 0x223   : > { %4456 = vpow2.f32 %v2715_v0 }
 0x224   : > { %v2643_v43 = vpop.xlane.xlu0 %2642  ;;  %4458 = vpow2.f32 %v2711_v16 }
 0x225   : > { %v2681_v23 = vmax.f32 %v2616_v42, %v2643_v43  ;;  %4460 = vpow2.f32 %v2727_v12 }
 0x226   : > { %v2667_v38 = vpop.xlane.xlu2 %2666 }
 0x227   : > { %3300 = vst.msk [vmem:[#allocation2 + $0x20] sm:$0xff] %vm294_vm3, %v2681_v23  ;;  %v6058_v27 = vmax.f32 %v6054_v26, %v2667_v38  ;;  %2763 = vperm.xlu2 %4431, %v2681_v23   ;;  %2798 = vperm.xlu1 %4430, %v6049_v19   ;;  %v2697_v5 = vsub.f32 %v2616_v42, %v2681_v23  ;;  %v6100_v38 = vpop.eup %4454 }
 0x229   : > { %3308 = vst.msk [vmem:[#allocation2 + $0x60] sm:$0xff] %vm294_vm3, %v6058_v27  ;;  %v2717_v43 = vmul.f32 1.442695, %v2697_v5  ;;  %v6102_v50 = vpop.eup %4456  ;;  %v2705_v23 = vsub.f32 %v6054_v26, %v6058_v27 }
 0x22a   : > { %v6108_v42 = vpop.eup %4458 }
 0x22b   : > { %4462 = vpow2.f32 %v2717_v43  ;;  %v2733_v1 = vmul.f32 1.442695, %v2705_v23 }
 0x22c   : > { %v2646_v14 = vpop.xlane.xlu1 %2645 }
 0x22d   : > { %v2682_v2 = vmax.f32 %v2617_v34, %v2646_v14  ;;  %v6113_v14 = vpop.eup %4460 }
 0x22e   : > { %v2670_v41 = vpop.xlane.xlu0 %2669 }
 0x22f   : > { %3301 = vst.msk [vmem:[#allocation2 + $0x28] sm:$0xff] %vm294_vm3, %v2682_v2  ;;  %v6069_v29 = vmax.f32 %v6065_v30, %v2670_v41  ;;  %2803 = vperm.xlu2 %4431, %v6058_v27   ;;  %2768 = vperm.xlu1 %4430, %v2682_v2   ;;  %v2698_v45 = vsub.f32 %v2617_v34, %v2682_v2  ;;  %v2729_v34 = vmul.f32 1.442695, %v2703_v63 }
 0x231   : > { %3309 = vst.msk [vmem:[#allocation2 + $0x68] sm:$0xff] %vm294_vm3, %v6069_v29  ;;  %2808 = vperm.xlu0 %4429, %v6069_v29   ;;  %v2719_v54 = vmul.f32 1.442695, %v2698_v45  ;;  %v6115_v2 = vpop.eup %4462  ;;  %v2706_v31 = vsub.f32 %v6065_v30, %v6069_v29  ;;  %v2731_v29 = vmul.f32 1.442695, %v2704_v3 }
 0x233   : > { %4464 = vpow2.f32 %v2719_v54  ;;  %v2735_v37 = vmul.f32 1.442695, %v2706_v31 }
 0x234   : > { %v2649_v61 = vpop.xlane.xlu2 %2648  ;;  %4466 = vpow2.f32 %v2729_v34 }
 0x235   : > { %v2683_v59 = vmax.f32 %v6075_v13, %v2649_v61  ;;  %4468 = vpow2.f32 %v2733_v1 }
 0x236   : > { %v2673_v8 = vpop.xlane.xlu1 %2672  ;;  %4470 = vpow2.f32 %v2725_v28 }
 0x237   : > { %3302 = vst.msk [vmem:[#allocation2 + $0x30] sm:$0xff] %vm294_vm3, %v2683_v59  ;;  %v6085_v22 = vmax.f32 %v6077_v44, %v2673_v8  ;;  %2773 = vperm.xlu2 %4431, %v2683_v59   ;;  %3170 = vperm.xlu1 %4430, %v6080_v20   ;;  %v2699_v27 = vsub.f32 %v6075_v13, %v2683_v59  ;;  %4472 = vpow2.f32 %v2735_v37 }
 0x239   : > { %3310 = vst.msk [vmem:[#allocation2 + $0x70] sm:$0xff] %vm294_vm3, %v6085_v22  ;;  %v6124_v26 = vpop.eup %4464  ;;  %v2721_v25 = vmul.f32 1.442695, %v2699_v27  ;;  %v2707_v24 = vsub.f32 %v6077_v44, %v6085_v22 }
 0x23a   : > { %v6130_v41 = vpop.eup %4466 }
 0x23b   : > { %v6132_v30 = vpop.eup %4468  ;;  %4474 = vpow2.f32 %v2721_v25  ;;  %v2737_v4 = vmul.f32 1.442695, %v2707_v24 }
 0x23c   : > { %v2652_v62 = vpop.xlane.xlu0 %2651  ;;  %v6137_v13 = vpop.eup %4470  ;;  %4476 = vpow2.f32 %v2731_v29 }
 0x23d   : > { %v2684_v57 = vmax.f32 %v6092_v53, %v2652_v62  ;;  %v6142_v56 = vpop.eup %4472 }
 0x23e   : > { %v2676_v9 = vpop.xlane.xlu2 %2675 }
 0x23f   : > { %3303 = vst.msk [vmem:[#allocation2 + $0x38] sm:$0xff] %vm294_vm3, %v2684_v57  ;;  %v2692_v32 = vmax.f32 %v2627_v52, %v2676_v9  ;;  %2778 = vperm.xlu0 %4429, %v2684_v57   ;;  %2813 = vperm.xlu1 %4430, %v6085_v22   ;;  %v2700_v61 = vsub.f32 %v6092_v53, %v2684_v57 }
 0x241   : > { %3311 = vst.msk [vmem:[#allocation2 + $0x78] sm:$0xff] %vm294_vm3, %v2692_v32  ;;  %2818 = vperm.xlu2 %4431, %v2692_v32   ;;  %v2708_v59 = vsub.f32 %v2627_v52, %v2692_v32  ;;  %v2723_v19 = vmul.f32 1.442695, %v2700_v61  ;;  %v6144_v10 = vpop.eup %4474 }
 0x242   : > { %v6148_v53 = vpop.eup %4476 }
 0x243   : > { %v2739_v8 = vmul.f32 1.442695, %v2708_v59  ;;  %4478 = vpow2.f32 %v2723_v19 }
 0x245   : > { %4480 = vpow2.f32 %v2739_v8 }
 0x246   : > { %4482 = vpow2.f32 %v2737_v4 }
 0x247   : > { %3180 = vperm.xlu0 %4429, %v6100_v38   ;;  %3185 = vperm.xlu1 %4430, %v6102_v50  }
 0x249   : > { %3175 = vperm.xlu2 %4431, %v6108_v42   ;;  %v6151_v39 = vpop.eup %4478 }
 0x24b   : > { %v6153_v44 = vpop.eup %4480 }
 0x24c   : > { %v6157_v22 = vpop.eup %4482 }
 0x24f   : > { %3190 = vperm.xlu0 %4429, %v6115_v2   ;;  %3215 = vperm.xlu1 %4430, %v6113_v14  }
 0x251   : > { %3195 = vperm.xlu2 %4431, %v6124_v26  }
 0x257   : > { %3220 = vperm.xlu0 %4429, %v6130_v41   ;;  %3230 = vperm.xlu1 %4430, %v6132_v30  }
 0x259   : > { %3210 = vperm.xlu2 %4431, %v6137_v13  }
 0x25f   : > { %3235 = vperm.xlu0 %4429, %v6142_v56   ;;  %3200 = vperm.xlu1 %4430, %v6144_v10  }
 0x261   : > { %3225 = vperm.xlu2 %4431, %v6148_v53  }
 0x265   : > { %v2789_v62 = vpop.permute.xlu2 %2788 }
 0x266   : > { %v2830_v9 = vsub.f32 %v5719_v11, %v2789_v62 }
 0x267   : > { %3205 = vperm.xlu0 %4429, %v6151_v39   ;;  %3245 = vperm.xlu1 %4430, %v6153_v44  }
 0x268   : > { %v2855_v45 = vmul.f32 1.442695, %v2830_v9 }
 0x269   : > { %3240 = vperm.xlu2 %4431, %v6157_v22  }
 0x271   : > { %v2754_v32 = vpop.permute.xlu2 %2753 }
 0x272   : > { %v2823_v63 = vsub.f32 %v5769_v46, %v2754_v32 }
 0x273   : > { %v2744_v0 = vpop.permute.xlu0 %2743 }
 0x274   : > { %v2821_v52 = vsub.f32 %v5659_v55, %v2744_v0  ;;  %v2841_v11 = vmul.f32 1.442695, %v2823_v63 }
 0x276   : > { %v2837_v57 = vmul.f32 1.442695, %v2821_v52 }
 0x278   : > { %4484 = vpow2.f32 %v2837_v57 }
 0x27d   : > { %v2749_v16 = vpop.permute.xlu1 %2748 }
 0x27e   : > { %v2822_v18 = vsub.f32 %v5708_v17, %v2749_v16  ;;  %v4485_v12 = vpop.eup %4484 }
 0x27f   : > { %v2982_v23 = vpack.c.bf16 %v4485_v12, %v4485_v12  ;;  %v2901_v59 = vsel %vm2628_vm2, %v4485_v12, 0.0 }
 0x280   : > { %v2839_v5 = vmul.f32 1.442695, %v2822_v18 }
 0x281   : > { %v2764_v34 = vpop.permute.xlu2 %2763  ;;  %v3006_v17 = vunpack.c.l.b16 %v2982_v23 }
 0x282   : > { %4486 = vpow2.f32 %v2839_v5  ;;  %v2825_v29 = vsub.f32 %v5828_v51, %v2764_v34 }
 0x283   : > { %4488 = vpow2.f32 %v2855_v45 }
 0x284   : > { %v2845_v4 = vmul.f32 1.442695, %v2825_v29 }
 0x285   : > { %v2784_v43 = vpop.permute.xlu1 %2783 }
 0x286   : > { %v2829_v54 = vsub.f32 %v5670_v58, %v2784_v43 }
 0x288   : > { %v4487_v55 = vpop.eup %4486  ;;  %v2853_v1 = vmul.f32 1.442695, %v2829_v54 }
 0x289   : > { %v2983_v28 = vpack.c.bf16 %v4487_v55, %v4487_v55  ;;  %v4489_v3 = vpop.eup %4488  ;;  %v2904_v24 = vsel %vm2628_vm2, %v4487_v55, 0.0  ;;  %v2804_v0 = vpop.permute.xlu2 %2803 }
 0x28a   : > { %4490 = vpow2.f32 %v2853_v1  ;;  %v2991_v46 = vpack.c.bf16 %v4489_v3, %v4489_v3  ;;  %v2833_v32 = vsub.f32 %v5840_v33, %v2804_v0  ;;  %v2928_v5 = vsel %vm2628_vm2, %v4489_v3, 0.0 }
 0x28b   : > { %v2794_v31 = vpop.permute.xlu0 %2793  ;;  %v3007_v27 = vunpack.c.l.b16 %v2983_v28  ;;  %4492 = vpow2.f32 %v2841_v11 }
 0x28c   : > { %v2831_v37 = vsub.f32 %v5776_v49, %v2794_v31  ;;  %v3084_v52 = vunpack.c.l.b16 %v2991_v46  ;;  %v2861_v54 = vmul.f32 1.442695, %v2833_v32 }
 0x28d   : > { %v3014_v25 = vpack.c.b16 %v3007_v27, %v3006_v17 }
 0x28e   : > { %v2857_v61 = vmul.f32 1.442695, %v2831_v37 }
 0x28f   : > { %4384 = vmatmul.msk.bf16.vlgmr.msra.gmra.mxu2 %vm2628_vm2, %v3014_v25 }
 0x290   : > { %v4491_v58 = vpop.eup %4490  ;;  %4494 = vpow2.f32 %v2857_v61 }
 0x291   : > { %2902 = vadd.xlane.f32.xlu0 %v2901_v59  ;;  %v2759_v19 = vpop.permute.xlu1 %2758  ;;  %2905 = vadd.xlane.f32.xlu1 %v2904_v24  ;;  %v2925_v8 = vsel %vm2628_vm2, %v4491_v58, 0.0  ;;  %v2990_v49 = vpack.c.bf16 %v4491_v58, %v4491_v58  ;;  %v4493_v16 = vpop.eup %4492  ;;  %4496 = vpow2.f32 %v2845_v4 }
 0x292   : > { %v2824_v51 = vsub.f32 %v5799_v7, %v2759_v19  ;;  %2926 = vadd.xlane.f32.xlu2 %v2925_v8  ;;  %v2907_v7 = vsel %vm2628_vm2, %v4493_v16, 0.0  ;;  %v2774_v23 = vpop.permute.xlu2 %2773  ;;  %v2984_v33 = vpack.c.bf16 %v4493_v16, %v4493_v16 }
 0x293   : > { %v3083_v62 = vunpack.c.l.b16 %v2990_v49  ;;  %v2827_v11 = vsub.f32 %v5895_v47, %v2774_v23 }
 0x294   : > { %v2843_v57 = vmul.f32 1.442695, %v2824_v51  ;;  %v3008_v17 = vunpack.c.l.b16 %v2984_v33 }
 0x295   : > { %v3091_v9 = vpack.c.b16 %v3084_v52, %v3083_v62  ;;  %v2849_v25 = vmul.f32 1.442695, %v2827_v11 }
 0x296   : > { %v4495_v18 = vpop.eup %4494  ;;  %4498 = vpow2.f32 %v2843_v57 }
 0x297   : > { %4388 = vmatmul.msk.bf16.vlgmr.msra.gmra.mxu3 %vm2628_vm2, %v3091_v9  ;;  %v2931_v45 = vsel %vm2628_vm2, %v4495_v18, 0.0  ;;  %v4497_v63 = vpop.eup %4496  ;;  %v2992_v61 = vpack.c.bf16 %v4495_v18, %v4495_v18 }
 0x298   : > { %v2913_v31 = vsel %vm2628_vm2, %v4497_v63, 0.0  ;;  %v2986_v57 = vpack.c.bf16 %v4497_v63, %v4497_v63 }
 0x299   : > { %2929 = vadd.xlane.f32.xlu0 %v2928_v5  ;;  %v2799_v12 = vpop.permute.xlu1 %2798  ;;  %2932 = vadd.xlane.f32.xlu1 %v2931_v45  ;;  %v3085_v4 = vunpack.c.l.b16 %v2992_v61 }
 0x29a   : > { %v2832_v43 = vsub.f32 %v5808_v40, %v2799_v12  ;;  %2908 = vadd.xlane.f32.xlu2 %v2907_v7  ;;  %v3010_v45 = vunpack.c.l.b16 %v2986_v57 }
 0x29b   : > { %v2819_v58 = vpop.permute.xlu2 %2818 }
 0x29c   : > { %v2859_v55 = vmul.f32 1.442695, %v2832_v43  ;;  %v4499_v34 = vpop.eup %4498 }
 0x29d   : > { %v2910_v1 = vsel %vm2628_vm2, %v4499_v34, 0.0  ;;  %v2985_v28 = vpack.c.bf16 %v4499_v34, %v4499_v34 }
 0x29e   : > { %4500 = vpow2.f32 %v2859_v55 }
 0x29f   : > { %4502 = vpow2.f32 %v2861_v54  ;;  %v3009_v27 = vunpack.c.l.b16 %v2985_v28 }
 0x2a1   : > { %2911 = vadd.xlane.f32.xlu0 %v2910_v1  ;;  %v2769_v40 = vpop.permute.xlu1 %2768  ;;  %2914 = vadd.xlane.f32.xlu1 %v2913_v31  ;;  %v3015_v37 = vpack.c.b16 %v3009_v27, %v3008_v17 }
 0x2a2   : > { %v2826_v3 = vsub.f32 %v5864_v60, %v2769_v40  ;;  %v2836_v60 = vsub.f32 %v5946_v15, %v2819_v58 }
 0x2a3   : > { %v2809_v29 = vpop.permute.xlu0 %2808  ;;  %4385 = vmatmul.msk.bf16.gmra.mxu2 %vm2628_vm2, %v3015_v37 }
 0x2a4   : > { %v4501_v46 = vpop.eup %4500  ;;  %v2847_v59 = vmul.f32 1.442695, %v2826_v3  ;;  %v2834_v24 = vsub.f32 %v5873_v48, %v2809_v29  ;;  %v2867_v52 = vmul.f32 1.442695, %v2836_v60 }
 0x2a5   : > { %v4503_v47 = vpop.eup %4502  ;;  %v2934_v19 = vsel %vm2628_vm2, %v4501_v46, 0.0  ;;  %v2993_v8 = vpack.c.bf16 %v4501_v46, %v4501_v46 }
 0x2a6   : > { %4504 = vpow2.f32 %v2847_v59  ;;  %v2863_v49 = vmul.f32 1.442695, %v2834_v24  ;;  %2935 = vadd.xlane.f32.xlu2 %v2934_v19  ;;  %v2937_v51 = vsel %vm2628_vm2, %v4503_v47, 0.0  ;;  %v2994_v34 = vpack.c.bf16 %v4503_v47, %v4503_v47 }
 0x2a7   : > { %4506 = vpow2.f32 %v2849_v25  ;;  %v3086_v0 = vunpack.c.l.b16 %v2993_v8 }
 0x2a8   : > { %4508 = vpow2.f32 %v2863_v49  ;;  %v3087_v17 = vunpack.c.l.b16 %v2994_v34 }
 0x2a9   : > { %2938 = vadd.xlane.f32.xlu0 %v2937_v51  ;;  %v6187_v62 = vpop.permute.xlu1 %3170  ;;  %v3092_v48 = vpack.c.b16 %v3086_v0, %v3085_v4  ;;  %4510 = vpow2.f32 %v2867_v52  ;;  %v6206_v4 = vpop.permute.xlu2 %3175 }
 0x2ab   : > { %4389 = vmatmul.msk.bf16.gmra.mxu3 %vm2628_vm2, %v3092_v48 }
 0x2ac   : > { %v4505_v16 = vpop.eup %4504 }
 0x2ad   : > { %v4507_v9 = vpop.eup %4506  ;;  %v2916_v18 = vsel %vm2628_vm2, %v4505_v16, 0.0  ;;  %v2987_v32 = vpack.c.bf16 %v4505_v16, %v4505_v16 }
 0x2ae   : > { %v4509_v5 = vpop.eup %4508  ;;  %2917 = vadd.xlane.f32.xlu2 %v2916_v18  ;;  %v2919_v7 = vsel %vm2628_vm2, %v4507_v9, 0.0 }
 0x2af   : > { %v2940_v15 = vsel %vm2628_vm2, %v4509_v5, 0.0  ;;  %v3011_v12 = vunpack.c.l.b16 %v2987_v32  ;;  %v2995_v63 = vpack.c.bf16 %v4509_v5, %v4509_v5  ;;  %v4511_v11 = vpop.eup %4510 }
 0x2b0   : > { %2941 = vadd.xlane.f32.xlu1 %v2940_v15  ;;  %v2946_v27 = vsel %vm2628_vm2, %v4511_v11, 0.0  ;;  %v2997_v24 = vpack.c.bf16 %v4511_v11, %v4511_v11 }
 0x2b1   : > { %2920 = vadd.xlane.f32.xlu0 %v2919_v7  ;;  %v2779_v43 = vpop.permute.xlu0 %2778  ;;  %v2814_v54 = vpop.permute.xlu1 %2813  ;;  %v3016_v23 = vpack.c.b16 %v3011_v12, %v3010_v45  ;;  %v3088_v31 = vunpack.c.l.b16 %v2995_v63  ;;  %v2869_v12 = vld [vmem:[#allocation3] sm:$0xff]  ;;  %v2870_v7 = vld [vmem:[#allocation3 + $0x8] sm:$0xff] }
 0x2b2   : > { %v2828_v55 = vsub.f32 %v5938_v36, %v2779_v43  ;;  %v2835_v33 = vsub.f32 %v5910_v6, %v2814_v54  ;;  %v2988_v36 = vpack.c.bf16 %v4507_v9, %v4507_v9  ;;  %v3090_v19 = vunpack.c.l.b16 %v2997_v24  ;;  %v6212_v48 = vpop.permute.xlu2 %3195  ;;  %v2877_v43 = vld [vmem:[#allocation3 + $0x40] sm:$0xff] }
 0x2b3   : > { %4386 = vmatmul.msk.bf16.gmra.mxu2 %vm2628_vm2, %v3016_v23  ;;  %v3093_v40 = vpack.c.b16 %v3088_v31, %v3087_v17  ;;  %v2885_v54 = vmul.f32 %v6080_v20, %v2869_v12  ;;  %v2886_v23 = vmul.f32 %v6108_v42, %v2870_v7  ;;  %v2878_v31 = vld [vmem:[#allocation3 + $0x48] sm:$0xff]  ;;  %v2879_v17 = vld [vmem:[#allocation3 + $0x50] sm:$0xff] }
 0x2b4   : > { %v2851_v1 = vmul.f32 1.442695, %v2828_v55  ;;  %v2865_v28 = vmul.f32 1.442695, %v2835_v33  ;;  %v3012_v46 = vunpack.c.l.b16 %v2988_v36  ;;  %v2893_v33 = vmul.f32 %v6137_v13, %v2877_v43 }
 0x2b5   : > { %v2894_v20 = vmul.f32 %v6113_v14, %v2878_v31  ;;  %v2895_v42 = vmul.f32 %v6130_v41, %v2879_v17  ;;  %v2873_v14 = vld [vmem:[#allocation3 + $0x20] sm:$0xff] }
 0x2b6   : > { %4512 = vpow2.f32 %v2851_v1 }
 0x2b7   : > { %4514 = vpow2.f32 %v2865_v28 }
 0x2b9   : > { %2947 = vadd.xlane.f32.xlu0 %v2946_v27  ;;  %v6202_v49 = vpop.permute.xlu0 %3180  ;;  %v6204_v60 = vpop.permute.xlu1 %3185  ;;  %v2871_v27 = vld [vmem:[#allocation3 + $0x10] sm:$0xff] }
 0x2ba   : > { %v6218_v16 = vpop.permute.xlu2 %3210  ;;  %v2887_v13 = vmul.f32 %v6100_v38, %v2871_v27 }
 0x2bb   : > { %4390 = vmatmul.msk.bf16.gmra.mxu3 %vm2628_vm2, %v3093_v40 }
 0x2bc   : > { %v4513_v3 = vpop.eup %4512 }
 0x2bd   : > { %v4515_v37 = vpop.eup %4514  ;;  %v2922_v6 = vsel %vm2628_vm2, %v4513_v3, 0.0  ;;  %v2989_v25 = vpack.c.bf16 %v4513_v3, %v4513_v3 }
 0x2be   : > { %2923 = vadd.xlane.f32.xlu1 %v2922_v6  ;;  %v2943_v29 = vsel %vm2628_vm2, %v4515_v37, 0.0  ;;  %v2996_v58 = vpack.c.bf16 %v4515_v37, %v4515_v37 }
 0x2bf   : > { %2944 = vadd.xlane.f32.xlu2 %v2943_v29  ;;  %v3013_v61 = vunpack.c.l.b16 %v2989_v25  ;;  %v3152_v25 = vld [vmem:[#allocation4] sm:$0xff] }
 0x2c0   : > { %v3089_v47 = vunpack.c.l.b16 %v2996_v58  ;;  %v2872_v58 = vld [vmem:[#allocation3 + $0x18] sm:$0xff] }
 0x2c1   : > { %v3017_v59 = vpack.c.b16 %v3013_v61, %v3012_v46  ;;  %v6208_v0 = vpop.permute.xlu0 %3190  ;;  %v6210_v51 = vpop.permute.xlu1 %3215  ;;  %v2888_v24 = vmul.f32 %v6102_v50, %v2872_v58  ;;  %v2875_v58 = vld [vmem:[#allocation3 + $0x30] sm:$0xff] }
 0x2c2   : > { %v3094_v8 = vpack.c.b16 %v3090_v19, %v3089_v47  ;;  %v6224_v32 = vpop.permute.xlu2 %3225  ;;  %v2889_v47 = vmul.f32 %v6115_v2, %v2873_v14 }
 0x2c3   : > { %4387 = vmatmul.msk.bf16.gmra.mxu2 %vm2628_vm2, %v3017_v59  ;;  %v3248_v59 = vmul.f32 %v6187_v62, %v3152_v25  ;;  %v3160_v62 = vld [vmem:[#allocation4 + $0x40] sm:$0xff]  ;;  %v3161_v25 = vld [vmem:[#allocation4 + $0x48] sm:$0xff] }
 0x2c4   : > { %v3256_v31 = vmul.f32 %v6218_v16, %v3160_v62  ;;  %v3257_v14 = vmul.f32 %v6210_v51, %v3161_v25  ;;  %v2884_v62 = vld [vmem:[#allocation3 + $0x78] sm:$0xff]  ;;  %v3156_v25 = vld [vmem:[#allocation4 + $0x20] sm:$0xff] }
 0x2c9   : > { %v6214_v52 = vpop.permute.xlu0 %3220  ;;  %v6216_v57 = vpop.permute.xlu1 %3230 }
 0x2ca   : > { %v6230_v45 = vpop.permute.xlu2 %3240 }
 0x2cb   : > { %4391 = vmatmul.msk.bf16.gmra.mxu3 %vm2628_vm2, %v3094_v8 }
 0x2d1   : > { %v6220_v9 = vpop.permute.xlu0 %3235  ;;  %v6222_v18 = vpop.permute.xlu1 %3200 }
 0x2d9   : > { %v6226_v5 = vpop.permute.xlu0 %3205  ;;  %v6228_v15 = vpop.permute.xlu1 %3245 }
 0x304   : > { %v2903_v63 = vpop.xlane.xlu0 %2902  ;;  %v2906_v55 = vpop.xlane.xlu1 %2905 }
 0x305   : > { %v2949_v34 = vadd.f32 %v2903_v63, %v2885_v54  ;;  %v2950_v1 = vadd.f32 %v2906_v55, %v2886_v23  ;;  %v2927_v28 = vpop.xlane.xlu2 %2926  ;;  %v2880_v23 = vld [vmem:[#allocation3 + $0x58] sm:$0xff]  ;;  %v3153_v55 = vld [vmem:[#allocation4 + $0x8] sm:$0xff] }
 0x306   : > { %v2957_v11 = vadd.f32 %v2927_v28, %v2893_v33  ;;  %v2896_v2 = vmul.f32 %v6148_v53, %v2880_v23 }
 0x307   : > { %2966 = vst.msk [vmem:[#allocation3] sm:$0xff] %vm294_vm3, %v2949_v34 }
 0x308   : > { %2967 = vst.msk [vmem:[#allocation3 + $0x8] sm:$0xff] %vm294_vm3, %v2950_v1  ;;  %v2881_v1 = vld [vmem:[#allocation3 + $0x60] sm:$0xff] }
 0x309   : > { %2974 = vst.msk [vmem:[#allocation3 + $0x40] sm:$0xff] %vm294_vm3, %v2957_v11  ;;  %v3249_v11 = vmul.f32 %v6206_v4, %v3153_v55 }
 0x30c   : > { %v2930_v40 = vpop.xlane.xlu0 %2929  ;;  %v2933_v3 = vpop.xlane.xlu1 %2932 }
 0x30d   : > { %v2958_v36 = vadd.f32 %v2930_v40, %v2894_v20  ;;  %v2959_v37 = vadd.f32 %v2933_v3, %v2895_v42  ;;  %v2909_v6 = vpop.xlane.xlu2 %2908  ;;  %v2897_v40 = vmul.f32 %v6132_v30, %v2881_v1  ;;  %v2882_v30 = vld [vmem:[#allocation3 + $0x68] sm:$0xff] }
 0x30e   : > { %v2951_v29 = vadd.f32 %v2909_v6, %v2887_v13  ;;  %v3315_v61 = vld [vmem:[#allocation3] sm:$0xff]  ;;  %v2874_v6 = vld [vmem:[#allocation3 + $0x28] sm:$0xff] }
 0x30f   : > { %2975 = vst.msk [vmem:[#allocation3 + $0x48] sm:$0xff] %vm294_vm3, %v2958_v36  ;;  %4516 = vrcp.f32 %v3315_v61  ;;  %v3316_v46 = vld [vmem:[#allocation3 + $0x8] sm:$0xff] }
 0x310   : > { %2976 = vst.msk [vmem:[#allocation3 + $0x50] sm:$0xff] %vm294_vm3, %v2959_v37  ;;  %4518 = vrcp.f32 %v3316_v46  ;;  %v3323_v41 = vld [vmem:[#allocation3 + $0x40] sm:$0xff]  ;;  %v2890_v46 = vmul.f32 %v6124_v26, %v2874_v6  ;;  %v3163_v6 = vld [vmem:[#allocation4 + $0x58] sm:$0xff] }
 0x311   : > { %2968 = vst.msk [vmem:[#allocation3 + $0x10] sm:$0xff] %vm294_vm3, %v2951_v29  ;;  %4520 = vrcp.f32 %v3323_v41 }
 0x312   : > { %v3055_v38 = vpop.f32.mrf.mxu2 }
 0x313   : > { %v3264_v19 = vadd.f32 %v3248_v59, %v3055_v38  ;;  %v2898_v38 = vmul.f32 %v6142_v56, %v2882_v30  ;;  %v3259_v30 = vmul.f32 %v6224_v32, %v3163_v6 }
 0x314   : > { %v2912_v8 = vpop.xlane.xlu0 %2911  ;;  %v2915_v12 = vpop.xlane.xlu1 %2914 }
 0x315   : > { %v4517_v7 = vpop.eup %4516  ;;  %v2952_v43 = vadd.f32 %v2912_v8, %v2888_v24  ;;  %v2953_v54 = vadd.f32 %v2915_v12, %v2889_v47  ;;  %3280 = vst.msk [vmem:[#allocation4] sm:$0xff] %vm327_vm1, %v3264_v19  ;;  %v3154_v47 = vld [vmem:[#allocation4 + $0x10] sm:$0xff]  ;;  %v2891_v8 = vmul.f32 %v6144_v10, %v2875_v58 }
 0x316   : > { %v4519_v63 = vpop.eup %4518  ;;  %3365 = vperm.xlu0 %4429, %v4517_v7   ;;  %v3324_v33 = vld [vmem:[#allocation3 + $0x48] sm:$0xff] }
 0x317   : > { %v4521_v34 = vpop.eup %4520  ;;  %2969 = vst.msk [vmem:[#allocation3 + $0x18] sm:$0xff] %vm294_vm3, %v2952_v43  ;;  %3370 = vperm.xlu2 %4431, %v4519_v63   ;;  %4522 = vrcp.f32 %v3324_v33  ;;  %v3325_v50 = vld [vmem:[#allocation3 + $0x50] sm:$0xff]  ;;  %v3250_v63 = vmul.f32 %v6202_v49, %v3154_v47 }
 0x318   : > { %2970 = vst.msk [vmem:[#allocation3 + $0x20] sm:$0xff] %vm294_vm3, %v2953_v54  ;;  %3405 = vperm.xlu1 %4430, %v4521_v34   ;;  %4524 = vrcp.f32 %v3325_v50  ;;  %v3317_v28 = vld [vmem:[#allocation3 + $0x10] sm:$0xff]  ;;  %v3155_v50 = vld [vmem:[#allocation4 + $0x18] sm:$0xff] }
 0x319   : > { %v2936_v17 = vpop.xlane.xlu2 %2935  ;;  %4526 = vrcp.f32 %v3317_v28  ;;  %v3162_v34 = vld [vmem:[#allocation4 + $0x50] sm:$0xff] }
 0x31a   : > { %v2960_v27 = vadd.f32 %v2936_v17, %v2896_v2  ;;  %v3057_v20 = vpop.f32.mrf.mxu2  ;;  %v3132_v42 = vpop.f32.mrf.mxu3  ;;  %v2900_v2 = vmul.f32 %v6153_v44, %v2884_v62  ;;  %v2876_v17 = vld [vmem:[#allocation3 + $0x38] sm:$0xff] }
 0x31b   : > { %v3265_v3 = vadd.f32 %v3249_v11, %v3057_v20  ;;  %v3272_v13 = vadd.f32 %v3256_v31, %v3132_v42  ;;  %v3258_v11 = vmul.f32 %v6214_v52, %v3162_v34  ;;  %v2883_v42 = vld [vmem:[#allocation3 + $0x70] sm:$0xff]  ;;  %v3159_v34 = vld [vmem:[#allocation4 + $0x38] sm:$0xff] }
 0x31c   : > { %2977 = vst.msk [vmem:[#allocation3 + $0x58] sm:$0xff] %vm294_vm3, %v2960_v27  ;;  %v2939_v53 = vpop.xlane.xlu0 %2938  ;;  %v3251_v27 = vmul.f32 %v6204_v60, %v3155_v50  ;;  %v2899_v52 = vmul.f32 %v6157_v22, %v2883_v42 }
 0x31d   : > { %v4523_v36 = vpop.eup %4522  ;;  %v2961_v37 = vadd.f32 %v2939_v53, %v2897_v40  ;;  %3281 = vst.msk [vmem:[#allocation4 + $0x8] sm:$0xff] %vm327_vm1, %v3265_v3  ;;  %v2892_v53 = vmul.f32 %v6151_v39, %v2876_v17  ;;  %v3252_v39 = vmul.f32 %v6208_v0, %v3156_v25 }
 0x31e   : > { %v4525_v4 = vpop.eup %4524  ;;  %3410 = vperm.xlu0 %4429, %v4523_v36   ;;  %3288 = vst.msk [vmem:[#allocation4 + $0x40] sm:$0xff] %vm327_vm1, %v3272_v13  ;;  %v3318_v16 = vld [vmem:[#allocation3 + $0x18] sm:$0xff] }
 0x31f   : > { %v4527_v29 = vpop.eup %4526  ;;  %2978 = vst.msk [vmem:[#allocation3 + $0x60] sm:$0xff] %vm294_vm3, %v2961_v37  ;;  %3415 = vperm.xlu2 %4431, %v4525_v4   ;;  %4528 = vrcp.f32 %v3318_v16  ;;  %v3319_v61 = vld [vmem:[#allocation3 + $0x20] sm:$0xff] }
 0x320   : > { %3375 = vperm.xlu1 %4430, %v4527_v29   ;;  %4530 = vrcp.f32 %v3319_v61 }
 0x321   : > { %v2918_v41 = vpop.xlane.xlu2 %2917 }
 0x322   : > { %v2954_v59 = vadd.f32 %v2918_v41, %v2890_v46  ;;  %v3134_v24 = vpop.f32.mrf.mxu3  ;;  %v3164_v41 = vld [vmem:[#allocation4 + $0x60] sm:$0xff] }
 0x323   : > { %v2942_v19 = vpop.xlane.xlu1 %2941  ;;  %v3273_v12 = vadd.f32 %v3257_v14, %v3134_v24  ;;  %v3326_v7 = vld [vmem:[#allocation3 + $0x58] sm:$0xff]  ;;  %v3260_v47 = vmul.f32 %v6216_v57, %v3164_v41 }
 0x324   : > { %2971 = vst.msk [vmem:[#allocation3 + $0x28] sm:$0xff] %vm294_vm3, %v2954_v59  ;;  %v2962_v43 = vadd.f32 %v2942_v19, %v2898_v38  ;;  %v2921_v26 = vpop.xlane.xlu0 %2920  ;;  %4532 = vrcp.f32 %v3326_v7  ;;  %v3157_v59 = vld [vmem:[#allocation4 + $0x28] sm:$0xff] }
 0x325   : > { %v4529_v54 = vpop.eup %4528  ;;  %v2955_v23 = vadd.f32 %v2921_v26, %v2891_v8  ;;  %3289 = vst.msk [vmem:[#allocation4 + $0x48] sm:$0xff] %vm327_vm1, %v3273_v12  ;;  %v3253_v0 = vmul.f32 %v6212_v48, %v3157_v59 }
 0x326   : > { %v4531_v51 = vpop.eup %4530  ;;  %2979 = vst.msk [vmem:[#allocation3 + $0x68] sm:$0xff] %vm294_vm3, %v2962_v43  ;;  %3380 = vperm.xlu0 %4429, %v4529_v54   ;;  %v3327_v56 = vld [vmem:[#allocation3 + $0x60] sm:$0xff]  ;;  %v3060_v10 = vpop.f32.mrf.mxu2  ;;  %v3165_v54 = vld [vmem:[#allocation4 + $0x68] sm:$0xff] }
 0x327   : > { %2972 = vst.msk [vmem:[#allocation3 + $0x30] sm:$0xff] %vm294_vm3, %v2955_v23  ;;  %3385 = vperm.xlu2 %4431, %v4531_v51   ;;  %4534 = vrcp.f32 %v3327_v56  ;;  %v3266_v55 = vadd.f32 %v3250_v63, %v3060_v10  ;;  %v3158_v51 = vld [vmem:[#allocation4 + $0x30] sm:$0xff]  ;;  %v3261_v57 = vmul.f32 %v6220_v9, %v3165_v54 }
 0x328   : > { %v3254_v48 = vmul.f32 %v6222_v18, %v3158_v51 }
 0x329   : > { %3282 = vst.msk [vmem:[#allocation4 + $0x10] sm:$0xff] %vm327_vm1, %v3266_v55 }
 0x32a   : > { %v4533_v33 = vpop.eup %4532 }
 0x32b   : > { %3420 = vperm.xlu1 %4430, %v4533_v33   ;;  %v3320_v49 = vld [vmem:[#allocation3 + $0x28] sm:$0xff]  ;;  %v3166_v33 = vld [vmem:[#allocation4 + $0x70] sm:$0xff] }
 0x32c   : > { %v2948_v1 = vpop.xlane.xlu0 %2947  ;;  %4536 = vrcp.f32 %v3320_v49  ;;  %v3262_v50 = vmul.f32 %v6230_v45, %v3166_v33  ;;  %v3348_v45 = vld [vmem:[#allocation4 + $0x8] sm:$0xff] }
 0x32d   : > { %v4535_v28 = vpop.eup %4534  ;;  %v2964_v31 = vadd.f32 %v2948_v1, %v2900_v2  ;;  %v3328_v43 = vld [vmem:[#allocation3 + $0x68] sm:$0xff]  ;;  %v3255_v2 = vmul.f32 %v6226_v5, %v3159_v34 }
 0x32e   : > { %3425 = vperm.xlu0 %4429, %v4535_v28   ;;  %v3137_v20 = vpop.f32.mrf.mxu3  ;;  %v3321_v40 = vld [vmem:[#allocation3 + $0x30] sm:$0xff]  ;;  %v3062_v3 = vpop.f32.mrf.mxu2  ;;  %v3167_v28 = vld [vmem:[#allocation4 + $0x78] sm:$0xff]  ;;  %v3356_v51 = vld [vmem:[#allocation4 + $0x48] sm:$0xff] }
 0x32f   : > { %2981 = vst.msk [vmem:[#allocation3 + $0x78] sm:$0xff] %vm294_vm3, %v2964_v31  ;;  %v3274_v13 = vadd.f32 %v3258_v11, %v3137_v20  ;;  %4538 = vrcp.f32 %v3321_v40  ;;  %v3267_v44 = vadd.f32 %v3251_v27, %v3062_v3  ;;  %v3263_v11 = vmul.f32 %v6228_v15, %v3167_v28 }
 0x331   : > { %3290 = vst.msk [vmem:[#allocation4 + $0x50] sm:$0xff] %vm327_vm1, %v3274_v13  ;;  %v2924_v36 = vpop.xlane.xlu1 %2923 }
 0x332   : > { %v4537_v37 = vpop.eup %4536  ;;  %3283 = vst.msk [vmem:[#allocation4 + $0x18] sm:$0xff] %vm327_vm1, %v3267_v44  ;;  %v2956_v60 = vadd.f32 %v2924_v36, %v2892_v53  ;;  %v2945_v4 = vpop.xlane.xlu2 %2944 }
 0x333   : > { %v2963_v16 = vadd.f32 %v2945_v4, %v2899_v52  ;;  %3390 = vperm.xlu1 %4430, %v4537_v37   ;;  %v3347_v37 = vld [vmem:[#allocation4] sm:$0xff] }
 0x334   : > { %2973 = vst.msk [vmem:[#allocation3 + $0x38] sm:$0xff] %vm294_vm3, %v2956_v60 }
 0x335   : > { %v4539_v29 = vpop.eup %4538  ;;  %2980 = vst.msk [vmem:[#allocation3 + $0x70] sm:$0xff] %vm294_vm3, %v2963_v16  ;;  %v3355_v16 = vld [vmem:[#allocation4 + $0x40] sm:$0xff] }
 0x336   : > { %3395 = vperm.xlu0 %4429, %v4539_v29   ;;  %v3139_v22 = vpop.f32.mrf.mxu3  ;;  %v3330_v61 = vld [vmem:[#allocation3 + $0x78] sm:$0xff]  ;;  %v3065_v46 = vpop.f32.mrf.mxu2 }
 0x337   : > { %v3275_v58 = vadd.f32 %v3259_v30, %v3139_v22  ;;  %4540 = vrcp.f32 %v3330_v61  ;;  %v3268_v14 = vadd.f32 %v3252_v39, %v3065_v46 }
 0x338   : > { %v3357_v5 = vld [vmem:[#allocation4 + $0x50] sm:$0xff] }
 0x339   : > { %3291 = vst.msk [vmem:[#allocation4 + $0x58] sm:$0xff] %vm327_vm1, %v3275_v58 }
 0x33a   : > { %3284 = vst.msk [vmem:[#allocation4 + $0x20] sm:$0xff] %vm327_vm1, %v3268_v14 }
 0x33b   : > { %v3322_v38 = vld [vmem:[#allocation3 + $0x38] sm:$0xff] }
 0x33c   : > { %4542 = vrcp.f32 %v3322_v38  ;;  %v3329_v32 = vld [vmem:[#allocation3 + $0x70] sm:$0xff] }
 0x33d   : > { %v4541_v24 = vpop.eup %4540  ;;  %4544 = vrcp.f32 %v3329_v32 }
 0x33e   : > { %3440 = vperm.xlu0 %4429, %v4541_v24   ;;  %v3142_v19 = vpop.f32.mrf.mxu3  ;;  %v3067_v8 = vpop.f32.mrf.mxu2  ;;  %4546 = vrcp.f32 %v3328_v43 }
 0x33f   : > { %v3276_v12 = vadd.f32 %v3260_v47, %v3142_v19  ;;  %v3269_v7 = vadd.f32 %v3253_v0, %v3067_v8 }
 0x341   : > { %3292 = vst.msk [vmem:[#allocation4 + $0x60] sm:$0xff] %vm327_vm1, %v3276_v12  ;;  %v3351_v36 = vld [vmem:[#allocation4 + $0x20] sm:$0xff] }
 0x342   : > { %v4543_v26 = vpop.eup %4542  ;;  %3285 = vst.msk [vmem:[#allocation4 + $0x28] sm:$0xff] %vm327_vm1, %v3269_v7 }
 0x343   : > { %v4545_v23 = vpop.eup %4544  ;;  %3400 = vperm.xlu2 %4431, %v4543_v26  }
 0x344   : > { %3435 = vperm.xlu1 %4430, %v4545_v23   ;;  %v4547_v62 = vpop.eup %4546 }
 0x346   : > { %v3144_v63 = vpop.f32.mrf.mxu3  ;;  %v3070_v56 = vpop.f32.mrf.mxu2 }
 0x347   : > { %v3277_v10 = vadd.f32 %v3261_v57, %v3144_v63  ;;  %v3270_v55 = vadd.f32 %v3254_v48, %v3070_v56 }
 0x349   : > { %3293 = vst.msk [vmem:[#allocation4 + $0x68] sm:$0xff] %vm327_vm1, %v3277_v10 }
 0x34a   : > { %3286 = vst.msk [vmem:[#allocation4 + $0x30] sm:$0xff] %vm327_vm1, %v3270_v55 }
 0x34b   : > { %3430 = vperm.xlu2 %4431, %v4547_v62  }
 0x34e   : > { %v3147_v49 = vpop.f32.mrf.mxu3  ;;  %v3072_v9 = vpop.f32.mrf.mxu2 }
 0x34f   : > { %v3278_v1 = vadd.f32 %v3262_v50, %v3147_v49  ;;  %v3271_v18 = vadd.f32 %v3255_v2, %v3072_v9 }
 0x351   : > { %3294 = vst.msk [vmem:[#allocation4 + $0x70] sm:$0xff] %vm327_vm1, %v3278_v1 }
 0x352   : > { %3287 = vst.msk [vmem:[#allocation4 + $0x38] sm:$0xff] %vm327_vm1, %v3271_v18  ;;  %v3349_v18 = vld [vmem:[#allocation4 + $0x10] sm:$0xff] }
 0x356   : > { %v3149_v31 = vpop.f32.mrf.mxu3 }
 0x357   : > { %v3279_v17 = vadd.f32 %v3263_v11, %v3149_v31 }
 0x359   : > { %3295 = vst.msk [vmem:[#allocation4 + $0x78] sm:$0xff] %vm327_vm1, %v3279_v17 }
 0x371   : > { %v3371_v27 = vpop.permute.xlu2 %3370 }
 0x372   : > { %v3444_v42 = vmul.f32 %v3371_v27, %v3348_v45 }
 0x374   : > { %v3512_v3 = vrot.slane %v3444_v42, 4  ;;  %v3517_v4 = vperm.slane %v3444_v42, %v4697_v21 }
 0x376   : > { %v3513_v53 = vsel %vm430_vm0, 0.0, %v3512_v3  ;;  %v3534_v24 = vrot.slane %v3517_v4, 4 }
 0x377   : > { %v6300_v25 = vperm.slane %v3513_v53, %v4697_v21 }
 0x379   : > { %v3416_v20 = vpop.permute.xlu2 %3415  ;;  %v3546_v47 = vrot.slane %v6300_v25, 4 }
 0x37a   : > { %v3453_v40 = vmul.f32 %v3416_v20, %v3357_v5 }
 0x37c   : > { %v3574_v13 = vrot.slane %v3453_v40, 4  ;;  %v6303_v30 = vperm.slane %v3453_v40, %v4697_v21 }
 0x37e   : > { %v3575_v15 = vsel %vm430_vm0, 0.0, %v3574_v13  ;;  %v3584_v19 = vrot.slane %v6303_v30, 4 }
 0x37f   : > { %v6307_v46 = vperm.slane %v3575_v15, %v4697_v21 }
 0x381   : > { %v3386_v44 = vpop.permute.xlu2 %3385  ;;  %v3596_v48 = vrot.slane %v6307_v46, 4 }
 0x382   : > { %v3447_v52 = vmul.f32 %v3386_v44, %v3351_v36 }
 0x384   : > { %v3668_v58 = vrot.slane %v3447_v52, 4  ;;  %v6310_v14 = vperm.slane %v3447_v52, %v4697_v21 }
 0x386   : > { %v3669_v43 = vsel %vm430_vm0, 0.0, %v3668_v58  ;;  %v3690_v63 = vrot.slane %v6310_v14, 4 }
 0x387   : > { %v6328_v2 = vperm.slane %v3669_v43, %v4697_v21 }
 0x388   : > { %v3366_v6 = vpop.permute.xlu0 %3365 }
 0x389   : > { %v3443_v60 = vmul.f32 %v3366_v6, %v3347_v37  ;;  %v3702_v37 = vrot.slane %v6328_v2, 4 }
 0x38a   : > { %v3406_v29 = vpop.permute.xlu1 %3405 }
 0x38b   : > { %v3459_v39 = vrot.slane %v3443_v60, 4  ;;  %v3465_v22 = vperm.slane %v3443_v60, %v4697_v21  ;;  %v3451_v61 = vmul.f32 %v3406_v29, %v3355_v16 }
 0x38d   : > { %v3461_v41 = vsel %vm430_vm0, 0.0, %v3459_v39  ;;  %v3482_v59 = vrot.slane %v3465_v22, 4  ;;  %v3470_v38 = vrot.slane %v3451_v61, 4  ;;  %v3475_v32 = vperm.slane %v3451_v61, %v4697_v21 }
 0x38e   : > { %v3469_v0 = vperm.slane %v3461_v41, %v4697_v21 }
 0x38f   : > { %v3471_v8 = vsel %vm430_vm0, 0.0, %v3470_v38  ;;  %v3480_v12 = vrot.slane %v3475_v32, 4  ;;  %v3483_v7 = vsel %vm430_vm0, %v3475_v32, %v3482_v59 }
 0x390   : > { %v3494_v26 = vrot.slane %v3469_v0, 4  ;;  %v3479_v54 = vperm.slane %v3471_v8, %v4697_v21  ;;  %v3491_v23 = vperm.slane %v3483_v7, %v4703_v35  ;;  %v3411_v57 = vpop.permute.xlu0 %3410  ;;  %v3350_v8 = vld [vmem:[#allocation4 + $0x18] sm:$0xff] }
 0x391   : > { %v3481_v56 = vsel %vm430_vm0, %v3480_v12, %v3465_v22  ;;  %v3452_v10 = vmul.f32 %v3411_v57, %v3356_v51 }
 0x392   : > { %v3487_v55 = vperm.slane %v3481_v56, %v4703_v35  ;;  %v3492_v62 = vrot.slane %v3479_v54, 4  ;;  %v3495_v33 = vsel %vm430_vm0, %v3479_v54, %v3494_v26  ;;  %v3506_v34 = vrot.slane %v3491_v23, 4  ;;  %v3376_v50 = vpop.permute.xlu1 %3375 }
 0x393   : > { %v3503_v49 = vperm.slane %v3495_v33, %v4703_v35  ;;  %v3522_v9 = vrot.slane %v3452_v10, 4  ;;  %v3527_v1 = vperm.slane %v3452_v10, %v4697_v21  ;;  %v3445_v17 = vmul.f32 %v3376_v50, %v3349_v18 }
 0x394   : > { %v3493_v28 = vsel %vm430_vm0, %v3492_v62, %v3469_v0  ;;  %v3504_v11 = vrot.slane %v3487_v55, 4  ;;  %v3507_v31 = vsel %vm430_vm0, 0.0, %v3506_v34  ;;  %v6340_v45 = vsel %vm430_vm0, %v3506_v34, %v3487_v55 }
 0x395   : > { %v6335_v27 = vperm.slane %v3493_v28, %v4703_v35  ;;  %v6337_v20 = vrot.slane %v3503_v49, 4  ;;  %v3881_v42 = vrot.slane %v3507_v31, 4  ;;  %v3523_v40 = vsel %vm430_vm0, 0.0, %v3522_v9 }
 0x396   : > { %v3505_v5 = vsel %vm430_vm0, 0.0, %v3504_v11  ;;  %v3532_v3 = vrot.slane %v3527_v1, 4  ;;  %v3535_v13 = vsel %vm430_vm0, %v3527_v1, %v3534_v24  ;;  %v3531_v52 = vperm.slane %v3523_v40, %v4697_v21 }
 0x397   : > { %v3508_v44 = vrot.slane %v6335_v27, 4  ;;  %v6348_v53 = vsel %vm430_vm0, 0.0, %v6337_v20  ;;  %v3882_v36 = vsel %vm430_vm0, %v3881_v42, %v3505_v5  ;;  %v3880_v6 = vperm.slane %v6340_v45, %v4697_v21 }
 0x398   : > { %v3533_v15 = vsel %vm430_vm0, %v3532_v3, %v3517_v4  ;;  %v3543_v60 = vperm.slane %v3535_v13, %v4703_v35  ;;  %v3381_v16 = vpop.permute.xlu0 %3380  ;;  %v3886_v29 = vperm.slane %v3882_v36, %v4697_v21  ;;  %v3544_v22 = vrot.slane %v3531_v52, 4 }
 0x399   : > { %v3539_v39 = vperm.slane %v3533_v15, %v4703_v35  ;;  %v3547_v61 = vsel %vm430_vm0, %v3531_v52, %v3546_v47  ;;  %v3892_v58 = vrot.slane %v6348_v53, 4  ;;  %v3564_v38 = vrot.slane %v3445_v17, 4  ;;  %v3354_v52 = vld [vmem:[#allocation4 + $0x38] sm:$0xff] }
 0x39a   : > { %v3555_v41 = vperm.slane %v3547_v61, %v4703_v35  ;;  %v3558_v59 = vrot.slane %v3543_v60, 4  ;;  %v6363_v32 = vsel %vm430_vm0, 0.0, %v3508_v44  ;;  %v3545_v4 = vsel %vm430_vm0, %v3544_v22, %v6300_v25 }
 0x39b   : > { %v3556_v24 = vrot.slane %v3539_v39, 4  ;;  %v3569_v0 = vperm.slane %v3445_v17, %v4697_v21  ;;  %v6369_v12 = vperm.slane %v3545_v4, %v4703_v35  ;;  %v3446_v43 = vmul.f32 %v3381_v16, %v3350_v8 }
 0x39c   : > { %v3559_v47 = vsel %vm430_vm0, 0.0, %v3558_v59  ;;  %v6372_v7 = vrot.slane %v3555_v41, 4  ;;  %v6376_v54 = vsel %vm430_vm0, %v3558_v59, %v3539_v39  ;;  %v3565_v25 = vsel %vm430_vm0, 0.0, %v3564_v38  ;;  %v3359_v39 = vld [vmem:[#allocation4 + $0x60] sm:$0xff] }
 0x39d   : > { %v3557_v26 = vsel %vm430_vm0, 0.0, %v3556_v24  ;;  %v3919_v23 = vrot.slane %v3559_v47, 4  ;;  %v6379_v51 = vrot.slane %v3886_v29, 4  ;;  %v3560_v57 = vrot.slane %v6369_v12, 4  ;;  %v3401_v31 = vpop.permute.xlu2 %3400  ;;  %v3421_v3 = vpop.permute.xlu1 %3420 }
 0x39e   : > { %v3573_v56 = vperm.slane %v3565_v25, %v4697_v21  ;;  %v3585_v10 = vsel %vm430_vm0, %v3584_v19, %v3569_v0  ;;  %v6388_v55 = vsel %vm430_vm0, 0.0, %v6372_v7  ;;  %v3586_v33 = vrot.slane %v3569_v0, 4 }
 0x39f   : > { %v3920_v62 = vsel %vm430_vm0, %v3919_v23, %v3557_v26  ;;  %v3591_v34 = vperm.slane %v3585_v10, %v4703_v35  ;;  %v3918_v50 = vperm.slane %v6376_v54, %v4697_v21  ;;  %v3616_v11 = vrot.slane %v3446_v43, 4 }
 0x3a0   : > { %v3924_v49 = vperm.slane %v3920_v62, %v4697_v21  ;;  %v3597_v9 = vsel %vm430_vm0, %v3596_v48, %v3573_v56  ;;  %v3598_v1 = vrot.slane %v3573_v56, 4  ;;  %v3587_v19 = vsel %vm430_vm0, %v6303_v30, %v3586_v33  ;;  %v3426_v48 = vpop.permute.xlu0 %3425 }
 0x3a1   : > { %v3603_v18 = vperm.slane %v3597_v9, %v4703_v35  ;;  %v3608_v28 = vrot.slane %v3591_v34, 4  ;;  %v3930_v17 = vrot.slane %v6388_v55, 4  ;;  %v3595_v42 = vperm.slane %v3587_v19, %v4703_v35 }
 0x3a2   : > { %v3599_v5 = vsel %vm430_vm0, %v6307_v46, %v3598_v1  ;;  %v3621_v40 = vperm.slane %v3446_v43, %v4697_v21  ;;  %v6407_v13 = vsel %vm430_vm0, 0.0, %v3560_v57  ;;  %v3617_v36 = vsel %vm430_vm0, 0.0, %v3616_v11  ;;  %v3358_v46 = vld [vmem:[#allocation4 + $0x58] sm:$0xff] }
 0x3a3   : > { %v3607_v30 = vperm.slane %v3599_v5, %v4703_v35  ;;  %v3612_v44 = vrot.slane %v3603_v18, 4  ;;  %v6411_v15 = vrot.slane %v3924_v49, 4  ;;  %v3610_v60 = vrot.slane %v3595_v42, 4 }
 0x3a4   : > { %v3625_v16 = vperm.slane %v3617_v36, %v4697_v21  ;;  %v3450_v29 = vmul.f32 %v3401_v31, %v3354_v52  ;;  %v3609_v22 = vsel %vm430_vm0, 0.0, %v3608_v28  ;;  %v3454_v41 = vmul.f32 %v3421_v3, %v3358_v46 }
 0x3a5   : > { %v3614_v61 = vrot.slane %v3607_v30, 4  ;;  %v3455_v59 = vmul.f32 %v3426_v48, %v3359_v39  ;;  %v3611_v38 = vsel %vm430_vm0, 0.0, %v3610_v60  ;;  %v6417_v4 = vsel %vm430_vm0, %v3610_v60, %v3591_v34 }
 0x3a6   : > { %v3638_v24 = vrot.slane %v3621_v40, 4  ;;  %v3824_v0 = vrot.slane %v3450_v29, 4  ;;  %v6420_v8 = vsel %vm430_vm0, 0.0, %v3612_v44  ;;  %v3957_v43 = vrot.slane %v3611_v38, 4 }
 0x3a7   : > { %v6423_v47 = vsel %vm430_vm0, 0.0, %v3614_v61  ;;  %v3650_v26 = vrot.slane %v3625_v16, 4  ;;  %v3956_v23 = vperm.slane %v6417_v4, %v4697_v21  ;;  %v6429_v57 = vperm.slane %v3450_v29, %v4697_v21 }
 0x3a8   : > { %v3825_v25 = vsel %vm430_vm0, 0.0, %v3824_v0  ;;  %v3626_v56 = vrot.slane %v3454_v41, 4  ;;  %v3958_v10 = vsel %vm430_vm0, %v3957_v43, %v3609_v22  ;;  %v6433_v62 = vsel %vm430_vm0, %v3614_v61, %v3603_v18 }
 0x3a9   : > { %v3631_v33 = vperm.slane %v3454_v41, %v4697_v21  ;;  %v3678_v34 = vrot.slane %v3455_v59, 4  ;;  %v3968_v49 = vrot.slane %v6423_v47, 4  ;;  %v6438_v9 = vperm.slane %v3825_v25, %v4697_v21 }
 0x3aa   : > { %v3627_v1 = vsel %vm430_vm0, 0.0, %v3626_v56  ;;  %v3683_v19 = vperm.slane %v3455_v59, %v4697_v21  ;;  %v3962_v28 = vperm.slane %v3958_v10, %v4697_v21  ;;  %v3846_v42 = vrot.slane %v6429_v57, 4 }
 0x3ab   : > { %v3635_v11 = vperm.slane %v3627_v1, %v4697_v21  ;;  %v3636_v31 = vrot.slane %v3631_v33, 4  ;;  %v3639_v18 = vsel %vm430_vm0, %v3631_v33, %v3638_v24  ;;  %v3679_v3 = vsel %vm430_vm0, 0.0, %v3678_v34  ;;  %v3431_v33 = vpop.permute.xlu2 %3430  ;;  %v3391_v34 = vpop.permute.xlu1 %3390 }
 0x3ac   : > { %v3647_v5 = vperm.slane %v3639_v18, %v4703_v35  ;;  %v3688_v48 = vrot.slane %v3683_v19, 4  ;;  %v3687_v52 = vperm.slane %v3679_v3, %v4697_v21  ;;  %v3691_v61 = vsel %vm430_vm0, %v3683_v19, %v3690_v63 }
 0x3ad   : > { %v3637_v30 = vsel %vm430_vm0, %v3636_v31, %v3621_v40  ;;  %v3648_v44 = vrot.slane %v3635_v11, 4  ;;  %v3651_v36 = vsel %vm430_vm0, %v3635_v11, %v3650_v26  ;;  %v6472_v63 = vrot.slane %v3962_v28, 4  ;;  %v3396_v31 = vpop.permute.xlu0 %3395 }
 0x3ae   : > { %v3643_v60 = vperm.slane %v3637_v30, %v4703_v35  ;;  %v3659_v29 = vperm.slane %v3651_v36, %v4703_v35  ;;  %v3662_v46 = vrot.slane %v3647_v5, 4  ;;  %v3689_v39 = vsel %vm430_vm0, %v3688_v48, %v6310_v14  ;;  %v3360_v30 = vld [vmem:[#allocation4 + $0x68] sm:$0xff] }
 0x3af   : > { %v3649_v22 = vsel %vm430_vm0, %v3648_v44, %v3625_v16  ;;  %v3695_v40 = vperm.slane %v3689_v39, %v4703_v35  ;;  %v3700_v41 = vrot.slane %v3687_v52, 4  ;;  %v3699_v16 = vperm.slane %v3691_v61, %v4703_v35  ;;  %v3352_v44 = vld [vmem:[#allocation4 + $0x28] sm:$0xff] }
 0x3b0   : > { %v6461_v59 = vperm.slane %v3649_v22, %v4703_v35  ;;  %v3660_v38 = vrot.slane %v3643_v60, 4  ;;  %v3663_v24 = vsel %vm430_vm0, 0.0, %v3662_v46  ;;  %v6464_v0 = vrot.slane %v3659_v29, 4 }
 0x3b1   : > { %v6467_v43 = vsel %vm430_vm0, %v3662_v46, %v3643_v60  ;;  %v3995_v26 = vrot.slane %v3663_v24, 4  ;;  %v3701_v14 = vsel %vm430_vm0, %v3700_v41, %v6328_v2  ;;  %v3858_v25 = vrot.slane %v6438_v9, 4 }
 0x3b2   : > { %v3661_v56 = vsel %vm430_vm0, 0.0, %v3660_v38  ;;  %v3664_v10 = vrot.slane %v6461_v59, 4  ;;  %v6479_v1 = vsel %vm430_vm0, 0.0, %v6464_v0  ;;  %v3703_v11 = vsel %vm430_vm0, %v3687_v52, %v3702_v37  ;;  %v3353_v37 = vld [vmem:[#allocation4 + $0x30] sm:$0xff] }
 0x3b3   : > { %v3996_v19 = vsel %vm430_vm0, %v3995_v26, %v3661_v56  ;;  %v6486_v28 = vperm.slane %v3701_v14, %v4703_v35  ;;  %v3994_v18 = vperm.slane %v6467_v43, %v4697_v21  ;;  %v3711_v3 = vperm.slane %v3703_v11, %v4703_v35 }
 0x3b4   : > { %v4000_v5 = vperm.slane %v3996_v19, %v4697_v21  ;;  %v3712_v48 = vrot.slane %v3695_v40, 4  ;;  %v3714_v36 = vrot.slane %v3699_v16, 4  ;;  %v3456_v2 = vmul.f32 %v3431_v33, %v3360_v30 }
 0x3b5   : > { %v3716_v60 = vrot.slane %v6486_v28, 4  ;;  %v3448_v29 = vmul.f32 %v3391_v34, %v3352_v44  ;;  %v6494_v52 = vsel %vm430_vm0, 0.0, %v3664_v10  ;;  %v4006_v46 = vrot.slane %v6479_v1, 4 }
 0x3b6   : > { %v6497_v39 = vrot.slane %v3711_v3, 4  ;;  %v3449_v22 = vmul.f32 %v3396_v31, %v3353_v37  ;;  %v6499_v61 = vrot.slane %v4000_v5, 4  ;;  %v3713_v41 = vsel %vm430_vm0, 0.0, %v3712_v48 }
 0x3b7   : > { %v3715_v38 = vsel %vm430_vm0, 0.0, %v3714_v36  ;;  %v3730_v24 = vrot.slane %v3456_v2, 4  ;;  %v6504_v26 = vsel %vm430_vm0, 0.0, %v3716_v60  ;;  %v6507_v16 = vsel %vm430_vm0, %v3714_v36, %v3695_v40 }
 0x3b8   : > { %v4033_v14 = vrot.slane %v3715_v38, 4  ;;  %v3735_v56 = vperm.slane %v3456_v2, %v4697_v21  ;;  %v6512_v10 = vsel %vm430_vm0, 0.0, %v6497_v39  ;;  %v3720_v34 = vrot.slane %v3448_v29, 4 }
 0x3b9   : > { %v3731_v33 = vsel %vm430_vm0, 0.0, %v3730_v24  ;;  %v3725_v19 = vperm.slane %v3448_v29, %v4697_v21  ;;  %v3772_v3 = vrot.slane %v3449_v22, 4  ;;  %v6521_v44 = vperm.slane %v3449_v22, %v4697_v21 }
 0x3ba   : > { %v4034_v11 = vsel %vm430_vm0, %v4033_v14, %v3713_v41  ;;  %v3739_v31 = vperm.slane %v3731_v33, %v4697_v21  ;;  %v3740_v5 = vrot.slane %v3735_v56, 4  ;;  %v3721_v48 = vsel %vm430_vm0, 0.0, %v3720_v34 }
 0x3bb   : > { %v4038_v40 = vperm.slane %v4034_v11, %v4697_v21  ;;  %v3742_v30 = vrot.slane %v3725_v19, 4  ;;  %v3729_v60 = vperm.slane %v3721_v48, %v4697_v21  ;;  %v3773_v29 = vsel %vm430_vm0, 0.0, %v3772_v3 }
 0x3bc   : > { %v3752_v36 = vrot.slane %v3739_v31, 4  ;;  %v3741_v2 = vsel %vm430_vm0, %v3740_v5, %v3725_v19  ;;  %v4032_v37 = vperm.slane %v6507_v16, %v4697_v21  ;;  %v6531_v24 = vperm.slane %v3773_v29, %v4697_v21 }
 0x3bd   : > { %v3743_v41 = vsel %vm430_vm0, %v3735_v56, %v3742_v30  ;;  %v3747_v38 = vperm.slane %v3741_v2, %v4703_v35  ;;  %v4044_v22 = vrot.slane %v6512_v10, 4  ;;  %v3754_v34 = vrot.slane %v3729_v60, 4 }
 0x3be   : > { %v3751_v14 = vperm.slane %v3743_v41, %v4703_v35  ;;  %v3753_v33 = vsel %vm430_vm0, %v3752_v36, %v3729_v60  ;;  %v6536_v19 = vrot.slane %v4038_v40, 4  ;;  %v3887_v56 = vsel %vm430_vm0, %v6337_v20, %v6335_v27 }
 0x3bf   : > { %v3759_v11 = vperm.slane %v3753_v33, %v4703_v35  ;;  %v3764_v5 = vrot.slane %v3747_v38, 4  ;;  %v3755_v3 = vsel %vm430_vm0, %v3739_v31, %v3754_v34  ;;  %v3794_v30 = vrot.slane %v6521_v44, 4 }
 0x3c0   : > { %v3766_v48 = vrot.slane %v3751_v14, 4  ;;  %v3893_v36 = vsel %vm430_vm0, %v3892_v58, %v6363_v32  ;;  %v3763_v40 = vperm.slane %v3755_v3, %v4703_v35  ;;  %v3806_v2 = vrot.slane %v6531_v24, 4 }
 0x3c1   : > { %v3768_v60 = vrot.slane %v3759_v11, 4  ;;  %v3897_v29 = vperm.slane %v3893_v36, %v4697_v21  ;;  %v3891_v20 = vperm.slane %v3887_v56, %v4697_v21  ;;  %v3899_v53 = vsel %vm430_vm0, %v6379_v51, %v3880_v6  ;;  %v3441_v6 = vpop.permute.xlu0 %3440  ;;  %v3436_v56 = vpop.permute.xlu1 %3435 }
 0x3c2   : > { %v3767_v41 = vsel %vm430_vm0, 0.0, %v3766_v48  ;;  %v6553_v27 = vsel %vm430_vm0, %v3766_v48, %v3747_v38  ;;  %v3765_v58 = vsel %vm430_vm0, 0.0, %v3764_v5  ;;  %v3770_v32 = vrot.slane %v3763_v40, 4 }
 0x3c3   : > { %v4071_v31 = vrot.slane %v3767_v41, 4  ;;  %v3925_v14 = vsel %vm430_vm0, %v6372_v7, %v6369_v12  ;;  %v6566_v33 = vsel %vm430_vm0, 0.0, %v3768_v60  ;;  %v6569_v38 = vperm.slane %v3899_v53, %v4703_v35  ;;  %v3361_v41 = vld [vmem:[#allocation4 + $0x70] sm:$0xff] }
 0x3c4   : > { %v3904_v34 = vrot.slane %v3897_v29, 4  ;;  %v3931_v45 = vsel %vm430_vm0, %v3930_v17, %v6407_v13  ;;  %v6576_v51 = vsel %vm430_vm0, 0.0, %v3770_v32  ;;  %v4070_v5 = vperm.slane %v6553_v27, %v4697_v21  ;;  %v3362_v13 = vld [vmem:[#allocation4 + $0x78] sm:$0xff] }
 0x3c5   : > { %v4072_v12 = vsel %vm430_vm0, %v4071_v31, %v3765_v58  ;;  %v3935_v7 = vperm.slane %v3931_v45, %v4697_v21  ;;  %v3912_v55 = vrot.slane %v6569_v38, 4  ;;  %v3929_v17 = vperm.slane %v3925_v14, %v4697_v21 }
 0x3c6   : > { %v4076_v3 = vperm.slane %v4072_v12, %v4697_v21  ;;  %v3905_v48 = vsel %vm430_vm0, %v3904_v34, %v3891_v20  ;;  %v3937_v40 = vsel %vm430_vm0, %v6411_v15, %v3918_v50  ;;  %v3458_v29 = vmul.f32 %v3441_v6, %v3362_v13 }
 0x3c7   : > { %v6587_v36 = vperm.slane %v3905_v48, %v4703_v35  ;;  %v3942_v60 = vrot.slane %v3935_v7, 4  ;;  %v6595_v53 = vsel %vm430_vm0, %v3770_v32, %v3759_v11  ;;  %v4082_v20 = vrot.slane %v6576_v51, 4 }
 0x3c8   : > { %v6599_v58 = vperm.slane %v3937_v40, %v4703_v35  ;;  %v3457_v31 = vmul.f32 %v3436_v56, %v3361_v41  ;;  %v6601_v14 = vrot.slane %v4076_v3, 4  ;;  %v3834_v50 = vrot.slane %v3458_v29, 4 }
 0x3c9   : > { %v3913_v54 = vsel %vm430_vm0, %v6587_v36, %v3912_v55  ;;  %v3943_v34 = vsel %vm430_vm0, %v3942_v60, %v3929_v17  ;;  %v3839_v32 = vperm.slane %v3458_v29, %v4697_v21  ;;  %v3910_v6 = vrot.slane %v6587_v36, 4 }
 0x3ca   : > { %v6607_v15 = vperm.slane %v3943_v34, %v4703_v35  ;;  %v3950_v11 = vrot.slane %v6599_v58, 4  ;;  %v3782_v45 = vrot.slane %v3457_v31, 4  ;;  %v3835_v12 = vsel %vm430_vm0, 0.0, %v3834_v50 }
 0x3cb   : > { %v3787_v7 = vperm.slane %v3457_v31, %v4697_v21  ;;  %v3967_v56 = vperm.slane %v6433_v62, %v4697_v21  ;;  %v3843_v48 = vperm.slane %v3835_v12, %v4697_v21  ;;  %v3844_v55 = vrot.slane %v3839_v32, 4 }
 0x3cc   : > { %v3951_v3 = vsel %vm430_vm0, %v6607_v15, %v3950_v11  ;;  %v3969_v17 = vsel %vm430_vm0, %v3968_v49, %v6420_v8  ;;  %v3847_v40 = vsel %vm430_vm0, %v3839_v32, %v3846_v42  ;;  %v3783_v60 = vsel %vm430_vm0, 0.0, %v3782_v45 }
 0x3cd   : > { %v4432_v13 = vpack.i.bf16 %v3951_v3, %v3913_v54  ;;  %v3792_v29 = vrot.slane %v3787_v7, 4  ;;  %v3845_v62 = vsel %vm430_vm0, %v3844_v55, %v6429_v57  ;;  %v3855_v41 = vperm.slane %v3847_v40, %v4703_v35 }
 0x3ce   : > { %v3856_v31 = vrot.slane %v3843_v48, 4  ;;  %v3859_v47 = vsel %vm430_vm0, %v3843_v48, %v3858_v25  ;;  %v3851_v8 = vperm.slane %v3845_v62, %v4703_v35  ;;  %v3791_v42 = vperm.slane %v3783_v60, %v4697_v21 }
 0x3cf   : > { %4433 = vrot.lane.b32.xlu2 %v4432_v13, %s4580_s27  ;;  %v3867_v49 = vperm.slane %v3859_v47, %v4703_v35  ;;  %v3793_v54 = vsel %vm430_vm0, %v3792_v29, %v6521_v44  ;;  %v3870_v34 = vrot.slane %v3855_v41, 4  ;;  %v3795_v25 = vsel %vm430_vm0, %v3787_v7, %v3794_v30 }
 0x3d0   : > { %v3857_v57 = vsel %vm430_vm0, %v3856_v31, %v6438_v9  ;;  %v3799_v50 = vperm.slane %v3793_v54, %v4703_v35  ;;  %v3868_v32 = vrot.slane %v3851_v8, 4  ;;  %v3803_v12 = vperm.slane %v3795_v25, %v4703_v35 }
 0x3d1   : > { %v6646_v11 = vperm.slane %v3857_v57, %v4703_v35  ;;  %v6648_v45 = vrot.slane %v3867_v49, 4  ;;  %v3871_v3 = vsel %vm430_vm0, 0.0, %v3870_v34  ;;  %v6653_v48 = vsel %vm430_vm0, %v3870_v34, %v3851_v8 }
 0x3d2   : > { %v3804_v9 = vrot.slane %v3791_v42, 4  ;;  %v3807_v44 = vsel %vm430_vm0, %v3791_v42, %v3806_v2  ;;  %v3948_v30 = vrot.slane %v6607_v15, 4  ;;  %v3869_v7 = vsel %vm430_vm0, 0.0, %v3868_v32 }
 0x3d3   : > { %v6662_v55 = vsel %vm430_vm0, 0.0, %v6648_v45  ;;  %v3975_v13 = vsel %vm430_vm0, %v6472_v63, %v3956_v23  ;;  %v3872_v40 = vrot.slane %v6646_v11, 4  ;;  %v4147_v60 = vrot.slane %v3871_v3, 4 }
 0x3d4   : > { %v3805_v2 = vsel %vm430_vm0, %v3804_v9, %v6531_v24  ;;  %v3815_v29 = vperm.slane %v3807_v44, %v4703_v35  ;;  %v4146_v62 = vperm.slane %v6653_v48, %v4697_v21  ;;  %v3816_v31 = vrot.slane %v3799_v50, 4 }
 0x3d5   : > { %v3811_v41 = vperm.slane %v3805_v2, %v4703_v35  ;;  %v3818_v47 = vrot.slane %v3803_v12, 4  ;;  %v4148_v4 = vsel %vm430_vm0, %v4147_v60, %v3869_v7  ;;  %v4158_v8 = vrot.slane %v6662_v55, 4 }
 0x3d6   : > { %v3822_v23 = vrot.slane %v3815_v29, 4  ;;  %v3973_v63 = vperm.slane %v3969_v17, %v4697_v21  ;;  %v4152_v49 = vperm.slane %v4148_v4, %v4697_v21  ;;  %v3817_v24 = vsel %vm430_vm0, 0.0, %v3816_v31 }
 0x3d7   : > { %v3819_v42 = vsel %vm430_vm0, 0.0, %v3818_v47  ;;  %v3820_v54 = vrot.slane %v3811_v41, 4  ;;  %v4104_v34 = vsel %vm430_vm0, %v3818_v47, %v3799_v50  ;;  %v3873_v12 = vsel %vm430_vm0, 0.0, %v3872_v40 }
 0x3d8   : > { %v3823_v57 = vsel %vm430_vm0, 0.0, %v3822_v23  ;;  %v4109_v25 = vrot.slane %v3819_v42, 4  ;;  %v3980_v32 = vrot.slane %v3973_v63, 4  ;;  %v4164_v3 = vrot.slane %v4152_v49, 4 }
 0x3d9   : > { %v3821_v9 = vsel %vm430_vm0, 0.0, %v3820_v54  ;;  %v6687_v17 = vperm.slane %v3975_v13, %v4703_v35  ;;  %v4108_v44 = vperm.slane %v4104_v34, %v4697_v21  ;;  %v4001_v50 = vsel %vm430_vm0, %v6464_v0, %v6461_v59 }
 0x3da   : > { %v4110_v7 = vsel %vm430_vm0, %v4109_v25, %v3817_v24  ;;  %v3981_v60 = vsel %vm430_vm0, %v3980_v32, %v3967_v56  ;;  %v4120_v29 = vrot.slane %v3823_v57, 4  ;;  %v4007_v13 = vsel %vm430_vm0, %v4006_v46, %v6494_v52 }
 0x3db   : > { %v4114_v2 = vperm.slane %v4110_v7, %v4697_v21  ;;  %v6697_v40 = vperm.slane %v3981_v60, %v4703_v35  ;;  %v4011_v31 = vperm.slane %v4007_v13, %v4697_v21  ;;  %v4013_v56 = vsel %vm430_vm0, %v6499_v61, %v3994_v18 }
 0x3dc   : > { %v4039_v59 = vsel %vm430_vm0, %v6497_v39, %v6486_v28  ;;  %v4045_v0 = vsel %vm430_vm0, %v4044_v22, %v6504_v26  ;;  %v3988_v52 = vrot.slane %v6687_v17, 4  ;;  %v4005_v46 = vperm.slane %v4001_v50, %v4697_v21 }
 0x3dd   : > { %v4126_v1 = vrot.slane %v4114_v2, 4  ;;  %v4017_v47 = vperm.slane %v4013_v56, %v4703_v35  ;;  %v3986_v43 = vrot.slane %v6697_v40, 4  ;;  %v4018_v4 = vrot.slane %v4011_v31, 4 }
 0x3de   : > { %v4049_v18 = vperm.slane %v4045_v0, %v4697_v21  ;;  %v4051_v28 = vsel %vm430_vm0, %v6536_v19, %v4032_v37  ;;  %v4043_v61 = vperm.slane %v4039_v59, %v4697_v21  ;;  %v4083_v10 = vsel %vm430_vm0, %v4082_v20, %v6566_v33 }
 0x3df   : > { %v4026_v39 = vrot.slane %v4017_v47, 4  ;;  %v4055_v26 = vperm.slane %v4051_v28, %v4703_v35  ;;  %v4019_v22 = vsel %vm430_vm0, %v4018_v4, %v4005_v46  ;;  %v4087_v49 = vperm.slane %v4083_v10, %v4697_v21 }
 0x3e0   : > { %v4056_v63 = vrot.slane %v4049_v18, 4  ;;  %v4089_v16 = vsel %vm430_vm0, %v6601_v14, %v4070_v5  ;;  %v4023_v37 = vperm.slane %v4019_v22, %v4703_v35  ;;  %v4081_v24 = vperm.slane %v6595_v53, %v4697_v21 }
 0x3e1   : > { %v4064_v19 = vrot.slane %v4055_v26, 4  ;;  %v4093_v51 = vperm.slane %v4089_v16, %v4703_v35  ;;  %v4094_v20 = vrot.slane %v4087_v49, 4  ;;  %v4115_v42 = vsel %vm430_vm0, %v3822_v23, %v3811_v41 }
 0x3e2   : > { %v4057_v33 = vsel %vm430_vm0, %v4056_v63, %v4043_v61  ;;  %v4121_v54 = vsel %vm430_vm0, %v4120_v29, %v3821_v9  ;;  %v3989_v27 = vsel %vm430_vm0, %v6697_v40, %v3988_v52  ;;  %v4027_v5 = vsel %vm430_vm0, %v4023_v37, %v4026_v39 }
 0x3e3   : > { %v4061_v14 = vperm.slane %v4057_v33, %v4703_v35  ;;  %v4102_v57 = vrot.slane %v4093_v51, 4  ;;  %v4437_v34 = vpack.i.bf16 %v4027_v5, %v3989_v27  ;;  %v4095_v53 = vsel %vm430_vm0, %v4094_v20, %v4081_v24 }
 0x3e4   : > { %v4125_v25 = vperm.slane %v4121_v54, %v4697_v21  ;;  %v4127_v32 = vsel %vm430_vm0, %v4126_v1, %v4108_v44  ;;  %v4024_v7 = vrot.slane %v4023_v37, 4  ;;  %v4099_v41 = vperm.slane %v4095_v53, %v4703_v35 }
 0x3e5   : > { %v4119_v23 = vperm.slane %v4115_v42, %v4697_v21  ;;  %v4131_v9 = vperm.slane %v4127_v32, %v4703_v35  ;;  %4438 = vrot.lane.b32.xlu1 %v4437_v34, %s4580_s27  ;;  %v4065_v60 = vsel %vm430_vm0, %v4061_v14, %v4064_v19  ;;  %v4159_v2 = vsel %vm430_vm0, %v4158_v8, %v3873_v12 }
 0x3e6   : > { %v4132_v50 = vrot.slane %v4125_v25, 4  ;;  %v4165_v44 = vsel %vm430_vm0, %v4164_v3, %v4146_v62  ;;  %v4100_v29 = vrot.slane %v4099_v41, 4  ;;  %v4103_v40 = vsel %vm430_vm0, %v4099_v41, %v4102_v57 }
 0x3e7   : > { %v4062_v13 = vrot.slane %v4061_v14, 4  ;;  %v4153_v31 = vsel %vm430_vm0, %v6648_v45, %v6646_v11  ;;  %v4442_v56 = vpack.i.bf16 %v4103_v40, %v4065_v60  ;;  %v4163_v55 = vperm.slane %v4159_v2, %v4697_v21 }
 0x3e8   : > { %v4133_v59 = vsel %vm430_vm0, %v4132_v50, %v4119_v23  ;;  %v4169_v8 = vperm.slane %v4165_v44, %v4703_v35  ;;  %v4140_v48 = vrot.slane %v4131_v9, 4  ;;  %v3911_v62 = vsel %vm430_vm0, %v3910_v6, %v6569_v38 }
 0x3e9   : > { %v4137_v12 = vperm.slane %v4133_v59, %v4703_v35  ;;  %v3949_v11 = vsel %vm430_vm0, %v3948_v30, %v6599_v58  ;;  %4443 = vrot.lane.b32.xlu0 %v4442_v56, %s4580_s27  ;;  %v4157_v45 = vperm.slane %v4153_v31, %v4697_v21  ;;  %v4170_v3 = vrot.slane %v4163_v55, 4 }
 0x3ea   : > { %v3987_v0 = vsel %vm430_vm0, %v3986_v43, %v6687_v17  ;;  %v4025_v1 = vsel %vm430_vm0, %v4024_v7, %v4017_v47  ;;  %v4178_v52 = vrot.slane %v4169_v8, 4  ;;  %v4063_v36 = vsel %vm430_vm0, %v4062_v13, %v4055_v26 }
 0x3eb   : > { %v4101_v38 = vsel %vm430_vm0, %v4100_v29, %v4093_v51  ;;  %v4171_v15 = vsel %vm430_vm0, %v4170_v3, %v4157_v45  ;;  %v4138_v6 = vrot.slane %v4137_v12, 4  ;;  %v4141_v58 = vsel %vm430_vm0, %v4137_v12, %v4140_v48 }
 0x3ec   : > { %v4175_v30 = vperm.slane %v4171_v15, %v4703_v35 }
 0x3ed   : > { %v4139_v17 = vsel %vm430_vm0, %v4138_v6, %v4131_v9 }
 0x3ee   : > { %v4179_v21 = vsel %vm430_vm0, %v4175_v30, %v4178_v52  ;;  %v4176_v46 = vrot.slane %v4175_v30, 4 }
 0x3ef   : > { %v4447_v4 = vpack.i.bf16 %v4179_v21, %v4141_v58 }
 0x3f0   : > { %v4177_v47 = vsel %vm430_vm0, %v4176_v46, %v4169_v8 }
 0x3f1   : > { %4448 = vrot.lane.b32.xlu2 %v4447_v4, %s4580_s27 }
 0x429   : > { %v4434_v43 = vpop.permute.xlu2 %4433 }
 0x42a   : > { %v4436_v18 = vunpack.i.h.bf16 %v4434_v43  ;;  %v4435_v28 = vunpack.i.l.bf16 %v4434_v43 }
 0x42c   : > { %v4212_v35 = vsel %vm327_vm1, %v3911_v62, %v4435_v28  ;;  %v4213_v39 = vsel %vm327_vm1, %v3949_v11, %v4436_v18 }
 0x42d   : > { %v4220_v61 = vpack.c.bf16 %v4212_v35, %v4212_v35  ;;  %v4221_v26 = vpack.c.bf16 %v4213_v39, %v4213_v39 }
 0x42f   : > { %4229 = vst.msk [vmem:[%s6799_s30] sm:$0xf] %vm4228_vm4, %v4220_v61 }
 0x430   : > { %4230 = vst.msk [vmem:[%s6799_s30 + $0x4] sm:$0xf] %vm4228_vm4, %v4221_v26 }
 0x44b   : > { %v4449_v10 = vpop.permute.xlu2 %4448 }
 0x44c   : > { %v4451_v22 = vunpack.i.h.bf16 %v4449_v10  ;;  %v4450_v63 = vunpack.i.l.bf16 %v4449_v10 }
 0x44e   : > { %v4218_v49 = vsel %vm327_vm1, %v4139_v17, %v4450_v63  ;;  %v4219_v16 = vsel %vm327_vm1, %v4177_v47, %v4451_v22 }
 0x44f   : > { %v4226_v37 = vpack.c.bf16 %v4218_v49, %v4218_v49  ;;  %v4227_v19 = vpack.c.bf16 %v4219_v16, %v4219_v16 }
 0x451   : > { %4235 = vst.msk [vmem:[%s6799_s30 + $0x18] sm:$0xf] %vm4228_vm4, %v4226_v37 }
 0x452   : > { %4236 = vst.msk [vmem:[%s6799_s30 + $0x1c] sm:$0xf] %vm4228_vm4, %v4227_v19 }
 0x457   : > { %v4439_v24 = vpop.permute.xlu1 %4438 }
 0x458   : > { %v4441_v51 = vunpack.i.h.bf16 %v4439_v24  ;;  %v4440_v33 = vunpack.i.l.bf16 %v4439_v24 }
 0x45a   : > { %v4214_v20 = vsel %vm327_vm1, %v3987_v0, %v4440_v33  ;;  %v4215_v42 = vsel %vm327_vm1, %v4025_v1, %v4441_v51 }
 0x45b   : > { %v4222_v54 = vpack.c.bf16 %v4214_v20, %v4214_v20  ;;  %v4223_v27 = vpack.c.bf16 %v4215_v42, %v4215_v42  ;;  %v4444_v5 = vpop.permute.xlu0 %4443 }
 0x45c   : > { %v4446_v14 = vunpack.i.h.bf16 %v4444_v5  ;;  %v4445_v57 = vunpack.i.l.bf16 %v4444_v5 }
 0x45d   : > { %4231 = vst.msk [vmem:[%s6799_s30 + $0x8] sm:$0xf] %vm4228_vm4, %v4222_v54 }
 0x45e   : > { %4232 = vst.msk [vmem:[%s6799_s30 + $0xc] sm:$0xf] %vm4228_vm4, %v4223_v27  ;;  %v4217_v34 = vsel %vm327_vm1, %v4101_v38, %v4446_v14  ;;  %v4216_v53 = vsel %vm327_vm1, %v4063_v36, %v4445_v57 }
 0x45f   : > { %v4225_v25 = vpack.c.bf16 %v4217_v34, %v4217_v34  ;;  %v4224_v32 = vpack.c.bf16 %v4216_v53, %v4216_v53 }
 0x461   : > { %4234 = vst.msk [vmem:[%s6799_s30 + $0x14] sm:$0xf] %vm4228_vm4, %v4225_v25 }
 0x462   : > { %4233 = vst.msk [vmem:[%s6799_s30 + $0x10] sm:$0xf] %vm4228_vm4, %v4224_v32 }
 0x463 PF: > { %s13_s14 = sadd.s32 1, %s4572_s14   ;;  %s6901_s12 = smov %s4568_s13 }
 0x464   : > { %p10_p5 = scmp.ge.s32.totalorder %s13_s14, 4   ;;  %s6902_s13 = smov %s6904_s15 }
 0x466   :  { %12 = sbr.rel (!%p10_p5) target bundleno = 2 (0x2), region = 76 }

</bundles_post_ra>
